<compile_context>
chip_gen: v7x
topology: tpu7x:2x2x1
jax: 0.10.0
libtpu: 0.0.40
codegen_flags: <defaults>
</compile_context>

<pallas_src>
import jax
import jax.numpy as jnp
from jax import lax
from jax.experimental import pallas as pl
from jax.experimental.pallas import tpu as pltpu

EPS = 1e-5


def _round_up(x, m):
    return (x + m - 1) // m * m


def _make_conv_stats_kernel(offsets, tile_rows):
    """Pass 1: conv as 27 shifted matmuls + per-tile masked sum / sumsq."""

    def kernel(x_ref, w_ref, mask_ref, y_ref, stats_ref):
        # x_ref    : (tile_rows + halo, Cin)  compute dtype (bf16/f32)
        # w_ref    : (27, Cin, Coutp)         compute dtype
        # mask_ref : (tile_rows, 1)           f32, 1.0 = valid output position
        # y_ref    : (tile_rows, Coutp)       f32 conv output (also accumulator)
        # stats_ref: (2, Coutp)               f32: row 0 = sum, row 1 = sumsq
        y_ref[...] = jnp.zeros_like(y_ref)
        for j, off in enumerate(offsets):            # static unrolled taps
            xs = x_ref[pl.ds(off, tile_rows), :]
            y_ref[...] += jnp.dot(xs, w_ref[j],
                                  preferred_element_type=jnp.float32)
        y = y_ref[...]
        ym = y * mask_ref[...]                       # exclude padded positions
        stats_ref[0:1, :] = jnp.sum(ym, axis=0, keepdims=True)
        stats_ref[1:2, :] = jnp.sum(ym * y, axis=0, keepdims=True)

    return kernel


def _bn_relu_kernel(y_ref, scale_ref, shift_ref, out_ref):
    # Folded BatchNorm affine + ReLU: 2 VPU ops per element, lane-dense.
    out_ref[...] = jnp.maximum(y_ref[...] * scale_ref[...] + shift_ref[...], 0.0)


def upblock3d_forward(x_ncdhw, conv_w_oidhw, gamma, beta, filter_size=3,
                      compute_dtype=jnp.bfloat16, target_tile_rows=4096):
    """x: [N, Cin, D, H, W]; conv_w: [Cout, Cin, k, k, k]; gamma/beta: [Cout]."""
    ks = filter_size
    N, Cin, D, H, W = x_ncdhw.shape
    Cout = conv_w_oidhw.shape[0]
    Do, Ho, Wo = D - ks + 1, H - ks + 1, W - ks + 1
    assert Do > 0 and Ho > 0 and Wo > 0

    Coutp = _round_up(Cout, 128)            # lane-dense output, full MXU columns
    HW = H * W
    halo = (ks - 1) * (HW + W + 1)          # max tap offset in flattened (d,h,w)

    # Depth-block tiling: each tile computes the conv at *all* H*W lateral
    # positions of `td` depth slices (h>=Ho / w>=Wo / d>=Do positions are
    # garbage, masked out of the BN stats and sliced away at the end).
    # TODO(synk): sub-depth-slice tiling for H*W so large that one slice
    # exceeds the VMEM row budget.
    td = max(1, min(D, target_tile_rows // max(HW, 1)))
    nb = -(-D // td)
    d_pad = nb * td
    tile_rows = td * HW
    x_rows = tile_rows + halo

    # ---- glue (layout only, no compute) ------------------------------------
    xl = jnp.transpose(x_ncdhw, (0, 2, 3, 4, 1))                 # (N,D,H,W,Cin)
    xl = jnp.pad(xl, ((0, 0), (0, d_pad - D), (0, 0), (0, 0), (0, 0)))
    x2 = xl.reshape(N, d_pad * HW, Cin)
    x2 = jnp.pad(x2, ((0, 0), (0, halo), (0, 0))).astype(compute_dtype)
    # Overlapping (halo'd) depth-block slabs -> rectangular BlockSpec tiles.
    x_tiles = jnp.stack([x2[:, b * tile_rows: b * tile_rows + x_rows, :]
                         for b in range(nb)], axis=1)            # (N,nb,x_rows,Cin)

    # Weights: (Cout, Cin, kd, kh, kw) -> (27, Cin, Coutp), tap-major, zero-pad.
    w = jnp.transpose(conv_w_oidhw, (2, 3, 4, 1, 0)).reshape(ks ** 3, Cin, Cout)
    w = jnp.pad(w, ((0, 0), (0, 0), (0, Coutp - Cout))).astype(compute_dtype)
    offsets = [kd * HW + kh * W + kw
               for kd in range(ks) for kh in range(ks) for kw in range(ks)]

    # Valid-output mask per depth block (independent of batch index).
    valid = ((jnp.arange(d_pad) < Do)[:, None, None]
             & (jnp.arange(H) < Ho)[None, :, None]
             & (jnp.arange(W) < Wo)[None, None, :])
    mask = valid.astype(jnp.float32).reshape(nb, tile_rows, 1)

    itemsize = jnp.dtype(compute_dtype).itemsize
    cparams = pltpu.CompilerParams(
        dimension_semantics=("parallel", "parallel"),
        vmem_limit_bytes=48 * 1024 * 1024)

    # ---- pass 1: conv + per-tile BN partial sums ---------------------------
    flops1 = 2 * N * nb * tile_rows * (ks ** 3) * Cin * Coutp
    bytes1 = (x_tiles.size * itemsize + w.size * itemsize + mask.size * 4
              + N * nb * tile_rows * Coutp * 4 + N * nb * 2 * Coutp * 4)
    y_full, stats = pl.pallas_call(
        _make_conv_stats_kernel(offsets, tile_rows),
        out_shape=(jax.ShapeDtypeStruct((N, nb, tile_rows, Coutp), jnp.float32),
                   jax.ShapeDtypeStruct((N, nb, 2, Coutp), jnp.float32)),
        grid=(N, nb),
        in_specs=[
            pl.BlockSpec((None, None, x_rows, Cin), lambda n, b: (n, b, 0, 0)),
            pl.BlockSpec((ks ** 3, Cin, Coutp), lambda n, b: (0, 0, 0)),
            pl.BlockSpec((None, tile_rows, 1), lambda n, b: (b, 0, 0)),
        ],
        out_specs=(
            pl.BlockSpec((None, None, tile_rows, Coutp), lambda n, b: (n, b, 0, 0)),
            pl.BlockSpec((None, None, 2, Coutp), lambda n, b: (n, b, 0, 0)),
        ),
        compiler_params=cparams,
        cost_estimate=pl.CostEstimate(flops=flops1, transcendentals=0,
                                      bytes_accessed=bytes1),
    )(x_tiles, w, mask)

    # ---- tiny cross-tile BN finalize (plain JAX, O(nb*Coutp)) --------------
    count = N * Do * Ho * Wo
    ch_sum = jnp.sum(stats[:, :, 0, :], axis=(0, 1))
    ch_sq = jnp.sum(stats[:, :, 1, :], axis=(0, 1))
    mean = ch_sum / count
    var = jnp.maximum(ch_sq / count - mean * mean, 0.0)   # biased (train-mode)
    inv = lax.rsqrt(var + EPS)
    gamma_p = jnp.pad(gamma.astype(jnp.float32), (0, Coutp - Cout))
    beta_p = jnp.pad(beta.astype(jnp.float32), (0, Coutp - Cout))
    scale = (gamma_p * inv).reshape(1, Coutp)
    shift = (beta_p - mean * gamma_p * inv).reshape(1, Coutp)

    # ---- pass 2: normalize + ReLU ------------------------------------------
    flops2 = 2 * y_full.size
    bytes2 = 2 * y_full.size * 4 + 4 * Coutp * 4
    out_full = pl.pallas_call(
        _bn_relu_kernel,
        out_shape=jax.ShapeDtypeStruct((N, nb, tile_rows, Coutp), jnp.float32),
        grid=(N, nb),
        in_specs=[
            pl.BlockSpec((None, None, tile_rows, Coutp), lambda n, b: (n, b, 0, 0)),
            pl.BlockSpec((1, Coutp), lambda n, b: (0, 0)),
            pl.BlockSpec((1, Coutp), lambda n, b: (0, 0)),
        ],
        out_specs=pl.BlockSpec((None, None, tile_rows, Coutp),
                               lambda n, b: (n, b, 0, 0)),
        compiler_params=cparams,
        cost_estimate=pl.CostEstimate(flops=flops2, transcendentals=0,
                                      bytes_accessed=bytes2),
    )(y_full, scale, shift)

    # ---- back to PyTorch NCDHW, drop padded / garbage positions ------------
    out = out_full.reshape(N, d_pad, H, W, Coutp)[:, :Do, :Ho, :Wo, :Cout]
    return jnp.transpose(out, (0, 4, 1, 2, 3))


def reference_forward(x_ncdhw, conv_w_oidhw, gamma, beta):
    """Pure-JAX reference of the PyTorch forward (train-mode BatchNorm)."""
    y = lax.conv_general_dilated(
        x_ncdhw.astype(jnp.float32), conv_w_oidhw.astype(jnp.float32),
        window_strides=(1, 1, 1), padding="VALID",
        dimension_numbers=("NCDHW", "OIDHW", "NCDHW"),
        precision=lax.Precision.HIGHEST)
    mean = jnp.mean(y, axis=(0, 2, 3, 4), keepdims=True)
    var = jnp.mean((y - mean) ** 2, axis=(0, 2, 3, 4), keepdims=True)
    yn = (y - mean) * lax.rsqrt(var + EPS)
    yn = yn * gamma.reshape(1, -1, 1, 1, 1) + beta.reshape(1, -1, 1, 1, 1)
    return jnp.maximum(yn, 0.0)


if __name__ == "__main__":
    # Small shapes consistent with the module: N=2, Cin=4, spatial 8^3, Cout=8.
    N, Cin, D, H, W = 2, 4, 8, 8, 8
    Cout, ks = 8, 3

    key = jax.random.PRNGKey(0)
    kx, kw, kg, kb = jax.random.split(key, 4)
    x = jax.random.normal(kx, (N, Cin, D, H, W), dtype=jnp.float32)
    conv_w = jax.random.normal(kw, (Cout, Cin, ks, ks, ks), dtype=jnp.float32) * 0.1
    gamma = jax.random.normal(kg, (Cout,), dtype=jnp.float32) * 0.5 + 1.0
    beta = jax.random.normal(kb, (Cout,), dtype=jnp.float32) * 0.1
    # NOTE: BatchNorm3d is evaluated in PyTorch's default training mode (batch
    # statistics); running_mean/running_var do not affect the forward output.
    # TODO(synk): the running-stats momentum buffer update is a training-time
    # side effect (not part of the returned tensor) and is not implemented.

    ref = reference_forward(x, conv_w, gamma, beta)

    # f32 compute path: tight numerical check of the kernel implementation.
    out_f32 = jax.block_until_ready(
        upblock3d_forward(x, conv_w, gamma, beta, filter_size=ks,
                          compute_dtype=jnp.float32))
    assert out_f32.shape == (N, Cout, D - ks + 1, H - ks + 1, W - ks + 1)
    assert jnp.allclose(out_f32, ref, atol=1e-3, rtol=1e-3)

    # bf16 MXU operands (f32 accumulation / BN statistics): the perf config.
    out_bf16 = jax.block_until_ready(
        upblock3d_forward(x, conv_w, gamma, beta, filter_size=ks,
                          compute_dtype=jnp.bfloat16))
    assert out_bf16.shape == ref.shape
    assert jnp.allclose(out_bf16, ref, atol=1e-1, rtol=1e-1)

    print("KERNEL_OK")
</pallas_src>

<mosaic_0001>
module attributes {stable_mosaic.version = 11 : i64} {
  func.func @kernel(%arg0: i32, %arg1: i32, %arg2: memref<1x1x658x4xf32, #tpu.memory_space<vmem>>, %arg3: memref<27x4x128xf32, #tpu.memory_space<vmem>>, %arg4: memref<1x512x1xf32, #tpu.memory_space<vmem>>, %arg5: memref<1x1x512x128xf32, #tpu.memory_space<vmem>>, %arg6: memref<1x1x2x128xf32, #tpu.memory_space<vmem>>) attributes {dimension_semantics = [#tpu.dimension_semantics<parallel>, #tpu.dimension_semantics<parallel>], iteration_bounds = array<i64: 2, 1>, scalar_prefetch = 0 : i64, scratch_operands = 0 : i64, tpu.core_type = #tpu.core_type<tc>, window_params = [{transform_indices = @transform_0, window_bounds = array<i64: 1, 1, 658, 4>}, {pipeline_mode = #tpu.pipeline_mode<synchronous>, transform_indices = @transform_1, window_bounds = array<i64: 27, 4, 128>}, {transform_indices = @transform_2, window_bounds = array<i64: 1, 512, 1>}, {transform_indices = @transform_3, window_bounds = array<i64: 1, 1, 512, 128>}, {transform_indices = @transform_4, window_bounds = array<i64: 1, 1, 2, 128>}]} {
    %cst = arith.constant 0.000000e+00 : f32
    %0 = vector.broadcast %cst : f32 to vector<512x128xf32>
    %c0 = arith.constant 0 : index
    %c0_0 = arith.constant 0 : index
    %c0_1 = arith.constant 0 : index
    %c0_2 = arith.constant 0 : index
    %1 = vector.load %arg5[%c0, %c0_0, %c0_1, %c0_2] : memref<1x1x512x128xf32, #tpu.memory_space<vmem>>, vector<1x1x512x128xf32>
    %2 = vector.shape_cast %1 : vector<1x1x512x128xf32> to vector<512x128xf32>
    %3 = vector.shape_cast %0 : vector<512x128xf32> to vector<1x1x512x128xf32>
    tpu.vector_store %arg5[%c0, %c0_0, %c0_1, %c0_2], %3 {strides = array<i32>} : memref<1x1x512x128xf32, #tpu.memory_space<vmem>>, vector<1x1x512x128xf32>,
    %c0_3 = arith.constant 0 : index
    %c0_4 = arith.constant 0 : index
    %c0_5 = arith.constant 0 : index
    %c0_6 = arith.constant 0 : index
    %4 = vector.load %arg2[%c0_3, %c0_4, %c0_5, %c0_6] : memref<1x1x658x4xf32, #tpu.memory_space<vmem>>, vector<1x1x512x4xf32>
    %5 = vector.shape_cast %4 : vector<1x1x512x4xf32> to vector<512x4xf32>
    %c0_7 = arith.constant 0 : index
    %c0_8 = arith.constant 0 : index
    %c0_9 = arith.constant 0 : index
    %c0_10 = arith.constant 0 : index
    %6 = vector.load %arg5[%c0_7, %c0_8, %c0_9, %c0_10] : memref<1x1x512x128xf32, #tpu.memory_space<vmem>>, vector<1x1x512x128xf32>
    %7 = vector.shape_cast %6 : vector<1x1x512x128xf32> to vector<512x128xf32>
    %c0_11 = arith.constant 0 : index
    %c0_12 = arith.constant 0 : index
    %c0_13 = arith.constant 0 : index
    %8 = vector.load %arg3[%c0_11, %c0_12, %c0_13] : memref<27x4x128xf32, #tpu.memory_space<vmem>>, vector<1x4x128xf32>
    %9 = vector.shape_cast %8 : vector<1x4x128xf32> to vector<4x128xf32>
    %cst_14 = arith.constant dense<0.000000e+00> : vector<512x128xf32>
    %10 = tpu.matmul %5, %9, %cst_14 {dimension_numbers = #tpu.dot_dimension_numbers<[1], [0], [0], [1], [0, 0, 1, 1], [], []>} : vector<512x4xf32>, vector<4x128xf32>, vector<512x128xf32> -> vector<512x128xf32>
    %11 = arith.addf %7, %10 : vector<512x128xf32>
    %c0_15 = arith.constant 0 : index
    %c0_16 = arith.constant 0 : index
    %c0_17 = arith.constant 0 : index
    %c0_18 = arith.constant 0 : index
    %12 = vector.load %arg5[%c0_15, %c0_16, %c0_17, %c0_18] : memref<1x1x512x128xf32, #tpu.memory_space<vmem>>, vector<1x1x512x128xf32>
    %13 = vector.shape_cast %12 : vector<1x1x512x128xf32> to vector<512x128xf32>
    %14 = vector.shape_cast %11 : vector<512x128xf32> to vector<1x1x512x128xf32>
    tpu.vector_store %arg5[%c0_15, %c0_16, %c0_17, %c0_18], %14 {strides = array<i32>} : memref<1x1x512x128xf32, #tpu.memory_space<vmem>>, vector<1x1x512x128xf32>,
    %c0_19 = arith.constant 0 : index
    %c0_20 = arith.constant 0 : index
    %c1 = arith.constant 1 : index
    %c0_21 = arith.constant 0 : index
    %15 = vector.load %arg2[%c0_19, %c0_20, %c1, %c0_21] : memref<1x1x658x4xf32, #tpu.memory_space<vmem>>, vector<1x1x512x4xf32>
    %16 = vector.shape_cast %15 : vector<1x1x512x4xf32> to vector<512x4xf32>
    %c0_22 = arith.constant 0 : index
    %c0_23 = arith.constant 0 : index
    %c0_24 = arith.constant 0 : index
    %c0_25 = arith.constant 0 : index
    %17 = vector.load %arg5[%c0_22, %c0_23, %c0_24, %c0_25] : memref<1x1x512x128xf32, #tpu.memory_space<vmem>>, vector<1x1x512x128xf32>
    %18 = vector.shape_cast %17 : vector<1x1x512x128xf32> to vector<512x128xf32>
    %c1_26 = arith.constant 1 : index
    %c0_27 = arith.constant 0 : index
    %c0_28 = arith.constant 0 : index
    %19 = vector.load %arg3[%c1_26, %c0_27, %c0_28] : memref<27x4x128xf32, #tpu.memory_space<vmem>>, vector<1x4x128xf32>
    %20 = vector.shape_cast %19 : vector<1x4x128xf32> to vector<4x128xf32>
    %cst_29 = arith.constant dense<0.000000e+00> : vector<512x128xf32>
    %21 = tpu.matmul %16, %20, %cst_29 {dimension_numbers = #tpu.dot_dimension_numbers<[1], [0], [0], [1], [0, 0, 1, 1], [], []>} : vector<512x4xf32>, vector<4x128xf32>, vector<512x128xf32> -> vector<512x128xf32>
    %22 = arith.addf %18, %21 : vector<512x128xf32>
    %c0_30 = arith.constant 0 : index
    %c0_31 = arith.constant 0 : index
    %c0_32 = arith.constant 0 : index
    %c0_33 = arith.constant 0 : index
    %23 = vector.load %arg5[%c0_30, %c0_31, %c0_32, %c0_33] : memref<1x1x512x128xf32, #tpu.memory_space<vmem>>, vector<1x1x512x128xf32>
    %24 = vector.shape_cast %23 : vector<1x1x512x128xf32> to vector<512x128xf32>
    %25 = vector.shape_cast %22 : vector<512x128xf32> to vector<1x1x512x128xf32>
    tpu.vector_store %arg5[%c0_30, %c0_31, %c0_32, %c0_33], %25 {strides = array<i32>} : memref<1x1x512x128xf32, #tpu.memory_space<vmem>>, vector<1x1x512x128xf32>,
    %c0_34 = arith.constant 0 : index
    %c0_35 = arith.constant 0 : index
    %c2 = arith.constant 2 : index
    %c0_36 = arith.constant 0 : index
    %26 = vector.load %arg2[%c0_34, %c0_35, %c2, %c0_36] : memref<1x1x658x4xf32, #tpu.memory_space<vmem>>, vector<1x1x512x4xf32>
    %27 = vector.shape_cast %26 : vector<1x1x512x4xf32> to vector<512x4xf32>
    %c0_37 = arith.constant 0 : index
    %c0_38 = arith.constant 0 : index
    %c0_39 = arith.constant 0 : index
    %c0_40 = arith.constant 0 : index
    %28 = vector.load %arg5[%c0_37, %c0_38, %c0_39, %c0_40] : memref<1x1x512x128xf32, #tpu.memory_space<vmem>>, vector<1x1x512x128xf32>
    %29 = vector.shape_cast %28 : vector<1x1x512x128xf32> to vector<512x128xf32>
    %c2_41 = arith.constant 2 : index
    %c0_42 = arith.constant 0 : index
    %c0_43 = arith.constant 0 : index
    %30 = vector.load %arg3[%c2_41, %c0_42, %c0_43] : memref<27x4x128xf32, #tpu.memory_space<vmem>>, vector<1x4x128xf32>
    %31 = vector.shape_cast %30 : vector<1x4x128xf32> to vector<4x128xf32>
    %cst_44 = arith.constant dense<0.000000e+00> : vector<512x128xf32>
    %32 = tpu.matmul %27, %31, %cst_44 {dimension_numbers = #tpu.dot_dimension_numbers<[1], [0], [0], [1], [0, 0, 1, 1], [], []>} : vector<512x4xf32>, vector<4x128xf32>, vector<512x128xf32> -> vector<512x128xf32>
    %33 = arith.addf %29, %32 : vector<512x128xf32>
    %c0_45 = arith.constant 0 : index
    %c0_46 = arith.constant 0 : index
    %c0_47 = arith.constant 0 : index
    %c0_48 = arith.constant 0 : index
    %34 = vector.load %arg5[%c0_45, %c0_46, %c0_47, %c0_48] : memref<1x1x512x128xf32, #tpu.memory_space<vmem>>, vector<1x1x512x128xf32>
    %35 = vector.shape_cast %34 : vector<1x1x512x128xf32> to vector<512x128xf32>
    %36 = vector.shape_cast %33 : vector<512x128xf32> to vector<1x1x512x128xf32>
    tpu.vector_store %arg5[%c0_45, %c0_46, %c0_47, %c0_48], %36 {strides = array<i32>} : memref<1x1x512x128xf32, #tpu.memory_space<vmem>>, vector<1x1x512x128xf32>,
    %c0_49 = arith.constant 0 : index
    %c0_50 = arith.constant 0 : index
    %c8 = arith.constant 8 : index
    %c0_51 = arith.constant 0 : index
    %37 = vector.load %arg2[%c0_49, %c0_50, %c8, %c0_51] : memref<1x1x658x4xf32, #tpu.memory_space<vmem>>, vector<1x1x512x4xf32>
    %38 = vector.shape_cast %37 : vector<1x1x512x4xf32> to vector<512x4xf32>
    %c0_52 = arith.constant 0 : index
    %c0_53 = arith.constant 0 : index
    %c0_54 = arith.constant 0 : index
    %c0_55 = arith.constant 0 : index
    %39 = vector.load %arg5[%c0_52, %c0_53, %c0_54, %c0_55] : memref<1x1x512x128xf32, #tpu.memory_space<vmem>>, vector<1x1x512x128xf32>
    %40 = vector.shape_cast %39 : vector<1x1x512x128xf32> to vector<512x128xf32>
    %c3 = arith.constant 3 : index
    %c0_56 = arith.constant 0 : index
    %c0_57 = arith.constant 0 : index
    %41 = vector.load %arg3[%c3, %c0_56, %c0_57] : memref<27x4x128xf32, #tpu.memory_space<vmem>>, vector<1x4x128xf32>
    %42 = vector.shape_cast %41 : vector<1x4x128xf32> to vector<4x128xf32>
    %cst_58 = arith.constant dense<0.000000e+00> : vector<512x128xf32>
    %43 = tpu.matmul %38, %42, %cst_58 {dimension_numbers = #tpu.dot_dimension_numbers<[1], [0], [0], [1], [0, 0, 1, 1], [], []>} : vector<512x4xf32>, vector<4x128xf32>, vector<512x128xf32> -> vector<512x128xf32>
    %44 = arith.addf %40, %43 : vector<512x128xf32>
    %c0_59 = arith.constant 0 : index
    %c0_60 = arith.constant 0 : index
    %c0_61 = arith.constant 0 : index
    %c0_62 = arith.constant 0 : index
    %45 = vector.load %arg5[%c0_59, %c0_60, %c0_61, %c0_62] : memref<1x1x512x128xf32, #tpu.memory_space<vmem>>, vector<1x1x512x128xf32>
    %46 = vector.shape_cast %45 : vector<1x1x512x128xf32> to vector<512x128xf32>
    %47 = vector.shape_cast %44 : vector<512x128xf32> to vector<1x1x512x128xf32>
    tpu.vector_store %arg5[%c0_59, %c0_60, %c0_61, %c0_62], %47 {strides = array<i32>} : memref<1x1x512x128xf32, #tpu.memory_space<vmem>>, vector<1x1x512x128xf32>,
    %c0_63 = arith.constant 0 : index
    %c0_64 = arith.constant 0 : index
    %c9 = arith.constant 9 : index
    %c0_65 = arith.constant 0 : index
    %48 = vector.load %arg2[%c0_63, %c0_64, %c9, %c0_65] : memref<1x1x658x4xf32, #tpu.memory_space<vmem>>, vector<1x1x512x4xf32>
    %49 = vector.shape_cast %48 : vector<1x1x512x4xf32> to vector<512x4xf32>
    %c0_66 = arith.constant 0 : index
    %c0_67 = arith.constant 0 : index
    %c0_68 = arith.constant 0 : index
    %c0_69 = arith.constant 0 : index
    %50 = vector.load %arg5[%c0_66, %c0_67, %c0_68, %c0_69] : memref<1x1x512x128xf32, #tpu.memory_space<vmem>>, vector<1x1x512x128xf32>
    %51 = vector.shape_cast %50 : vector<1x1x512x128xf32> to vector<512x128xf32>
    %c4 = arith.constant 4 : index
    %c0_70 = arith.constant 0 : index
    %c0_71 = arith.constant 0 : index
    %52 = vector.load %arg3[%c4, %c0_70, %c0_71] : memref<27x4x128xf32, #tpu.memory_space<vmem>>, vector<1x4x128xf32>
    %53 = vector.shape_cast %52 : vector<1x4x128xf32> to vector<4x128xf32>
    %cst_72 = arith.constant dense<0.000000e+00> : vector<512x128xf32>
    %54 = tpu.matmul %49, %53, %cst_72 {dimension_numbers = #tpu.dot_dimension_numbers<[1], [0], [0], [1], [0, 0, 1, 1], [], []>} : vector<512x4xf32>, vector<4x128xf32>, vector<512x128xf32> -> vector<512x128xf32>
    %55 = arith.addf %51, %54 : vector<512x128xf32>
    %c0_73 = arith.constant 0 : index
    %c0_74 = arith.constant 0 : index
    %c0_75 = arith.constant 0 : index
    %c0_76 = arith.constant 0 : index
    %56 = vector.load %arg5[%c0_73, %c0_74, %c0_75, %c0_76] : memref<1x1x512x128xf32, #tpu.memory_space<vmem>>, vector<1x1x512x128xf32>
    %57 = vector.shape_cast %56 : vector<1x1x512x128xf32> to vector<512x128xf32>
    %58 = vector.shape_cast %55 : vector<512x128xf32> to vector<1x1x512x128xf32>
    tpu.vector_store %arg5[%c0_73, %c0_74, %c0_75, %c0_76], %58 {strides = array<i32>} : memref<1x1x512x128xf32, #tpu.memory_space<vmem>>, vector<1x1x512x128xf32>,
    %c0_77 = arith.constant 0 : index
    %c0_78 = arith.constant 0 : index
    %c10 = arith.constant 10 : index
    %c0_79 = arith.constant 0 : index
    %59 = vector.load %arg2[%c0_77, %c0_78, %c10, %c0_79] : memref<1x1x658x4xf32, #tpu.memory_space<vmem>>, vector<1x1x512x4xf32>
    %60 = vector.shape_cast %59 : vector<1x1x512x4xf32> to vector<512x4xf32>
    %c0_80 = arith.constant 0 : index
    %c0_81 = arith.constant 0 : index
    %c0_82 = arith.constant 0 : index
    %c0_83 = arith.constant 0 : index
    %61 = vector.load %arg5[%c0_80, %c0_81, %c0_82, %c0_83] : memref<1x1x512x128xf32, #tpu.memory_space<vmem>>, vector<1x1x512x128xf32>
    %62 = vector.shape_cast %61 : vector<1x1x512x128xf32> to vector<512x128xf32>
    %c5 = arith.constant 5 : index
    %c0_84 = arith.constant 0 : index
    %c0_85 = arith.constant 0 : index
    %63 = vector.load %arg3[%c5, %c0_84, %c0_85] : memref<27x4x128xf32, #tpu.memory_space<vmem>>, vector<1x4x128xf32>
    %64 = vector.shape_cast %63 : vector<1x4x128xf32> to vector<4x128xf32>
    %cst_86 = arith.constant dense<0.000000e+00> : vector<512x128xf32>
    %65 = tpu.matmul %60, %64, %cst_86 {dimension_numbers = #tpu.dot_dimension_numbers<[1], [0], [0], [1], [0, 0, 1, 1], [], []>} : vector<512x4xf32>, vector<4x128xf32>, vector<512x128xf32> -> vector<512x128xf32>
    %66 = arith.addf %62, %65 : vector<512x128xf32>
    %c0_87 = arith.constant 0 : index
    %c0_88 = arith.constant 0 : index
    %c0_89 = arith.constant 0 : index
    %c0_90 = arith.constant 0 : index
    %67 = vector.load %arg5[%c0_87, %c0_88, %c0_89, %c0_90] : memref<1x1x512x128xf32, #tpu.memory_space<vmem>>, vector<1x1x512x128xf32>
    %68 = vector.shape_cast %67 : vector<1x1x512x128xf32> to vector<512x128xf32>
    %69 = vector.shape_cast %66 : vector<512x128xf32> to vector<1x1x512x128xf32>
    tpu.vector_store %arg5[%c0_87, %c0_88, %c0_89, %c0_90], %69 {strides = array<i32>} : memref<1x1x512x128xf32, #tpu.memory_space<vmem>>, vector<1x1x512x128xf32>,
    %c0_91 = arith.constant 0 : index
    %c0_92 = arith.constant 0 : index
    %c16 = arith.constant 16 : index
    %c0_93 = arith.constant 0 : index
    %70 = vector.load %arg2[%c0_91, %c0_92, %c16, %c0_93] : memref<1x1x658x4xf32, #tpu.memory_space<vmem>>, vector<1x1x512x4xf32>
    %71 = vector.shape_cast %70 : vector<1x1x512x4xf32> to vector<512x4xf32>
    %c0_94 = arith.constant 0 : index
    %c0_95 = arith.constant 0 : index
    %c0_96 = arith.constant 0 : index
    %c0_97 = arith.constant 0 : index
    %72 = vector.load %arg5[%c0_94, %c0_95, %c0_96, %c0_97] : memref<1x1x512x128xf32, #tpu.memory_space<vmem>>, vector<1x1x512x128xf32>
    %73 = vector.shape_cast %72 : vector<1x1x512x128xf32> to vector<512x128xf32>
    %c6 = arith.constant 6 : index
    %c0_98 = arith.constant 0 : index
    %c0_99 = arith.constant 0 : index
    %74 = vector.load %arg3[%c6, %c0_98, %c0_99] : memref<27x4x128xf32, #tpu.memory_space<vmem>>, vector<1x4x128xf32>
    %75 = vector.shape_cast %74 : vector<1x4x128xf32> to vector<4x128xf32>
    %cst_100 = arith.constant dense<0.000000e+00> : vector<512x128xf32>
    %76 = tpu.matmul %71, %75, %cst_100 {dimension_numbers = #tpu.dot_dimension_numbers<[1], [0], [0], [1], [0, 0, 1, 1], [], []>} : vector<512x4xf32>, vector<4x128xf32>, vector<512x128xf32> -> vector<512x128xf32>
    %77 = arith.addf %73, %76 : vector<512x128xf32>
    %c0_101 = arith.constant 0 : index
    %c0_102 = arith.constant 0 : index
    %c0_103 = arith.constant 0 : index
    %c0_104 = arith.constant 0 : index
    %78 = vector.load %arg5[%c0_101, %c0_102, %c0_103, %c0_104] : memref<1x1x512x128xf32, #tpu.memory_space<vmem>>, vector<1x1x512x128xf32>
    %79 = vector.shape_cast %78 : vector<1x1x512x128xf32> to vector<512x128xf32>
    %80 = vector.shape_cast %77 : vector<512x128xf32> to vector<1x1x512x128xf32>
    tpu.vector_store %arg5[%c0_101, %c0_102, %c0_103, %c0_104], %80 {strides = array<i32>} : memref<1x1x512x128xf32, #tpu.memory_space<vmem>>, vector<1x1x512x128xf32>,
    %c0_105 = arith.constant 0 : index
    %c0_106 = arith.constant 0 : index
    %c17 = arith.constant 17 : index
    %c0_107 = arith.constant 0 : index
    %81 = vector.load %arg2[%c0_105, %c0_106, %c17, %c0_107] : memref<1x1x658x4xf32, #tpu.memory_space<vmem>>, vector<1x1x512x4xf32>
    %82 = vector.shape_cast %81 : vector<1x1x512x4xf32> to vector<512x4xf32>
    %c0_108 = arith.constant 0 : index
    %c0_109 = arith.constant 0 : index
    %c0_110 = arith.constant 0 : index
    %c0_111 = arith.constant 0 : index
    %83 = vector.load %arg5[%c0_108, %c0_109, %c0_110, %c0_111] : memref<1x1x512x128xf32, #tpu.memory_space<vmem>>, vector<1x1x512x128xf32>
    %84 = vector.shape_cast %83 : vector<1x1x512x128xf32> to vector<512x128xf32>
    %c7 = arith.constant 7 : index
    %c0_112 = arith.constant 0 : index
    %c0_113 = arith.constant 0 : index
    %85 = vector.load %arg3[%c7, %c0_112, %c0_113] : memref<27x4x128xf32, #tpu.memory_space<vmem>>, vector<1x4x128xf32>
    %86 = vector.shape_cast %85 : vector<1x4x128xf32> to vector<4x128xf32>
    %cst_114 = arith.constant dense<0.000000e+00> : vector<512x128xf32>
    %87 = tpu.matmul %82, %86, %cst_114 {dimension_numbers = #tpu.dot_dimension_numbers<[1], [0], [0], [1], [0, 0, 1, 1], [], []>} : vector<512x4xf32>, vector<4x128xf32>, vector<512x128xf32> -> vector<512x128xf32>
    %88 = arith.addf %84, %87 : vector<512x128xf32>
    %c0_115 = arith.constant 0 : index
    %c0_116 = arith.constant 0 : index
    %c0_117 = arith.constant 0 : index
    %c0_118 = arith.constant 0 : index
    %89 = vector.load %arg5[%c0_115, %c0_116, %c0_117, %c0_118] : memref<1x1x512x128xf32, #tpu.memory_space<vmem>>, vector<1x1x512x128xf32>
    %90 = vector.shape_cast %89 : vector<1x1x512x128xf32> to vector<512x128xf32>
    %91 = vector.shape_cast %88 : vector<512x128xf32> to vector<1x1x512x128xf32>
    tpu.vector_store %arg5[%c0_115, %c0_116, %c0_117, %c0_118], %91 {strides = array<i32>} : memref<1x1x512x128xf32, #tpu.memory_space<vmem>>, vector<1x1x512x128xf32>,
    %c0_119 = arith.constant 0 : index
    %c0_120 = arith.constant 0 : index
    %c18 = arith.constant 18 : index
    %c0_121 = arith.constant 0 : index
    %92 = vector.load %arg2[%c0_119, %c0_120, %c18, %c0_121] : memref<1x1x658x4xf32, #tpu.memory_space<vmem>>, vector<1x1x512x4xf32>
    %93 = vector.shape_cast %92 : vector<1x1x512x4xf32> to vector<512x4xf32>
    %c0_122 = arith.constant 0 : index
    %c0_123 = arith.constant 0 : index
    %c0_124 = arith.constant 0 : index
    %c0_125 = arith.constant 0 : index
    %94 = vector.load %arg5[%c0_122, %c0_123, %c0_124, %c0_125] : memref<1x1x512x128xf32, #tpu.memory_space<vmem>>, vector<1x1x512x128xf32>
    %95 = vector.shape_cast %94 : vector<1x1x512x128xf32> to vector<512x128xf32>
    %c8_126 = arith.constant 8 : index
    %c0_127 = arith.constant 0 : index
    %c0_128 = arith.constant 0 : index
    %96 = vector.load %arg3[%c8_126, %c0_127, %c0_128] : memref<27x4x128xf32, #tpu.memory_space<vmem>>, vector<1x4x128xf32>
    %97 = vector.shape_cast %96 : vector<1x4x128xf32> to vector<4x128xf32>
    %cst_129 = arith.constant dense<0.000000e+00> : vector<512x128xf32>
    %98 = tpu.matmul %93, %97, %cst_129 {dimension_numbers = #tpu.dot_dimension_numbers<[1], [0], [0], [1], [0, 0, 1, 1], [], []>} : vector<512x4xf32>, vector<4x128xf32>, vector<512x128xf32> -> vector<512x128xf32>
    %99 = arith.addf %95, %98 : vector<512x128xf32>
    %c0_130 = arith.constant 0 : index
    %c0_131 = arith.constant 0 : index
    %c0_132 = arith.constant 0 : index
    %c0_133 = arith.constant 0 : index
    %100 = vector.load %arg5[%c0_130, %c0_131, %c0_132, %c0_133] : memref<1x1x512x128xf32, #tpu.memory_space<vmem>>, vector<1x1x512x128xf32>
    %101 = vector.shape_cast %100 : vector<1x1x512x128xf32> to vector<512x128xf32>
    %102 = vector.shape_cast %99 : vector<512x128xf32> to vector<1x1x512x128xf32>
    tpu.vector_store %arg5[%c0_130, %c0_131, %c0_132, %c0_133], %102 {strides = array<i32>} : memref<1x1x512x128xf32, #tpu.memory_space<vmem>>, vector<1x1x512x128xf32>,
    %c0_134 = arith.constant 0 : index
    %c0_135 = arith.constant 0 : index
    %c64 = arith.constant 64 : index
    %c0_136 = arith.constant 0 : index
    %103 = vector.load %arg2[%c0_134, %c0_135, %c64, %c0_136] : memref<1x1x658x4xf32, #tpu.memory_space<vmem>>, vector<1x1x512x4xf32>
    %104 = vector.shape_cast %103 : vector<1x1x512x4xf32> to vector<512x4xf32>
    %c0_137 = arith.constant 0 : index
    %c0_138 = arith.constant 0 : index
    %c0_139 = arith.constant 0 : index
    %c0_140 = arith.constant 0 : index
    %105 = vector.load %arg5[%c0_137, %c0_138, %c0_139, %c0_140] : memref<1x1x512x128xf32, #tpu.memory_space<vmem>>, vector<1x1x512x128xf32>
    %106 = vector.shape_cast %105 : vector<1x1x512x128xf32> to vector<512x128xf32>
    %c9_141 = arith.constant 9 : index
    %c0_142 = arith.constant 0 : index
    %c0_143 = arith.constant 0 : index
    %107 = vector.load %arg3[%c9_141, %c0_142, %c0_143] : memref<27x4x128xf32, #tpu.memory_space<vmem>>, vector<1x4x128xf32>
    %108 = vector.shape_cast %107 : vector<1x4x128xf32> to vector<4x128xf32>
    %cst_144 = arith.constant dense<0.000000e+00> : vector<512x128xf32>
    %109 = tpu.matmul %104, %108, %cst_144 {dimension_numbers = #tpu.dot_dimension_numbers<[1], [0], [0], [1], [0, 0, 1, 1], [], []>} : vector<512x4xf32>, vector<4x128xf32>, vector<512x128xf32> -> vector<512x128xf32>
    %110 = arith.addf %106, %109 : vector<512x128xf32>
    %c0_145 = arith.constant 0 : index
    %c0_146 = arith.constant 0 : index
    %c0_147 = arith.constant 0 : index
    %c0_148 = arith.constant 0 : index
    %111 = vector.load %arg5[%c0_145, %c0_146, %c0_147, %c0_148] : memref<1x1x512x128xf32, #tpu.memory_space<vmem>>, vector<1x1x512x128xf32>
    %112 = vector.shape_cast %111 : vector<1x1x512x128xf32> to vector<512x128xf32>
    %113 = vector.shape_cast %110 : vector<512x128xf32> to vector<1x1x512x128xf32>
    tpu.vector_store %arg5[%c0_145, %c0_146, %c0_147, %c0_148], %113 {strides = array<i32>} : memref<1x1x512x128xf32, #tpu.memory_space<vmem>>, vector<1x1x512x128xf32>,
    %c0_149 = arith.constant 0 : index
    %c0_150 = arith.constant 0 : index
    %c65 = arith.constant 65 : index
    %c0_151 = arith.constant 0 : index
    %114 = vector.load %arg2[%c0_149, %c0_150, %c65, %c0_151] : memref<1x1x658x4xf32, #tpu.memory_space<vmem>>, vector<1x1x512x4xf32>
    %115 = vector.shape_cast %114 : vector<1x1x512x4xf32> to vector<512x4xf32>
    %c0_152 = arith.constant 0 : index
    %c0_153 = arith.constant 0 : index
    %c0_154 = arith.constant 0 : index
    %c0_155 = arith.constant 0 : index
    %116 = vector.load %arg5[%c0_152, %c0_153, %c0_154, %c0_155] : memref<1x1x512x128xf32, #tpu.memory_space<vmem>>, vector<1x1x512x128xf32>
    %117 = vector.shape_cast %116 : vector<1x1x512x128xf32> to vector<512x128xf32>
    %c10_156 = arith.constant 10 : index
    %c0_157 = arith.constant 0 : index
    %c0_158 = arith.constant 0 : index
    %118 = vector.load %arg3[%c10_156, %c0_157, %c0_158] : memref<27x4x128xf32, #tpu.memory_space<vmem>>, vector<1x4x128xf32>
    %119 = vector.shape_cast %118 : vector<1x4x128xf32> to vector<4x128xf32>
    %cst_159 = arith.constant dense<0.000000e+00> : vector<512x128xf32>
    %120 = tpu.matmul %115, %119, %cst_159 {dimension_numbers = #tpu.dot_dimension_numbers<[1], [0], [0], [1], [0, 0, 1, 1], [], []>} : vector<512x4xf32>, vector<4x128xf32>, vector<512x128xf32> -> vector<512x128xf32>
    %121 = arith.addf %117, %120 : vector<512x128xf32>
    %c0_160 = arith.constant 0 : index
    %c0_161 = arith.constant 0 : index
    %c0_162 = arith.constant 0 : index
    %c0_163 = arith.constant 0 : index
    %122 = vector.load %arg5[%c0_160, %c0_161, %c0_162, %c0_163] : memref<1x1x512x128xf32, #tpu.memory_space<vmem>>, vector<1x1x512x128xf32>
    %123 = vector.shape_cast %122 : vector<1x1x512x128xf32> to vector<512x128xf32>
    %124 = vector.shape_cast %121 : vector<512x128xf32> to vector<1x1x512x128xf32>
    tpu.vector_store %arg5[%c0_160, %c0_161, %c0_162, %c0_163], %124 {strides = array<i32>} : memref<1x1x512x128xf32, #tpu.memory_space<vmem>>, vector<1x1x512x128xf32>,
    %c0_164 = arith.constant 0 : index
    %c0_165 = arith.constant 0 : index
    %c66 = arith.constant 66 : index
    %c0_166 = arith.constant 0 : index
    %125 = vector.load %arg2[%c0_164, %c0_165, %c66, %c0_166] : memref<1x1x658x4xf32, #tpu.memory_space<vmem>>, vector<1x1x512x4xf32>
    %126 = vector.shape_cast %125 : vector<1x1x512x4xf32> to vector<512x4xf32>
    %c0_167 = arith.constant 0 : index
    %c0_168 = arith.constant 0 : index
    %c0_169 = arith.constant 0 : index
    %c0_170 = arith.constant 0 : index
    %127 = vector.load %arg5[%c0_167, %c0_168, %c0_169, %c0_170] : memref<1x1x512x128xf32, #tpu.memory_space<vmem>>, vector<1x1x512x128xf32>
    %128 = vector.shape_cast %127 : vector<1x1x512x128xf32> to vector<512x128xf32>
    %c11 = arith.constant 11 : index
    %c0_171 = arith.constant 0 : index
    %c0_172 = arith.constant 0 : index
    %129 = vector.load %arg3[%c11, %c0_171, %c0_172] : memref<27x4x128xf32, #tpu.memory_space<vmem>>, vector<1x4x128xf32>
    %130 = vector.shape_cast %129 : vector<1x4x128xf32> to vector<4x128xf32>
    %cst_173 = arith.constant dense<0.000000e+00> : vector<512x128xf32>
    %131 = tpu.matmul %126, %130, %cst_173 {dimension_numbers = #tpu.dot_dimension_numbers<[1], [0], [0], [1], [0, 0, 1, 1], [], []>} : vector<512x4xf32>, vector<4x128xf32>, vector<512x128xf32> -> vector<512x128xf32>
    %132 = arith.addf %128, %131 : vector<512x128xf32>
    %c0_174 = arith.constant 0 : index
    %c0_175 = arith.constant 0 : index
    %c0_176 = arith.constant 0 : index
    %c0_177 = arith.constant 0 : index
    %133 = vector.load %arg5[%c0_174, %c0_175, %c0_176, %c0_177] : memref<1x1x512x128xf32, #tpu.memory_space<vmem>>, vector<1x1x512x128xf32>
    %134 = vector.shape_cast %133 : vector<1x1x512x128xf32> to vector<512x128xf32>
    %135 = vector.shape_cast %132 : vector<512x128xf32> to vector<1x1x512x128xf32>
    tpu.vector_store %arg5[%c0_174, %c0_175, %c0_176, %c0_177], %135 {strides = array<i32>} : memref<1x1x512x128xf32, #tpu.memory_space<vmem>>, vector<1x1x512x128xf32>,
    %c0_178 = arith.constant 0 : index
    %c0_179 = arith.constant 0 : index
    %c72 = arith.constant 72 : index
    %c0_180 = arith.constant 0 : index
    %136 = vector.load %arg2[%c0_178, %c0_179, %c72, %c0_180] : memref<1x1x658x4xf32, #tpu.memory_space<vmem>>, vector<1x1x512x4xf32>
    %137 = vector.shape_cast %136 : vector<1x1x512x4xf32> to vector<512x4xf32>
    %c0_181 = arith.constant 0 : index
    %c0_182 = arith.constant 0 : index
    %c0_183 = arith.constant 0 : index
    %c0_184 = arith.constant 0 : index
    %138 = vector.load %arg5[%c0_181, %c0_182, %c0_183, %c0_184] : memref<1x1x512x128xf32, #tpu.memory_space<vmem>>, vector<1x1x512x128xf32>
    %139 = vector.shape_cast %138 : vector<1x1x512x128xf32> to vector<512x128xf32>
    %c12 = arith.constant 12 : index
    %c0_185 = arith.constant 0 : index
    %c0_186 = arith.constant 0 : index
    %140 = vector.load %arg3[%c12, %c0_185, %c0_186] : memref<27x4x128xf32, #tpu.memory_space<vmem>>, vector<1x4x128xf32>
    %141 = vector.shape_cast %140 : vector<1x4x128xf32> to vector<4x128xf32>
    %cst_187 = arith.constant dense<0.000000e+00> : vector<512x128xf32>
    %142 = tpu.matmul %137, %141, %cst_187 {dimension_numbers = #tpu.dot_dimension_numbers<[1], [0], [0], [1], [0, 0, 1, 1], [], []>} : vector<512x4xf32>, vector<4x128xf32>, vector<512x128xf32> -> vector<512x128xf32>
    %143 = arith.addf %139, %142 : vector<512x128xf32>
    %c0_188 = arith.constant 0 : index
    %c0_189 = arith.constant 0 : index
    %c0_190 = arith.constant 0 : index
    %c0_191 = arith.constant 0 : index
    %144 = vector.load %arg5[%c0_188, %c0_189, %c0_190, %c0_191] : memref<1x1x512x128xf32, #tpu.memory_space<vmem>>, vector<1x1x512x128xf32>
    %145 = vector.shape_cast %144 : vector<1x1x512x128xf32> to vector<512x128xf32>
    %146 = vector.shape_cast %143 : vector<512x128xf32> to vector<1x1x512x128xf32>
    tpu.vector_store %arg5[%c0_188, %c0_189, %c0_190, %c0_191], %146 {strides = array<i32>} : memref<1x1x512x128xf32, #tpu.memory_space<vmem>>, vector<1x1x512x128xf32>,
    %c0_192 = arith.constant 0 : index
    %c0_193 = arith.constant 0 : index
    %c73 = arith.constant 73 : index
    %c0_194 = arith.constant 0 : index
    %147 = vector.load %arg2[%c0_192, %c0_193, %c73, %c0_194] : memref<1x1x658x4xf32, #tpu.memory_space<vmem>>, vector<1x1x512x4xf32>
    %148 = vector.shape_cast %147 : vector<1x1x512x4xf32> to vector<512x4xf32>
    %c0_195 = arith.constant 0 : index
    %c0_196 = arith.constant 0 : index
    %c0_197 = arith.constant 0 : index
    %c0_198 = arith.constant 0 : index
    %149 = vector.load %arg5[%c0_195, %c0_196, %c0_197, %c0_198] : memref<1x1x512x128xf32, #tpu.memory_space<vmem>>, vector<1x1x512x128xf32>
    %150 = vector.shape_cast %149 : vector<1x1x512x128xf32> to vector<512x128xf32>
    %c13 = arith.constant 13 : index
    %c0_199 = arith.constant 0 : index
    %c0_200 = arith.constant 0 : index
    %151 = vector.load %arg3[%c13, %c0_199, %c0_200] : memref<27x4x128xf32, #tpu.memory_space<vmem>>, vector<1x4x128xf32>
    %152 = vector.shape_cast %151 : vector<1x4x128xf32> to vector<4x128xf32>
    %cst_201 = arith.constant dense<0.000000e+00> : vector<512x128xf32>
    %153 = tpu.matmul %148, %152, %cst_201 {dimension_numbers = #tpu.dot_dimension_numbers<[1], [0], [0], [1], [0, 0, 1, 1], [], []>} : vector<512x4xf32>, vector<4x128xf32>, vector<512x128xf32> -> vector<512x128xf32>
    %154 = arith.addf %150, %153 : vector<512x128xf32>
    %c0_202 = arith.constant 0 : index
    %c0_203 = arith.constant 0 : index
    %c0_204 = arith.constant 0 : index
    %c0_205 = arith.constant 0 : index
    %155 = vector.load %arg5[%c0_202, %c0_203, %c0_204, %c0_205] : memref<1x1x512x128xf32, #tpu.memory_space<vmem>>, vector<1x1x512x128xf32>
    %156 = vector.shape_cast %155 : vector<1x1x512x128xf32> to vector<512x128xf32>
    %157 = vector.shape_cast %154 : vector<512x128xf32> to vector<1x1x512x128xf32>
    tpu.vector_store %arg5[%c0_202, %c0_203, %c0_204, %c0_205], %157 {strides = array<i32>} : memref<1x1x512x128xf32, #tpu.memory_space<vmem>>, vector<1x1x512x128xf32>,
    %c0_206 = arith.constant 0 : index
    %c0_207 = arith.constant 0 : index
    %c74 = arith.constant 74 : index
    %c0_208 = arith.constant 0 : index
    %158 = vector.load %arg2[%c0_206, %c0_207, %c74, %c0_208] : memref<1x1x658x4xf32, #tpu.memory_space<vmem>>, vector<1x1x512x4xf32>
    %159 = vector.shape_cast %158 : vector<1x1x512x4xf32> to vector<512x4xf32>
    %c0_209 = arith.constant 0 : index
    %c0_210 = arith.constant 0 : index
    %c0_211 = arith.constant 0 : index
    %c0_212 = arith.constant 0 : index
    %160 = vector.load %arg5[%c0_209, %c0_210, %c0_211, %c0_212] : memref<1x1x512x128xf32, #tpu.memory_space<vmem>>, vector<1x1x512x128xf32>
    %161 = vector.shape_cast %160 : vector<1x1x512x128xf32> to vector<512x128xf32>
    %c14 = arith.constant 14 : index
    %c0_213 = arith.constant 0 : index
    %c0_214 = arith.constant 0 : index
    %162 = vector.load %arg3[%c14, %c0_213, %c0_214] : memref<27x4x128xf32, #tpu.memory_space<vmem>>, vector<1x4x128xf32>
    %163 = vector.shape_cast %162 : vector<1x4x128xf32> to vector<4x128xf32>
    %cst_215 = arith.constant dense<0.000000e+00> : vector<512x128xf32>
    %164 = tpu.matmul %159, %163, %cst_215 {dimension_numbers = #tpu.dot_dimension_numbers<[1], [0], [0], [1], [0, 0, 1, 1], [], []>} : vector<512x4xf32>, vector<4x128xf32>, vector<512x128xf32> -> vector<512x128xf32>
    %165 = arith.addf %161, %164 : vector<512x128xf32>
    %c0_216 = arith.constant 0 : index
    %c0_217 = arith.constant 0 : index
    %c0_218 = arith.constant 0 : index
    %c0_219 = arith.constant 0 : index
    %166 = vector.load %arg5[%c0_216, %c0_217, %c0_218, %c0_219] : memref<1x1x512x128xf32, #tpu.memory_space<vmem>>, vector<1x1x512x128xf32>
    %167 = vector.shape_cast %166 : vector<1x1x512x128xf32> to vector<512x128xf32>
    %168 = vector.shape_cast %165 : vector<512x128xf32> to vector<1x1x512x128xf32>
    tpu.vector_store %arg5[%c0_216, %c0_217, %c0_218, %c0_219], %168 {strides = array<i32>} : memref<1x1x512x128xf32, #tpu.memory_space<vmem>>, vector<1x1x512x128xf32>,
    %c0_220 = arith.constant 0 : index
    %c0_221 = arith.constant 0 : index
    %c80 = arith.constant 80 : index
    %c0_222 = arith.constant 0 : index
    %169 = vector.load %arg2[%c0_220, %c0_221, %c80, %c0_222] : memref<1x1x658x4xf32, #tpu.memory_space<vmem>>, vector<1x1x512x4xf32>
    %170 = vector.shape_cast %169 : vector<1x1x512x4xf32> to vector<512x4xf32>
    %c0_223 = arith.constant 0 : index
    %c0_224 = arith.constant 0 : index
    %c0_225 = arith.constant 0 : index
    %c0_226 = arith.constant 0 : index
    %171 = vector.load %arg5[%c0_223, %c0_224, %c0_225, %c0_226] : memref<1x1x512x128xf32, #tpu.memory_space<vmem>>, vector<1x1x512x128xf32>
    %172 = vector.shape_cast %171 : vector<1x1x512x128xf32> to vector<512x128xf32>
    %c15 = arith.constant 15 : index
    %c0_227 = arith.constant 0 : index
    %c0_228 = arith.constant 0 : index
    %173 = vector.load %arg3[%c15, %c0_227, %c0_228] : memref<27x4x128xf32, #tpu.memory_space<vmem>>, vector<1x4x128xf32>
    %174 = vector.shape_cast %173 : vector<1x4x128xf32> to vector<4x128xf32>
    %cst_229 = arith.constant dense<0.000000e+00> : vector<512x128xf32>
    %175 = tpu.matmul %170, %174, %cst_229 {dimension_numbers = #tpu.dot_dimension_numbers<[1], [0], [0], [1], [0, 0, 1, 1], [], []>} : vector<512x4xf32>, vector<4x128xf32>, vector<512x128xf32> -> vector<512x128xf32>
    %176 = arith.addf %172, %175 : vector<512x128xf32>
    %c0_230 = arith.constant 0 : index
    %c0_231 = arith.constant 0 : index
    %c0_232 = arith.constant 0 : index
    %c0_233 = arith.constant 0 : index
    %177 = vector.load %arg5[%c0_230, %c0_231, %c0_232, %c0_233] : memref<1x1x512x128xf32, #tpu.memory_space<vmem>>, vector<1x1x512x128xf32>
    %178 = vector.shape_cast %177 : vector<1x1x512x128xf32> to vector<512x128xf32>
    %179 = vector.shape_cast %176 : vector<512x128xf32> to vector<1x1x512x128xf32>
    tpu.vector_store %arg5[%c0_230, %c0_231, %c0_232, %c0_233], %179 {strides = array<i32>} : memref<1x1x512x128xf32, #tpu.memory_space<vmem>>, vector<1x1x512x128xf32>,
    %c0_234 = arith.constant 0 : index
    %c0_235 = arith.constant 0 : index
    %c81 = arith.constant 81 : index
    %c0_236 = arith.constant 0 : index
    %180 = vector.load %arg2[%c0_234, %c0_235, %c81, %c0_236] : memref<1x1x658x4xf32, #tpu.memory_space<vmem>>, vector<1x1x512x4xf32>
    %181 = vector.shape_cast %180 : vector<1x1x512x4xf32> to vector<512x4xf32>
    %c0_237 = arith.constant 0 : index
    %c0_238 = arith.constant 0 : index
    %c0_239 = arith.constant 0 : index
    %c0_240 = arith.constant 0 : index
    %182 = vector.load %arg5[%c0_237, %c0_238, %c0_239, %c0_240] : memref<1x1x512x128xf32, #tpu.memory_space<vmem>>, vector<1x1x512x128xf32>
    %183 = vector.shape_cast %182 : vector<1x1x512x128xf32> to vector<512x128xf32>
    %c16_241 = arith.constant 16 : index
    %c0_242 = arith.constant 0 : index
    %c0_243 = arith.constant 0 : index
    %184 = vector.load %arg3[%c16_241, %c0_242, %c0_243] : memref<27x4x128xf32, #tpu.memory_space<vmem>>, vector<1x4x128xf32>
    %185 = vector.shape_cast %184 : vector<1x4x128xf32> to vector<4x128xf32>
    %cst_244 = arith.constant dense<0.000000e+00> : vector<512x128xf32>
    %186 = tpu.matmul %181, %185, %cst_244 {dimension_numbers = #tpu.dot_dimension_numbers<[1], [0], [0], [1], [0, 0, 1, 1], [], []>} : vector<512x4xf32>, vector<4x128xf32>, vector<512x128xf32> -> vector<512x128xf32>
    %187 = arith.addf %183, %186 : vector<512x128xf32>
    %c0_245 = arith.constant 0 : index
    %c0_246 = arith.constant 0 : index
    %c0_247 = arith.constant 0 : index
    %c0_248 = arith.constant 0 : index
    %188 = vector.load %arg5[%c0_245, %c0_246, %c0_247, %c0_248] : memref<1x1x512x128xf32, #tpu.memory_space<vmem>>, vector<1x1x512x128xf32>
    %189 = vector.shape_cast %188 : vector<1x1x512x128xf32> to vector<512x128xf32>
    %190 = vector.shape_cast %187 : vector<512x128xf32> to vector<1x1x512x128xf32>
    tpu.vector_store %arg5[%c0_245, %c0_246, %c0_247, %c0_248], %190 {strides = array<i32>} : memref<1x1x512x128xf32, #tpu.memory_space<vmem>>, vector<1x1x512x128xf32>,
    %c0_249 = arith.constant 0 : index
    %c0_250 = arith.constant 0 : index
    %c82 = arith.constant 82 : index
    %c0_251 = arith.constant 0 : index
    %191 = vector.load %arg2[%c0_249, %c0_250, %c82, %c0_251] : memref<1x1x658x4xf32, #tpu.memory_space<vmem>>, vector<1x1x512x4xf32>
    %192 = vector.shape_cast %191 : vector<1x1x512x4xf32> to vector<512x4xf32>
    %c0_252 = arith.constant 0 : index
    %c0_253 = arith.constant 0 : index
    %c0_254 = arith.constant 0 : index
    %c0_255 = arith.constant 0 : index
    %193 = vector.load %arg5[%c0_252, %c0_253, %c0_254, %c0_255] : memref<1x1x512x128xf32, #tpu.memory_space<vmem>>, vector<1x1x512x128xf32>
    %194 = vector.shape_cast %193 : vector<1x1x512x128xf32> to vector<512x128xf32>
    %c17_256 = arith.constant 17 : index
    %c0_257 = arith.constant 0 : index
    %c0_258 = arith.constant 0 : index
    %195 = vector.load %arg3[%c17_256, %c0_257, %c0_258] : memref<27x4x128xf32, #tpu.memory_space<vmem>>, vector<1x4x128xf32>
    %196 = vector.shape_cast %195 : vector<1x4x128xf32> to vector<4x128xf32>
    %cst_259 = arith.constant dense<0.000000e+00> : vector<512x128xf32>
    %197 = tpu.matmul %192, %196, %cst_259 {dimension_numbers = #tpu.dot_dimension_numbers<[1], [0], [0], [1], [0, 0, 1, 1], [], []>} : vector<512x4xf32>, vector<4x128xf32>, vector<512x128xf32> -> vector<512x128xf32>
    %198 = arith.addf %194, %197 : vector<512x128xf32>
    %c0_260 = arith.constant 0 : index
    %c0_261 = arith.constant 0 : index
    %c0_262 = arith.constant 0 : index
    %c0_263 = arith.constant 0 : index
    %199 = vector.load %arg5[%c0_260, %c0_261, %c0_262, %c0_263] : memref<1x1x512x128xf32, #tpu.memory_space<vmem>>, vector<1x1x512x128xf32>
    %200 = vector.shape_cast %199 : vector<1x1x512x128xf32> to vector<512x128xf32>
    %201 = vector.shape_cast %198 : vector<512x128xf32> to vector<1x1x512x128xf32>
    tpu.vector_store %arg5[%c0_260, %c0_261, %c0_262, %c0_263], %201 {strides = array<i32>} : memref<1x1x512x128xf32, #tpu.memory_space<vmem>>, vector<1x1x512x128xf32>,
    %c0_264 = arith.constant 0 : index
    %c0_265 = arith.constant 0 : index
    %c128 = arith.constant 128 : index
    %c0_266 = arith.constant 0 : index
    %202 = vector.load %arg2[%c0_264, %c0_265, %c128, %c0_266] : memref<1x1x658x4xf32, #tpu.memory_space<vmem>>, vector<1x1x512x4xf32>
    %203 = vector.shape_cast %202 : vector<1x1x512x4xf32> to vector<512x4xf32>
    %c0_267 = arith.constant 0 : index
    %c0_268 = arith.constant 0 : index
    %c0_269 = arith.constant 0 : index
    %c0_270 = arith.constant 0 : index
    %204 = vector.load %arg5[%c0_267, %c0_268, %c0_269, %c0_270] : memref<1x1x512x128xf32, #tpu.memory_space<vmem>>, vector<1x1x512x128xf32>
    %205 = vector.shape_cast %204 : vector<1x1x512x128xf32> to vector<512x128xf32>
    %c18_271 = arith.constant 18 : index
    %c0_272 = arith.constant 0 : index
    %c0_273 = arith.constant 0 : index
    %206 = vector.load %arg3[%c18_271, %c0_272, %c0_273] : memref<27x4x128xf32, #tpu.memory_space<vmem>>, vector<1x4x128xf32>
    %207 = vector.shape_cast %206 : vector<1x4x128xf32> to vector<4x128xf32>
    %cst_274 = arith.constant dense<0.000000e+00> : vector<512x128xf32>
    %208 = tpu.matmul %203, %207, %cst_274 {dimension_numbers = #tpu.dot_dimension_numbers<[1], [0], [0], [1], [0, 0, 1, 1], [], []>} : vector<512x4xf32>, vector<4x128xf32>, vector<512x128xf32> -> vector<512x128xf32>
    %209 = arith.addf %205, %208 : vector<512x128xf32>
    %c0_275 = arith.constant 0 : index
    %c0_276 = arith.constant 0 : index
    %c0_277 = arith.constant 0 : index
    %c0_278 = arith.constant 0 : index
    %210 = vector.load %arg5[%c0_275, %c0_276, %c0_277, %c0_278] : memref<1x1x512x128xf32, #tpu.memory_space<vmem>>, vector<1x1x512x128xf32>
    %211 = vector.shape_cast %210 : vector<1x1x512x128xf32> to vector<512x128xf32>
    %212 = vector.shape_cast %209 : vector<512x128xf32> to vector<1x1x512x128xf32>
    tpu.vector_store %arg5[%c0_275, %c0_276, %c0_277, %c0_278], %212 {strides = array<i32>} : memref<1x1x512x128xf32, #tpu.memory_space<vmem>>, vector<1x1x512x128xf32>,
    %c0_279 = arith.constant 0 : index
    %c0_280 = arith.constant 0 : index
    %c129 = arith.constant 129 : index
    %c0_281 = arith.constant 0 : index
    %213 = vector.load %arg2[%c0_279, %c0_280, %c129, %c0_281] : memref<1x1x658x4xf32, #tpu.memory_space<vmem>>, vector<1x1x512x4xf32>
    %214 = vector.shape_cast %213 : vector<1x1x512x4xf32> to vector<512x4xf32>
    %c0_282 = arith.constant 0 : index
    %c0_283 = arith.constant 0 : index
    %c0_284 = arith.constant 0 : index
    %c0_285 = arith.constant 0 : index
    %215 = vector.load %arg5[%c0_282, %c0_283, %c0_284, %c0_285] : memref<1x1x512x128xf32, #tpu.memory_space<vmem>>, vector<1x1x512x128xf32>
    %216 = vector.shape_cast %215 : vector<1x1x512x128xf32> to vector<512x128xf32>
    %c19 = arith.constant 19 : index
    %c0_286 = arith.constant 0 : index
    %c0_287 = arith.constant 0 : index
    %217 = vector.load %arg3[%c19, %c0_286, %c0_287] : memref<27x4x128xf32, #tpu.memory_space<vmem>>, vector<1x4x128xf32>
    %218 = vector.shape_cast %217 : vector<1x4x128xf32> to vector<4x128xf32>
    %cst_288 = arith.constant dense<0.000000e+00> : vector<512x128xf32>
    %219 = tpu.matmul %214, %218, %cst_288 {dimension_numbers = #tpu.dot_dimension_numbers<[1], [0], [0], [1], [0, 0, 1, 1], [], []>} : vector<512x4xf32>, vector<4x128xf32>, vector<512x128xf32> -> vector<512x128xf32>
    %220 = arith.addf %216, %219 : vector<512x128xf32>
    %c0_289 = arith.constant 0 : index
    %c0_290 = arith.constant 0 : index
    %c0_291 = arith.constant 0 : index
    %c0_292 = arith.constant 0 : index
    %221 = vector.load %arg5[%c0_289, %c0_290, %c0_291, %c0_292] : memref<1x1x512x128xf32, #tpu.memory_space<vmem>>, vector<1x1x512x128xf32>
    %222 = vector.shape_cast %221 : vector<1x1x512x128xf32> to vector<512x128xf32>
    %223 = vector.shape_cast %220 : vector<512x128xf32> to vector<1x1x512x128xf32>
    tpu.vector_store %arg5[%c0_289, %c0_290, %c0_291, %c0_292], %223 {strides = array<i32>} : memref<1x1x512x128xf32, #tpu.memory_space<vmem>>, vector<1x1x512x128xf32>,
    %c0_293 = arith.constant 0 : index
    %c0_294 = arith.constant 0 : index
    %c130 = arith.constant 130 : index
    %c0_295 = arith.constant 0 : index
    %224 = vector.load %arg2[%c0_293, %c0_294, %c130, %c0_295] : memref<1x1x658x4xf32, #tpu.memory_space<vmem>>, vector<1x1x512x4xf32>
    %225 = vector.shape_cast %224 : vector<1x1x512x4xf32> to vector<512x4xf32>
    %c0_296 = arith.constant 0 : index
    %c0_297 = arith.constant 0 : index
    %c0_298 = arith.constant 0 : index
    %c0_299 = arith.constant 0 : index
    %226 = vector.load %arg5[%c0_296, %c0_297, %c0_298, %c0_299] : memref<1x1x512x128xf32, #tpu.memory_space<vmem>>, vector<1x1x512x128xf32>
    %227 = vector.shape_cast %226 : vector<1x1x512x128xf32> to vector<512x128xf32>
    %c20 = arith.constant 20 : index
    %c0_300 = arith.constant 0 : index
    %c0_301 = arith.constant 0 : index
    %228 = vector.load %arg3[%c20, %c0_300, %c0_301] : memref<27x4x128xf32, #tpu.memory_space<vmem>>, vector<1x4x128xf32>
    %229 = vector.shape_cast %228 : vector<1x4x128xf32> to vector<4x128xf32>
    %cst_302 = arith.constant dense<0.000000e+00> : vector<512x128xf32>
    %230 = tpu.matmul %225, %229, %cst_302 {dimension_numbers = #tpu.dot_dimension_numbers<[1], [0], [0], [1], [0, 0, 1, 1], [], []>} : vector<512x4xf32>, vector<4x128xf32>, vector<512x128xf32> -> vector<512x128xf32>
    %231 = arith.addf %227, %230 : vector<512x128xf32>
    %c0_303 = arith.constant 0 : index
    %c0_304 = arith.constant 0 : index
    %c0_305 = arith.constant 0 : index
    %c0_306 = arith.constant 0 : index
    %232 = vector.load %arg5[%c0_303, %c0_304, %c0_305, %c0_306] : memref<1x1x512x128xf32, #tpu.memory_space<vmem>>, vector<1x1x512x128xf32>
    %233 = vector.shape_cast %232 : vector<1x1x512x128xf32> to vector<512x128xf32>
    %234 = vector.shape_cast %231 : vector<512x128xf32> to vector<1x1x512x128xf32>
    tpu.vector_store %arg5[%c0_303, %c0_304, %c0_305, %c0_306], %234 {strides = array<i32>} : memref<1x1x512x128xf32, #tpu.memory_space<vmem>>, vector<1x1x512x128xf32>,
    %c0_307 = arith.constant 0 : index
    %c0_308 = arith.constant 0 : index
    %c136 = arith.constant 136 : index
    %c0_309 = arith.constant 0 : index
    %235 = vector.load %arg2[%c0_307, %c0_308, %c136, %c0_309] : memref<1x1x658x4xf32, #tpu.memory_space<vmem>>, vector<1x1x512x4xf32>
    %236 = vector.shape_cast %235 : vector<1x1x512x4xf32> to vector<512x4xf32>
    %c0_310 = arith.constant 0 : index
    %c0_311 = arith.constant 0 : index
    %c0_312 = arith.constant 0 : index
    %c0_313 = arith.constant 0 : index
    %237 = vector.load %arg5[%c0_310, %c0_311, %c0_312, %c0_313] : memref<1x1x512x128xf32, #tpu.memory_space<vmem>>, vector<1x1x512x128xf32>
    %238 = vector.shape_cast %237 : vector<1x1x512x128xf32> to vector<512x128xf32>
    %c21 = arith.constant 21 : index
    %c0_314 = arith.constant 0 : index
    %c0_315 = arith.constant 0 : index
    %239 = vector.load %arg3[%c21, %c0_314, %c0_315] : memref<27x4x128xf32, #tpu.memory_space<vmem>>, vector<1x4x128xf32>
    %240 = vector.shape_cast %239 : vector<1x4x128xf32> to vector<4x128xf32>
    %cst_316 = arith.constant dense<0.000000e+00> : vector<512x128xf32>
    %241 = tpu.matmul %236, %240, %cst_316 {dimension_numbers = #tpu.dot_dimension_numbers<[1], [0], [0], [1], [0, 0, 1, 1], [], []>} : vector<512x4xf32>, vector<4x128xf32>, vector<512x128xf32> -> vector<512x128xf32>
    %242 = arith.addf %238, %241 : vector<512x128xf32>
    %c0_317 = arith.constant 0 : index
    %c0_318 = arith.constant 0 : index
    %c0_319 = arith.constant 0 : index
    %c0_320 = arith.constant 0 : index
    %243 = vector.load %arg5[%c0_317, %c0_318, %c0_319, %c0_320] : memref<1x1x512x128xf32, #tpu.memory_space<vmem>>, vector<1x1x512x128xf32>
    %244 = vector.shape_cast %243 : vector<1x1x512x128xf32> to vector<512x128xf32>
    %245 = vector.shape_cast %242 : vector<512x128xf32> to vector<1x1x512x128xf32>
    tpu.vector_store %arg5[%c0_317, %c0_318, %c0_319, %c0_320], %245 {strides = array<i32>} : memref<1x1x512x128xf32, #tpu.memory_space<vmem>>, vector<1x1x512x128xf32>,
    %c0_321 = arith.constant 0 : index
    %c0_322 = arith.constant 0 : index
    %c137 = arith.constant 137 : index
    %c0_323 = arith.constant 0 : index
    %246 = vector.load %arg2[%c0_321, %c0_322, %c137, %c0_323] : memref<1x1x658x4xf32, #tpu.memory_space<vmem>>, vector<1x1x512x4xf32>
    %247 = vector.shape_cast %246 : vector<1x1x512x4xf32> to vector<512x4xf32>
    %c0_324 = arith.constant 0 : index
    %c0_325 = arith.constant 0 : index
    %c0_326 = arith.constant 0 : index
    %c0_327 = arith.constant 0 : index
    %248 = vector.load %arg5[%c0_324, %c0_325, %c0_326, %c0_327] : memref<1x1x512x128xf32, #tpu.memory_space<vmem>>, vector<1x1x512x128xf32>
    %249 = vector.shape_cast %248 : vector<1x1x512x128xf32> to vector<512x128xf32>
    %c22 = arith.constant 22 : index
    %c0_328 = arith.constant 0 : index
    %c0_329 = arith.constant 0 : index
    %250 = vector.load %arg3[%c22, %c0_328, %c0_329] : memref<27x4x128xf32, #tpu.memory_space<vmem>>, vector<1x4x128xf32>
    %251 = vector.shape_cast %250 : vector<1x4x128xf32> to vector<4x128xf32>
    %cst_330 = arith.constant dense<0.000000e+00> : vector<512x128xf32>
    %252 = tpu.matmul %247, %251, %cst_330 {dimension_numbers = #tpu.dot_dimension_numbers<[1], [0], [0], [1], [0, 0, 1, 1], [], []>} : vector<512x4xf32>, vector<4x128xf32>, vector<512x128xf32> -> vector<512x128xf32>
    %253 = arith.addf %249, %252 : vector<512x128xf32>
    %c0_331 = arith.constant 0 : index
    %c0_332 = arith.constant 0 : index
    %c0_333 = arith.constant 0 : index
    %c0_334 = arith.constant 0 : index
    %254 = vector.load %arg5[%c0_331, %c0_332, %c0_333, %c0_334] : memref<1x1x512x128xf32, #tpu.memory_space<vmem>>, vector<1x1x512x128xf32>
    %255 = vector.shape_cast %254 : vector<1x1x512x128xf32> to vector<512x128xf32>
    %256 = vector.shape_cast %253 : vector<512x128xf32> to vector<1x1x512x128xf32>
    tpu.vector_store %arg5[%c0_331, %c0_332, %c0_333, %c0_334], %256 {strides = array<i32>} : memref<1x1x512x128xf32, #tpu.memory_space<vmem>>, vector<1x1x512x128xf32>,
    %c0_335 = arith.constant 0 : index
    %c0_336 = arith.constant 0 : index
    %c138 = arith.constant 138 : index
    %c0_337 = arith.constant 0 : index
    %257 = vector.load %arg2[%c0_335, %c0_336, %c138, %c0_337] : memref<1x1x658x4xf32, #tpu.memory_space<vmem>>, vector<1x1x512x4xf32>
    %258 = vector.shape_cast %257 : vector<1x1x512x4xf32> to vector<512x4xf32>
    %c0_338 = arith.constant 0 : index
    %c0_339 = arith.constant 0 : index
    %c0_340 = arith.constant 0 : index
    %c0_341 = arith.constant 0 : index
    %259 = vector.load %arg5[%c0_338, %c0_339, %c0_340, %c0_341] : memref<1x1x512x128xf32, #tpu.memory_space<vmem>>, vector<1x1x512x128xf32>
    %260 = vector.shape_cast %259 : vector<1x1x512x128xf32> to vector<512x128xf32>
    %c23 = arith.constant 23 : index
    %c0_342 = arith.constant 0 : index
    %c0_343 = arith.constant 0 : index
    %261 = vector.load %arg3[%c23, %c0_342, %c0_343] : memref<27x4x128xf32, #tpu.memory_space<vmem>>, vector<1x4x128xf32>
    %262 = vector.shape_cast %261 : vector<1x4x128xf32> to vector<4x128xf32>
    %cst_344 = arith.constant dense<0.000000e+00> : vector<512x128xf32>
    %263 = tpu.matmul %258, %262, %cst_344 {dimension_numbers = #tpu.dot_dimension_numbers<[1], [0], [0], [1], [0, 0, 1, 1], [], []>} : vector<512x4xf32>, vector<4x128xf32>, vector<512x128xf32> -> vector<512x128xf32>
    %264 = arith.addf %260, %263 : vector<512x128xf32>
    %c0_345 = arith.constant 0 : index
    %c0_346 = arith.constant 0 : index
    %c0_347 = arith.constant 0 : index
    %c0_348 = arith.constant 0 : index
    %265 = vector.load %arg5[%c0_345, %c0_346, %c0_347, %c0_348] : memref<1x1x512x128xf32, #tpu.memory_space<vmem>>, vector<1x1x512x128xf32>
    %266 = vector.shape_cast %265 : vector<1x1x512x128xf32> to vector<512x128xf32>
    %267 = vector.shape_cast %264 : vector<512x128xf32> to vector<1x1x512x128xf32>
    tpu.vector_store %arg5[%c0_345, %c0_346, %c0_347, %c0_348], %267 {strides = array<i32>} : memref<1x1x512x128xf32, #tpu.memory_space<vmem>>, vector<1x1x512x128xf32>,
    %c0_349 = arith.constant 0 : index
    %c0_350 = arith.constant 0 : index
    %c144 = arith.constant 144 : index
    %c0_351 = arith.constant 0 : index
    %268 = vector.load %arg2[%c0_349, %c0_350, %c144, %c0_351] : memref<1x1x658x4xf32, #tpu.memory_space<vmem>>, vector<1x1x512x4xf32>
    %269 = vector.shape_cast %268 : vector<1x1x512x4xf32> to vector<512x4xf32>
    %c0_352 = arith.constant 0 : index
    %c0_353 = arith.constant 0 : index
    %c0_354 = arith.constant 0 : index
    %c0_355 = arith.constant 0 : index
    %270 = vector.load %arg5[%c0_352, %c0_353, %c0_354, %c0_355] : memref<1x1x512x128xf32, #tpu.memory_space<vmem>>, vector<1x1x512x128xf32>
    %271 = vector.shape_cast %270 : vector<1x1x512x128xf32> to vector<512x128xf32>
    %c24 = arith.constant 24 : index
    %c0_356 = arith.constant 0 : index
    %c0_357 = arith.constant 0 : index
    %272 = vector.load %arg3[%c24, %c0_356, %c0_357] : memref<27x4x128xf32, #tpu.memory_space<vmem>>, vector<1x4x128xf32>
    %273 = vector.shape_cast %272 : vector<1x4x128xf32> to vector<4x128xf32>
    %cst_358 = arith.constant dense<0.000000e+00> : vector<512x128xf32>
    %274 = tpu.matmul %269, %273, %cst_358 {dimension_numbers = #tpu.dot_dimension_numbers<[1], [0], [0], [1], [0, 0, 1, 1], [], []>} : vector<512x4xf32>, vector<4x128xf32>, vector<512x128xf32> -> vector<512x128xf32>
    %275 = arith.addf %271, %274 : vector<512x128xf32>
    %c0_359 = arith.constant 0 : index
    %c0_360 = arith.constant 0 : index
    %c0_361 = arith.constant 0 : index
    %c0_362 = arith.constant 0 : index
    %276 = vector.load %arg5[%c0_359, %c0_360, %c0_361, %c0_362] : memref<1x1x512x128xf32, #tpu.memory_space<vmem>>, vector<1x1x512x128xf32>
    %277 = vector.shape_cast %276 : vector<1x1x512x128xf32> to vector<512x128xf32>
    %278 = vector.shape_cast %275 : vector<512x128xf32> to vector<1x1x512x128xf32>
    tpu.vector_store %arg5[%c0_359, %c0_360, %c0_361, %c0_362], %278 {strides = array<i32>} : memref<1x1x512x128xf32, #tpu.memory_space<vmem>>, vector<1x1x512x128xf32>,
    %c0_363 = arith.constant 0 : index
    %c0_364 = arith.constant 0 : index
    %c145 = arith.constant 145 : index
    %c0_365 = arith.constant 0 : index
    %279 = vector.load %arg2[%c0_363, %c0_364, %c145, %c0_365] : memref<1x1x658x4xf32, #tpu.memory_space<vmem>>, vector<1x1x512x4xf32>
    %280 = vector.shape_cast %279 : vector<1x1x512x4xf32> to vector<512x4xf32>
    %c0_366 = arith.constant 0 : index
    %c0_367 = arith.constant 0 : index
    %c0_368 = arith.constant 0 : index
    %c0_369 = arith.constant 0 : index
    %281 = vector.load %arg5[%c0_366, %c0_367, %c0_368, %c0_369] : memref<1x1x512x128xf32, #tpu.memory_space<vmem>>, vector<1x1x512x128xf32>
    %282 = vector.shape_cast %281 : vector<1x1x512x128xf32> to vector<512x128xf32>
    %c25 = arith.constant 25 : index
    %c0_370 = arith.constant 0 : index
    %c0_371 = arith.constant 0 : index
    %283 = vector.load %arg3[%c25, %c0_370, %c0_371] : memref<27x4x128xf32, #tpu.memory_space<vmem>>, vector<1x4x128xf32>
    %284 = vector.shape_cast %283 : vector<1x4x128xf32> to vector<4x128xf32>
    %cst_372 = arith.constant dense<0.000000e+00> : vector<512x128xf32>
    %285 = tpu.matmul %280, %284, %cst_372 {dimension_numbers = #tpu.dot_dimension_numbers<[1], [0], [0], [1], [0, 0, 1, 1], [], []>} : vector<512x4xf32>, vector<4x128xf32>, vector<512x128xf32> -> vector<512x128xf32>
    %286 = arith.addf %282, %285 : vector<512x128xf32>
    %c0_373 = arith.constant 0 : index
    %c0_374 = arith.constant 0 : index
    %c0_375 = arith.constant 0 : index
    %c0_376 = arith.constant 0 : index
    %287 = vector.load %arg5[%c0_373, %c0_374, %c0_375, %c0_376] : memref<1x1x512x128xf32, #tpu.memory_space<vmem>>, vector<1x1x512x128xf32>
    %288 = vector.shape_cast %287 : vector<1x1x512x128xf32> to vector<512x128xf32>
    %289 = vector.shape_cast %286 : vector<512x128xf32> to vector<1x1x512x128xf32>
    tpu.vector_store %arg5[%c0_373, %c0_374, %c0_375, %c0_376], %289 {strides = array<i32>} : memref<1x1x512x128xf32, #tpu.memory_space<vmem>>, vector<1x1x512x128xf32>,
    %c0_377 = arith.constant 0 : index
    %c0_378 = arith.constant 0 : index
    %c146 = arith.constant 146 : index
    %c0_379 = arith.constant 0 : index
    %290 = vector.load %arg2[%c0_377, %c0_378, %c146, %c0_379] : memref<1x1x658x4xf32, #tpu.memory_space<vmem>>, vector<1x1x512x4xf32>
    %291 = vector.shape_cast %290 : vector<1x1x512x4xf32> to vector<512x4xf32>
    %c0_380 = arith.constant 0 : index
    %c0_381 = arith.constant 0 : index
    %c0_382 = arith.constant 0 : index
    %c0_383 = arith.constant 0 : index
    %292 = vector.load %arg5[%c0_380, %c0_381, %c0_382, %c0_383] : memref<1x1x512x128xf32, #tpu.memory_space<vmem>>, vector<1x1x512x128xf32>
    %293 = vector.shape_cast %292 : vector<1x1x512x128xf32> to vector<512x128xf32>
    %c26 = arith.constant 26 : index
    %c0_384 = arith.constant 0 : index
    %c0_385 = arith.constant 0 : index
    %294 = vector.load %arg3[%c26, %c0_384, %c0_385] : memref<27x4x128xf32, #tpu.memory_space<vmem>>, vector<1x4x128xf32>
    %295 = vector.shape_cast %294 : vector<1x4x128xf32> to vector<4x128xf32>
    %cst_386 = arith.constant dense<0.000000e+00> : vector<512x128xf32>
    %296 = tpu.matmul %291, %295, %cst_386 {dimension_numbers = #tpu.dot_dimension_numbers<[1], [0], [0], [1], [0, 0, 1, 1], [], []>} : vector<512x4xf32>, vector<4x128xf32>, vector<512x128xf32> -> vector<512x128xf32>
    %297 = arith.addf %293, %296 : vector<512x128xf32>
    %c0_387 = arith.constant 0 : index
    %c0_388 = arith.constant 0 : index
    %c0_389 = arith.constant 0 : index
    %c0_390 = arith.constant 0 : index
    %298 = vector.load %arg5[%c0_387, %c0_388, %c0_389, %c0_390] : memref<1x1x512x128xf32, #tpu.memory_space<vmem>>, vector<1x1x512x128xf32>
    %299 = vector.shape_cast %298 : vector<1x1x512x128xf32> to vector<512x128xf32>
    %300 = vector.shape_cast %297 : vector<512x128xf32> to vector<1x1x512x128xf32>
    tpu.vector_store %arg5[%c0_387, %c0_388, %c0_389, %c0_390], %300 {strides = array<i32>} : memref<1x1x512x128xf32, #tpu.memory_space<vmem>>, vector<1x1x512x128xf32>,
    %c0_391 = arith.constant 0 : index
    %c0_392 = arith.constant 0 : index
    %c0_393 = arith.constant 0 : index
    %c0_394 = arith.constant 0 : index
    %301 = vector.load %arg5[%c0_391, %c0_392, %c0_393, %c0_394] : memref<1x1x512x128xf32, #tpu.memory_space<vmem>>, vector<1x1x512x128xf32>
    %302 = vector.shape_cast %301 : vector<1x1x512x128xf32> to vector<512x128xf32>
    %c0_395 = arith.constant 0 : index
    %c0_396 = arith.constant 0 : index
    %c0_397 = arith.constant 0 : index
    %303 = vector.load %arg4[%c0_395, %c0_396, %c0_397] : memref<1x512x1xf32, #tpu.memory_space<vmem>>, vector<1x512x1xf32>
    %304 = vector.shape_cast %303 : vector<1x512x1xf32> to vector<512x1xf32>
    %305 = vector.broadcast %304 : vector<512x1xf32> to vector<512x128xf32>
    %306 = arith.mulf %302, %305 : vector<512x128xf32>
    %cst_398 = arith.constant dense<0.000000e+00> : vector<128xf32>
    %307 = vector.multi_reduction <add>, %306, %cst_398 [0] : vector<512x128xf32> to vector<128xf32>
    %308 = vector.shape_cast %307 : vector<128xf32> to vector<1x128xf32>
    %c0_399 = arith.constant 0 : index
    %c0_400 = arith.constant 0 : index
    %c0_401 = arith.constant 0 : index
    %c0_402 = arith.constant 0 : index
    %309 = vector.load %arg6[%c0_399, %c0_400, %c0_401, %c0_402] : memref<1x1x2x128xf32, #tpu.memory_space<vmem>>, vector<1x1x1x128xf32>
    %310 = vector.shape_cast %309 : vector<1x1x1x128xf32> to vector<1x128xf32>
    %311 = vector.shape_cast %308 : vector<1x128xf32> to vector<1x1x1x128xf32>
    tpu.vector_store %arg6[%c0_399, %c0_400, %c0_401, %c0_402], %311 {strides = array<i32>} : memref<1x1x2x128xf32, #tpu.memory_space<vmem>>, vector<1x1x1x128xf32>,
    %312 = arith.mulf %306, %302 : vector<512x128xf32>
    %cst_403 = arith.constant dense<0.000000e+00> : vector<128xf32>
    %313 = vector.multi_reduction <add>, %312, %cst_403 [0] : vector<512x128xf32> to vector<128xf32>
    %314 = vector.shape_cast %313 : vector<128xf32> to vector<1x128xf32>
    %c0_404 = arith.constant 0 : index
    %c0_405 = arith.constant 0 : index
    %c1_406 = arith.constant 1 : index
    %c0_407 = arith.constant 0 : index
    %315 = vector.load %arg6[%c0_404, %c0_405, %c1_406, %c0_407] : memref<1x1x2x128xf32, #tpu.memory_space<vmem>>, vector<1x1x1x128xf32>
    %316 = vector.shape_cast %315 : vector<1x1x1x128xf32> to vector<1x128xf32>
    %317 = vector.shape_cast %314 : vector<1x128xf32> to vector<1x1x1x128xf32>
    tpu.vector_store %arg6[%c0_404, %c0_405, %c1_406, %c0_407], %317 {strides = array<i32>} : memref<1x1x2x128xf32, #tpu.memory_space<vmem>>, vector<1x1x1x128xf32>,
    return
  }
  func.func @transform_0(%arg0: i32, %arg1: i32) -> (i32, i32, i32, i32) {
    %c0_i32 = arith.constant 0 : i32
    %c0_i32_0 = arith.constant 0 : i32
    %c0_i32_1 = arith.constant 0 : i32
    return %arg0, %arg1, %c0_i32, %c0_i32_0 : i32, i32, i32, i32
  }
  func.func @transform_1(%arg0: i32, %arg1: i32) -> (i32, i32, i32) {
    %c0_i32 = arith.constant 0 : i32
    %c0_i32_0 = arith.constant 0 : i32
    %c0_i32_1 = arith.constant 0 : i32
    %c0_i32_2 = arith.constant 0 : i32
    return %c0_i32, %c0_i32_0, %c0_i32_1 : i32, i32, i32
  }
  func.func @transform_2(%arg0: i32, %arg1: i32) -> (i32, i32, i32) {
    %c0_i32 = arith.constant 0 : i32
    %c0_i32_0 = arith.constant 0 : i32
    %c0_i32_1 = arith.constant 0 : i32
    return %arg1, %c0_i32, %c0_i32_0 : i32, i32, i32
  }
  func.func @transform_3(%arg0: i32, %arg1: i32) -> (i32, i32, i32, i32) {
    %c0_i32 = arith.constant 0 : i32
    %c0_i32_0 = arith.constant 0 : i32
    %c0_i32_1 = arith.constant 0 : i32
    return %arg0, %arg1, %c0_i32, %c0_i32_0 : i32, i32, i32, i32
  }
  func.func @transform_4(%arg0: i32, %arg1: i32) -> (i32, i32, i32, i32) {
    %c0_i32 = arith.constant 0 : i32
    %c0_i32_0 = arith.constant 0 : i32
    %c0_i32_1 = arith.constant 0 : i32
    return %arg0, %arg1, %c0_i32, %c0_i32_0 : i32, i32, i32, i32
  }
}

</mosaic_0001>

<bundles_post_ra>
// kernel: tpu_custom_call.1
= control target key start
LH: loop header
LB: loop body
LE: loop exit
PB: predicated region body
PF: predicated region fallthrough
CT: control target
= control target key end

     0   :  { %10 = vsyncpa [#allocation3], 0  ;;  %s38542_s0 = inlined_call_operand.vmem [shape: f32[2,1,658,4], index: 0, kind: input, shape index: {}]   ;;  %s38543_s1 = inlined_call_operand.vmem [shape: f32[27,4,128], index: 1, kind: input, shape index: {}]   ;;  %s38544_s2 = inlined_call_operand.vmem [shape: f32[1,512,1], index: 2, kind: input, shape index: {}]   ;;  %s38545_s3 = inlined_call_operand.hbm [shape: f32[2,1,512,128], index: 3, kind: output, shape index: {0}]   ;;  %s38546_s4 = inlined_call_operand.hbm [shape: f32[2,1,2,128], index: 4, kind: output, shape index: {1}]  }
   0x1   :  { %12 = vsyncpa [#allocation3 + $0x1], 0 }
   0x2   :  { %13 = vsyncpa [#allocation5], 0 }
   0x3   :  { %15 = vsyncpa [#allocation5 + $0x1], 0  ;;  %s32224_s15 = smov 0   ;;  %s32226_s16 = smov 0  }
   0x4   :  { %s32228_s17 = smov 0   ;;  %s32230_s18 = smov 0  }
   0x5   :  { %s32232_s19 = smov 0   ;;  %s32234_s20 = smov 0  }
   0x6 LB: > { %s23829_s21 = sadd.s32 4294967295, %s32192_s20   ;;  %s23830_s22 = sadd.s32 4294967294, %s32192_s20   ;;  %s32192_s20 = sphi %s32234_s20, %s21_s20   ;;  %s32188_s19 = sphi %s32232_s19, %s39345_s19   ;;  %s32184_s18 = sphi %s32230_s18, %s39344_s18   ;;  %s32180_s17 = sphi %s32228_s17, %s39343_s17   ;;  %s32176_s16 = sphi %s32226_s16, %s39342_s16   ;;  %s32172_s15 = sphi %s32224_s15, %s39341_s15  }
   0x7   : > { %s33_s23 = sadd.s32 1, %s32188_s19  ;;  %s117_s24 = sadd.s32 1, %s32180_s17 }
   0x8   : > { %p35_p0 = scmp.ge.s32.totalorder %s33_s23, 2  ;;  %p127_p1 = scmp.ne.s32.totalorder %s32180_s17, %s32176_s16 }
   0x9   : > { %p128_p2 = scmp.eq.s32.totalorder %s23829_s21, 1  ;;  %p133_p3 = scmp.ne.s32.totalorder %s32176_s16, %s32172_s15 }
   0xa   : > { %s39347_s23 = smov (%p35_p0, %s33_s23), 0  ;;  %p134_p5 = scmp.eq.s32.totalorder %s23830_s22, 1 }
   0xb   : > { %p32264_p4 = por %p128_p2, %p127_p1  ;;  %s112_s26 = ssub.s32 %s32188_s19, %s39347_s23 }
   0xc   : > { %p23834_p6 = scmp.ge.s32.totalorder %s32192_s20, 1  ;;  %p115_p7 = scmp.eq.s32.totalorder %s112_s26, 0 }
   0xd   : > { %p32271_p8 = por %p134_p5, %p133_p3  ;;  %p203_p9 = scmp.lt.s32.totalorder %s32192_s20, 3 }
   0xe   : > { %s32277_s28 = scalar_select %p115_p7, %s32180_s17, %s117_s24  }
   0xf   : > { %p204_p10 = pnand %p23834_p6, %p203_p9 }
  0x11   : > { %207 = sbr.rel (%p204_p10) target bundleno = 2025 (0x7e9), region = 32 }
  0x18   : > { %v449_v0 = vld [vmem:[%s38543_s1] sm:$0xf]  ;;  %vm643_vm0 = vcmask 1043456   ;;  %v24695_v1 = vld [vmem:[%s38543_s1 + $0x34] sm:$0xf]  ;;  %p243_p11 = scmp.lt.s32.totalorder %s32184_s18, 1 }
  0x19   : > { %27382 = vmatprep.subr.msk.mxu1 %vm643_vm0, %v449_v0  ;;  %28656 = vmatprep.subr.msk.mxu0 %vm643_vm0, %v24695_v1  ;;  %v23903_v2 = vld [vmem:[%s38543_s1 + $0x4] sm:$0xf]  ;;  %v24761_v3 = vld [vmem:[%s38543_s1 + $0x38] sm:$0xf]  ;;  %vm450_vm1 = vcmask 31744   ;;  %s25626_s13 = sshll.u32 %s32184_s18, 13 }
  0x1a   : > { %27383 = vmatpush3.msk.msra.mxu1 %vm643_vm0, %v449_v0  ;;  %s244_s11 = scalar_select %p243_p11, %s32184_s18, 1  ;;  %28657 = vmatpush3.msk.msra.mxu0 %vm643_vm0, %v24695_v1  ;;  %v32325_v10 = vld [vmem:[%s38543_s1 + $0x3c] sm:$0xf]  ;;  %v32330_v11 = vld [vmem:[%s38543_s1 + $0x8] sm:$0xf] }
  0x1b   : > { %27480 = vmatprep.subr.msk.mxu1 %vm643_vm0, %v23903_v2  ;;  %28754 = vmatprep.subr.msk.mxu0 %vm643_vm0, %v24761_v3  ;;  %s38453_s26 = scalar_lea.hbm %s38545_s3, %s25626_s13  ;;  %s32195_s5 = smov [#allocation2]  }
  0x1c   : > { %s32014_s12 = smul.u32 664, %s244_s11  ;;  %s32086_s6 = sshll.u32 %s32195_s5, 4  ;;  %s32087_s6 = int_to_ptr.vmem [resolvable:$false] %s32086_s6 }
  0x1d   : > { %s32088_s7 = scalar_lea.vmem %s32087_s6, 16384 }
  0x1e   : > { %s32302_s21 = scalar_lea.vmem %s38542_s0, %s32014_s12 }
  0x1f   : > { %v321_v4 = vld [vmem:[%s32302_s21] sm:$0xff]  ;;  %v32306_v5 = vld [vmem:[%s32302_s21 + $0x49] sm:$0xff]  ;;  %v32313_v7 = vld [vmem:[%s32302_s21 + $0x51] sm:$0xff] }
  0x20   : > { %v322_v6 = vld [vmem:[%s32302_s21 + $0x8] sm:$0xff]  ;;  %27384 = vmatprep.mubr.msk.f32.mxu1 %vm450_vm1, %v321_v4  ;;  %28658 = vmatprep.mubr.msk.f32.mxu0 %vm450_vm1, %v32306_v5  ;;  %v323_v8 = vld [vmem:[%s32302_s21 + $0x10] sm:$0xff]  ;;  %v32317_v9 = vld [vmem:[%s32302_s21 + $0x59] sm:$0xff] }
  0x21   : > { %27385 = vmatmul.mubr.msk.f32.vlgmr.msra.gmra.mrb[0].mxu1 %vm450_vm1, %v322_v6  ;;  %28659 = vmatmul.mubr.msk.f32.vlgmr.msra.gmra.mrb[0].mxu0 %vm450_vm1, %v32313_v7  ;;  %v324_v12 = vld [vmem:[%s32302_s21 + $0x18] sm:$0xff]  ;;  %v32336_v13 = vld [vmem:[%s32302_s21 + $0x61] sm:$0xff]  ;;  %v32342_v15 = vld [vmem:[%s32302_s21 + $0x69] sm:$0xff] }
  0x22   : > { %27481 = vmatpush3.msk.msra.mxu1 %vm643_vm0, %v23903_v2  ;;  %27387 = vmatprep.mubr.msk.f32.mxu1 %vm450_vm1, %v323_v8  ;;  %v325_v14 = vld [vmem:[%s32302_s21 + $0x20] sm:$0xff]  ;;  %v326_v16 = vld [vmem:[%s32302_s21 + $0x28] sm:$0xff]  ;;  %v32357_v17 = vld [vmem:[%s32302_s21 + $0x71] sm:$0xff] }
  0x23   : > { %28661 = vmatprep.mubr.msk.f32.mxu0 %vm450_vm1, %v32317_v9  ;;  %28755 = vmatpush3.msk.msra.mxu0 %vm643_vm0, %v24761_v3  ;;  %v327_v18 = vld [vmem:[%s32302_s21 + $0x30] sm:$0xff]  ;;  %v32361_v19 = vld [vmem:[%s32302_s21 + $0x79] sm:$0xff]  ;;  %v32371_v21 = vld [vmem:[%s32302_s21 + $0x81] sm:$0xff] }
  0x24   : > { %28852 = vmatprep.subr.msk.mxu0 %vm643_vm0, %v32325_v10  ;;  %27578 = vmatprep.subr.msk.mxu1 %vm643_vm0, %v32330_v11  ;;  %v328_v20 = vld [vmem:[%s32302_s21 + $0x38] sm:$0xff]  ;;  %v329_v22 = vld [vmem:[%s32302_s21 + $0x40] sm:$0xff]  ;;  %v32375_v23 = vld [vmem:[%s32302_s21 + $0x89] sm:$0xff] }
  0x25   : > { %27388 = vmatmul.mubr.msk.f32.gmra.mrb[2].mxu1 %vm450_vm1, %v324_v12  ;;  %28662 = vmatmul.mubr.msk.f32.gmra.mrb[2].mxu0 %vm450_vm1, %v32336_v13  ;;  %v330_v24 = vld [vmem:[%s32302_s21 + $0x48] sm:$0xff]  ;;  %v32385_v25 = vld [vmem:[%s32302_s21 + $0x91] sm:$0xff]  ;;  %v32391_v27 = vld [vmem:[%s32302_s21 + $0x99] sm:$0xff] }
  0x26   : > { %27390 = vmatprep.mubr.msk.f32.mxu1 %vm450_vm1, %v325_v14  ;;  %28664 = vmatprep.mubr.msk.f32.mxu0 %vm450_vm1, %v32342_v15  ;;  %v32388_v26 = vld [vmem:[%s32302_s21 + $0x50] sm:$0xff]  ;;  %v32401_v28 = vld [vmem:[%s32302_s21 + $0x58] sm:$0xff]  ;;  %v32404_v29 = vld [vmem:[%s32302_s21 + $0xa1] sm:$0xff] }
  0x27   : > { %v32407_v30 = vld [vmem:[%s32302_s21 + $0x60] sm:$0xff]  ;;  %v32410_v31 = vld [vmem:[%s32302_s21 + $0xa9] sm:$0xff]  ;;  %v32424_v33 = vld [vmem:[%s32302_s21 + $0xb1] sm:$0xff] }
  0x28   : > { %v32421_v32 = vld [vmem:[%s32302_s21 + $0x68] sm:$0xff]  ;;  %v32427_v34 = vld [vmem:[%s32302_s21 + $0x70] sm:$0xff]  ;;  %v32430_v35 = vld [vmem:[%s32302_s21 + $0xb9] sm:$0xff] }
  0x29   : > { %27391 = vmatmul.mubr.msk.f32.gmra.mrb[4].mxu1 %vm450_vm1, %v326_v16  ;;  %28665 = vmatmul.mubr.msk.f32.gmra.mrb[4].mxu0 %vm450_vm1, %v32357_v17  ;;  %v32441_v36 = vld [vmem:[%s32302_s21 + $0x78] sm:$0xff]  ;;  %v32444_v37 = vld [vmem:[%s32302_s21 + $0xc1] sm:$0xff]  ;;  %v32450_v39 = vld [vmem:[%s32302_s21 + $0xc9] sm:$0xff] }
  0x2a   : > { %27393 = vmatprep.mubr.msk.f32.mxu1 %vm450_vm1, %v327_v18  ;;  %28667 = vmatprep.mubr.msk.f32.mxu0 %vm450_vm1, %v32361_v19  ;;  %v32447_v38 = vld [vmem:[%s32302_s21 + $0x80] sm:$0xff]  ;;  %v32461_v40 = vld [vmem:[%s32302_s21 + $0x88] sm:$0xff]  ;;  %v32464_v41 = vld [vmem:[%s32302_s21 + $0xd1] sm:$0xff] }
  0x2b   : > { %v32467_v42 = vld [vmem:[%s32302_s21 + $0x90] sm:$0xff]  ;;  %v32470_v43 = vld [vmem:[%s32302_s21 + $0xd9] sm:$0xff]  ;;  %v32484_v45 = vld [vmem:[%s32302_s21 + $0xe1] sm:$0xff] }
  0x2c   : > { %v32481_v44 = vld [vmem:[%s32302_s21 + $0x98] sm:$0xff]  ;;  %v32487_v46 = vld [vmem:[%s32302_s21 + $0xa0] sm:$0xff]  ;;  %v32490_v47 = vld [vmem:[%s32302_s21 + $0xe9] sm:$0xff] }
  0x2d   : > { %27394 = vmatmul.mubr.msk.f32.gmra.mrb[6].mxu1 %vm450_vm1, %v328_v20  ;;  %28668 = vmatmul.mubr.msk.f32.gmra.mrb[6].mxu0 %vm450_vm1, %v32371_v21  ;;  %v32501_v48 = vld [vmem:[%s32302_s21 + $0xa8] sm:$0xff]  ;;  %v32504_v49 = vld [vmem:[%s32302_s21 + $0xf1] sm:$0xff]  ;;  %v32510_v51 = vld [vmem:[%s32302_s21 + $0xf9] sm:$0xff] }
  0x2e   : > { %27396 = vmatprep.mubr.msk.f32.mxu1 %vm450_vm1, %v329_v22  ;;  %28670 = vmatprep.mubr.msk.f32.mxu0 %vm450_vm1, %v32375_v23  ;;  %v32507_v50 = vld [vmem:[%s32302_s21 + $0xb0] sm:$0xff]  ;;  %v32521_v52 = vld [vmem:[%s32302_s21 + $0xb8] sm:$0xff]  ;;  %v32524_v53 = vld [vmem:[%s32302_s21 + $0x101] sm:$0xff] }
  0x2f   : > { %v32527_v54 = vld [vmem:[%s32302_s21 + $0xc0] sm:$0xff]  ;;  %v32530_v55 = vld [vmem:[%s32302_s21 + $0x109] sm:$0xff]  ;;  %v32544_v57 = vld [vmem:[%s32302_s21 + $0x111] sm:$0xff] }
  0x30   : > { %v32541_v56 = vld [vmem:[%s32302_s21 + $0xc8] sm:$0xff]  ;;  %v32547_v58 = vld [vmem:[%s32302_s21 + $0xd0] sm:$0xff]  ;;  %v32550_v59 = vld [vmem:[%s32302_s21 + $0x119] sm:$0xff] }
  0x31   : > { %27397 = vmatmul.mubr.msk.f32.gmra.mrb[8].mxu1 %vm450_vm1, %v330_v24  ;;  %28671 = vmatmul.mubr.msk.f32.gmra.mrb[8].mxu0 %vm450_vm1, %v32385_v25  ;;  %v32561_v60 = vld [vmem:[%s32302_s21 + $0xd8] sm:$0xff]  ;;  %v32564_v61 = vld [vmem:[%s32302_s21 + $0x121] sm:$0xff]  ;;  %v32570_v63 = vld [vmem:[%s32302_s21 + $0x129] sm:$0xff] }
  0x32   : > { %27399 = vmatprep.mubr.msk.f32.mxu1 %vm450_vm1, %v32388_v26  ;;  %28673 = vmatprep.mubr.msk.f32.mxu0 %vm450_vm1, %v32391_v27  ;;  %v32567_v62 = vld [vmem:[%s32302_s21 + $0xe0] sm:$0xff]  ;;  %v32581_v0 = vld [vmem:[%s32302_s21 + $0xe8] sm:$0xff]  ;;  %v32584_v1 = vld [vmem:[%s32302_s21 + $0x131] sm:$0xff] }
  0x33   : > { %v32587_v2 = vld [vmem:[%s32302_s21 + $0xf0] sm:$0xff]  ;;  %v32590_v3 = vld [vmem:[%s32302_s21 + $0x139] sm:$0xff]  ;;  %v32604_v6 = vld [vmem:[%s32302_s21 + $0x141] sm:$0xff] }
  0x34   : > { %v32601_v4 = vld [vmem:[%s32302_s21 + $0xf8] sm:$0xff]  ;;  %v32607_v8 = vld [vmem:[%s32302_s21 + $0x100] sm:$0xff]  ;;  %v32610_v12 = vld [vmem:[%s32302_s21 + $0x4a] sm:$0xff] }
  0x35   : > { %27400 = vmatmul.mubr.msk.f32.gmra.mrb[10].mxu1 %vm450_vm1, %v32401_v28  ;;  %28674 = vmatmul.mubr.msk.f32.gmra.mrb[10].mxu0 %vm450_vm1, %v32404_v29  ;;  %38809 = vst [vmem:[#allocation8_spill] sm:$0xff] %v32607_v8  ;;  %38810 = vst [vmem:[#allocation9_spill] sm:$0xff] %v32610_v12  ;;  %v32621_v14 = vld [vmem:[%s32302_s21 + $0x108] sm:$0xff]  ;;  %v32624_v16 = vld [vmem:[%s32302_s21 + $0x52] sm:$0xff] }
  0x36   : > { %27402 = vmatprep.mubr.msk.f32.mxu1 %vm450_vm1, %v32407_v30  ;;  %28676 = vmatprep.mubr.msk.f32.mxu0 %vm450_vm1, %v32410_v31  ;;  %38811 = vst [vmem:[#allocation10_spill] sm:$0xff] %v32621_v14  ;;  %38812 = vst [vmem:[#allocation11_spill] sm:$0xff] %v32624_v16  ;;  %v32627_v18 = vld [vmem:[%s32302_s21 + $0x110] sm:$0xff]  ;;  %v32630_v20 = vld [vmem:[%s32302_s21 + $0x5a] sm:$0xff] }
  0x37   : > { %38813 = vst [vmem:[#allocation12_spill] sm:$0xff] %v32627_v18  ;;  %38814 = vst [vmem:[#allocation13_spill] sm:$0xff] %v32630_v20  ;;  %v32641_v22 = vld [vmem:[%s32302_s21 + $0x118] sm:$0xff]  ;;  %v32644_v24 = vld [vmem:[%s32302_s21 + $0x62] sm:$0xff] }
  0x38   : > { %38815 = vst [vmem:[#allocation14_spill] sm:$0xff] %v32641_v22  ;;  %38816 = vst [vmem:[#allocation15_spill] sm:$0xff] %v32644_v24 }
  0x39   : > { %27403 = vmatmul.mubr.msk.f32.gmra.mrb[12].mxu1 %vm450_vm1, %v32421_v32  ;;  %28677 = vmatmul.mubr.msk.f32.gmra.mrb[12].mxu0 %vm450_vm1, %v32424_v33 }
  0x3a   : > { %27405 = vmatprep.mubr.msk.f32.mxu1 %vm450_vm1, %v32427_v34  ;;  %28679 = vmatprep.mubr.msk.f32.mxu0 %vm450_vm1, %v32430_v35 }
  0x3d   : > { %27406 = vmatmul.mubr.msk.f32.gmra.mrb[14].mxu1 %vm450_vm1, %v32441_v36  ;;  %28680 = vmatmul.mubr.msk.f32.gmra.mrb[14].mxu0 %vm450_vm1, %v32444_v37 }
  0x3e   : > { %27408 = vmatprep.mubr.msk.f32.mxu1 %vm450_vm1, %v32447_v38  ;;  %28682 = vmatprep.mubr.msk.f32.mxu0 %vm450_vm1, %v32450_v39 }
  0x41   : > { %27409 = vmatmul.mubr.msk.f32.gmra.mrb[16].mxu1 %vm450_vm1, %v32461_v40  ;;  %28683 = vmatmul.mubr.msk.f32.gmra.mrb[16].mxu0 %vm450_vm1, %v32464_v41 }
  0x42   : > { %27411 = vmatprep.mubr.msk.f32.mxu1 %vm450_vm1, %v32467_v42  ;;  %28685 = vmatprep.mubr.msk.f32.mxu0 %vm450_vm1, %v32470_v43 }
  0x45   : > { %27412 = vmatmul.mubr.msk.f32.gmra.mrb[18].mxu1 %vm450_vm1, %v32481_v44  ;;  %28686 = vmatmul.mubr.msk.f32.gmra.mrb[18].mxu0 %vm450_vm1, %v32484_v45 }
  0x46   : > { %27414 = vmatprep.mubr.msk.f32.mxu1 %vm450_vm1, %v32487_v46  ;;  %28688 = vmatprep.mubr.msk.f32.mxu0 %vm450_vm1, %v32490_v47 }
  0x49   : > { %27415 = vmatmul.mubr.msk.f32.gmra.mrb[20].mxu1 %vm450_vm1, %v32501_v48  ;;  %28689 = vmatmul.mubr.msk.f32.gmra.mrb[20].mxu0 %vm450_vm1, %v32504_v49 }
  0x4a   : > { %27417 = vmatprep.mubr.msk.f32.mxu1 %vm450_vm1, %v32507_v50  ;;  %28691 = vmatprep.mubr.msk.f32.mxu0 %vm450_vm1, %v32510_v51 }
  0x4d   : > { %27418 = vmatmul.mubr.msk.f32.gmra.mrb[22].mxu1 %vm450_vm1, %v32521_v52  ;;  %28692 = vmatmul.mubr.msk.f32.gmra.mrb[22].mxu0 %vm450_vm1, %v32524_v53 }
  0x4e   : > { %27420 = vmatprep.mubr.msk.f32.mxu1 %vm450_vm1, %v32527_v54  ;;  %28694 = vmatprep.mubr.msk.f32.mxu0 %vm450_vm1, %v32530_v55 }
  0x51   : > { %27421 = vmatmul.mubr.msk.f32.gmra.mrb[24].mxu1 %vm450_vm1, %v32541_v56  ;;  %28695 = vmatmul.mubr.msk.f32.gmra.mrb[24].mxu0 %vm450_vm1, %v32544_v57 }
  0x52   : > { %27423 = vmatprep.mubr.msk.f32.mxu1 %vm450_vm1, %v32547_v58  ;;  %28697 = vmatprep.mubr.msk.f32.mxu0 %vm450_vm1, %v32550_v59 }
  0x55   : > { %27424 = vmatmul.mubr.msk.f32.gmra.mrb[26].mxu1 %vm450_vm1, %v32561_v60  ;;  %28698 = vmatmul.mubr.msk.f32.gmra.mrb[26].mxu0 %vm450_vm1, %v32564_v61 }
  0x56   : > { %27426 = vmatprep.mubr.msk.f32.mxu1 %vm450_vm1, %v32567_v62  ;;  %28700 = vmatprep.mubr.msk.f32.mxu0 %vm450_vm1, %v32570_v63 }
  0x59   : > { %27427 = vmatmul.mubr.msk.f32.gmra.mrb[28].mxu1 %vm450_vm1, %v32581_v0  ;;  %28701 = vmatmul.mubr.msk.f32.gmra.mrb[28].mxu0 %vm450_vm1, %v32584_v1 }
  0x5a   : > { %27429 = vmatprep.mubr.msk.f32.mxu1 %vm450_vm1, %v32587_v2  ;;  %28703 = vmatprep.mubr.msk.f32.mxu0 %vm450_vm1, %v32590_v3 }
  0x5d   : > { %27430 = vmatmul.mubr.msk.f32.gmra.mrb[30].mxu1 %vm450_vm1, %v32601_v4  ;;  %28704 = vmatmul.mubr.msk.f32.gmra.mrb[30].mxu0 %vm450_vm1, %v32604_v6 }
  0x5e   : > { %27432 = vmatprep.mubr.msk.f32.mxu1 %vm450_vm1, %v32607_v8  ;;  %28756 = vmatprep.mubr.msk.f32.mxu0 %vm450_vm1, %v32610_v12  ;;  %v32647_v12 = vld [vmem:[%s32302_s21 + $0x120] sm:$0xff]  ;;  %v32650_v8 = vld [vmem:[%s32302_s21 + $0x6a] sm:$0xff] }
  0x5f   : > { %38817 = vst [vmem:[#allocation16_spill] sm:$0xff] %v32647_v12  ;;  %38818 = vst [vmem:[#allocation17_spill] sm:$0xff] %v32650_v8 }
  0x61   : > { %27433 = vmatmul.mubr.msk.f32.gmra.mrb[32].mxu1 %vm450_vm1, %v32621_v14  ;;  %28757 = vmatmul.mubr.msk.f32.vlgmr.msra.gmra.mrb[0].mxu0 %vm450_vm1, %v32624_v16  ;;  %v32666_v16 = vld [vmem:[%s32302_s21 + $0x72] sm:$0xff]  ;;  %v32719_v14 = vld [vmem:[%s32302_s21 + $0x9a] sm:$0xff] }
  0x62   : > { %27435 = vmatprep.mubr.msk.f32.mxu1 %vm450_vm1, %v32627_v18  ;;  %28759 = vmatprep.mubr.msk.f32.mxu0 %vm450_vm1, %v32630_v20  ;;  %v32663_v20 = vld [vmem:[%s32302_s21 + $0x128] sm:$0xff]  ;;  %38820 = vst [vmem:[#allocation19_spill] sm:$0xff] %v32666_v16  ;;  %v32669_v18 = vld [vmem:[%s32302_s21 + $0x130] sm:$0xff]  ;;  %38830 = vst [vmem:[#allocation29_spill] sm:$0xff] %v32719_v14 }
  0x63   : > { %28853 = vmatpush3.msk.msra.mxu0 %vm643_vm0, %v32325_v10  ;;  %38819 = vst [vmem:[#allocation18_spill] sm:$0xff] %v32663_v20  ;;  %38821 = vst [vmem:[#allocation20_spill] sm:$0xff] %v32669_v18  ;;  %v32672_v10 = vld [vmem:[%s32302_s21 + $0x7a] sm:$0xff] }
  0x64   : > { %38822 = vst [vmem:[#allocation21_spill] sm:$0xff] %v32672_v10 }
  0x65   : > { %27436 = vmatmul.mubr.msk.f32.gmra.mrb[34].mxu1 %vm450_vm1, %v32641_v22  ;;  %28760 = vmatmul.mubr.msk.f32.gmra.mrb[2].mxu0 %vm450_vm1, %v32644_v24  ;;  %v32688_v24 = vld [vmem:[%s32302_s21 + $0x138] sm:$0xff]  ;;  %v32716_v22 = vld [vmem:[%s32302_s21 + $0x150] sm:$0xff] }
  0x66   : > { %27438 = vmatprep.mubr.msk.f32.mxu1 %vm450_vm1, %v32647_v12  ;;  %28762 = vmatprep.mubr.msk.f32.mxu0 %vm450_vm1, %v32650_v8  ;;  %v32681_v8 = vld [vmem:[%s38543_s1 + $0x40] sm:$0xf]  ;;  %38823 = vst [vmem:[#allocation22_spill] sm:$0xff] %v32688_v24  ;;  %38829 = vst [vmem:[#allocation28_spill] sm:$0xff] %v32716_v22 }
  0x67   : > { %v32691_v12 = vld [vmem:[%s32302_s21 + $0x82] sm:$0xff]  ;;  %28950 = vmatprep.subr.msk.mxu0 %vm643_vm0, %v32681_v8 }
  0x68   : > { %38824 = vst [vmem:[#allocation23_spill] sm:$0xff] %v32691_v12 }
  0x69   : > { %27439 = vmatmul.mubr.msk.f32.gmra.mrb[36].mxu1 %vm450_vm1, %v32663_v20  ;;  %28763 = vmatmul.mubr.msk.f32.gmra.mrb[4].mxu0 %vm450_vm1, %v32666_v16  ;;  %v32694_v20 = vld [vmem:[%s32302_s21 + $0x140] sm:$0xff]  ;;  %v32697_v16 = vld [vmem:[%s32302_s21 + $0x8a] sm:$0xff] }
  0x6a   : > { %27441 = vmatprep.mubr.msk.f32.mxu1 %vm450_vm1, %v32669_v18  ;;  %28765 = vmatprep.mubr.msk.f32.mxu0 %vm450_vm1, %v32672_v10  ;;  %38825 = vst [vmem:[#allocation24_spill] sm:$0xff] %v32694_v20  ;;  %38826 = vst [vmem:[#allocation25_spill] sm:$0xff] %v32697_v16  ;;  %v32710_v10 = vld [vmem:[%s32302_s21 + $0x148] sm:$0xff]  ;;  %v32713_v18 = vld [vmem:[%s32302_s21 + $0x92] sm:$0xff] }
  0x6b   : > { %38827 = vst [vmem:[#allocation26_spill] sm:$0xff] %v32710_v10  ;;  %38828 = vst [vmem:[#allocation27_spill] sm:$0xff] %v32713_v18 }
  0x6d   : > { %27442 = vmatmul.mubr.msk.f32.gmra.mrb[38].mxu1 %vm450_vm1, %v32688_v24  ;;  %28766 = vmatmul.mubr.msk.f32.gmra.mrb[6].mxu0 %vm450_vm1, %v32691_v12  ;;  %v32733_v12 = vld [vmem:[%s32302_s21 + $0xa2] sm:$0xff]  ;;  %v32739_v24 = vld [vmem:[%s32302_s21 + $0xaa] sm:$0xff] }
  0x6e   : > { %27444 = vmatprep.mubr.msk.f32.mxu1 %vm450_vm1, %v32694_v20  ;;  %28768 = vmatprep.mubr.msk.f32.mxu0 %vm450_vm1, %v32697_v16  ;;  %v32730_v16 = vld [vmem:[%s32302_s21 + $0x158] sm:$0xff]  ;;  %38832 = vst [vmem:[#allocation31_spill] sm:$0xff] %v32733_v12  ;;  %v32736_v20 = vld [vmem:[%s32302_s21 + $0x160] sm:$0xff]  ;;  %38834 = vst [vmem:[#allocation33_spill] sm:$0xff] %v32739_v24 }
  0x6f   : > { %38831 = vst [vmem:[#allocation30_spill] sm:$0xff] %v32730_v16  ;;  %38833 = vst [vmem:[#allocation32_spill] sm:$0xff] %v32736_v20 }
  0x71   : > { %27445 = vmatmul.mubr.msk.f32.gmra.mrb[40].mxu1 %vm450_vm1, %v32710_v10  ;;  %28769 = vmatmul.mubr.msk.f32.gmra.mrb[8].mxu0 %vm450_vm1, %v32713_v18  ;;  %v32753_v18 = vld [vmem:[%s32302_s21 + $0xb2] sm:$0xff]  ;;  %v32759_v10 = vld [vmem:[%s32302_s21 + $0xba] sm:$0xff] }
  0x72   : > { %27447 = vmatprep.mubr.msk.f32.mxu1 %vm450_vm1, %v32716_v22  ;;  %28771 = vmatprep.mubr.msk.f32.mxu0 %vm450_vm1, %v32719_v14  ;;  %v32750_v14 = vld [vmem:[%s32302_s21 + $0x168] sm:$0xff]  ;;  %38836 = vst [vmem:[#allocation35_spill] sm:$0xff] %v32753_v18  ;;  %v32756_v22 = vld [vmem:[%s32302_s21 + $0x170] sm:$0xff]  ;;  %38838 = vst [vmem:[#allocation37_spill] sm:$0xff] %v32759_v10 }
  0x73   : > { %38835 = vst [vmem:[#allocation34_spill] sm:$0xff] %v32750_v14  ;;  %38837 = vst [vmem:[#allocation36_spill] sm:$0xff] %v32756_v22 }
  0x75   : > { %27448 = vmatmul.mubr.msk.f32.gmra.mrb[42].mxu1 %vm450_vm1, %v32730_v16  ;;  %28772 = vmatmul.mubr.msk.f32.gmra.mrb[10].mxu0 %vm450_vm1, %v32733_v12  ;;  %v32773_v12 = vld [vmem:[%s32302_s21 + $0xc2] sm:$0xff]  ;;  %v32779_v16 = vld [vmem:[%s32302_s21 + $0xca] sm:$0xff] }
  0x76   : > { %27450 = vmatprep.mubr.msk.f32.mxu1 %vm450_vm1, %v32736_v20  ;;  %28774 = vmatprep.mubr.msk.f32.mxu0 %vm450_vm1, %v32739_v24  ;;  %v32770_v24 = vld [vmem:[%s32302_s21 + $0x178] sm:$0xff]  ;;  %38840 = vst [vmem:[#allocation39_spill] sm:$0xff] %v32773_v12  ;;  %v32776_v20 = vld [vmem:[%s32302_s21 + $0x180] sm:$0xff]  ;;  %38842 = vst [vmem:[#allocation41_spill] sm:$0xff] %v32779_v16 }
  0x77   : > { %38839 = vst [vmem:[#allocation38_spill] sm:$0xff] %v32770_v24  ;;  %38841 = vst [vmem:[#allocation40_spill] sm:$0xff] %v32776_v20 }
  0x79   : > { %27451 = vmatmul.mubr.msk.f32.gmra.mrb[44].mxu1 %vm450_vm1, %v32750_v14  ;;  %28775 = vmatmul.mubr.msk.f32.gmra.mrb[12].mxu0 %vm450_vm1, %v32753_v18  ;;  %v32793_v18 = vld [vmem:[%s32302_s21 + $0xd2] sm:$0xff]  ;;  %v32799_v14 = vld [vmem:[%s32302_s21 + $0xda] sm:$0xff] }
  0x7a   : > { %27453 = vmatprep.mubr.msk.f32.mxu1 %vm450_vm1, %v32756_v22  ;;  %28777 = vmatprep.mubr.msk.f32.mxu0 %vm450_vm1, %v32759_v10  ;;  %v32790_v10 = vld [vmem:[%s32302_s21 + $0x188] sm:$0xff]  ;;  %38844 = vst [vmem:[#allocation43_spill] sm:$0xff] %v32793_v18  ;;  %v32796_v22 = vld [vmem:[%s32302_s21 + $0x190] sm:$0xff]  ;;  %38846 = vst [vmem:[#allocation45_spill] sm:$0xff] %v32799_v14 }
  0x7b   : > { %38843 = vst [vmem:[#allocation42_spill] sm:$0xff] %v32790_v10  ;;  %38845 = vst [vmem:[#allocation44_spill] sm:$0xff] %v32796_v22 }
  0x7d   : > { %27454 = vmatmul.mubr.msk.f32.gmra.mrb[46].mxu1 %vm450_vm1, %v32770_v24  ;;  %28778 = vmatmul.mubr.msk.f32.gmra.mrb[14].mxu0 %vm450_vm1, %v32773_v12  ;;  %v32813_v12 = vld [vmem:[%s32302_s21 + $0xe2] sm:$0xff]  ;;  %v32819_v24 = vld [vmem:[%s32302_s21 + $0xea] sm:$0xff] }
  0x7e   : > { %27456 = vmatprep.mubr.msk.f32.mxu1 %vm450_vm1, %v32776_v20  ;;  %28780 = vmatprep.mubr.msk.f32.mxu0 %vm450_vm1, %v32779_v16  ;;  %v32810_v16 = vld [vmem:[%s32302_s21 + $0x198] sm:$0xff]  ;;  %38848 = vst [vmem:[#allocation47_spill] sm:$0xff] %v32813_v12  ;;  %v32816_v20 = vld [vmem:[%s32302_s21 + $0x1a0] sm:$0xff]  ;;  %38850 = vst [vmem:[#allocation49_spill] sm:$0xff] %v32819_v24 }
  0x7f   : > { %38847 = vst [vmem:[#allocation46_spill] sm:$0xff] %v32810_v16  ;;  %38849 = vst [vmem:[#allocation48_spill] sm:$0xff] %v32816_v20 }
  0x81   : > { %27457 = vmatmul.mubr.msk.f32.gmra.mrb[48].mxu1 %vm450_vm1, %v32790_v10  ;;  %28781 = vmatmul.mubr.msk.f32.gmra.mrb[16].mxu0 %vm450_vm1, %v32793_v18  ;;  %v32833_v18 = vld [vmem:[%s32302_s21 + $0xf2] sm:$0xff]  ;;  %v32839_v10 = vld [vmem:[%s32302_s21 + $0xfa] sm:$0xff] }
  0x82   : > { %27459 = vmatprep.mubr.msk.f32.mxu1 %vm450_vm1, %v32796_v22  ;;  %28783 = vmatprep.mubr.msk.f32.mxu0 %vm450_vm1, %v32799_v14  ;;  %v32830_v14 = vld [vmem:[%s32302_s21 + $0x1a8] sm:$0xff]  ;;  %38852 = vst [vmem:[#allocation51_spill] sm:$0xff] %v32833_v18  ;;  %v32836_v22 = vld [vmem:[%s32302_s21 + $0x1b0] sm:$0xff]  ;;  %38854 = vst [vmem:[#allocation53_spill] sm:$0xff] %v32839_v10 }
  0x83   : > { %38851 = vst [vmem:[#allocation50_spill] sm:$0xff] %v32830_v14  ;;  %38853 = vst [vmem:[#allocation52_spill] sm:$0xff] %v32836_v22 }
  0x85   : > { %27460 = vmatmul.mubr.msk.f32.gmra.mrb[50].mxu1 %vm450_vm1, %v32810_v16  ;;  %28784 = vmatmul.mubr.msk.f32.gmra.mrb[18].mxu0 %vm450_vm1, %v32813_v12  ;;  %v32853_v12 = vld [vmem:[%s32302_s21 + $0x102] sm:$0xff]  ;;  %v32859_v16 = vld [vmem:[%s32302_s21 + $0x10a] sm:$0xff] }
  0x86   : > { %27462 = vmatprep.mubr.msk.f32.mxu1 %vm450_vm1, %v32816_v20  ;;  %28786 = vmatprep.mubr.msk.f32.mxu0 %vm450_vm1, %v32819_v24  ;;  %v32850_v24 = vld [vmem:[%s32302_s21 + $0x1b8] sm:$0xff]  ;;  %38856 = vst [vmem:[#allocation55_spill] sm:$0xff] %v32853_v12  ;;  %v32856_v20 = vld [vmem:[%s32302_s21 + $0x1c0] sm:$0xff]  ;;  %38858 = vst [vmem:[#allocation57_spill] sm:$0xff] %v32859_v16 }
  0x87   : > { %38855 = vst [vmem:[#allocation54_spill] sm:$0xff] %v32850_v24  ;;  %38857 = vst [vmem:[#allocation56_spill] sm:$0xff] %v32856_v20 }
  0x89   : > { %27463 = vmatmul.mubr.msk.f32.gmra.mrb[52].mxu1 %vm450_vm1, %v32830_v14  ;;  %28787 = vmatmul.mubr.msk.f32.gmra.mrb[20].mxu0 %vm450_vm1, %v32833_v18  ;;  %v32873_v18 = vld [vmem:[%s32302_s21 + $0x112] sm:$0xff]  ;;  %v32879_v14 = vld [vmem:[%s32302_s21 + $0x11a] sm:$0xff] }
  0x8a   : > { %27465 = vmatprep.mubr.msk.f32.mxu1 %vm450_vm1, %v32836_v22  ;;  %28789 = vmatprep.mubr.msk.f32.mxu0 %vm450_vm1, %v32839_v10  ;;  %v32870_v10 = vld [vmem:[%s32302_s21 + $0x1c8] sm:$0xff]  ;;  %38860 = vst [vmem:[#allocation59_spill] sm:$0xff] %v32873_v18  ;;  %v32876_v22 = vld [vmem:[%s32302_s21 + $0x1d0] sm:$0xff]  ;;  %38862 = vst [vmem:[#allocation61_spill] sm:$0xff] %v32879_v14 }
  0x8b   : > { %38859 = vst [vmem:[#allocation58_spill] sm:$0xff] %v32870_v10  ;;  %38861 = vst [vmem:[#allocation60_spill] sm:$0xff] %v32876_v22 }
  0x8d   : > { %27466 = vmatmul.mubr.msk.f32.gmra.mrb[54].mxu1 %vm450_vm1, %v32850_v24  ;;  %28790 = vmatmul.mubr.msk.f32.gmra.mrb[22].mxu0 %vm450_vm1, %v32853_v12  ;;  %v32893_v12 = vld [vmem:[%s32302_s21 + $0x122] sm:$0xff]  ;;  %v32899_v24 = vld [vmem:[%s32302_s21 + $0x12a] sm:$0xff] }
  0x8e   : > { %27468 = vmatprep.mubr.msk.f32.mxu1 %vm450_vm1, %v32856_v20  ;;  %28792 = vmatprep.mubr.msk.f32.mxu0 %vm450_vm1, %v32859_v16  ;;  %v32890_v16 = vld [vmem:[%s32302_s21 + $0x1d8] sm:$0xff]  ;;  %38864 = vst [vmem:[#allocation63_spill] sm:$0xff] %v32893_v12  ;;  %v32896_v20 = vld [vmem:[%s32302_s21 + $0x1e0] sm:$0xff]  ;;  %38866 = vst [vmem:[#allocation65_spill] sm:$0xff] %v32899_v24 }
  0x8f   : > { %38863 = vst [vmem:[#allocation62_spill] sm:$0xff] %v32890_v16  ;;  %38865 = vst [vmem:[#allocation64_spill] sm:$0xff] %v32896_v20 }
  0x91   : > { %27469 = vmatmul.mubr.msk.f32.gmra.mrb[56].mxu1 %vm450_vm1, %v32870_v10  ;;  %28793 = vmatmul.mubr.msk.f32.gmra.mrb[24].mxu0 %vm450_vm1, %v32873_v18  ;;  %v32913_v18 = vld [vmem:[%s32302_s21 + $0x132] sm:$0xff]  ;;  %v32919_v10 = vld [vmem:[%s32302_s21 + $0x13a] sm:$0xff] }
  0x92   : > { %27471 = vmatprep.mubr.msk.f32.mxu1 %vm450_vm1, %v32876_v22  ;;  %28795 = vmatprep.mubr.msk.f32.mxu0 %vm450_vm1, %v32879_v14  ;;  %v32910_v14 = vld [vmem:[%s32302_s21 + $0x1e8] sm:$0xff]  ;;  %38868 = vst [vmem:[#allocation67_spill] sm:$0xff] %v32913_v18  ;;  %v32916_v22 = vld [vmem:[%s32302_s21 + $0x1f0] sm:$0xff]  ;;  %38870 = vst [vmem:[#allocation69_spill] sm:$0xff] %v32919_v10 }
  0x93   : > { %38867 = vst [vmem:[#allocation66_spill] sm:$0xff] %v32910_v14  ;;  %38869 = vst [vmem:[#allocation68_spill] sm:$0xff] %v32916_v22 }
  0x95   : > { %27472 = vmatmul.mubr.msk.f32.gmra.mrb[58].mxu1 %vm450_vm1, %v32890_v16  ;;  %28796 = vmatmul.mubr.msk.f32.gmra.mrb[26].mxu0 %vm450_vm1, %v32893_v12  ;;  %v32933_v12 = vld [vmem:[%s32302_s21 + $0x142] sm:$0xff]  ;;  %v32937_v16 = vld [vmem:[%s32302_s21 + $0x14a] sm:$0xff] }
  0x96   : > { %27474 = vmatprep.mubr.msk.f32.mxu1 %vm450_vm1, %v32896_v20  ;;  %28798 = vmatprep.mubr.msk.f32.mxu0 %vm450_vm1, %v32899_v24  ;;  %v32930_v24 = vld [vmem:[%s32302_s21 + $0x1f8] sm:$0xff]  ;;  %38872 = vst [vmem:[#allocation71_spill] sm:$0xff] %v32933_v12  ;;  %v1160_v20 = vld [vmem:[%s32302_s21 + $0x1] sm:$0xff]  ;;  %38873 = vst [vmem:[#allocation72_spill] sm:$0xff] %v32937_v16 }
  0x97   : > { %38871 = vst [vmem:[#allocation70_spill] sm:$0xff] %v32930_v24 }
  0x99   : > { %27475 = vmatmul.mubr.msk.f32.gmra.mrb[60].mxu1 %vm450_vm1, %v32910_v14  ;;  %28799 = vmatmul.mubr.msk.f32.gmra.mrb[28].mxu0 %vm450_vm1, %v32913_v18  ;;  %v32948_v18 = vld [vmem:[%s32302_s21 + $0x152] sm:$0xff]  ;;  %v32952_v14 = vld [vmem:[%s32302_s21 + $0x15a] sm:$0xff] }
  0x9a   : > { %27477 = vmatprep.mubr.msk.f32.mxu1 %vm450_vm1, %v32916_v22  ;;  %28801 = vmatprep.mubr.msk.f32.mxu0 %vm450_vm1, %v32919_v10  ;;  %v1161_v10 = vld [vmem:[%s32302_s21 + $0x9] sm:$0xff]  ;;  %38874 = vst [vmem:[#allocation73_spill] sm:$0xff] %v32948_v18  ;;  %v1162_v22 = vld [vmem:[%s32302_s21 + $0x11] sm:$0xff]  ;;  %38875 = vst [vmem:[#allocation74_spill] sm:$0xff] %v32952_v14 }
  0x9d   : > { %27478 = vmatmul.mubr.msk.f32.gmra.mrb[62].mxu1 %vm450_vm1, %v32930_v24  ;;  %28802 = vmatmul.mubr.msk.f32.gmra.mrb[30].mxu0 %vm450_vm1, %v32933_v12  ;;  %v32957_v24 = vld [vmem:[%s38543_s1 + $0xc] sm:$0xf]  ;;  %v1164_v12 = vld [vmem:[%s32302_s21 + $0x21] sm:$0xff] }
  0x9e   : > { %27482 = vmatprep.mubr.msk.f32.mxu1 %vm450_vm1, %v1160_v20  ;;  %28804 = vmatprep.mubr.msk.f32.mxu0 %vm450_vm1, %v32937_v16  ;;  %v1163_v20 = vld [vmem:[%s32302_s21 + $0x19] sm:$0xff]  ;;  %v32967_v16 = vld [vmem:[%s32302_s21 + $0x162] sm:$0xff] }
  0x9f   : > { %38876 = vst [vmem:[#allocation75_spill] sm:$0xff] %v32967_v16 }
  0xa1   : > { %27483 = vmatmul.mubr.msk.f32.vlgmr.msra.gmra.mrb[0].mxu1 %vm450_vm1, %v1161_v10  ;;  %28805 = vmatmul.mubr.msk.f32.gmra.mrb[32].mxu0 %vm450_vm1, %v32948_v18  ;;  %v32973_v10 = vld [vmem:[%s32302_s21 + $0x16a] sm:$0xff]  ;;  %v32989_v18 = vld [vmem:[%s32302_s21 + $0x17a] sm:$0xff] }
  0xa2   : > { %27579 = vmatpush3.msk.msra.mxu1 %vm643_vm0, %v32330_v11  ;;  %27485 = vmatprep.mubr.msk.f32.mxu1 %vm450_vm1, %v1162_v22  ;;  %38877 = vst [vmem:[#allocation76_spill] sm:$0xff] %v32973_v10  ;;  %v1165_v11 = vld [vmem:[%s32302_s21 + $0x29] sm:$0xff]  ;;  %v32985_v22 = vld [vmem:[%s32302_s21 + $0x172] sm:$0xff] }
  0xa3   : > { %28807 = vmatprep.mubr.msk.f32.mxu0 %vm450_vm1, %v32952_v14  ;;  %27676 = vmatprep.subr.msk.mxu1 %vm643_vm0, %v32957_v24  ;;  %v1166_v14 = vld [vmem:[%s32302_s21 + $0x31] sm:$0xff] }
  0xa5   : > { %27486 = vmatmul.mubr.msk.f32.gmra.mrb[2].mxu1 %vm450_vm1, %v1163_v20  ;;  %28808 = vmatmul.mubr.msk.f32.gmra.mrb[34].mxu0 %vm450_vm1, %v32967_v16  ;;  %v32999_v20 = vld [vmem:[%s32302_s21 + $0x182] sm:$0xff]  ;;  %v33003_v16 = vld [vmem:[%s32302_s21 + $0x18a] sm:$0xff] }
  0xa6   : > { %27488 = vmatprep.mubr.msk.f32.mxu1 %vm450_vm1, %v1164_v12  ;;  %28810 = vmatprep.mubr.msk.f32.mxu0 %vm450_vm1, %v32973_v10  ;;  %v1167_v12 = vld [vmem:[%s32302_s21 + $0x39] sm:$0xff]  ;;  %v1168_v10 = vld [vmem:[%s32302_s21 + $0x41] sm:$0xff] }
  0xa9   : > { %27489 = vmatmul.mubr.msk.f32.gmra.mrb[4].mxu1 %vm450_vm1, %v1165_v11  ;;  %28811 = vmatmul.mubr.msk.f32.gmra.mrb[36].mxu0 %vm450_vm1, %v32985_v22  ;;  %v33015_v11 = vld [vmem:[%s32302_s21 + $0x19a] sm:$0xff] }
  0xaa   : > { %27491 = vmatprep.mubr.msk.f32.mxu1 %vm450_vm1, %v1166_v14  ;;  %28813 = vmatprep.mubr.msk.f32.mxu0 %vm450_vm1, %v32989_v18  ;;  %v33012_v14 = vld [vmem:[%s32302_s21 + $0x192] sm:$0xff] }
  0xad   : > { %27492 = vmatmul.mubr.msk.f32.gmra.mrb[6].mxu1 %vm450_vm1, %v1167_v12  ;;  %28814 = vmatmul.mubr.msk.f32.gmra.mrb[38].mxu0 %vm450_vm1, %v32999_v20  ;;  %v33029_v12 = vld [vmem:[%s32302_s21 + $0x1aa] sm:$0xff] }
  0xae   : > { %27494 = vmatprep.mubr.msk.f32.mxu1 %vm450_vm1, %v1168_v10  ;;  %28816 = vmatprep.mubr.msk.f32.mxu0 %vm450_vm1, %v33003_v16  ;;  %v33026_v10 = vld [vmem:[%s32302_s21 + $0x1a2] sm:$0xff] }
  0xb1   : > { %27495 = vmatmul.mubr.msk.f32.gmra.mrb[8].mxu1 %vm450_vm1, %v32306_v5  ;;  %28817 = vmatmul.mubr.msk.f32.gmra.mrb[40].mxu0 %vm450_vm1, %v33012_v14  ;;  %v33040_v5 = vld [vmem:[%s32302_s21 + $0x1b2] sm:$0xff] }
  0xb2   : > { %27497 = vmatprep.mubr.msk.f32.mxu1 %vm450_vm1, %v32313_v7  ;;  %28819 = vmatprep.mubr.msk.f32.mxu0 %vm450_vm1, %v33015_v11  ;;  %v33043_v7 = vld [vmem:[%s32302_s21 + $0x1ba] sm:$0xff] }
  0xb5   : > { %27498 = vmatmul.mubr.msk.f32.gmra.mrb[10].mxu1 %vm450_vm1, %v32317_v9  ;;  %28820 = vmatmul.mubr.msk.f32.gmra.mrb[42].mxu0 %vm450_vm1, %v33026_v10  ;;  %v33054_v9 = vld [vmem:[%s32302_s21 + $0x1c2] sm:$0xff] }
  0xb6   : > { %27500 = vmatprep.mubr.msk.f32.mxu1 %vm450_vm1, %v32336_v13  ;;  %28822 = vmatprep.mubr.msk.f32.mxu0 %vm450_vm1, %v33029_v12  ;;  %v33057_v13 = vld [vmem:[%s32302_s21 + $0x1ca] sm:$0xff] }
  0xb9   : > { %27501 = vmatmul.mubr.msk.f32.gmra.mrb[12].mxu1 %vm450_vm1, %v32342_v15  ;;  %28823 = vmatmul.mubr.msk.f32.gmra.mrb[44].mxu0 %vm450_vm1, %v33040_v5  ;;  %v33068_v15 = vld [vmem:[%s32302_s21 + $0x1d2] sm:$0xff] }
  0xba   : > { %27503 = vmatprep.mubr.msk.f32.mxu1 %vm450_vm1, %v32357_v17  ;;  %28825 = vmatprep.mubr.msk.f32.mxu0 %vm450_vm1, %v33043_v7  ;;  %v33071_v17 = vld [vmem:[%s32302_s21 + $0x1da] sm:$0xff] }
  0xbd   : > { %27504 = vmatmul.mubr.msk.f32.gmra.mrb[14].mxu1 %vm450_vm1, %v32361_v19  ;;  %28826 = vmatmul.mubr.msk.f32.gmra.mrb[46].mxu0 %vm450_vm1, %v33054_v9  ;;  %v33082_v19 = vld [vmem:[%s32302_s21 + $0x1e2] sm:$0xff] }
  0xbe   : > { %27506 = vmatprep.mubr.msk.f32.mxu1 %vm450_vm1, %v32371_v21  ;;  %28828 = vmatprep.mubr.msk.f32.mxu0 %vm450_vm1, %v33057_v13  ;;  %v33085_v21 = vld [vmem:[%s32302_s21 + $0x1ea] sm:$0xff] }
  0xc1   : > { %27507 = vmatmul.mubr.msk.f32.gmra.mrb[16].mxu1 %vm450_vm1, %v32375_v23  ;;  %28829 = vmatmul.mubr.msk.f32.gmra.mrb[48].mxu0 %vm450_vm1, %v33068_v15  ;;  %v33096_v23 = vld [vmem:[%s32302_s21 + $0x1f2] sm:$0xff] }
  0xc2   : > { %27509 = vmatprep.mubr.msk.f32.mxu1 %vm450_vm1, %v32385_v25  ;;  %28831 = vmatprep.mubr.msk.f32.mxu0 %vm450_vm1, %v33071_v17  ;;  %38878 = vst [vmem:[#allocation77_spill] sm:$0xff] %v33096_v23  ;;  %v33099_v25 = vld [vmem:[%s32302_s21 + $0x1fa] sm:$0xff] }
  0xc5   : > { %27510 = vmatmul.mubr.msk.f32.gmra.mrb[18].mxu1 %vm450_vm1, %v32391_v27  ;;  %28832 = vmatmul.mubr.msk.f32.gmra.mrb[50].mxu0 %vm450_vm1, %v33082_v19  ;;  %v12109_v27 = vld [vmem:[%s32302_s21 + $0x202] sm:$0xff] }
  0xc6   : > { %27512 = vmatprep.mubr.msk.f32.mxu1 %vm450_vm1, %v32404_v29  ;;  %28834 = vmatprep.mubr.msk.f32.mxu0 %vm450_vm1, %v33085_v21  ;;  %v12110_v29 = vld [vmem:[%s32302_s21 + $0x20a] sm:$0xff] }
  0xc9   : > { %27513 = vmatmul.mubr.msk.f32.gmra.mrb[20].mxu1 %vm450_vm1, %v32410_v31  ;;  %28835 = vmatmul.mubr.msk.f32.gmra.mrb[52].mxu0 %vm450_vm1, %v33096_v23  ;;  %v12111_v31 = vld [vmem:[%s32302_s21 + $0x212] sm:$0xff]  ;;  %v12112_v23 = vld [vmem:[%s32302_s21 + $0x21a] sm:$0xff] }
  0xca   : > { %27515 = vmatprep.mubr.msk.f32.mxu1 %vm450_vm1, %v32424_v33  ;;  %28837 = vmatprep.mubr.msk.f32.mxu0 %vm450_vm1, %v33099_v25  ;;  %v12113_v33 = vld [vmem:[%s32302_s21 + $0x222] sm:$0xff] }
  0xcd   : > { %27516 = vmatmul.mubr.msk.f32.gmra.mrb[22].mxu1 %vm450_vm1, %v32430_v35  ;;  %28838 = vmatmul.mubr.msk.f32.gmra.mrb[54].mxu0 %vm450_vm1, %v12109_v27  ;;  %v12114_v35 = vld [vmem:[%s32302_s21 + $0x22a] sm:$0xff] }
  0xce   : > { %27518 = vmatprep.mubr.msk.f32.mxu1 %vm450_vm1, %v32444_v37  ;;  %28840 = vmatprep.mubr.msk.f32.mxu0 %vm450_vm1, %v12110_v29  ;;  %v12115_v37 = vld [vmem:[%s32302_s21 + $0x232] sm:$0xff] }
  0xcf   : > { %v33360_v27 = vld [vmem:[%s38543_s1 + $0x10] sm:$0xf]  ;;  %v38890_v29 = vld [vmem:[#allocation30_spill] sm:$0xff] }
  0xd1   : > { %27519 = vmatmul.mubr.msk.f32.gmra.mrb[24].mxu1 %vm450_vm1, %v32450_v39  ;;  %28841 = vmatmul.mubr.msk.f32.gmra.mrb[56].mxu0 %vm450_vm1, %v12111_v31  ;;  %v12116_v39 = vld [vmem:[%s32302_s21 + $0x23a] sm:$0xff] }
  0xd2   : > { %27521 = vmatprep.mubr.msk.f32.mxu1 %vm450_vm1, %v32464_v41  ;;  %28843 = vmatprep.mubr.msk.f32.mxu0 %vm450_vm1, %v12112_v23  ;;  %v12117_v41 = vld [vmem:[%s32302_s21 + $0x242] sm:$0xff]  ;;  %v2000_v23 = vld [vmem:[%s32302_s21 + $0x12] sm:$0xff]  ;;  %v2001_v31 = vld [vmem:[%s32302_s21 + $0x1a] sm:$0xff] }
  0xd5   : > { %27522 = vmatmul.mubr.msk.f32.gmra.mrb[26].mxu1 %vm450_vm1, %v32470_v43  ;;  %28844 = vmatmul.mubr.msk.f32.gmra.mrb[58].mxu0 %vm450_vm1, %v12113_v33  ;;  %v33247_v43 = vld [vmem:[%s32302_s21 + $0x189] sm:$0xff] }
  0xd6   : > { %27524 = vmatprep.mubr.msk.f32.mxu1 %vm450_vm1, %v32484_v45  ;;  %28846 = vmatprep.mubr.msk.f32.mxu0 %vm450_vm1, %v12114_v35  ;;  %v33261_v45 = vld [vmem:[%s32302_s21 + $0x199] sm:$0xff]  ;;  %v38891_v33 = vld [vmem:[#allocation32_spill] sm:$0xff] }
  0xd7   : > { %v2002_v35 = vld [vmem:[%s32302_s21 + $0x22] sm:$0xff] }
  0xd9   : > { %27525 = vmatmul.mubr.msk.f32.gmra.mrb[28].mxu1 %vm450_vm1, %v32490_v47  ;;  %28847 = vmatmul.mubr.msk.f32.gmra.mrb[60].mxu0 %vm450_vm1, %v12115_v37  ;;  %v33275_v47 = vld [vmem:[%s32302_s21 + $0x1a9] sm:$0xff]  ;;  %v38892_v37 = vld [vmem:[#allocation34_spill] sm:$0xff] }
  0xda   : > { %27527 = vmatprep.mubr.msk.f32.mxu1 %vm450_vm1, %v32504_v49  ;;  %28849 = vmatprep.mubr.msk.f32.mxu0 %vm450_vm1, %v12116_v39  ;;  %v38879_v49 = vld [vmem:[#allocation8_spill] sm:$0xff] }
  0xdb   : > { %v2003_v39 = vld [vmem:[%s32302_s21 + $0x2a] sm:$0xff] }
  0xdd   : > { %27528 = vmatmul.mubr.msk.f32.gmra.mrb[30].mxu1 %vm450_vm1, %v32510_v51  ;;  %28850 = vmatmul.mubr.msk.f32.gmra.mrb[62].mxu0 %vm450_vm1, %v12117_v41  ;;  %v33292_v51 = vld [vmem:[%s32302_s21 + $0x1c1] sm:$0xff]  ;;  %v2004_v41 = vld [vmem:[%s32302_s21 + $0x32] sm:$0xff] }
  0xde   : > { %27530 = vmatprep.mubr.msk.f32.mxu1 %vm450_vm1, %v32524_v53  ;;  %28854 = vmatprep.mubr.msk.f32.mxu0 %vm450_vm1, %v32388_v26  ;;  %v33174_v26 = vld [vmem:[%s38543_s1 + $0x44] sm:$0xf] }
  0xdf   : > { %v38881_v53 = vld [vmem:[#allocation12_spill] sm:$0xff] }
  0xe1   : > { %27531 = vmatmul.mubr.msk.f32.gmra.mrb[32].mxu1 %vm450_vm1, %v32530_v55  ;;  %28855 = vmatmul.mubr.msk.f32.vlgmr.msra.gmra.mrb[0].mxu0 %vm450_vm1, %v32401_v28  ;;  %v33191_v28 = vld [vmem:[%s32302_s21 + $0x149] sm:$0xff]  ;;  %v33306_v55 = vld [vmem:[%s32302_s21 + $0x1d1] sm:$0xff] }
  0xe2   : > { %27533 = vmatprep.mubr.msk.f32.mxu1 %vm450_vm1, %v32544_v57  ;;  %28857 = vmatprep.mubr.msk.f32.mxu0 %vm450_vm1, %v32407_v30  ;;  %v33194_v30 = vld [vmem:[%s32302_s21 + $0x151] sm:$0xff]  ;;  %v38883_v57 = vld [vmem:[#allocation16_spill] sm:$0xff] }
  0xe3   : > { %28951 = vmatpush3.msk.msra.mxu0 %vm643_vm0, %v32681_v8  ;;  %v1999_v8 = vld [vmem:[%s32302_s21 + $0xa] sm:$0xff] }
  0xe4   : > { %29048 = vmatprep.subr.msk.mxu0 %vm643_vm0, %v33174_v26 }
  0xe5   : > { %27534 = vmatmul.mubr.msk.f32.gmra.mrb[34].mxu1 %vm450_vm1, %v32550_v59  ;;  %28858 = vmatmul.mubr.msk.f32.gmra.mrb[2].mxu0 %vm450_vm1, %v32421_v32  ;;  %v33205_v32 = vld [vmem:[%s32302_s21 + $0x159] sm:$0xff]  ;;  %v33320_v59 = vld [vmem:[%s32302_s21 + $0x1e1] sm:$0xff] }
  0xe6   : > { %27536 = vmatprep.mubr.msk.f32.mxu1 %vm450_vm1, %v32564_v61  ;;  %28860 = vmatprep.mubr.msk.f32.mxu0 %vm450_vm1, %v32427_v34  ;;  %v33208_v34 = vld [vmem:[%s32302_s21 + $0x161] sm:$0xff] }
  0xe7   : > { %v38885_v61 = vld [vmem:[#allocation20_spill] sm:$0xff] }
  0xe9   : > { %27537 = vmatmul.mubr.msk.f32.gmra.mrb[36].mxu1 %vm450_vm1, %v32570_v63  ;;  %28861 = vmatmul.mubr.msk.f32.gmra.mrb[4].mxu0 %vm450_vm1, %v32441_v36  ;;  %v33219_v36 = vld [vmem:[%s32302_s21 + $0x169] sm:$0xff]  ;;  %v33334_v63 = vld [vmem:[%s32302_s21 + $0x1f1] sm:$0xff] }
  0xea   : > { %27539 = vmatprep.mubr.msk.f32.mxu1 %vm450_vm1, %v32584_v1  ;;  %28863 = vmatprep.mubr.msk.f32.mxu0 %vm450_vm1, %v32447_v38  ;;  %v33222_v38 = vld [vmem:[%s32302_s21 + $0x171] sm:$0xff]  ;;  %v38887_v1 = vld [vmem:[#allocation24_spill] sm:$0xff] }
  0xed   : > { %27540 = vmatmul.mubr.msk.f32.gmra.mrb[38].mxu1 %vm450_vm1, %v32590_v3  ;;  %28864 = vmatmul.mubr.msk.f32.gmra.mrb[6].mxu0 %vm450_vm1, %v32461_v40  ;;  %v33233_v40 = vld [vmem:[%s32302_s21 + $0x179] sm:$0xff]  ;;  %v1998_v3 = vld [vmem:[%s32302_s21 + $0x2] sm:$0xff] }
  0xee   : > { %27542 = vmatprep.mubr.msk.f32.mxu1 %vm450_vm1, %v32604_v6  ;;  %28866 = vmatprep.mubr.msk.f32.mxu0 %vm450_vm1, %v32467_v42  ;;  %v33236_v42 = vld [vmem:[%s32302_s21 + $0x181] sm:$0xff] }
  0xef   : > { %v38889_v6 = vld [vmem:[#allocation28_spill] sm:$0xff] }
  0xf1   : > { %27543 = vmatmul.mubr.msk.f32.gmra.mrb[40].mxu1 %vm450_vm1, %v33191_v28  ;;  %28867 = vmatmul.mubr.msk.f32.gmra.mrb[8].mxu0 %vm450_vm1, %v32481_v44  ;;  %v33250_v44 = vld [vmem:[%s32302_s21 + $0x191] sm:$0xff] }
  0xf2   : > { %27545 = vmatprep.mubr.msk.f32.mxu1 %vm450_vm1, %v33194_v30  ;;  %28869 = vmatprep.mubr.msk.f32.mxu0 %vm450_vm1, %v32487_v46  ;;  %v33264_v46 = vld [vmem:[%s32302_s21 + $0x1a1] sm:$0xff] }
  0xf5   : > { %27546 = vmatmul.mubr.msk.f32.gmra.mrb[42].mxu1 %vm450_vm1, %v33205_v32  ;;  %28870 = vmatmul.mubr.msk.f32.gmra.mrb[10].mxu0 %vm450_vm1, %v32501_v48  ;;  %v33278_v48 = vld [vmem:[%s32302_s21 + $0x1b1] sm:$0xff] }
  0xf6   : > { %27548 = vmatprep.mubr.msk.f32.mxu1 %vm450_vm1, %v33208_v34  ;;  %28872 = vmatprep.mubr.msk.f32.mxu0 %vm450_vm1, %v32507_v50  ;;  %v33289_v50 = vld [vmem:[%s32302_s21 + $0x1b9] sm:$0xff] }
  0xf9   : > { %27549 = vmatmul.mubr.msk.f32.gmra.mrb[44].mxu1 %vm450_vm1, %v33219_v36  ;;  %28873 = vmatmul.mubr.msk.f32.gmra.mrb[12].mxu0 %vm450_vm1, %v32521_v52  ;;  %v38880_v52 = vld [vmem:[#allocation10_spill] sm:$0xff] }
  0xfa   : > { %27551 = vmatprep.mubr.msk.f32.mxu1 %vm450_vm1, %v33222_v38  ;;  %28875 = vmatprep.mubr.msk.f32.mxu0 %vm450_vm1, %v32527_v54  ;;  %v33303_v54 = vld [vmem:[%s32302_s21 + $0x1c9] sm:$0xff] }
  0xfd   : > { %27552 = vmatmul.mubr.msk.f32.gmra.mrb[46].mxu1 %vm450_vm1, %v33233_v40  ;;  %28876 = vmatmul.mubr.msk.f32.gmra.mrb[14].mxu0 %vm450_vm1, %v32541_v56  ;;  %v38882_v56 = vld [vmem:[#allocation14_spill] sm:$0xff] }
  0xfe   : > { %27554 = vmatprep.mubr.msk.f32.mxu1 %vm450_vm1, %v33236_v42  ;;  %28878 = vmatprep.mubr.msk.f32.mxu0 %vm450_vm1, %v32547_v58  ;;  %v33317_v58 = vld [vmem:[%s32302_s21 + $0x1d9] sm:$0xff] }
 0x101   : > { %27555 = vmatmul.mubr.msk.f32.gmra.mrb[48].mxu1 %vm450_vm1, %v33247_v43  ;;  %28879 = vmatmul.mubr.msk.f32.gmra.mrb[16].mxu0 %vm450_vm1, %v32561_v60  ;;  %v38884_v60 = vld [vmem:[#allocation18_spill] sm:$0xff] }
 0x102   : > { %27557 = vmatprep.mubr.msk.f32.mxu1 %vm450_vm1, %v33250_v44  ;;  %28881 = vmatprep.mubr.msk.f32.mxu0 %vm450_vm1, %v32567_v62  ;;  %v33331_v62 = vld [vmem:[%s32302_s21 + $0x1e9] sm:$0xff] }
 0x105   : > { %27558 = vmatmul.mubr.msk.f32.gmra.mrb[50].mxu1 %vm450_vm1, %v33261_v45  ;;  %28882 = vmatmul.mubr.msk.f32.gmra.mrb[18].mxu0 %vm450_vm1, %v32581_v0  ;;  %v38886_v0 = vld [vmem:[#allocation22_spill] sm:$0xff] }
 0x106   : > { %27560 = vmatprep.mubr.msk.f32.mxu1 %vm450_vm1, %v33264_v46  ;;  %28884 = vmatprep.mubr.msk.f32.mxu0 %vm450_vm1, %v32587_v2  ;;  %v33345_v2 = vld [vmem:[%s32302_s21 + $0x1f9] sm:$0xff] }
 0x109   : > { %27561 = vmatmul.mubr.msk.f32.gmra.mrb[52].mxu1 %vm450_vm1, %v33275_v47  ;;  %28885 = vmatmul.mubr.msk.f32.gmra.mrb[20].mxu0 %vm450_vm1, %v32601_v4  ;;  %v38888_v4 = vld [vmem:[#allocation26_spill] sm:$0xff] }
 0x10a   : > { %27563 = vmatprep.mubr.msk.f32.mxu1 %vm450_vm1, %v33278_v48  ;;  %28887 = vmatprep.mubr.msk.f32.mxu0 %vm450_vm1, %v38879_v49  ;;  %v38894_v49 = vld [vmem:[#allocation38_spill] sm:$0xff] }
 0x10d   : > { %27564 = vmatmul.mubr.msk.f32.gmra.mrb[54].mxu1 %vm450_vm1, %v33289_v50  ;;  %28888 = vmatmul.mubr.msk.f32.gmra.mrb[22].mxu0 %vm450_vm1, %v38880_v52  ;;  %v38895_v52 = vld [vmem:[#allocation40_spill] sm:$0xff] }
 0x10e   : > { %27566 = vmatprep.mubr.msk.f32.mxu1 %vm450_vm1, %v33292_v51  ;;  %28890 = vmatprep.mubr.msk.f32.mxu0 %vm450_vm1, %v38881_v53  ;;  %v2005_v53 = vld [vmem:[%s32302_s21 + $0x3a] sm:$0xff] }
 0x111   : > { %27567 = vmatmul.mubr.msk.f32.gmra.mrb[56].mxu1 %vm450_vm1, %v33303_v54  ;;  %28891 = vmatmul.mubr.msk.f32.gmra.mrb[24].mxu0 %vm450_vm1, %v38882_v56  ;;  %v2006_v56 = vld [vmem:[%s32302_s21 + $0x42] sm:$0xff] }
 0x112   : > { %27569 = vmatprep.mubr.msk.f32.mxu1 %vm450_vm1, %v33306_v55  ;;  %28893 = vmatprep.mubr.msk.f32.mxu0 %vm450_vm1, %v38883_v57  ;;  %v38896_v57 = vld [vmem:[#allocation42_spill] sm:$0xff] }
 0x115   : > { %27570 = vmatmul.mubr.msk.f32.gmra.mrb[58].mxu1 %vm450_vm1, %v33317_v58  ;;  %28894 = vmatmul.mubr.msk.f32.gmra.mrb[26].mxu0 %vm450_vm1, %v38884_v60  ;;  %v38897_v60 = vld [vmem:[#allocation44_spill] sm:$0xff] }
 0x116   : > { %27572 = vmatprep.mubr.msk.f32.mxu1 %vm450_vm1, %v33320_v59  ;;  %28896 = vmatprep.mubr.msk.f32.mxu0 %vm450_vm1, %v38885_v61  ;;  %v38898_v61 = vld [vmem:[#allocation9_spill] sm:$0xff] }
 0x119   : > { %27573 = vmatmul.mubr.msk.f32.gmra.mrb[60].mxu1 %vm450_vm1, %v33331_v62  ;;  %28897 = vmatmul.mubr.msk.f32.gmra.mrb[28].mxu0 %vm450_vm1, %v38886_v0  ;;  %v38899_v0 = vld [vmem:[#allocation46_spill] sm:$0xff] }
 0x11a   : > { %27575 = vmatprep.mubr.msk.f32.mxu1 %vm450_vm1, %v33334_v63  ;;  %28899 = vmatprep.mubr.msk.f32.mxu0 %vm450_vm1, %v38887_v1  ;;  %v38900_v1 = vld [vmem:[#allocation11_spill] sm:$0xff] }
 0x11d   : > { %27576 = vmatmul.mubr.msk.f32.gmra.mrb[62].mxu1 %vm450_vm1, %v33345_v2  ;;  %28900 = vmatmul.mubr.msk.f32.gmra.mrb[30].mxu0 %vm450_vm1, %v38888_v4  ;;  %v38902_v4 = vld [vmem:[#allocation13_spill] sm:$0xff] }
 0x11e   : > { %27580 = vmatprep.mubr.msk.f32.mxu1 %vm450_vm1, %v1998_v3  ;;  %28902 = vmatprep.mubr.msk.f32.mxu0 %vm450_vm1, %v38889_v6  ;;  %v38901_v3 = vld [vmem:[#allocation48_spill] sm:$0xff]  ;;  %v38903_v6 = vld [vmem:[#allocation50_spill] sm:$0xff] }
 0x121   : > { %27581 = vmatmul.mubr.msk.f32.vlgmr.msra.gmra.mrb[0].mxu1 %vm450_vm1, %v1999_v8  ;;  %28903 = vmatmul.mubr.msk.f32.gmra.mrb[32].mxu0 %vm450_vm1, %v38890_v29  ;;  %v38904_v8 = vld [vmem:[#allocation15_spill] sm:$0xff]  ;;  %v38906_v29 = vld [vmem:[#allocation17_spill] sm:$0xff] }
 0x122   : > { %27677 = vmatpush3.msk.msra.mxu1 %vm643_vm0, %v32957_v24  ;;  %27583 = vmatprep.mubr.msk.f32.mxu1 %vm450_vm1, %v2000_v23  ;;  %v38893_v24 = vld [vmem:[#allocation36_spill] sm:$0xff] }
 0x123   : > { %28905 = vmatprep.mubr.msk.f32.mxu0 %vm450_vm1, %v38891_v33  ;;  %27774 = vmatprep.subr.msk.mxu1 %vm643_vm0, %v33360_v27  ;;  %v38905_v23 = vld [vmem:[#allocation52_spill] sm:$0xff]  ;;  %v38908_v33 = vld [vmem:[#allocation19_spill] sm:$0xff] }
 0x125   : > { %27584 = vmatmul.mubr.msk.f32.gmra.mrb[2].mxu1 %vm450_vm1, %v2001_v31  ;;  %28906 = vmatmul.mubr.msk.f32.gmra.mrb[34].mxu0 %vm450_vm1, %v38892_v37  ;;  %v38907_v31 = vld [vmem:[#allocation54_spill] sm:$0xff]  ;;  %v38910_v37 = vld [vmem:[#allocation21_spill] sm:$0xff] }
 0x126   : > { %27586 = vmatprep.mubr.msk.f32.mxu1 %vm450_vm1, %v2002_v35  ;;  %28908 = vmatprep.mubr.msk.f32.mxu0 %vm450_vm1, %v38893_v24  ;;  %v38909_v35 = vld [vmem:[#allocation56_spill] sm:$0xff]  ;;  %v38911_v24 = vld [vmem:[#allocation58_spill] sm:$0xff] }
 0x129   : > { %27587 = vmatmul.mubr.msk.f32.gmra.mrb[4].mxu1 %vm450_vm1, %v2003_v39  ;;  %28909 = vmatmul.mubr.msk.f32.gmra.mrb[36].mxu0 %vm450_vm1, %v38894_v49  ;;  %v38912_v39 = vld [vmem:[#allocation23_spill] sm:$0xff]  ;;  %v38914_v49 = vld [vmem:[#allocation25_spill] sm:$0xff] }
 0x12a   : > { %27589 = vmatprep.mubr.msk.f32.mxu1 %vm450_vm1, %v2004_v41  ;;  %28911 = vmatprep.mubr.msk.f32.mxu0 %vm450_vm1, %v38895_v52  ;;  %v38913_v41 = vld [vmem:[#allocation60_spill] sm:$0xff]  ;;  %v38915_v52 = vld [vmem:[#allocation62_spill] sm:$0xff] }
 0x12d   : > { %27590 = vmatmul.mubr.msk.f32.gmra.mrb[6].mxu1 %vm450_vm1, %v2005_v53  ;;  %28912 = vmatmul.mubr.msk.f32.gmra.mrb[38].mxu0 %vm450_vm1, %v38896_v57  ;;  %v38916_v53 = vld [vmem:[#allocation27_spill] sm:$0xff]  ;;  %v38918_v57 = vld [vmem:[#allocation29_spill] sm:$0xff] }
 0x12e   : > { %27592 = vmatprep.mubr.msk.f32.mxu1 %vm450_vm1, %v2006_v56  ;;  %28914 = vmatprep.mubr.msk.f32.mxu0 %vm450_vm1, %v38897_v60  ;;  %v38917_v56 = vld [vmem:[#allocation64_spill] sm:$0xff]  ;;  %v38919_v60 = vld [vmem:[#allocation66_spill] sm:$0xff] }
 0x131   : > { %27593 = vmatmul.mubr.msk.f32.gmra.mrb[8].mxu1 %vm450_vm1, %v38898_v61  ;;  %28915 = vmatmul.mubr.msk.f32.gmra.mrb[40].mxu0 %vm450_vm1, %v38899_v0  ;;  %v38920_v61 = vld [vmem:[#allocation31_spill] sm:$0xff]  ;;  %v38921_v0 = vld [vmem:[#allocation68_spill] sm:$0xff] }
 0x132   : > { %27595 = vmatprep.mubr.msk.f32.mxu1 %vm450_vm1, %v38900_v1  ;;  %28917 = vmatprep.mubr.msk.f32.mxu0 %vm450_vm1, %v38901_v3  ;;  %v33445_v1 = vld [vmem:[%s32302_s21 + $0x200] sm:$0xff]  ;;  %v38922_v3 = vld [vmem:[#allocation33_spill] sm:$0xff] }
 0x135   : > { %27596 = vmatmul.mubr.msk.f32.gmra.mrb[10].mxu1 %vm450_vm1, %v38902_v4  ;;  %28918 = vmatmul.mubr.msk.f32.gmra.mrb[42].mxu0 %vm450_vm1, %v38903_v6  ;;  %v38923_v4 = vld [vmem:[#allocation70_spill] sm:$0xff]  ;;  %v38924_v6 = vld [vmem:[#allocation35_spill] sm:$0xff] }
 0x136   : > { %27598 = vmatprep.mubr.msk.f32.mxu1 %vm450_vm1, %v38904_v8  ;;  %28920 = vmatprep.mubr.msk.f32.mxu0 %vm450_vm1, %v38905_v23  ;;  %v12947_v8 = vld [vmem:[%s32302_s21 + $0x208] sm:$0xff]  ;;  %v12948_v23 = vld [vmem:[%s32302_s21 + $0x210] sm:$0xff] }
 0x139   : > { %27599 = vmatmul.mubr.msk.f32.gmra.mrb[12].mxu1 %vm450_vm1, %v38906_v29  ;;  %28921 = vmatmul.mubr.msk.f32.gmra.mrb[44].mxu0 %vm450_vm1, %v38907_v31  ;;  %v38925_v29 = vld [vmem:[#allocation37_spill] sm:$0xff]  ;;  %v38926_v31 = vld [vmem:[#allocation39_spill] sm:$0xff] }
 0x13a   : > { %27601 = vmatprep.mubr.msk.f32.mxu1 %vm450_vm1, %v38908_v33  ;;  %28923 = vmatprep.mubr.msk.f32.mxu0 %vm450_vm1, %v38909_v35  ;;  %v12949_v33 = vld [vmem:[%s32302_s21 + $0x218] sm:$0xff]  ;;  %v12950_v35 = vld [vmem:[%s32302_s21 + $0x220] sm:$0xff] }
 0x13d   : > { %27602 = vmatmul.mubr.msk.f32.gmra.mrb[14].mxu1 %vm450_vm1, %v38910_v37  ;;  %28924 = vmatmul.mubr.msk.f32.gmra.mrb[46].mxu0 %vm450_vm1, %v38911_v24  ;;  %v38927_v37 = vld [vmem:[#allocation41_spill] sm:$0xff]  ;;  %v38928_v24 = vld [vmem:[#allocation43_spill] sm:$0xff] }
 0x13e   : > { %27604 = vmatprep.mubr.msk.f32.mxu1 %vm450_vm1, %v38912_v39  ;;  %28926 = vmatprep.mubr.msk.f32.mxu0 %vm450_vm1, %v38913_v41  ;;  %v12951_v39 = vld [vmem:[%s32302_s21 + $0x228] sm:$0xff]  ;;  %v12952_v41 = vld [vmem:[%s32302_s21 + $0x230] sm:$0xff] }
 0x141   : > { %27605 = vmatmul.mubr.msk.f32.gmra.mrb[16].mxu1 %vm450_vm1, %v38914_v49  ;;  %28927 = vmatmul.mubr.msk.f32.gmra.mrb[48].mxu0 %vm450_vm1, %v38915_v52  ;;  %v38929_v49 = vld [vmem:[#allocation45_spill] sm:$0xff]  ;;  %v38930_v52 = vld [vmem:[#allocation47_spill] sm:$0xff] }
 0x142   : > { %27607 = vmatprep.mubr.msk.f32.mxu1 %vm450_vm1, %v38916_v53  ;;  %28929 = vmatprep.mubr.msk.f32.mxu0 %vm450_vm1, %v38917_v56  ;;  %v12953_v53 = vld [vmem:[%s32302_s21 + $0x238] sm:$0xff]  ;;  %v12954_v56 = vld [vmem:[%s32302_s21 + $0x240] sm:$0xff] }
 0x145   : > { %27608 = vmatmul.mubr.msk.f32.gmra.mrb[18].mxu1 %vm450_vm1, %v38918_v57  ;;  %28930 = vmatmul.mubr.msk.f32.gmra.mrb[50].mxu0 %vm450_vm1, %v38919_v60  ;;  %v38931_v57 = vld [vmem:[#allocation49_spill] sm:$0xff]  ;;  %v38932_v60 = vld [vmem:[#allocation51_spill] sm:$0xff] }
 0x146   : > { %27610 = vmatprep.mubr.msk.f32.mxu1 %vm450_vm1, %v38920_v61  ;;  %28932 = vmatprep.mubr.msk.f32.mxu0 %vm450_vm1, %v38921_v0  ;;  %v12955_v61 = vld [vmem:[%s32302_s21 + $0x248] sm:$0xff]  ;;  %v33489_v0 = vld [vmem:[%s32302_s21 + $0x51] sm:$0xff] }
 0x149   : > { %27611 = vmatmul.mubr.msk.f32.gmra.mrb[20].mxu1 %vm450_vm1, %v38922_v3  ;;  %28933 = vmatmul.mubr.msk.f32.gmra.mrb[52].mxu0 %vm450_vm1, %v38923_v4  ;;  %v38933_v3 = vld [vmem:[#allocation53_spill] sm:$0xff]  ;;  %v38934_v4 = vld [vmem:[#allocation55_spill] sm:$0xff] }
 0x14a   : > { %27613 = vmatprep.mubr.msk.f32.mxu1 %vm450_vm1, %v38924_v6  ;;  %28935 = vmatprep.mubr.msk.f32.mxu0 %vm450_vm1, %v33445_v1  ;;  %v33499_v6 = vld [vmem:[%s32302_s21 + $0x59] sm:$0xff] }
 0x14d   : > { %27614 = vmatmul.mubr.msk.f32.gmra.mrb[22].mxu1 %vm450_vm1, %v38925_v29  ;;  %28936 = vmatmul.mubr.msk.f32.gmra.mrb[54].mxu0 %vm450_vm1, %v12947_v8  ;;  %v33502_v8 = vld [vmem:[%s32302_s21 + $0x61] sm:$0xff] }
 0x14e   : > { %27616 = vmatprep.mubr.msk.f32.mxu1 %vm450_vm1, %v38926_v31  ;;  %28938 = vmatprep.mubr.msk.f32.mxu0 %vm450_vm1, %v12948_v23  ;;  %v38935_v23 = vld [vmem:[#allocation57_spill] sm:$0xff]  ;;  %v38936_v29 = vld [vmem:[#allocation59_spill] sm:$0xff] }
 0x14f   : > { %v33513_v31 = vld [vmem:[%s32302_s21 + $0x69] sm:$0xff] }
 0x151   : > { %27617 = vmatmul.mubr.msk.f32.gmra.mrb[24].mxu1 %vm450_vm1, %v38927_v37  ;;  %28939 = vmatmul.mubr.msk.f32.gmra.mrb[56].mxu0 %vm450_vm1, %v12949_v33  ;;  %v33516_v33 = vld [vmem:[%s32302_s21 + $0x71] sm:$0xff]  ;;  %v38938_v37 = vld [vmem:[#allocation63_spill] sm:$0xff] }
 0x152   : > { %27619 = vmatprep.mubr.msk.f32.mxu1 %vm450_vm1, %v38928_v24  ;;  %28941 = vmatprep.mubr.msk.f32.mxu0 %vm450_vm1, %v12950_v35  ;;  %v38937_v35 = vld [vmem:[#allocation61_spill] sm:$0xff]  ;;  %v33529_v24 = vld [vmem:[%s32302_s21 + $0x79] sm:$0xff] }
 0x155   : > { %27620 = vmatmul.mubr.msk.f32.gmra.mrb[26].mxu1 %vm450_vm1, %v38929_v49  ;;  %28942 = vmatmul.mubr.msk.f32.gmra.mrb[58].mxu0 %vm450_vm1, %v12951_v39  ;;  %v33532_v39 = vld [vmem:[%s32302_s21 + $0x81] sm:$0xff] }
 0x156   : > { %27622 = vmatprep.mubr.msk.f32.mxu1 %vm450_vm1, %v38930_v52  ;;  %28944 = vmatprep.mubr.msk.f32.mxu0 %vm450_vm1, %v12952_v41  ;;  %v38939_v41 = vld [vmem:[#allocation65_spill] sm:$0xff]  ;;  %v38940_v49 = vld [vmem:[#allocation67_spill] sm:$0xff] }
 0x157   : > { %v33548_v52 = vld [vmem:[%s32302_s21 + $0x89] sm:$0xff] }
 0x159   : > { %27623 = vmatmul.mubr.msk.f32.gmra.mrb[28].mxu1 %vm450_vm1, %v38931_v57  ;;  %28945 = vmatmul.mubr.msk.f32.gmra.mrb[60].mxu0 %vm450_vm1, %v12953_v53  ;;  %v33551_v53 = vld [vmem:[%s32302_s21 + $0x91] sm:$0xff]  ;;  %v38942_v57 = vld [vmem:[#allocation71_spill] sm:$0xff] }
 0x15a   : > { %27625 = vmatprep.mubr.msk.f32.mxu1 %vm450_vm1, %v38932_v60  ;;  %28947 = vmatprep.mubr.msk.f32.mxu0 %vm450_vm1, %v12954_v56  ;;  %v38941_v56 = vld [vmem:[#allocation69_spill] sm:$0xff]  ;;  %v33564_v60 = vld [vmem:[%s32302_s21 + $0x99] sm:$0xff] }
 0x15d   : > { %27626 = vmatmul.mubr.msk.f32.gmra.mrb[30].mxu1 %vm450_vm1, %v38933_v3  ;;  %28948 = vmatmul.mubr.msk.f32.gmra.mrb[62].mxu0 %vm450_vm1, %v12955_v61  ;;  %v33567_v61 = vld [vmem:[%s32302_s21 + $0xa1] sm:$0xff] }
 0x15e   : > { %27628 = vmatprep.mubr.msk.f32.mxu1 %vm450_vm1, %v38934_v4  ;;  %28952 = vmatprep.mubr.msk.f32.mxu0 %vm450_vm1, %v33489_v0  ;;  %v38943_v3 = vld [vmem:[#allocation72_spill] sm:$0xff]  ;;  %v38944_v4 = vld [vmem:[#allocation73_spill] sm:$0xff] }
 0x161   : > { %27629 = vmatmul.mubr.msk.f32.gmra.mrb[32].mxu1 %vm450_vm1, %v38935_v23  ;;  %28953 = vmatmul.mubr.msk.f32.vlgmr.msra.gmra.mrb[0].mxu0 %vm450_vm1, %v33499_v6  ;;  %v33578_v23 = vld [vmem:[%s32302_s21 + $0xa9] sm:$0xff] }
 0x162   : > { %27631 = vmatprep.mubr.msk.f32.mxu1 %vm450_vm1, %v38936_v29  ;;  %28955 = vmatprep.mubr.msk.f32.mxu0 %vm450_vm1, %v33502_v8  ;;  %v33581_v29 = vld [vmem:[%s32302_s21 + $0xb1] sm:$0xff] }
 0x163   : > { %29049 = vmatpush3.msk.msra.mxu0 %vm643_vm0, %v33174_v26  ;;  %v33541_v26 = vld [vmem:[%s38543_s1 + $0x48] sm:$0xf] }
 0x164   : > { %29146 = vmatprep.subr.msk.mxu0 %vm643_vm0, %v33541_v26 }
 0x165   : > { %27632 = vmatmul.mubr.msk.f32.gmra.mrb[34].mxu1 %vm450_vm1, %v38937_v35  ;;  %28956 = vmatmul.mubr.msk.f32.gmra.mrb[2].mxu0 %vm450_vm1, %v33513_v31  ;;  %v38945_v35 = vld [vmem:[#allocation74_spill] sm:$0xff] }
 0x166   : > { %27634 = vmatprep.mubr.msk.f32.mxu1 %vm450_vm1, %v38938_v37  ;;  %28958 = vmatprep.mubr.msk.f32.mxu0 %vm450_vm1, %v33516_v33  ;;  %v38946_v37 = vld [vmem:[#allocation75_spill] sm:$0xff] }
 0x169   : > { %27635 = vmatmul.mubr.msk.f32.gmra.mrb[36].mxu1 %vm450_vm1, %v38939_v41  ;;  %28959 = vmatmul.mubr.msk.f32.gmra.mrb[4].mxu0 %vm450_vm1, %v33529_v24  ;;  %v33592_v41 = vld [vmem:[%s32302_s21 + $0xb9] sm:$0xff] }
 0x16a   : > { %27637 = vmatprep.mubr.msk.f32.mxu1 %vm450_vm1, %v38940_v49  ;;  %28961 = vmatprep.mubr.msk.f32.mxu0 %vm450_vm1, %v33532_v39  ;;  %v33595_v49 = vld [vmem:[%s32302_s21 + $0xc1] sm:$0xff] }
 0x16d   : > { %27638 = vmatmul.mubr.msk.f32.gmra.mrb[38].mxu1 %vm450_vm1, %v38941_v56  ;;  %28962 = vmatmul.mubr.msk.f32.gmra.mrb[6].mxu0 %vm450_vm1, %v33548_v52  ;;  %v38947_v56 = vld [vmem:[#allocation76_spill] sm:$0xff] }
 0x16e   : > { %27640 = vmatprep.mubr.msk.f32.mxu1 %vm450_vm1, %v38942_v57  ;;  %28964 = vmatprep.mubr.msk.f32.mxu0 %vm450_vm1, %v33551_v53  ;;  %v33606_v57 = vld [vmem:[%s32302_s21 + $0xc9] sm:$0xff] }
 0x171   : > { %27641 = vmatmul.mubr.msk.f32.gmra.mrb[40].mxu1 %vm450_vm1, %v38943_v3  ;;  %28965 = vmatmul.mubr.msk.f32.gmra.mrb[8].mxu0 %vm450_vm1, %v33564_v60  ;;  %v33609_v3 = vld [vmem:[%s32302_s21 + $0xd1] sm:$0xff] }
 0x172   : > { %27643 = vmatprep.mubr.msk.f32.mxu1 %vm450_vm1, %v38944_v4  ;;  %28967 = vmatprep.mubr.msk.f32.mxu0 %vm450_vm1, %v33567_v61  ;;  %v33623_v4 = vld [vmem:[%s32302_s21 + $0xe1] sm:$0xff] }
 0x175   : > { %27644 = vmatmul.mubr.msk.f32.gmra.mrb[42].mxu1 %vm450_vm1, %v38945_v35  ;;  %28968 = vmatmul.mubr.msk.f32.gmra.mrb[10].mxu0 %vm450_vm1, %v33578_v23  ;;  %v2838_v35 = vld [vmem:[%s32302_s21 + $0x18] sm:$0xff] }
 0x176   : > { %27646 = vmatprep.mubr.msk.f32.mxu1 %vm450_vm1, %v38946_v37  ;;  %28970 = vmatprep.mubr.msk.f32.mxu0 %vm450_vm1, %v33581_v29  ;;  %v33730_v37 = vld [vmem:[%s38543_s1 + $0x14] sm:$0xf] }
 0x179   : > { %27647 = vmatmul.mubr.msk.f32.gmra.mrb[44].mxu1 %vm450_vm1, %v38947_v56  ;;  %28971 = vmatmul.mubr.msk.f32.gmra.mrb[12].mxu0 %vm450_vm1, %v33592_v41  ;;  %v13786_v56 = vld [vmem:[%s32302_s21 + $0x211] sm:$0xff] }
 0x17a   : > { %27649 = vmatprep.mubr.msk.f32.mxu1 %vm450_vm1, %v32985_v22  ;;  %28973 = vmatprep.mubr.msk.f32.mxu0 %vm450_vm1, %v33595_v49  ;;  %v33620_v22 = vld [vmem:[%s32302_s21 + $0xd9] sm:$0xff] }
 0x17d   : > { %27650 = vmatmul.mubr.msk.f32.gmra.mrb[46].mxu1 %vm450_vm1, %v32989_v18  ;;  %28974 = vmatmul.mubr.msk.f32.gmra.mrb[14].mxu0 %vm450_vm1, %v33606_v57  ;;  %v33634_v18 = vld [vmem:[%s32302_s21 + $0xe9] sm:$0xff] }
 0x17e   : > { %27652 = vmatprep.mubr.msk.f32.mxu1 %vm450_vm1, %v32999_v20  ;;  %28976 = vmatprep.mubr.msk.f32.mxu0 %vm450_vm1, %v33609_v3  ;;  %v33637_v20 = vld [vmem:[%s32302_s21 + $0xf1] sm:$0xff] }
 0x181   : > { %27653 = vmatmul.mubr.msk.f32.gmra.mrb[48].mxu1 %vm450_vm1, %v33003_v16  ;;  %28977 = vmatmul.mubr.msk.f32.gmra.mrb[16].mxu0 %vm450_vm1, %v33620_v22  ;;  %v33648_v16 = vld [vmem:[%s32302_s21 + $0xf9] sm:$0xff] }
 0x182   : > { %27655 = vmatprep.mubr.msk.f32.mxu1 %vm450_vm1, %v33012_v14  ;;  %28979 = vmatprep.mubr.msk.f32.mxu0 %vm450_vm1, %v33623_v4  ;;  %v33651_v14 = vld [vmem:[%s32302_s21 + $0x101] sm:$0xff] }
 0x185   : > { %27656 = vmatmul.mubr.msk.f32.gmra.mrb[50].mxu1 %vm450_vm1, %v33015_v11  ;;  %28980 = vmatmul.mubr.msk.f32.gmra.mrb[18].mxu0 %vm450_vm1, %v33634_v18  ;;  %v33662_v11 = vld [vmem:[%s32302_s21 + $0x109] sm:$0xff] }
 0x186   : > { %27658 = vmatprep.mubr.msk.f32.mxu1 %vm450_vm1, %v33026_v10  ;;  %28982 = vmatprep.mubr.msk.f32.mxu0 %vm450_vm1, %v33637_v20  ;;  %v33665_v10 = vld [vmem:[%s32302_s21 + $0x111] sm:$0xff] }
 0x189   : > { %27659 = vmatmul.mubr.msk.f32.gmra.mrb[52].mxu1 %vm450_vm1, %v33029_v12  ;;  %28983 = vmatmul.mubr.msk.f32.gmra.mrb[20].mxu0 %vm450_vm1, %v33648_v16  ;;  %v33676_v12 = vld [vmem:[%s32302_s21 + $0x119] sm:$0xff] }
 0x18a   : > { %27661 = vmatprep.mubr.msk.f32.mxu1 %vm450_vm1, %v33040_v5  ;;  %28985 = vmatprep.mubr.msk.f32.mxu0 %vm450_vm1, %v33651_v14  ;;  %v33679_v5 = vld [vmem:[%s32302_s21 + $0x121] sm:$0xff] }
 0x18d   : > { %27662 = vmatmul.mubr.msk.f32.gmra.mrb[54].mxu1 %vm450_vm1, %v33043_v7  ;;  %28986 = vmatmul.mubr.msk.f32.gmra.mrb[22].mxu0 %vm450_vm1, %v33662_v11  ;;  %v33690_v7 = vld [vmem:[%s32302_s21 + $0x129] sm:$0xff] }
 0x18e   : > { %27664 = vmatprep.mubr.msk.f32.mxu1 %vm450_vm1, %v33054_v9  ;;  %28988 = vmatprep.mubr.msk.f32.mxu0 %vm450_vm1, %v33665_v10  ;;  %v33693_v9 = vld [vmem:[%s32302_s21 + $0x131] sm:$0xff] }
 0x191   : > { %27665 = vmatmul.mubr.msk.f32.gmra.mrb[56].mxu1 %vm450_vm1, %v33057_v13  ;;  %28989 = vmatmul.mubr.msk.f32.gmra.mrb[24].mxu0 %vm450_vm1, %v33676_v12  ;;  %v33704_v13 = vld [vmem:[%s32302_s21 + $0x139] sm:$0xff] }
 0x192   : > { %27667 = vmatprep.mubr.msk.f32.mxu1 %vm450_vm1, %v33068_v15  ;;  %28991 = vmatprep.mubr.msk.f32.mxu0 %vm450_vm1, %v33679_v5  ;;  %v33707_v15 = vld [vmem:[%s32302_s21 + $0x141] sm:$0xff] }
 0x195   : > { %27668 = vmatmul.mubr.msk.f32.gmra.mrb[58].mxu1 %vm450_vm1, %v33071_v17  ;;  %28992 = vmatmul.mubr.msk.f32.gmra.mrb[26].mxu0 %vm450_vm1, %v33690_v7  ;;  %v38948_v17 = vld [vmem:[#allocation77_spill] sm:$0xff] }
 0x196   : > { %27670 = vmatprep.mubr.msk.f32.mxu1 %vm450_vm1, %v33082_v19  ;;  %28994 = vmatprep.mubr.msk.f32.mxu0 %vm450_vm1, %v33693_v9  ;;  %v2836_v19 = vld [vmem:[%s32302_s21 + $0x8] sm:$0xff] }
 0x199   : > { %27671 = vmatmul.mubr.msk.f32.gmra.mrb[60].mxu1 %vm450_vm1, %v33085_v21  ;;  %28995 = vmatmul.mubr.msk.f32.gmra.mrb[28].mxu0 %vm450_vm1, %v33704_v13  ;;  %v2837_v21 = vld [vmem:[%s32302_s21 + $0x10] sm:$0xff] }
 0x19a   : > { %27673 = vmatprep.mubr.msk.f32.mxu1 %vm450_vm1, %v38948_v17  ;;  %28997 = vmatprep.mubr.msk.f32.mxu0 %vm450_vm1, %v33707_v15  ;;  %v13787_v17 = vld [vmem:[%s32302_s21 + $0x219] sm:$0xff] }
 0x19d   : > { %27674 = vmatmul.mubr.msk.f32.gmra.mrb[62].mxu1 %vm450_vm1, %v33099_v25  ;;  %28998 = vmatmul.mubr.msk.f32.gmra.mrb[30].mxu0 %vm450_vm1, %v33191_v28  ;;  %v2839_v25 = vld [vmem:[%s32302_s21 + $0x20] sm:$0xff]  ;;  %v2840_v28 = vld [vmem:[%s32302_s21 + $0x28] sm:$0xff] }
 0x19e   : > { %27678 = vmatprep.mubr.msk.f32.mxu1 %vm450_vm1, %v2836_v19  ;;  %29000 = vmatprep.mubr.msk.f32.mxu0 %vm450_vm1, %v33194_v30  ;;  %v2841_v30 = vld [vmem:[%s32302_s21 + $0x30] sm:$0xff]  ;;  %v33868_v19 = vld [vmem:[%s32302_s21 + $0xd8] sm:$0xff] }
 0x1a1   : > { %27679 = vmatmul.mubr.msk.f32.vlgmr.msra.gmra.mrb[0].mxu1 %vm450_vm1, %v2837_v21  ;;  %29001 = vmatmul.mubr.msk.f32.gmra.mrb[32].mxu0 %vm450_vm1, %v33205_v32  ;;  %v2842_v32 = vld [vmem:[%s32302_s21 + $0x38] sm:$0xff]  ;;  %v13788_v21 = vld [vmem:[%s32302_s21 + $0x221] sm:$0xff] }
 0x1a2   : > { %27775 = vmatpush3.msk.msra.mxu1 %vm643_vm0, %v33360_v27  ;;  %27681 = vmatprep.mubr.msk.f32.mxu1 %vm450_vm1, %v2838_v35  ;;  %v33854_v27 = vld [vmem:[%s32302_s21 + $0xc8] sm:$0xff]  ;;  %v33878_v35 = vld [vmem:[%s32302_s21 + $0xe0] sm:$0xff] }
 0x1a3   : > { %29003 = vmatprep.mubr.msk.f32.mxu0 %vm450_vm1, %v33208_v34  ;;  %27872 = vmatprep.subr.msk.mxu1 %vm643_vm0, %v33730_v37  ;;  %v2843_v34 = vld [vmem:[%s32302_s21 + $0x40] sm:$0xff] }
 0x1a5   : > { %27682 = vmatmul.mubr.msk.f32.gmra.mrb[2].mxu1 %vm450_vm1, %v2839_v25  ;;  %29004 = vmatmul.mubr.msk.f32.gmra.mrb[34].mxu0 %vm450_vm1, %v33219_v36  ;;  %v2844_v36 = vld [vmem:[%s32302_s21 + $0x48] sm:$0xff] }
 0x1a6   : > { %27684 = vmatprep.mubr.msk.f32.mxu1 %vm450_vm1, %v2840_v28  ;;  %29006 = vmatprep.mubr.msk.f32.mxu0 %vm450_vm1, %v33222_v38  ;;  %v2845_v38 = vld [vmem:[%s32302_s21 + $0x50] sm:$0xff]  ;;  %v33882_v28 = vld [vmem:[%s32302_s21 + $0xe8] sm:$0xff] }
 0x1a7   : > { %v13789_v25 = vld [vmem:[%s32302_s21 + $0x229] sm:$0xff] }
 0x1a9   : > { %27685 = vmatmul.mubr.msk.f32.gmra.mrb[4].mxu1 %vm450_vm1, %v2841_v30  ;;  %29007 = vmatmul.mubr.msk.f32.gmra.mrb[36].mxu0 %vm450_vm1, %v33233_v40  ;;  %v2846_v40 = vld [vmem:[%s32302_s21 + $0x58] sm:$0xff] }
 0x1aa   : > { %27687 = vmatprep.mubr.msk.f32.mxu1 %vm450_vm1, %v2842_v32  ;;  %29009 = vmatprep.mubr.msk.f32.mxu0 %vm450_vm1, %v33236_v42  ;;  %v2847_v42 = vld [vmem:[%s32302_s21 + $0x60] sm:$0xff]  ;;  %v13790_v30 = vld [vmem:[%s32302_s21 + $0x231] sm:$0xff] }
 0x1ab   : > { %v33892_v32 = vld [vmem:[%s32302_s21 + $0xf0] sm:$0xff] }
 0x1ad   : > { %27688 = vmatmul.mubr.msk.f32.gmra.mrb[6].mxu1 %vm450_vm1, %v2843_v34  ;;  %29010 = vmatmul.mubr.msk.f32.gmra.mrb[38].mxu0 %vm450_vm1, %v33247_v43  ;;  %v2848_v43 = vld [vmem:[%s32302_s21 + $0x68] sm:$0xff]  ;;  %v13791_v34 = vld [vmem:[%s32302_s21 + $0x239] sm:$0xff] }
 0x1ae   : > { %27690 = vmatprep.mubr.msk.f32.mxu1 %vm450_vm1, %v2844_v36  ;;  %29012 = vmatprep.mubr.msk.f32.mxu0 %vm450_vm1, %v33250_v44  ;;  %v2849_v44 = vld [vmem:[%s32302_s21 + $0x70] sm:$0xff]  ;;  %v33896_v36 = vld [vmem:[%s32302_s21 + $0xf8] sm:$0xff] }
 0x1b1   : > { %27691 = vmatmul.mubr.msk.f32.gmra.mrb[8].mxu1 %vm450_vm1, %v2845_v38  ;;  %29013 = vmatmul.mubr.msk.f32.gmra.mrb[40].mxu0 %vm450_vm1, %v33261_v45  ;;  %v2850_v45 = vld [vmem:[%s32302_s21 + $0x78] sm:$0xff]  ;;  %v13792_v38 = vld [vmem:[%s32302_s21 + $0x241] sm:$0xff] }
 0x1b2   : > { %27693 = vmatprep.mubr.msk.f32.mxu1 %vm450_vm1, %v2846_v40  ;;  %29015 = vmatprep.mubr.msk.f32.mxu0 %vm450_vm1, %v33264_v46  ;;  %v33791_v46 = vld [vmem:[%s32302_s21 + $0x80] sm:$0xff] }
 0x1b3   : > { %v33906_v40 = vld [vmem:[%s32302_s21 + $0x100] sm:$0xff] }
 0x1b5   : > { %27694 = vmatmul.mubr.msk.f32.gmra.mrb[10].mxu1 %vm450_vm1, %v2847_v42  ;;  %29016 = vmatmul.mubr.msk.f32.gmra.mrb[42].mxu0 %vm450_vm1, %v33275_v47  ;;  %v33794_v47 = vld [vmem:[%s32302_s21 + $0x88] sm:$0xff] }
 0x1b6   : > { %27696 = vmatprep.mubr.msk.f32.mxu1 %vm450_vm1, %v2848_v43  ;;  %29018 = vmatprep.mubr.msk.f32.mxu0 %vm450_vm1, %v33278_v48  ;;  %v33805_v48 = vld [vmem:[%s32302_s21 + $0x90] sm:$0xff]  ;;  %v33910_v43 = vld [vmem:[%s32302_s21 + $0x108] sm:$0xff] }
 0x1b7   : > { %v13793_v42 = vld [vmem:[%s32302_s21 + $0x249] sm:$0xff] }
 0x1b9   : > { %27697 = vmatmul.mubr.msk.f32.gmra.mrb[12].mxu1 %vm450_vm1, %v2849_v44  ;;  %29019 = vmatmul.mubr.msk.f32.gmra.mrb[44].mxu0 %vm450_vm1, %v33289_v50  ;;  %v33808_v50 = vld [vmem:[%s32302_s21 + $0x98] sm:$0xff] }
 0x1ba   : > { %27699 = vmatprep.mubr.msk.f32.mxu1 %vm450_vm1, %v2850_v45  ;;  %29021 = vmatprep.mubr.msk.f32.mxu0 %vm450_vm1, %v33292_v51  ;;  %v33819_v51 = vld [vmem:[%s32302_s21 + $0xa0] sm:$0xff]  ;;  %v33913_v44 = vld [vmem:[%s32302_s21 + $0x52] sm:$0xff] }
 0x1bb   : > { %38950 = vst [vmem:[#allocation10_spill] sm:$0xff] %v33913_v44  ;;  %v33923_v45 = vld [vmem:[%s32302_s21 + $0x110] sm:$0xff] }
 0x1bd   : > { %27700 = vmatmul.mubr.msk.f32.gmra.mrb[14].mxu1 %vm450_vm1, %v33791_v46  ;;  %29022 = vmatmul.mubr.msk.f32.gmra.mrb[46].mxu0 %vm450_vm1, %v33303_v54  ;;  %v33822_v54 = vld [vmem:[%s32302_s21 + $0xa8] sm:$0xff] }
 0x1be   : > { %27702 = vmatprep.mubr.msk.f32.mxu1 %vm450_vm1, %v33794_v47  ;;  %29024 = vmatprep.mubr.msk.f32.mxu0 %vm450_vm1, %v33306_v55  ;;  %v33833_v55 = vld [vmem:[%s32302_s21 + $0xb0] sm:$0xff] }
 0x1c1   : > { %27703 = vmatmul.mubr.msk.f32.gmra.mrb[16].mxu1 %vm450_vm1, %v33805_v48  ;;  %29025 = vmatmul.mubr.msk.f32.gmra.mrb[48].mxu0 %vm450_vm1, %v33317_v58  ;;  %v33836_v58 = vld [vmem:[%s32302_s21 + $0xb8] sm:$0xff] }
 0x1c2   : > { %27705 = vmatprep.mubr.msk.f32.mxu1 %vm450_vm1, %v33808_v50  ;;  %29027 = vmatprep.mubr.msk.f32.mxu0 %vm450_vm1, %v33320_v59  ;;  %v33839_v59 = vld [vmem:[%s32302_s21 + $0x201] sm:$0xff] }
 0x1c3   : > { %38949 = vst [vmem:[#allocation8_spill] sm:$0xff] %v33839_v59 }
 0x1c5   : > { %27706 = vmatmul.mubr.msk.f32.gmra.mrb[18].mxu1 %vm450_vm1, %v33819_v51  ;;  %29028 = vmatmul.mubr.msk.f32.gmra.mrb[50].mxu0 %vm450_vm1, %v33331_v62  ;;  %v33850_v62 = vld [vmem:[%s32302_s21 + $0xc0] sm:$0xff] }
 0x1c6   : > { %27708 = vmatprep.mubr.msk.f32.mxu1 %vm450_vm1, %v33822_v54  ;;  %29030 = vmatprep.mubr.msk.f32.mxu0 %vm450_vm1, %v33334_v63  ;;  %v13785_v63 = vld [vmem:[%s32302_s21 + $0x209] sm:$0xff] }
 0x1c9   : > { %27709 = vmatmul.mubr.msk.f32.gmra.mrb[20].mxu1 %vm450_vm1, %v33833_v55  ;;  %29031 = vmatmul.mubr.msk.f32.gmra.mrb[52].mxu0 %vm450_vm1, %v33345_v2  ;;  %v33864_v2 = vld [vmem:[%s32302_s21 + $0xd0] sm:$0xff] }
 0x1ca   : > { %27711 = vmatprep.mubr.msk.f32.mxu1 %vm450_vm1, %v33836_v58  ;;  %29033 = vmatprep.mubr.msk.f32.mxu0 %vm450_vm1, %v33839_v59  ;;  %v34015_v59 = vld [vmem:[%s32302_s21 + $0x9a] sm:$0xff] }
 0x1cb   : > { %38964 = vst [vmem:[#allocation38_spill] sm:$0xff] %v34015_v59 }
 0x1cd   : > { %27712 = vmatmul.mubr.msk.f32.gmra.mrb[22].mxu1 %vm450_vm1, %v33850_v62  ;;  %29034 = vmatmul.mubr.msk.f32.gmra.mrb[54].mxu0 %vm450_vm1, %v13785_v63  ;;  %v33926_v63 = vld [vmem:[%s32302_s21 + $0x5a] sm:$0xff] }
 0x1ce   : > { %27714 = vmatprep.mubr.msk.f32.mxu1 %vm450_vm1, %v33854_v27  ;;  %29036 = vmatprep.mubr.msk.f32.mxu0 %vm450_vm1, %v13786_v56  ;;  %38951 = vst [vmem:[#allocation12_spill] sm:$0xff] %v33926_v63  ;;  %v33929_v56 = vld [vmem:[%s32302_s21 + $0x118] sm:$0xff] }
 0x1d1   : > { %27715 = vmatmul.mubr.msk.f32.gmra.mrb[24].mxu1 %vm450_vm1, %v33864_v2  ;;  %29037 = vmatmul.mubr.msk.f32.gmra.mrb[56].mxu0 %vm450_vm1, %v13787_v17  ;;  %v33932_v17 = vld [vmem:[%s32302_s21 + $0x62] sm:$0xff] }
 0x1d2   : > { %27717 = vmatprep.mubr.msk.f32.mxu1 %vm450_vm1, %v33868_v19  ;;  %29039 = vmatprep.mubr.msk.f32.mxu0 %vm450_vm1, %v13788_v21  ;;  %38952 = vst [vmem:[#allocation14_spill] sm:$0xff] %v33932_v17  ;;  %v33943_v21 = vld [vmem:[%s32302_s21 + $0x120] sm:$0xff] }
 0x1d5   : > { %27718 = vmatmul.mubr.msk.f32.gmra.mrb[26].mxu1 %vm450_vm1, %v33878_v35  ;;  %29040 = vmatmul.mubr.msk.f32.gmra.mrb[58].mxu0 %vm450_vm1, %v13789_v25  ;;  %v33946_v25 = vld [vmem:[%s32302_s21 + $0x6a] sm:$0xff] }
 0x1d6   : > { %27720 = vmatprep.mubr.msk.f32.mxu1 %vm450_vm1, %v33882_v28  ;;  %29042 = vmatprep.mubr.msk.f32.mxu0 %vm450_vm1, %v13790_v30  ;;  %38953 = vst [vmem:[#allocation16_spill] sm:$0xff] %v33946_v25  ;;  %v33949_v30 = vld [vmem:[%s32302_s21 + $0x128] sm:$0xff] }
 0x1d9   : > { %27721 = vmatmul.mubr.msk.f32.gmra.mrb[28].mxu1 %vm450_vm1, %v33892_v32  ;;  %29043 = vmatmul.mubr.msk.f32.gmra.mrb[60].mxu0 %vm450_vm1, %v13791_v34  ;;  %v33952_v34 = vld [vmem:[%s32302_s21 + $0x72] sm:$0xff] }
 0x1da   : > { %27723 = vmatprep.mubr.msk.f32.mxu1 %vm450_vm1, %v33896_v36  ;;  %29045 = vmatprep.mubr.msk.f32.mxu0 %vm450_vm1, %v13792_v38  ;;  %38954 = vst [vmem:[#allocation18_spill] sm:$0xff] %v33952_v34  ;;  %v33965_v38 = vld [vmem:[%s32302_s21 + $0x130] sm:$0xff] }
 0x1db   : > { %38955 = vst [vmem:[#allocation20_spill] sm:$0xff] %v33965_v38 }
 0x1dd   : > { %27724 = vmatmul.mubr.msk.f32.gmra.mrb[30].mxu1 %vm450_vm1, %v33906_v40  ;;  %29046 = vmatmul.mubr.msk.f32.gmra.mrb[62].mxu0 %vm450_vm1, %v13793_v42  ;;  %v33968_v42 = vld [vmem:[%s32302_s21 + $0x7a] sm:$0xff] }
 0x1de   : > { %27726 = vmatprep.mubr.msk.f32.mxu1 %vm450_vm1, %v33910_v43  ;;  %29050 = vmatprep.mubr.msk.f32.mxu0 %vm450_vm1, %v33913_v44  ;;  %38956 = vst [vmem:[#allocation22_spill] sm:$0xff] %v33968_v42  ;;  %v33996_v44 = vld [vmem:[%s32302_s21 + $0x148] sm:$0xff] }
 0x1df   : > { %38961 = vst [vmem:[#allocation32_spill] sm:$0xff] %v33996_v44 }
 0x1e1   : > { %27727 = vmatmul.mubr.msk.f32.gmra.mrb[32].mxu1 %vm450_vm1, %v33923_v45  ;;  %29051 = vmatmul.mubr.msk.f32.vlgmr.msra.gmra.mrb[0].mxu0 %vm450_vm1, %v33926_v63  ;;  %v33993_v63 = vld [vmem:[%s32302_s21 + $0x8a] sm:$0xff] }
 0x1e2   : > { %27729 = vmatprep.mubr.msk.f32.mxu1 %vm450_vm1, %v33929_v56  ;;  %29053 = vmatprep.mubr.msk.f32.mxu0 %vm450_vm1, %v33932_v17  ;;  %v33971_v17 = vld [vmem:[%s32302_s21 + $0x138] sm:$0xff]  ;;  %38960 = vst [vmem:[#allocation30_spill] sm:$0xff] %v33993_v63 }
 0x1e3   : > { %29147 = vmatpush3.msk.msra.mxu0 %vm643_vm0, %v33541_v26  ;;  %38957 = vst [vmem:[#allocation24_spill] sm:$0xff] %v33971_v17  ;;  %v33974_v26 = vld [vmem:[%s32302_s21 + $0x82] sm:$0xff] }
 0x1e4   : > { %38958 = vst [vmem:[#allocation26_spill] sm:$0xff] %v33974_v26 }
 0x1e5   : > { %27730 = vmatmul.mubr.msk.f32.gmra.mrb[34].mxu1 %vm450_vm1, %v33943_v21  ;;  %29054 = vmatmul.mubr.msk.f32.gmra.mrb[2].mxu0 %vm450_vm1, %v33946_v25  ;;  %v33990_v25 = vld [vmem:[%s32302_s21 + $0x140] sm:$0xff] }
 0x1e6   : > { %27732 = vmatprep.mubr.msk.f32.mxu1 %vm450_vm1, %v33949_v30  ;;  %29056 = vmatprep.mubr.msk.f32.mxu0 %vm450_vm1, %v33952_v34  ;;  %v33983_v34 = vld [vmem:[%s38543_s1 + $0x4c] sm:$0xf]  ;;  %38959 = vst [vmem:[#allocation28_spill] sm:$0xff] %v33990_v25 }
 0x1e7   : > { %29244 = vmatprep.subr.msk.mxu0 %vm643_vm0, %v33983_v34 }
 0x1e9   : > { %27733 = vmatmul.mubr.msk.f32.gmra.mrb[36].mxu1 %vm450_vm1, %v33965_v38  ;;  %29057 = vmatmul.mubr.msk.f32.gmra.mrb[4].mxu0 %vm450_vm1, %v33968_v42  ;;  %v33999_v42 = vld [vmem:[%s32302_s21 + $0x92] sm:$0xff]  ;;  %v34021_v38 = vld [vmem:[%s32302_s21 + $0xa2] sm:$0xff] }
 0x1ea   : > { %27735 = vmatprep.mubr.msk.f32.mxu1 %vm450_vm1, %v33971_v17  ;;  %29059 = vmatprep.mubr.msk.f32.mxu0 %vm450_vm1, %v33974_v26  ;;  %38962 = vst [vmem:[#allocation34_spill] sm:$0xff] %v33999_v42  ;;  %v34012_v26 = vld [vmem:[%s32302_s21 + $0x150] sm:$0xff]  ;;  %v34018_v17 = vld [vmem:[%s32302_s21 + $0x158] sm:$0xff]  ;;  %38966 = vst [vmem:[#allocation42_spill] sm:$0xff] %v34021_v38 }
 0x1eb   : > { %38963 = vst [vmem:[#allocation36_spill] sm:$0xff] %v34012_v26  ;;  %38965 = vst [vmem:[#allocation40_spill] sm:$0xff] %v34018_v17 }
 0x1ed   : > { %27736 = vmatmul.mubr.msk.f32.gmra.mrb[38].mxu1 %vm450_vm1, %v33990_v25  ;;  %29060 = vmatmul.mubr.msk.f32.gmra.mrb[6].mxu0 %vm450_vm1, %v33993_v63  ;;  %v34035_v63 = vld [vmem:[%s32302_s21 + $0xaa] sm:$0xff]  ;;  %v34041_v25 = vld [vmem:[%s32302_s21 + $0xb2] sm:$0xff] }
 0x1ee   : > { %27738 = vmatprep.mubr.msk.f32.mxu1 %vm450_vm1, %v33996_v44  ;;  %29062 = vmatprep.mubr.msk.f32.mxu0 %vm450_vm1, %v33999_v42  ;;  %v34032_v42 = vld [vmem:[%s32302_s21 + $0x160] sm:$0xff]  ;;  %38968 = vst [vmem:[#allocation9_spill] sm:$0xff] %v34035_v63  ;;  %v34038_v44 = vld [vmem:[%s32302_s21 + $0x168] sm:$0xff]  ;;  %38970 = vst [vmem:[#allocation11_spill] sm:$0xff] %v34041_v25 }
 0x1ef   : > { %38967 = vst [vmem:[#allocation44_spill] sm:$0xff] %v34032_v42  ;;  %38969 = vst [vmem:[#allocation46_spill] sm:$0xff] %v34038_v44 }
 0x1f1   : > { %27739 = vmatmul.mubr.msk.f32.gmra.mrb[40].mxu1 %vm450_vm1, %v34012_v26  ;;  %29063 = vmatmul.mubr.msk.f32.gmra.mrb[8].mxu0 %vm450_vm1, %v34015_v59  ;;  %v34055_v59 = vld [vmem:[%s32302_s21 + $0xba] sm:$0xff]  ;;  %v34061_v26 = vld [vmem:[%s32302_s21 + $0xc2] sm:$0xff] }
 0x1f2   : > { %27741 = vmatprep.mubr.msk.f32.mxu1 %vm450_vm1, %v34018_v17  ;;  %29065 = vmatprep.mubr.msk.f32.mxu0 %vm450_vm1, %v34021_v38  ;;  %v34052_v38 = vld [vmem:[%s32302_s21 + $0x170] sm:$0xff]  ;;  %38972 = vst [vmem:[#allocation13_spill] sm:$0xff] %v34055_v59  ;;  %v34058_v17 = vld [vmem:[%s32302_s21 + $0x178] sm:$0xff]  ;;  %38974 = vst [vmem:[#allocation15_spill] sm:$0xff] %v34061_v26 }
 0x1f3   : > { %38971 = vst [vmem:[#allocation48_spill] sm:$0xff] %v34052_v38  ;;  %38973 = vst [vmem:[#allocation50_spill] sm:$0xff] %v34058_v17 }
 0x1f5   : > { %27742 = vmatmul.mubr.msk.f32.gmra.mrb[42].mxu1 %vm450_vm1, %v34032_v42  ;;  %29066 = vmatmul.mubr.msk.f32.gmra.mrb[10].mxu0 %vm450_vm1, %v34035_v63  ;;  %v34075_v63 = vld [vmem:[%s32302_s21 + $0xca] sm:$0xff]  ;;  %v34081_v42 = vld [vmem:[%s32302_s21 + $0xd2] sm:$0xff] }
 0x1f6   : > { %27744 = vmatprep.mubr.msk.f32.mxu1 %vm450_vm1, %v34038_v44  ;;  %29068 = vmatprep.mubr.msk.f32.mxu0 %vm450_vm1, %v34041_v25  ;;  %v34072_v25 = vld [vmem:[%s32302_s21 + $0x180] sm:$0xff]  ;;  %38976 = vst [vmem:[#allocation17_spill] sm:$0xff] %v34075_v63  ;;  %v34078_v44 = vld [vmem:[%s32302_s21 + $0x188] sm:$0xff]  ;;  %38978 = vst [vmem:[#allocation19_spill] sm:$0xff] %v34081_v42 }
 0x1f7   : > { %38975 = vst [vmem:[#allocation52_spill] sm:$0xff] %v34072_v25  ;;  %38977 = vst [vmem:[#allocation54_spill] sm:$0xff] %v34078_v44 }
 0x1f9   : > { %27745 = vmatmul.mubr.msk.f32.gmra.mrb[44].mxu1 %vm450_vm1, %v34052_v38  ;;  %29069 = vmatmul.mubr.msk.f32.gmra.mrb[12].mxu0 %vm450_vm1, %v34055_v59  ;;  %v34095_v59 = vld [vmem:[%s32302_s21 + $0xda] sm:$0xff]  ;;  %v34101_v38 = vld [vmem:[%s32302_s21 + $0xe2] sm:$0xff] }
 0x1fa   : > { %27747 = vmatprep.mubr.msk.f32.mxu1 %vm450_vm1, %v34058_v17  ;;  %29071 = vmatprep.mubr.msk.f32.mxu0 %vm450_vm1, %v34061_v26  ;;  %v34092_v26 = vld [vmem:[%s32302_s21 + $0x190] sm:$0xff]  ;;  %38980 = vst [vmem:[#allocation21_spill] sm:$0xff] %v34095_v59  ;;  %v34098_v17 = vld [vmem:[%s32302_s21 + $0x198] sm:$0xff]  ;;  %38982 = vst [vmem:[#allocation23_spill] sm:$0xff] %v34101_v38 }
 0x1fb   : > { %38979 = vst [vmem:[#allocation56_spill] sm:$0xff] %v34092_v26  ;;  %38981 = vst [vmem:[#allocation58_spill] sm:$0xff] %v34098_v17 }
 0x1fd   : > { %27748 = vmatmul.mubr.msk.f32.gmra.mrb[46].mxu1 %vm450_vm1, %v34072_v25  ;;  %29072 = vmatmul.mubr.msk.f32.gmra.mrb[14].mxu0 %vm450_vm1, %v34075_v63  ;;  %v34115_v63 = vld [vmem:[%s32302_s21 + $0xea] sm:$0xff]  ;;  %v34121_v25 = vld [vmem:[%s32302_s21 + $0xf2] sm:$0xff] }
 0x1fe   : > { %27750 = vmatprep.mubr.msk.f32.mxu1 %vm450_vm1, %v34078_v44  ;;  %29074 = vmatprep.mubr.msk.f32.mxu0 %vm450_vm1, %v34081_v42  ;;  %v34112_v42 = vld [vmem:[%s32302_s21 + $0x1a0] sm:$0xff]  ;;  %38984 = vst [vmem:[#allocation25_spill] sm:$0xff] %v34115_v63  ;;  %v34118_v44 = vld [vmem:[%s32302_s21 + $0x1a8] sm:$0xff]  ;;  %38986 = vst [vmem:[#allocation27_spill] sm:$0xff] %v34121_v25 }
 0x1ff   : > { %38983 = vst [vmem:[#allocation60_spill] sm:$0xff] %v34112_v42  ;;  %38985 = vst [vmem:[#allocation62_spill] sm:$0xff] %v34118_v44 }
 0x201   : > { %27751 = vmatmul.mubr.msk.f32.gmra.mrb[48].mxu1 %vm450_vm1, %v34092_v26  ;;  %29075 = vmatmul.mubr.msk.f32.gmra.mrb[16].mxu0 %vm450_vm1, %v34095_v59  ;;  %v34135_v59 = vld [vmem:[%s32302_s21 + $0xfa] sm:$0xff]  ;;  %v34141_v26 = vld [vmem:[%s32302_s21 + $0x102] sm:$0xff] }
 0x202   : > { %27753 = vmatprep.mubr.msk.f32.mxu1 %vm450_vm1, %v34098_v17  ;;  %29077 = vmatprep.mubr.msk.f32.mxu0 %vm450_vm1, %v34101_v38  ;;  %v34132_v38 = vld [vmem:[%s32302_s21 + $0x1b0] sm:$0xff]  ;;  %38988 = vst [vmem:[#allocation29_spill] sm:$0xff] %v34135_v59  ;;  %v34138_v17 = vld [vmem:[%s32302_s21 + $0x1b8] sm:$0xff]  ;;  %38990 = vst [vmem:[#allocation31_spill] sm:$0xff] %v34141_v26 }
 0x203   : > { %38987 = vst [vmem:[#allocation64_spill] sm:$0xff] %v34132_v38  ;;  %38989 = vst [vmem:[#allocation66_spill] sm:$0xff] %v34138_v17 }
 0x205   : > { %27754 = vmatmul.mubr.msk.f32.gmra.mrb[50].mxu1 %vm450_vm1, %v34112_v42  ;;  %29078 = vmatmul.mubr.msk.f32.gmra.mrb[18].mxu0 %vm450_vm1, %v34115_v63  ;;  %v34155_v63 = vld [vmem:[%s32302_s21 + $0x10a] sm:$0xff]  ;;  %v34161_v42 = vld [vmem:[%s32302_s21 + $0x112] sm:$0xff] }
 0x206   : > { %27756 = vmatprep.mubr.msk.f32.mxu1 %vm450_vm1, %v34118_v44  ;;  %29080 = vmatprep.mubr.msk.f32.mxu0 %vm450_vm1, %v34121_v25  ;;  %v34152_v25 = vld [vmem:[%s32302_s21 + $0x1c0] sm:$0xff]  ;;  %38992 = vst [vmem:[#allocation33_spill] sm:$0xff] %v34155_v63  ;;  %v34158_v44 = vld [vmem:[%s32302_s21 + $0x1c8] sm:$0xff]  ;;  %38994 = vst [vmem:[#allocation35_spill] sm:$0xff] %v34161_v42 }
 0x207   : > { %38991 = vst [vmem:[#allocation68_spill] sm:$0xff] %v34152_v25  ;;  %38993 = vst [vmem:[#allocation70_spill] sm:$0xff] %v34158_v44 }
 0x209   : > { %27757 = vmatmul.mubr.msk.f32.gmra.mrb[52].mxu1 %vm450_vm1, %v34132_v38  ;;  %29081 = vmatmul.mubr.msk.f32.gmra.mrb[20].mxu0 %vm450_vm1, %v34135_v59  ;;  %v34175_v59 = vld [vmem:[%s32302_s21 + $0x11a] sm:$0xff]  ;;  %v34181_v38 = vld [vmem:[%s32302_s21 + $0x122] sm:$0xff] }
 0x20a   : > { %27759 = vmatprep.mubr.msk.f32.mxu1 %vm450_vm1, %v34138_v17  ;;  %29083 = vmatprep.mubr.msk.f32.mxu0 %vm450_vm1, %v34141_v26  ;;  %v34172_v26 = vld [vmem:[%s32302_s21 + $0x1d0] sm:$0xff]  ;;  %38995 = vst [vmem:[#allocation37_spill] sm:$0xff] %v34175_v59  ;;  %v34178_v17 = vld [vmem:[%s32302_s21 + $0x1d8] sm:$0xff]  ;;  %38997 = vst [vmem:[#allocation41_spill] sm:$0xff] %v34181_v38 }
 0x20b   : > { %38996 = vst [vmem:[#allocation39_spill] sm:$0xff] %v34178_v17 }
 0x20d   : > { %27760 = vmatmul.mubr.msk.f32.gmra.mrb[54].mxu1 %vm450_vm1, %v34152_v25  ;;  %29084 = vmatmul.mubr.msk.f32.gmra.mrb[22].mxu0 %vm450_vm1, %v34155_v63  ;;  %v34195_v63 = vld [vmem:[%s32302_s21 + $0x12a] sm:$0xff]  ;;  %v34201_v25 = vld [vmem:[%s32302_s21 + $0x132] sm:$0xff] }
 0x20e   : > { %27762 = vmatprep.mubr.msk.f32.mxu1 %vm450_vm1, %v34158_v44  ;;  %29086 = vmatprep.mubr.msk.f32.mxu0 %vm450_vm1, %v34161_v42  ;;  %v34192_v42 = vld [vmem:[%s32302_s21 + $0x1e0] sm:$0xff]  ;;  %38999 = vst [vmem:[#allocation45_spill] sm:$0xff] %v34195_v63  ;;  %v34198_v44 = vld [vmem:[%s32302_s21 + $0x1e8] sm:$0xff]  ;;  %39001 = vst [vmem:[#allocation49_spill] sm:$0xff] %v34201_v25 }
 0x20f   : > { %38998 = vst [vmem:[#allocation43_spill] sm:$0xff] %v34192_v42  ;;  %39000 = vst [vmem:[#allocation47_spill] sm:$0xff] %v34198_v44 }
 0x211   : > { %27763 = vmatmul.mubr.msk.f32.gmra.mrb[56].mxu1 %vm450_vm1, %v34172_v26  ;;  %29087 = vmatmul.mubr.msk.f32.gmra.mrb[24].mxu0 %vm450_vm1, %v34175_v59  ;;  %v34215_v59 = vld [vmem:[%s32302_s21 + $0x13a] sm:$0xff] }
 0x212   : > { %27765 = vmatprep.mubr.msk.f32.mxu1 %vm450_vm1, %v34178_v17  ;;  %29089 = vmatprep.mubr.msk.f32.mxu0 %vm450_vm1, %v34181_v38  ;;  %v34212_v38 = vld [vmem:[%s32302_s21 + $0x1f0] sm:$0xff]  ;;  %39003 = vst [vmem:[#allocation53_spill] sm:$0xff] %v34215_v59  ;;  %v34218_v17 = vld [vmem:[%s32302_s21 + $0x1f8] sm:$0xff] }
 0x213   : > { %39002 = vst [vmem:[#allocation51_spill] sm:$0xff] %v34212_v38  ;;  %39004 = vst [vmem:[#allocation55_spill] sm:$0xff] %v34218_v17 }
 0x215   : > { %27766 = vmatmul.mubr.msk.f32.gmra.mrb[58].mxu1 %vm450_vm1, %v34192_v42  ;;  %29090 = vmatmul.mubr.msk.f32.gmra.mrb[26].mxu0 %vm450_vm1, %v34195_v63  ;;  %v34221_v42 = vld [vmem:[%s32302_s21 + $0x142] sm:$0xff] }
 0x216   : > { %27768 = vmatprep.mubr.msk.f32.mxu1 %vm450_vm1, %v34198_v44  ;;  %29092 = vmatprep.mubr.msk.f32.mxu0 %vm450_vm1, %v34201_v25  ;;  %39005 = vst [vmem:[#allocation57_spill] sm:$0xff] %v34221_v42  ;;  %v34232_v25 = vld [vmem:[%s32302_s21 + $0x14a] sm:$0xff]  ;;  %v34236_v44 = vld [vmem:[%s32302_s21 + $0x152] sm:$0xff] }
 0x217   : > { %39006 = vst [vmem:[#allocation59_spill] sm:$0xff] %v34232_v25  ;;  %v3674_v63 = vld [vmem:[%s32302_s21 + $0x9] sm:$0xff]  ;;  %39007 = vst [vmem:[#allocation61_spill] sm:$0xff] %v34236_v44 }
 0x219   : > { %27769 = vmatmul.mubr.msk.f32.gmra.mrb[60].mxu1 %vm450_vm1, %v34212_v38  ;;  %29093 = vmatmul.mubr.msk.f32.gmra.mrb[28].mxu0 %vm450_vm1, %v34215_v59  ;;  %v34247_v59 = vld [vmem:[%s32302_s21 + $0x15a] sm:$0xff]  ;;  %v34251_v38 = vld [vmem:[%s32302_s21 + $0x162] sm:$0xff] }
 0x21a   : > { %27771 = vmatprep.mubr.msk.f32.mxu1 %vm450_vm1, %v34218_v17  ;;  %29095 = vmatprep.mubr.msk.f32.mxu0 %vm450_vm1, %v34221_v42  ;;  %v3675_v42 = vld [vmem:[%s32302_s21 + $0x11] sm:$0xff]  ;;  %39008 = vst [vmem:[#allocation63_spill] sm:$0xff] %v34247_v59  ;;  %v3676_v17 = vld [vmem:[%s32302_s21 + $0x19] sm:$0xff]  ;;  %39009 = vst [vmem:[#allocation65_spill] sm:$0xff] %v34251_v38 }
 0x21d   : > { %27772 = vmatmul.mubr.msk.f32.gmra.mrb[62].mxu1 %vm450_vm1, %v33445_v1  ;;  %29096 = vmatmul.mubr.msk.f32.gmra.mrb[30].mxu0 %vm450_vm1, %v34232_v25  ;;  %v34256_v1 = vld [vmem:[%s38543_s1 + $0x18] sm:$0xf]  ;;  %v3678_v25 = vld [vmem:[%s32302_s21 + $0x29] sm:$0xff] }
 0x21e   : > { %27776 = vmatprep.mubr.msk.f32.mxu1 %vm450_vm1, %v3674_v63  ;;  %29098 = vmatprep.mubr.msk.f32.mxu0 %vm450_vm1, %v34236_v44  ;;  %v3677_v63 = vld [vmem:[%s32302_s21 + $0x21] sm:$0xff]  ;;  %v34266_v44 = vld [vmem:[%s32302_s21 + $0x16a] sm:$0xff] }
 0x21f   : > { %39010 = vst [vmem:[#allocation67_spill] sm:$0xff] %v34266_v44 }
 0x221   : > { %27777 = vmatmul.mubr.msk.f32.vlgmr.msra.gmra.mrb[0].mxu1 %vm450_vm1, %v3675_v42  ;;  %29099 = vmatmul.mubr.msk.f32.gmra.mrb[32].mxu0 %vm450_vm1, %v34247_v59  ;;  %v34272_v42 = vld [vmem:[%s32302_s21 + $0x172] sm:$0xff]  ;;  %v34288_v59 = vld [vmem:[%s32302_s21 + $0x182] sm:$0xff] }
 0x222   : > { %27873 = vmatpush3.msk.msra.mxu1 %vm643_vm0, %v33730_v37  ;;  %27779 = vmatprep.mubr.msk.f32.mxu1 %vm450_vm1, %v3676_v17  ;;  %39011 = vst [vmem:[#allocation69_spill] sm:$0xff] %v34272_v42  ;;  %v3679_v37 = vld [vmem:[%s32302_s21 + $0x31] sm:$0xff]  ;;  %v34284_v17 = vld [vmem:[%s32302_s21 + $0x17a] sm:$0xff] }
 0x223   : > { %29101 = vmatprep.mubr.msk.f32.mxu0 %vm450_vm1, %v34251_v38  ;;  %27970 = vmatprep.subr.msk.mxu1 %vm643_vm0, %v34256_v1  ;;  %v3680_v38 = vld [vmem:[%s32302_s21 + $0x39] sm:$0xff] }
 0x225   : > { %27780 = vmatmul.mubr.msk.f32.gmra.mrb[2].mxu1 %vm450_vm1, %v3677_v63  ;;  %29102 = vmatmul.mubr.msk.f32.gmra.mrb[34].mxu0 %vm450_vm1, %v34266_v44  ;;  %v34298_v63 = vld [vmem:[%s32302_s21 + $0x18a] sm:$0xff]  ;;  %v34302_v44 = vld [vmem:[%s32302_s21 + $0x192] sm:$0xff] }
 0x226   : > { %27782 = vmatprep.mubr.msk.f32.mxu1 %vm450_vm1, %v3678_v25  ;;  %29104 = vmatprep.mubr.msk.f32.mxu0 %vm450_vm1, %v34272_v42  ;;  %v3681_v25 = vld [vmem:[%s32302_s21 + $0x41] sm:$0xff]  ;;  %v3682_v42 = vld [vmem:[%s32302_s21 + $0x49] sm:$0xff] }
 0x229   : > { %27783 = vmatmul.mubr.msk.f32.gmra.mrb[4].mxu1 %vm450_vm1, %v3679_v37  ;;  %29105 = vmatmul.mubr.msk.f32.gmra.mrb[36].mxu0 %vm450_vm1, %v34284_v17  ;;  %v34314_v37 = vld [vmem:[%s32302_s21 + $0x1a2] sm:$0xff] }
 0x22a   : > { %27785 = vmatprep.mubr.msk.f32.mxu1 %vm450_vm1, %v3680_v38  ;;  %29107 = vmatprep.mubr.msk.f32.mxu0 %vm450_vm1, %v34288_v59  ;;  %v34311_v38 = vld [vmem:[%s32302_s21 + $0x19a] sm:$0xff] }
 0x22d   : > { %27786 = vmatmul.mubr.msk.f32.gmra.mrb[6].mxu1 %vm450_vm1, %v3681_v25  ;;  %29108 = vmatmul.mubr.msk.f32.gmra.mrb[38].mxu0 %vm450_vm1, %v34298_v63  ;;  %v34328_v25 = vld [vmem:[%s32302_s21 + $0x1b2] sm:$0xff] }
 0x22e   : > { %27788 = vmatprep.mubr.msk.f32.mxu1 %vm450_vm1, %v3682_v42  ;;  %29110 = vmatprep.mubr.msk.f32.mxu0 %vm450_vm1, %v34302_v44  ;;  %v34325_v42 = vld [vmem:[%s32302_s21 + $0x1aa] sm:$0xff] }
 0x231   : > { %27789 = vmatmul.mubr.msk.f32.gmra.mrb[8].mxu1 %vm450_vm1, %v33489_v0  ;;  %29111 = vmatmul.mubr.msk.f32.gmra.mrb[40].mxu0 %vm450_vm1, %v34311_v38  ;;  %v34339_v0 = vld [vmem:[%s32302_s21 + $0x1ba] sm:$0xff] }
 0x232   : > { %27791 = vmatprep.mubr.msk.f32.mxu1 %vm450_vm1, %v33499_v6  ;;  %29113 = vmatprep.mubr.msk.f32.mxu0 %vm450_vm1, %v34314_v37  ;;  %v34342_v6 = vld [vmem:[%s32302_s21 + $0x1c2] sm:$0xff] }
 0x235   : > { %27792 = vmatmul.mubr.msk.f32.gmra.mrb[10].mxu1 %vm450_vm1, %v33502_v8  ;;  %29114 = vmatmul.mubr.msk.f32.gmra.mrb[42].mxu0 %vm450_vm1, %v34325_v42  ;;  %v34353_v8 = vld [vmem:[%s32302_s21 + $0x1ca] sm:$0xff] }
 0x236   : > { %27794 = vmatprep.mubr.msk.f32.mxu1 %vm450_vm1, %v33513_v31  ;;  %29116 = vmatprep.mubr.msk.f32.mxu0 %vm450_vm1, %v34328_v25  ;;  %v34356_v31 = vld [vmem:[%s32302_s21 + $0x1d2] sm:$0xff] }
 0x239   : > { %27795 = vmatmul.mubr.msk.f32.gmra.mrb[12].mxu1 %vm450_vm1, %v33516_v33  ;;  %29117 = vmatmul.mubr.msk.f32.gmra.mrb[44].mxu0 %vm450_vm1, %v34339_v0  ;;  %v34367_v33 = vld [vmem:[%s32302_s21 + $0x1da] sm:$0xff] }
 0x23a   : > { %27797 = vmatprep.mubr.msk.f32.mxu1 %vm450_vm1, %v33529_v24  ;;  %29119 = vmatprep.mubr.msk.f32.mxu0 %vm450_vm1, %v34342_v6  ;;  %v34370_v24 = vld [vmem:[%s32302_s21 + $0x1e2] sm:$0xff] }
 0x23d   : > { %27798 = vmatmul.mubr.msk.f32.gmra.mrb[14].mxu1 %vm450_vm1, %v33532_v39  ;;  %29120 = vmatmul.mubr.msk.f32.gmra.mrb[46].mxu0 %vm450_vm1, %v34353_v8  ;;  %v34381_v39 = vld [vmem:[%s32302_s21 + $0x1ea] sm:$0xff] }
 0x23e   : > { %27800 = vmatprep.mubr.msk.f32.mxu1 %vm450_vm1, %v33548_v52  ;;  %29122 = vmatprep.mubr.msk.f32.mxu0 %vm450_vm1, %v34356_v31  ;;  %v34384_v52 = vld [vmem:[%s32302_s21 + $0x1f2] sm:$0xff] }
 0x241   : > { %27801 = vmatmul.mubr.msk.f32.gmra.mrb[16].mxu1 %vm450_vm1, %v33551_v53  ;;  %29123 = vmatmul.mubr.msk.f32.gmra.mrb[48].mxu0 %vm450_vm1, %v34367_v33  ;;  %v34395_v53 = vld [vmem:[%s32302_s21 + $0x1fa] sm:$0xff] }
 0x242   : > { %27803 = vmatprep.mubr.msk.f32.mxu1 %vm450_vm1, %v33564_v60  ;;  %29125 = vmatprep.mubr.msk.f32.mxu0 %vm450_vm1, %v34370_v24  ;;  %39012 = vst [vmem:[#allocation71_spill] sm:$0xff] %v34395_v53  ;;  %v34398_v60 = vld [vmem:[%s32302_s21 + $0x202] sm:$0xff] }
 0x245   : > { %27804 = vmatmul.mubr.msk.f32.gmra.mrb[18].mxu1 %vm450_vm1, %v33567_v61  ;;  %29126 = vmatmul.mubr.msk.f32.gmra.mrb[50].mxu0 %vm450_vm1, %v34381_v39  ;;  %v14623_v61 = vld [vmem:[%s32302_s21 + $0x20a] sm:$0xff] }
 0x246   : > { %27806 = vmatprep.mubr.msk.f32.mxu1 %vm450_vm1, %v33578_v23  ;;  %29128 = vmatprep.mubr.msk.f32.mxu0 %vm450_vm1, %v34384_v52  ;;  %v14624_v23 = vld [vmem:[%s32302_s21 + $0x212] sm:$0xff] }
 0x249   : > { %27807 = vmatmul.mubr.msk.f32.gmra.mrb[20].mxu1 %vm450_vm1, %v33581_v29  ;;  %29129 = vmatmul.mubr.msk.f32.gmra.mrb[52].mxu0 %vm450_vm1, %v34395_v53  ;;  %v14625_v29 = vld [vmem:[%s32302_s21 + $0x21a] sm:$0xff]  ;;  %v14626_v53 = vld [vmem:[%s32302_s21 + $0x222] sm:$0xff] }
 0x24a   : > { %27809 = vmatprep.mubr.msk.f32.mxu1 %vm450_vm1, %v33592_v41  ;;  %29131 = vmatprep.mubr.msk.f32.mxu0 %vm450_vm1, %v34398_v60  ;;  %v14627_v41 = vld [vmem:[%s32302_s21 + $0x22a] sm:$0xff] }
 0x24d   : > { %27810 = vmatmul.mubr.msk.f32.gmra.mrb[22].mxu1 %vm450_vm1, %v33595_v49  ;;  %29132 = vmatmul.mubr.msk.f32.gmra.mrb[54].mxu0 %vm450_vm1, %v14623_v61  ;;  %v14628_v49 = vld [vmem:[%s32302_s21 + $0x232] sm:$0xff] }
 0x24e   : > { %27812 = vmatprep.mubr.msk.f32.mxu1 %vm450_vm1, %v33606_v57  ;;  %29134 = vmatprep.mubr.msk.f32.mxu0 %vm450_vm1, %v14624_v23  ;;  %v14629_v57 = vld [vmem:[%s32302_s21 + $0x23a] sm:$0xff]  ;;  %v4513_v61 = vld [vmem:[%s32302_s21 + $0x12] sm:$0xff] }
 0x24f   : > { %v4514_v23 = vld [vmem:[%s32302_s21 + $0x1a] sm:$0xff] }
 0x251   : > { %27813 = vmatmul.mubr.msk.f32.gmra.mrb[24].mxu1 %vm450_vm1, %v33609_v3  ;;  %29135 = vmatmul.mubr.msk.f32.gmra.mrb[56].mxu0 %vm450_vm1, %v14625_v29  ;;  %v14630_v3 = vld [vmem:[%s32302_s21 + $0x242] sm:$0xff]  ;;  %v34659_v29 = vld [vmem:[%s38543_s1 + $0x1c] sm:$0xf] }
 0x252   : > { %27815 = vmatprep.mubr.msk.f32.mxu1 %vm450_vm1, %v33620_v22  ;;  %29137 = vmatprep.mubr.msk.f32.mxu0 %vm450_vm1, %v14626_v53  ;;  %v14631_v22 = vld [vmem:[%s32302_s21 + $0x24a] sm:$0xff] }
 0x253   : > { %v39024_v53 = vld [vmem:[#allocation52_spill] sm:$0xff] }
 0x255   : > { %27816 = vmatmul.mubr.msk.f32.gmra.mrb[26].mxu1 %vm450_vm1, %v33623_v4  ;;  %29138 = vmatmul.mubr.msk.f32.gmra.mrb[58].mxu0 %vm450_vm1, %v14627_v41  ;;  %v34473_v4 = vld [vmem:[%s38543_s1 + $0x50] sm:$0xf]  ;;  %v39025_v41 = vld [vmem:[#allocation54_spill] sm:$0xff] }
 0x256   : > { %27818 = vmatprep.mubr.msk.f32.mxu1 %vm450_vm1, %v33634_v18  ;;  %29140 = vmatprep.mubr.msk.f32.mxu0 %vm450_vm1, %v14628_v49  ;;  %v34480_v18 = vld [vmem:[%s32302_s21 + $0x149] sm:$0xff] }
 0x257   : > { %v4515_v49 = vld [vmem:[%s32302_s21 + $0x22] sm:$0xff] }
 0x259   : > { %27819 = vmatmul.mubr.msk.f32.gmra.mrb[28].mxu1 %vm450_vm1, %v33637_v20  ;;  %29141 = vmatmul.mubr.msk.f32.gmra.mrb[60].mxu0 %vm450_vm1, %v14629_v57  ;;  %v34493_v20 = vld [vmem:[%s32302_s21 + $0x151] sm:$0xff]  ;;  %v39026_v57 = vld [vmem:[#allocation56_spill] sm:$0xff] }
 0x25a   : > { %27821 = vmatprep.mubr.msk.f32.mxu1 %vm450_vm1, %v33648_v16  ;;  %29143 = vmatprep.mubr.msk.f32.mxu0 %vm450_vm1, %v14630_v3  ;;  %v34496_v16 = vld [vmem:[%s32302_s21 + $0x159] sm:$0xff]  ;;  %v4516_v3 = vld [vmem:[%s32302_s21 + $0x2a] sm:$0xff] }
 0x25d   : > { %27822 = vmatmul.mubr.msk.f32.gmra.mrb[30].mxu1 %vm450_vm1, %v33651_v14  ;;  %29144 = vmatmul.mubr.msk.f32.gmra.mrb[62].mxu0 %vm450_vm1, %v14631_v22  ;;  %v34507_v14 = vld [vmem:[%s32302_s21 + $0x161] sm:$0xff]  ;;  %v39027_v22 = vld [vmem:[#allocation58_spill] sm:$0xff] }
 0x25e   : > { %27824 = vmatprep.mubr.msk.f32.mxu1 %vm450_vm1, %v33662_v11  ;;  %29148 = vmatprep.mubr.msk.f32.mxu0 %vm450_vm1, %v33791_v46  ;;  %v34510_v11 = vld [vmem:[%s32302_s21 + $0x169] sm:$0xff] }
 0x25f   : > { %v34566_v46 = vld [vmem:[%s32302_s21 + $0x1a9] sm:$0xff] }
 0x261   : > { %27825 = vmatmul.mubr.msk.f32.gmra.mrb[32].mxu1 %vm450_vm1, %v33665_v10  ;;  %29149 = vmatmul.mubr.msk.f32.vlgmr.msra.gmra.mrb[0].mxu0 %vm450_vm1, %v33794_v47  ;;  %v34521_v10 = vld [vmem:[%s32302_s21 + $0x171] sm:$0xff] }
 0x262   : > { %27827 = vmatprep.mubr.msk.f32.mxu1 %vm450_vm1, %v33676_v12  ;;  %29151 = vmatprep.mubr.msk.f32.mxu0 %vm450_vm1, %v33805_v48  ;;  %v34524_v12 = vld [vmem:[%s32302_s21 + $0x179] sm:$0xff]  ;;  %v34577_v47 = vld [vmem:[%s32302_s21 + $0x1b1] sm:$0xff] }
 0x263   : > { %29245 = vmatpush3.msk.msra.mxu0 %vm643_vm0, %v33983_v34  ;;  %v34580_v48 = vld [vmem:[%s32302_s21 + $0x1b9] sm:$0xff] }
 0x264   : > { %29342 = vmatprep.subr.msk.mxu0 %vm643_vm0, %v34473_v4  ;;  %v39023_v34 = vld [vmem:[#allocation50_spill] sm:$0xff] }
 0x265   : > { %27828 = vmatmul.mubr.msk.f32.gmra.mrb[34].mxu1 %vm450_vm1, %v33679_v5  ;;  %29152 = vmatmul.mubr.msk.f32.gmra.mrb[2].mxu0 %vm450_vm1, %v33808_v50  ;;  %v34535_v5 = vld [vmem:[%s32302_s21 + $0x181] sm:$0xff] }
 0x266   : > { %27830 = vmatprep.mubr.msk.f32.mxu1 %vm450_vm1, %v33690_v7  ;;  %29154 = vmatprep.mubr.msk.f32.mxu0 %vm450_vm1, %v33819_v51  ;;  %v34538_v7 = vld [vmem:[%s32302_s21 + $0x189] sm:$0xff]  ;;  %v34591_v51 = vld [vmem:[%s32302_s21 + $0x1c1] sm:$0xff] }
 0x267   : > { %v39013_v50 = vld [vmem:[#allocation20_spill] sm:$0xff] }
 0x269   : > { %27831 = vmatmul.mubr.msk.f32.gmra.mrb[36].mxu1 %vm450_vm1, %v33693_v9  ;;  %29155 = vmatmul.mubr.msk.f32.gmra.mrb[4].mxu0 %vm450_vm1, %v33822_v54  ;;  %v34549_v9 = vld [vmem:[%s32302_s21 + $0x191] sm:$0xff]  ;;  %v34594_v54 = vld [vmem:[%s32302_s21 + $0x1c9] sm:$0xff] }
 0x26a   : > { %27833 = vmatprep.mubr.msk.f32.mxu1 %vm450_vm1, %v33704_v13  ;;  %29157 = vmatprep.mubr.msk.f32.mxu0 %vm450_vm1, %v33833_v55  ;;  %v34552_v13 = vld [vmem:[%s32302_s21 + $0x199] sm:$0xff]  ;;  %v39014_v55 = vld [vmem:[#allocation24_spill] sm:$0xff] }
 0x26d   : > { %27834 = vmatmul.mubr.msk.f32.gmra.mrb[38].mxu1 %vm450_vm1, %v33707_v15  ;;  %29158 = vmatmul.mubr.msk.f32.gmra.mrb[6].mxu0 %vm450_vm1, %v33836_v58  ;;  %v34563_v15 = vld [vmem:[%s32302_s21 + $0x1a1] sm:$0xff] }
 0x26e   : > { %27836 = vmatprep.mubr.msk.f32.mxu1 %vm450_vm1, %v34480_v18  ;;  %29160 = vmatprep.mubr.msk.f32.mxu0 %vm450_vm1, %v33850_v62  ;;  %v39015_v58 = vld [vmem:[#allocation28_spill] sm:$0xff]  ;;  %v34605_v62 = vld [vmem:[%s32302_s21 + $0x1d1] sm:$0xff] }
 0x271   : > { %27837 = vmatmul.mubr.msk.f32.gmra.mrb[40].mxu1 %vm450_vm1, %v34493_v20  ;;  %29161 = vmatmul.mubr.msk.f32.gmra.mrb[8].mxu0 %vm450_vm1, %v33854_v27  ;;  %v34608_v27 = vld [vmem:[%s32302_s21 + $0x1d9] sm:$0xff] }
 0x272   : > { %27839 = vmatprep.mubr.msk.f32.mxu1 %vm450_vm1, %v34496_v16  ;;  %29163 = vmatprep.mubr.msk.f32.mxu0 %vm450_vm1, %v33864_v2  ;;  %v39016_v2 = vld [vmem:[#allocation32_spill] sm:$0xff] }
 0x275   : > { %27840 = vmatmul.mubr.msk.f32.gmra.mrb[42].mxu1 %vm450_vm1, %v34507_v14  ;;  %29164 = vmatmul.mubr.msk.f32.gmra.mrb[10].mxu0 %vm450_vm1, %v33868_v19  ;;  %v39017_v19 = vld [vmem:[#allocation36_spill] sm:$0xff] }
 0x276   : > { %27842 = vmatprep.mubr.msk.f32.mxu1 %vm450_vm1, %v34510_v11  ;;  %29166 = vmatprep.mubr.msk.f32.mxu0 %vm450_vm1, %v33878_v35  ;;  %v34619_v35 = vld [vmem:[%s32302_s21 + $0x1e1] sm:$0xff] }
 0x279   : > { %27843 = vmatmul.mubr.msk.f32.gmra.mrb[44].mxu1 %vm450_vm1, %v34521_v10  ;;  %29167 = vmatmul.mubr.msk.f32.gmra.mrb[12].mxu0 %vm450_vm1, %v33882_v28  ;;  %v34622_v28 = vld [vmem:[%s32302_s21 + $0x1e9] sm:$0xff] }
 0x27a   : > { %27845 = vmatprep.mubr.msk.f32.mxu1 %vm450_vm1, %v34524_v12  ;;  %29169 = vmatprep.mubr.msk.f32.mxu0 %vm450_vm1, %v33892_v32  ;;  %v39018_v32 = vld [vmem:[#allocation40_spill] sm:$0xff] }
 0x27d   : > { %27846 = vmatmul.mubr.msk.f32.gmra.mrb[46].mxu1 %vm450_vm1, %v34535_v5  ;;  %29170 = vmatmul.mubr.msk.f32.gmra.mrb[14].mxu0 %vm450_vm1, %v33896_v36  ;;  %v39019_v36 = vld [vmem:[#allocation44_spill] sm:$0xff] }
 0x27e   : > { %27848 = vmatprep.mubr.msk.f32.mxu1 %vm450_vm1, %v34538_v7  ;;  %29172 = vmatprep.mubr.msk.f32.mxu0 %vm450_vm1, %v33906_v40  ;;  %v34633_v40 = vld [vmem:[%s32302_s21 + $0x1f1] sm:$0xff] }
 0x281   : > { %27849 = vmatmul.mubr.msk.f32.gmra.mrb[48].mxu1 %vm450_vm1, %v34549_v9  ;;  %29173 = vmatmul.mubr.msk.f32.gmra.mrb[16].mxu0 %vm450_vm1, %v33910_v43  ;;  %v34636_v43 = vld [vmem:[%s32302_s21 + $0x1f9] sm:$0xff] }
 0x282   : > { %27851 = vmatprep.mubr.msk.f32.mxu1 %vm450_vm1, %v34552_v13  ;;  %29175 = vmatprep.mubr.msk.f32.mxu0 %vm450_vm1, %v33923_v45  ;;  %v39020_v45 = vld [vmem:[#allocation46_spill] sm:$0xff] }
 0x285   : > { %27852 = vmatmul.mubr.msk.f32.gmra.mrb[50].mxu1 %vm450_vm1, %v34563_v15  ;;  %29176 = vmatmul.mubr.msk.f32.gmra.mrb[18].mxu0 %vm450_vm1, %v33929_v56  ;;  %v39021_v56 = vld [vmem:[#allocation48_spill] sm:$0xff] }
 0x286   : > { %27854 = vmatprep.mubr.msk.f32.mxu1 %vm450_vm1, %v34566_v46  ;;  %29178 = vmatprep.mubr.msk.f32.mxu0 %vm450_vm1, %v33943_v21  ;;  %v4512_v21 = vld [vmem:[%s32302_s21 + $0xa] sm:$0xff] }
 0x289   : > { %27855 = vmatmul.mubr.msk.f32.gmra.mrb[52].mxu1 %vm450_vm1, %v34577_v47  ;;  %29179 = vmatmul.mubr.msk.f32.gmra.mrb[20].mxu0 %vm450_vm1, %v33949_v30  ;;  %v39022_v30 = vld [vmem:[#allocation8_spill] sm:$0xff] }
 0x28a   : > { %27857 = vmatprep.mubr.msk.f32.mxu1 %vm450_vm1, %v34580_v48  ;;  %29181 = vmatprep.mubr.msk.f32.mxu0 %vm450_vm1, %v39013_v50  ;;  %v4517_v50 = vld [vmem:[%s32302_s21 + $0x32] sm:$0xff] }
 0x28d   : > { %27858 = vmatmul.mubr.msk.f32.gmra.mrb[54].mxu1 %vm450_vm1, %v34591_v51  ;;  %29182 = vmatmul.mubr.msk.f32.gmra.mrb[22].mxu0 %vm450_vm1, %v39014_v55  ;;  %v4518_v55 = vld [vmem:[%s32302_s21 + $0x3a] sm:$0xff] }
 0x28e   : > { %27860 = vmatprep.mubr.msk.f32.mxu1 %vm450_vm1, %v34594_v54  ;;  %29184 = vmatprep.mubr.msk.f32.mxu0 %vm450_vm1, %v39015_v58  ;;  %v39029_v58 = vld [vmem:[#allocation62_spill] sm:$0xff] }
 0x291   : > { %27861 = vmatmul.mubr.msk.f32.gmra.mrb[56].mxu1 %vm450_vm1, %v34605_v62  ;;  %29185 = vmatmul.mubr.msk.f32.gmra.mrb[24].mxu0 %vm450_vm1, %v39016_v2  ;;  %v39030_v2 = vld [vmem:[#allocation64_spill] sm:$0xff] }
 0x292   : > { %27863 = vmatprep.mubr.msk.f32.mxu1 %vm450_vm1, %v34608_v27  ;;  %29187 = vmatprep.mubr.msk.f32.mxu0 %vm450_vm1, %v39017_v19  ;;  %v4519_v19 = vld [vmem:[%s32302_s21 + $0x42] sm:$0xff] }
 0x295   : > { %27864 = vmatmul.mubr.msk.f32.gmra.mrb[58].mxu1 %vm450_vm1, %v34619_v35  ;;  %29188 = vmatmul.mubr.msk.f32.gmra.mrb[26].mxu0 %vm450_vm1, %v39018_v32  ;;  %v4520_v32 = vld [vmem:[%s32302_s21 + $0x4a] sm:$0xff] }
 0x296   : > { %27866 = vmatprep.mubr.msk.f32.mxu1 %vm450_vm1, %v34622_v28  ;;  %29190 = vmatprep.mubr.msk.f32.mxu0 %vm450_vm1, %v39019_v36  ;;  %v39031_v36 = vld [vmem:[#allocation66_spill] sm:$0xff] }
 0x299   : > { %27867 = vmatmul.mubr.msk.f32.gmra.mrb[60].mxu1 %vm450_vm1, %v34633_v40  ;;  %29191 = vmatmul.mubr.msk.f32.gmra.mrb[28].mxu0 %vm450_vm1, %v39020_v45  ;;  %v39032_v45 = vld [vmem:[#allocation68_spill] sm:$0xff] }
 0x29a   : > { %27869 = vmatprep.mubr.msk.f32.mxu1 %vm450_vm1, %v34636_v43  ;;  %29193 = vmatprep.mubr.msk.f32.mxu0 %vm450_vm1, %v39021_v56  ;;  %v39033_v56 = vld [vmem:[#allocation10_spill] sm:$0xff] }
 0x29d   : > { %27870 = vmatmul.mubr.msk.f32.gmra.mrb[62].mxu1 %vm450_vm1, %v39022_v30  ;;  %29194 = vmatmul.mubr.msk.f32.gmra.mrb[30].mxu0 %vm450_vm1, %v39023_v34  ;;  %v39035_v30 = vld [vmem:[#allocation12_spill] sm:$0xff]  ;;  %v39036_v34 = vld [vmem:[#allocation14_spill] sm:$0xff] }
 0x29e   : > { %27874 = vmatprep.mubr.msk.f32.mxu1 %vm450_vm1, %v4512_v21  ;;  %29196 = vmatprep.mubr.msk.f32.mxu0 %vm450_vm1, %v39024_v53  ;;  %v39034_v21 = vld [vmem:[#allocation70_spill] sm:$0xff]  ;;  %v39037_v53 = vld [vmem:[#allocation39_spill] sm:$0xff] }
 0x2a1   : > { %27875 = vmatmul.mubr.msk.f32.vlgmr.msra.gmra.mrb[0].mxu1 %vm450_vm1, %v4513_v61  ;;  %29197 = vmatmul.mubr.msk.f32.gmra.mrb[32].mxu0 %vm450_vm1, %v39025_v41  ;;  %v39038_v61 = vld [vmem:[#allocation16_spill] sm:$0xff]  ;;  %v39040_v41 = vld [vmem:[#allocation18_spill] sm:$0xff] }
 0x2a2   : > { %27971 = vmatpush3.msk.msra.mxu1 %vm643_vm0, %v34256_v1  ;;  %27877 = vmatprep.mubr.msk.f32.mxu1 %vm450_vm1, %v4514_v23  ;;  %v39028_v1 = vld [vmem:[#allocation60_spill] sm:$0xff]  ;;  %v39039_v23 = vld [vmem:[#allocation43_spill] sm:$0xff] }
 0x2a3   : > { %29199 = vmatprep.mubr.msk.f32.mxu0 %vm450_vm1, %v39026_v57  ;;  %28068 = vmatprep.subr.msk.mxu1 %vm643_vm0, %v34659_v29  ;;  %v39043_v57 = vld [vmem:[#allocation51_spill] sm:$0xff] }
 0x2a5   : > { %27878 = vmatmul.mubr.msk.f32.gmra.mrb[2].mxu1 %vm450_vm1, %v4515_v49  ;;  %29200 = vmatmul.mubr.msk.f32.gmra.mrb[34].mxu0 %vm450_vm1, %v39027_v22  ;;  %v39041_v49 = vld [vmem:[#allocation47_spill] sm:$0xff]  ;;  %v39044_v22 = vld [vmem:[#allocation26_spill] sm:$0xff] }
 0x2a6   : > { %27880 = vmatprep.mubr.msk.f32.mxu1 %vm450_vm1, %v4516_v3  ;;  %29202 = vmatprep.mubr.msk.f32.mxu0 %vm450_vm1, %v39028_v1  ;;  %v34720_v3 = vld [vmem:[%s32302_s21 + $0x200] sm:$0xff] }
 0x2a7   : > { %v39045_v1 = vld [vmem:[#allocation55_spill] sm:$0xff] }
 0x2a9   : > { %27881 = vmatmul.mubr.msk.f32.gmra.mrb[4].mxu1 %vm450_vm1, %v4517_v50  ;;  %29203 = vmatmul.mubr.msk.f32.gmra.mrb[36].mxu0 %vm450_vm1, %v39029_v58  ;;  %v39046_v50 = vld [vmem:[#allocation30_spill] sm:$0xff] }
 0x2aa   : > { %27883 = vmatprep.mubr.msk.f32.mxu1 %vm450_vm1, %v4518_v55  ;;  %29205 = vmatprep.mubr.msk.f32.mxu0 %vm450_vm1, %v39030_v2  ;;  %v34731_v55 = vld [vmem:[%s32302_s21 + $0x208] sm:$0xff]  ;;  %v15456_v58 = vld [vmem:[%s32302_s21 + $0x210] sm:$0xff] }
 0x2ab   : > { %v39047_v2 = vld [vmem:[#allocation34_spill] sm:$0xff] }
 0x2ad   : > { %27884 = vmatmul.mubr.msk.f32.gmra.mrb[6].mxu1 %vm450_vm1, %v4519_v19  ;;  %29206 = vmatmul.mubr.msk.f32.gmra.mrb[38].mxu0 %vm450_vm1, %v39031_v36  ;;  %v39048_v19 = vld [vmem:[#allocation38_spill] sm:$0xff]  ;;  %v15458_v36 = vld [vmem:[%s32302_s21 + $0x220] sm:$0xff] }
 0x2ae   : > { %27886 = vmatprep.mubr.msk.f32.mxu1 %vm450_vm1, %v4520_v32  ;;  %29208 = vmatprep.mubr.msk.f32.mxu0 %vm450_vm1, %v39032_v45  ;;  %v15457_v32 = vld [vmem:[%s32302_s21 + $0x218] sm:$0xff] }
 0x2af   : > { %v39049_v45 = vld [vmem:[#allocation42_spill] sm:$0xff] }
 0x2b1   : > { %27887 = vmatmul.mubr.msk.f32.gmra.mrb[8].mxu1 %vm450_vm1, %v39033_v56  ;;  %29209 = vmatmul.mubr.msk.f32.gmra.mrb[40].mxu0 %vm450_vm1, %v39034_v21  ;;  %v39050_v56 = vld [vmem:[#allocation9_spill] sm:$0xff] }
 0x2b2   : > { %27889 = vmatprep.mubr.msk.f32.mxu1 %vm450_vm1, %v39035_v30  ;;  %29211 = vmatprep.mubr.msk.f32.mxu0 %vm450_vm1, %v34172_v26  ;;  %v39042_v26 = vld [vmem:[#allocation22_spill] sm:$0xff]  ;;  %v15459_v21 = vld [vmem:[%s32302_s21 + $0x228] sm:$0xff] }
 0x2b3   : > { %v15460_v30 = vld [vmem:[%s32302_s21 + $0x230] sm:$0xff] }
 0x2b5   : > { %27890 = vmatmul.mubr.msk.f32.gmra.mrb[10].mxu1 %vm450_vm1, %v39036_v34  ;;  %29212 = vmatmul.mubr.msk.f32.gmra.mrb[42].mxu0 %vm450_vm1, %v39037_v53  ;;  %v39051_v34 = vld [vmem:[#allocation11_spill] sm:$0xff]  ;;  %v39052_v53 = vld [vmem:[#allocation13_spill] sm:$0xff] }
 0x2b6   : > { %27892 = vmatprep.mubr.msk.f32.mxu1 %vm450_vm1, %v39038_v61  ;;  %29214 = vmatprep.mubr.msk.f32.mxu0 %vm450_vm1, %v39039_v23  ;;  %v15461_v61 = vld [vmem:[%s32302_s21 + $0x238] sm:$0xff]  ;;  %v15462_v23 = vld [vmem:[%s32302_s21 + $0x240] sm:$0xff] }
 0x2b9   : > { %27893 = vmatmul.mubr.msk.f32.gmra.mrb[12].mxu1 %vm450_vm1, %v39040_v41  ;;  %29215 = vmatmul.mubr.msk.f32.gmra.mrb[44].mxu0 %vm450_vm1, %v39041_v49  ;;  %v39053_v41 = vld [vmem:[#allocation15_spill] sm:$0xff]  ;;  %v39054_v49 = vld [vmem:[#allocation17_spill] sm:$0xff] }
 0x2ba   : > { %27895 = vmatprep.mubr.msk.f32.mxu1 %vm450_vm1, %v39042_v26  ;;  %29217 = vmatprep.mubr.msk.f32.mxu0 %vm450_vm1, %v39043_v57  ;;  %v15463_v26 = vld [vmem:[%s32302_s21 + $0x248] sm:$0xff]  ;;  %v15464_v57 = vld [vmem:[%s32302_s21 + $0x250] sm:$0xff] }
 0x2bd   : > { %27896 = vmatmul.mubr.msk.f32.gmra.mrb[14].mxu1 %vm450_vm1, %v39044_v22  ;;  %29218 = vmatmul.mubr.msk.f32.gmra.mrb[46].mxu0 %vm450_vm1, %v39045_v1  ;;  %v39055_v22 = vld [vmem:[#allocation19_spill] sm:$0xff]  ;;  %v39056_v1 = vld [vmem:[#allocation21_spill] sm:$0xff] }
 0x2be   : > { %27898 = vmatprep.mubr.msk.f32.mxu1 %vm450_vm1, %v39046_v50  ;;  %29220 = vmatprep.mubr.msk.f32.mxu0 %vm450_vm1, %v34720_v3  ;;  %v15465_v50 = vld [vmem:[%s32302_s21 + $0x258] sm:$0xff] }
 0x2c1   : > { %27899 = vmatmul.mubr.msk.f32.gmra.mrb[16].mxu1 %vm450_vm1, %v39047_v2  ;;  %29221 = vmatmul.mubr.msk.f32.gmra.mrb[48].mxu0 %vm450_vm1, %v34731_v55  ;;  %v39057_v2 = vld [vmem:[#allocation23_spill] sm:$0xff] }
 0x2c2   : > { %27901 = vmatprep.mubr.msk.f32.mxu1 %vm450_vm1, %v39048_v19  ;;  %29223 = vmatprep.mubr.msk.f32.mxu0 %vm450_vm1, %v15456_v58  ;;  %v15466_v58 = vld [vmem:[%s32302_s21 + $0x260] sm:$0xff]  ;;  %v39058_v19 = vld [vmem:[#allocation25_spill] sm:$0xff] }
 0x2c5   : > { %27902 = vmatmul.mubr.msk.f32.gmra.mrb[18].mxu1 %vm450_vm1, %v39049_v45  ;;  %29224 = vmatmul.mubr.msk.f32.gmra.mrb[50].mxu0 %vm450_vm1, %v15457_v32  ;;  %v15467_v32 = vld [vmem:[%s32302_s21 + $0x268] sm:$0xff]  ;;  %v39059_v45 = vld [vmem:[#allocation27_spill] sm:$0xff] }
 0x2c6   : > { %27904 = vmatprep.mubr.msk.f32.mxu1 %vm450_vm1, %v39050_v56  ;;  %29226 = vmatprep.mubr.msk.f32.mxu0 %vm450_vm1, %v15458_v36  ;;  %v15468_v36 = vld [vmem:[%s32302_s21 + $0x270] sm:$0xff] }
 0x2c7   : > { %v39060_v56 = vld [vmem:[#allocation29_spill] sm:$0xff] }
 0x2c9   : > { %27905 = vmatmul.mubr.msk.f32.gmra.mrb[20].mxu1 %vm450_vm1, %v39051_v34  ;;  %29227 = vmatmul.mubr.msk.f32.gmra.mrb[52].mxu0 %vm450_vm1, %v15459_v21  ;;  %v15469_v21 = vld [vmem:[%s32302_s21 + $0x278] sm:$0xff] }
 0x2ca   : > { %27907 = vmatprep.mubr.msk.f32.mxu1 %vm450_vm1, %v39052_v53  ;;  %29229 = vmatprep.mubr.msk.f32.mxu0 %vm450_vm1, %v15460_v30  ;;  %v34791_v30 = vld [vmem:[%s32302_s21 + $0x81] sm:$0xff]  ;;  %v39062_v53 = vld [vmem:[#allocation33_spill] sm:$0xff] }
 0x2cb   : > { %v39061_v34 = vld [vmem:[#allocation31_spill] sm:$0xff] }
 0x2cd   : > { %27908 = vmatmul.mubr.msk.f32.gmra.mrb[22].mxu1 %vm450_vm1, %v39053_v41  ;;  %29230 = vmatmul.mubr.msk.f32.gmra.mrb[54].mxu0 %vm450_vm1, %v15461_v61  ;;  %v34801_v61 = vld [vmem:[%s32302_s21 + $0x89] sm:$0xff]  ;;  %v39063_v41 = vld [vmem:[#allocation35_spill] sm:$0xff] }
 0x2ce   : > { %27910 = vmatprep.mubr.msk.f32.mxu1 %vm450_vm1, %v39054_v49  ;;  %29232 = vmatprep.mubr.msk.f32.mxu0 %vm450_vm1, %v15462_v23  ;;  %v34804_v23 = vld [vmem:[%s32302_s21 + $0x91] sm:$0xff] }
 0x2cf   : > { %v39064_v49 = vld [vmem:[#allocation37_spill] sm:$0xff] }
 0x2d1   : > { %27911 = vmatmul.mubr.msk.f32.gmra.mrb[24].mxu1 %vm450_vm1, %v39055_v22  ;;  %29233 = vmatmul.mubr.msk.f32.gmra.mrb[56].mxu0 %vm450_vm1, %v15463_v26  ;;  %v34815_v26 = vld [vmem:[%s32302_s21 + $0x99] sm:$0xff]  ;;  %v39065_v22 = vld [vmem:[#allocation41_spill] sm:$0xff] }
 0x2d2   : > { %27913 = vmatprep.mubr.msk.f32.mxu1 %vm450_vm1, %v39056_v1  ;;  %29235 = vmatprep.mubr.msk.f32.mxu0 %vm450_vm1, %v15464_v57  ;;  %v34818_v57 = vld [vmem:[%s32302_s21 + $0xa1] sm:$0xff]  ;;  %v39066_v1 = vld [vmem:[#allocation45_spill] sm:$0xff] }
 0x2d5   : > { %27914 = vmatmul.mubr.msk.f32.gmra.mrb[26].mxu1 %vm450_vm1, %v39057_v2  ;;  %29236 = vmatmul.mubr.msk.f32.gmra.mrb[58].mxu0 %vm450_vm1, %v15465_v50  ;;  %v34831_v50 = vld [vmem:[%s32302_s21 + $0xa9] sm:$0xff] }
 0x2d6   : > { %27916 = vmatprep.mubr.msk.f32.mxu1 %vm450_vm1, %v39058_v19  ;;  %29238 = vmatprep.mubr.msk.f32.mxu0 %vm450_vm1, %v15466_v58  ;;  %v34834_v58 = vld [vmem:[%s32302_s21 + $0xb1] sm:$0xff] }
 0x2d7   : > { %v39067_v2 = vld [vmem:[#allocation49_spill] sm:$0xff] }
 0x2d8   : > { %v39068_v19 = vld [vmem:[#allocation53_spill] sm:$0xff] }
 0x2d9   : > { %27917 = vmatmul.mubr.msk.f32.gmra.mrb[28].mxu1 %vm450_vm1, %v39059_v45  ;;  %29239 = vmatmul.mubr.msk.f32.gmra.mrb[60].mxu0 %vm450_vm1, %v15467_v32  ;;  %v34850_v32 = vld [vmem:[%s32302_s21 + $0xb9] sm:$0xff]  ;;  %v39069_v45 = vld [vmem:[#allocation57_spill] sm:$0xff] }
 0x2da   : > { %27919 = vmatprep.mubr.msk.f32.mxu1 %vm450_vm1, %v39060_v56  ;;  %29241 = vmatprep.mubr.msk.f32.mxu0 %vm450_vm1, %v15468_v36  ;;  %v34853_v36 = vld [vmem:[%s32302_s21 + $0xc1] sm:$0xff] }
 0x2db   : > { %v39070_v56 = vld [vmem:[#allocation59_spill] sm:$0xff] }
 0x2dd   : > { %27920 = vmatmul.mubr.msk.f32.gmra.mrb[30].mxu1 %vm450_vm1, %v39061_v34  ;;  %29242 = vmatmul.mubr.msk.f32.gmra.mrb[62].mxu0 %vm450_vm1, %v15469_v21  ;;  %v34866_v21 = vld [vmem:[%s32302_s21 + $0xc9] sm:$0xff]  ;;  %v34869_v34 = vld [vmem:[%s32302_s21 + $0xd1] sm:$0xff] }
 0x2de   : > { %27922 = vmatprep.mubr.msk.f32.mxu1 %vm450_vm1, %v39062_v53  ;;  %29246 = vmatprep.mubr.msk.f32.mxu0 %vm450_vm1, %v34791_v30  ;;  %v39071_v53 = vld [vmem:[#allocation61_spill] sm:$0xff] }
 0x2e1   : > { %27923 = vmatmul.mubr.msk.f32.gmra.mrb[32].mxu1 %vm450_vm1, %v39063_v41  ;;  %29247 = vmatmul.mubr.msk.f32.vlgmr.msra.gmra.mrb[0].mxu0 %vm450_vm1, %v34801_v61  ;;  %v39072_v41 = vld [vmem:[#allocation63_spill] sm:$0xff] }
 0x2e2   : > { %27925 = vmatprep.mubr.msk.f32.mxu1 %vm450_vm1, %v39064_v49  ;;  %29249 = vmatprep.mubr.msk.f32.mxu0 %vm450_vm1, %v34804_v23  ;;  %v34880_v49 = vld [vmem:[%s32302_s21 + $0xd9] sm:$0xff] }
 0x2e3   : > { %29343 = vmatpush3.msk.msra.mxu0 %vm643_vm0, %v34473_v4  ;;  %v34843_v4 = vld [vmem:[%s38543_s1 + $0x54] sm:$0xf] }
 0x2e4   : > { %29440 = vmatprep.subr.msk.mxu0 %vm643_vm0, %v34843_v4 }
 0x2e5   : > { %27926 = vmatmul.mubr.msk.f32.gmra.mrb[34].mxu1 %vm450_vm1, %v39065_v22  ;;  %29250 = vmatmul.mubr.msk.f32.gmra.mrb[2].mxu0 %vm450_vm1, %v34815_v26  ;;  %v34883_v22 = vld [vmem:[%s32302_s21 + $0xe1] sm:$0xff] }
 0x2e6   : > { %27928 = vmatprep.mubr.msk.f32.mxu1 %vm450_vm1, %v39066_v1  ;;  %29252 = vmatprep.mubr.msk.f32.mxu0 %vm450_vm1, %v34818_v57  ;;  %v39073_v1 = vld [vmem:[#allocation65_spill] sm:$0xff] }
 0x2e9   : > { %27929 = vmatmul.mubr.msk.f32.gmra.mrb[36].mxu1 %vm450_vm1, %v39067_v2  ;;  %29253 = vmatmul.mubr.msk.f32.gmra.mrb[4].mxu0 %vm450_vm1, %v34831_v50  ;;  %v39074_v2 = vld [vmem:[#allocation67_spill] sm:$0xff] }
 0x2ea   : > { %27931 = vmatprep.mubr.msk.f32.mxu1 %vm450_vm1, %v39068_v19  ;;  %29255 = vmatprep.mubr.msk.f32.mxu0 %vm450_vm1, %v34834_v58  ;;  %v34894_v19 = vld [vmem:[%s32302_s21 + $0xe9] sm:$0xff] }
 0x2ed   : > { %27932 = vmatmul.mubr.msk.f32.gmra.mrb[38].mxu1 %vm450_vm1, %v39069_v45  ;;  %29256 = vmatmul.mubr.msk.f32.gmra.mrb[6].mxu0 %vm450_vm1, %v34850_v32  ;;  %v34897_v45 = vld [vmem:[%s32302_s21 + $0xf1] sm:$0xff] }
 0x2ee   : > { %27934 = vmatprep.mubr.msk.f32.mxu1 %vm450_vm1, %v39070_v56  ;;  %29258 = vmatprep.mubr.msk.f32.mxu0 %vm450_vm1, %v34853_v36  ;;  %v39075_v56 = vld [vmem:[#allocation69_spill] sm:$0xff] }
 0x2f1   : > { %27935 = vmatmul.mubr.msk.f32.gmra.mrb[40].mxu1 %vm450_vm1, %v39071_v53  ;;  %29259 = vmatmul.mubr.msk.f32.gmra.mrb[8].mxu0 %vm450_vm1, %v34866_v21  ;;  %v34908_v53 = vld [vmem:[%s32302_s21 + $0xf9] sm:$0xff] }
 0x2f2   : > { %27937 = vmatprep.mubr.msk.f32.mxu1 %vm450_vm1, %v39072_v41  ;;  %29261 = vmatprep.mubr.msk.f32.mxu0 %vm450_vm1, %v34869_v34  ;;  %v34911_v41 = vld [vmem:[%s32302_s21 + $0x101] sm:$0xff] }
 0x2f5   : > { %27938 = vmatmul.mubr.msk.f32.gmra.mrb[42].mxu1 %vm450_vm1, %v39073_v1  ;;  %29262 = vmatmul.mubr.msk.f32.gmra.mrb[10].mxu0 %vm450_vm1, %v34880_v49  ;;  %v34925_v1 = vld [vmem:[%s32302_s21 + $0x111] sm:$0xff] }
 0x2f6   : > { %27940 = vmatprep.mubr.msk.f32.mxu1 %vm450_vm1, %v39074_v2  ;;  %29264 = vmatprep.mubr.msk.f32.mxu0 %vm450_vm1, %v34883_v22  ;;  %v35141_v2 = vld [vmem:[%s32302_s21 + $0xd0] sm:$0xff] }
 0x2f9   : > { %27941 = vmatmul.mubr.msk.f32.gmra.mrb[44].mxu1 %vm450_vm1, %v39075_v56  ;;  %29265 = vmatmul.mubr.msk.f32.gmra.mrb[12].mxu0 %vm450_vm1, %v34894_v19  ;;  %v16300_v56 = vld [vmem:[%s32302_s21 + $0x241] sm:$0xff] }
 0x2fa   : > { %27943 = vmatprep.mubr.msk.f32.mxu1 %vm450_vm1, %v34284_v17  ;;  %29267 = vmatprep.mubr.msk.f32.mxu0 %vm450_vm1, %v34897_v45  ;;  %v34922_v17 = vld [vmem:[%s32302_s21 + $0x109] sm:$0xff] }
 0x2fd   : > { %27944 = vmatmul.mubr.msk.f32.gmra.mrb[46].mxu1 %vm450_vm1, %v34288_v59  ;;  %29268 = vmatmul.mubr.msk.f32.gmra.mrb[14].mxu0 %vm450_vm1, %v34908_v53  ;;  %v34936_v59 = vld [vmem:[%s32302_s21 + $0x119] sm:$0xff] }
 0x2fe   : > { %27946 = vmatprep.mubr.msk.f32.mxu1 %vm450_vm1, %v34298_v63  ;;  %29270 = vmatprep.mubr.msk.f32.mxu0 %vm450_vm1, %v34911_v41  ;;  %v34939_v63 = vld [vmem:[%s32302_s21 + $0x121] sm:$0xff] }
 0x301   : > { %27947 = vmatmul.mubr.msk.f32.gmra.mrb[48].mxu1 %vm450_vm1, %v34302_v44  ;;  %29271 = vmatmul.mubr.msk.f32.gmra.mrb[16].mxu0 %vm450_vm1, %v34922_v17  ;;  %v34950_v44 = vld [vmem:[%s32302_s21 + $0x129] sm:$0xff] }
 0x302   : > { %27949 = vmatprep.mubr.msk.f32.mxu1 %vm450_vm1, %v34311_v38  ;;  %29273 = vmatprep.mubr.msk.f32.mxu0 %vm450_vm1, %v34925_v1  ;;  %v34953_v38 = vld [vmem:[%s32302_s21 + $0x131] sm:$0xff] }
 0x305   : > { %27950 = vmatmul.mubr.msk.f32.gmra.mrb[50].mxu1 %vm450_vm1, %v34314_v37  ;;  %29274 = vmatmul.mubr.msk.f32.gmra.mrb[18].mxu0 %vm450_vm1, %v34936_v59  ;;  %v34964_v37 = vld [vmem:[%s32302_s21 + $0x139] sm:$0xff] }
 0x306   : > { %27952 = vmatprep.mubr.msk.f32.mxu1 %vm450_vm1, %v34325_v42  ;;  %29276 = vmatprep.mubr.msk.f32.mxu0 %vm450_vm1, %v34939_v63  ;;  %v34967_v42 = vld [vmem:[%s32302_s21 + $0x141] sm:$0xff] }
 0x309   : > { %27953 = vmatmul.mubr.msk.f32.gmra.mrb[52].mxu1 %vm450_vm1, %v34328_v25  ;;  %29277 = vmatmul.mubr.msk.f32.gmra.mrb[20].mxu0 %vm450_vm1, %v34950_v44  ;;  %v39076_v25 = vld [vmem:[#allocation71_spill] sm:$0xff] }
 0x30a   : > { %27955 = vmatprep.mubr.msk.f32.mxu1 %vm450_vm1, %v34339_v0  ;;  %29279 = vmatprep.mubr.msk.f32.mxu0 %vm450_vm1, %v34953_v38  ;;  %v5350_v0 = vld [vmem:[%s32302_s21 + $0x10] sm:$0xff] }
 0x30d   : > { %27956 = vmatmul.mubr.msk.f32.gmra.mrb[54].mxu1 %vm450_vm1, %v34342_v6  ;;  %29280 = vmatmul.mubr.msk.f32.gmra.mrb[22].mxu0 %vm450_vm1, %v34964_v37  ;;  %v5351_v6 = vld [vmem:[%s32302_s21 + $0x18] sm:$0xff] }
 0x30e   : > { %27958 = vmatprep.mubr.msk.f32.mxu1 %vm450_vm1, %v34353_v8  ;;  %29282 = vmatprep.mubr.msk.f32.mxu0 %vm450_vm1, %v34967_v42  ;;  %v5352_v8 = vld [vmem:[%s32302_s21 + $0x20] sm:$0xff] }
 0x311   : > { %27959 = vmatmul.mubr.msk.f32.gmra.mrb[56].mxu1 %vm450_vm1, %v34356_v31  ;;  %29283 = vmatmul.mubr.msk.f32.gmra.mrb[24].mxu0 %vm450_vm1, %v34480_v18  ;;  %v35014_v31 = vld [vmem:[%s38543_s1 + $0x20] sm:$0xf]  ;;  %v5358_v18 = vld [vmem:[%s32302_s21 + $0x50] sm:$0xff] }
 0x312   : > { %27961 = vmatprep.mubr.msk.f32.mxu1 %vm450_vm1, %v34367_v33  ;;  %29285 = vmatprep.mubr.msk.f32.mxu0 %vm450_vm1, %v34493_v20  ;;  %v5353_v33 = vld [vmem:[%s32302_s21 + $0x28] sm:$0xff]  ;;  %v5359_v20 = vld [vmem:[%s32302_s21 + $0x58] sm:$0xff] }
 0x315   : > { %27962 = vmatmul.mubr.msk.f32.gmra.mrb[58].mxu1 %vm450_vm1, %v34370_v24  ;;  %29286 = vmatmul.mubr.msk.f32.gmra.mrb[26].mxu0 %vm450_vm1, %v34496_v16  ;;  %v5354_v24 = vld [vmem:[%s32302_s21 + $0x30] sm:$0xff]  ;;  %v5360_v16 = vld [vmem:[%s32302_s21 + $0x60] sm:$0xff] }
 0x316   : > { %27964 = vmatprep.mubr.msk.f32.mxu1 %vm450_vm1, %v34381_v39  ;;  %29288 = vmatprep.mubr.msk.f32.mxu0 %vm450_vm1, %v34507_v14  ;;  %v5355_v39 = vld [vmem:[%s32302_s21 + $0x38] sm:$0xff]  ;;  %v5361_v14 = vld [vmem:[%s32302_s21 + $0x68] sm:$0xff] }
 0x319   : > { %27965 = vmatmul.mubr.msk.f32.gmra.mrb[60].mxu1 %vm450_vm1, %v34384_v52  ;;  %29289 = vmatmul.mubr.msk.f32.gmra.mrb[28].mxu0 %vm450_vm1, %v34510_v11  ;;  %v5356_v52 = vld [vmem:[%s32302_s21 + $0x40] sm:$0xff]  ;;  %v5362_v11 = vld [vmem:[%s32302_s21 + $0x70] sm:$0xff] }
 0x31a   : > { %27967 = vmatprep.mubr.msk.f32.mxu1 %vm450_vm1, %v39076_v25  ;;  %29291 = vmatprep.mubr.msk.f32.mxu0 %vm450_vm1, %v34521_v10  ;;  %v5363_v10 = vld [vmem:[%s32302_s21 + $0x78] sm:$0xff] }
 0x31b   : > { %v35151_v25 = vld [vmem:[%s32302_s21 + $0xd8] sm:$0xff] }
 0x31d   : > { %27968 = vmatmul.mubr.msk.f32.gmra.mrb[62].mxu1 %vm450_vm1, %v34398_v60  ;;  %29292 = vmatmul.mubr.msk.f32.gmra.mrb[30].mxu0 %vm450_vm1, %v34524_v12  ;;  %v5357_v60 = vld [vmem:[%s32302_s21 + $0x48] sm:$0xff]  ;;  %v5364_v12 = vld [vmem:[%s32302_s21 + $0x80] sm:$0xff] }
 0x31e   : > { %27972 = vmatprep.mubr.msk.f32.mxu1 %vm450_vm1, %v5350_v0  ;;  %29294 = vmatprep.mubr.msk.f32.mxu0 %vm450_vm1, %v34535_v5  ;;  %v35075_v5 = vld [vmem:[%s32302_s21 + $0x88] sm:$0xff] }
 0x31f   : > { %v16301_v0 = vld [vmem:[%s32302_s21 + $0x249] sm:$0xff] }
 0x321   : > { %27973 = vmatmul.mubr.msk.f32.vlgmr.msra.gmra.mrb[0].mxu1 %vm450_vm1, %v5351_v6  ;;  %29295 = vmatmul.mubr.msk.f32.gmra.mrb[32].mxu0 %vm450_vm1, %v34538_v7  ;;  %v35078_v7 = vld [vmem:[%s32302_s21 + $0x90] sm:$0xff]  ;;  %v35155_v6 = vld [vmem:[%s32302_s21 + $0xe0] sm:$0xff] }
 0x322   : > { %28069 = vmatpush3.msk.msra.mxu1 %vm643_vm0, %v34659_v29  ;;  %27975 = vmatprep.mubr.msk.f32.mxu1 %vm450_vm1, %v5352_v8  ;;  %v16299_v29 = vld [vmem:[%s32302_s21 + $0x239] sm:$0xff]  ;;  %v16302_v8 = vld [vmem:[%s32302_s21 + $0x251] sm:$0xff] }
 0x323   : > { %29297 = vmatprep.mubr.msk.f32.mxu0 %vm450_vm1, %v34549_v9  ;;  %28166 = vmatprep.subr.msk.mxu1 %vm643_vm0, %v35014_v31  ;;  %v35081_v9 = vld [vmem:[%s32302_s21 + $0x201] sm:$0xff] }
 0x324   : > { %39077 = vst [vmem:[#allocation72_spill] sm:$0xff] %v35081_v9 }
 0x325   : > { %27976 = vmatmul.mubr.msk.f32.gmra.mrb[2].mxu1 %vm450_vm1, %v5353_v33  ;;  %29298 = vmatmul.mubr.msk.f32.gmra.mrb[34].mxu0 %vm450_vm1, %v34552_v13  ;;  %v35092_v13 = vld [vmem:[%s32302_s21 + $0x98] sm:$0xff]  ;;  %v35165_v33 = vld [vmem:[%s32302_s21 + $0xe8] sm:$0xff] }
 0x326   : > { %27978 = vmatprep.mubr.msk.f32.mxu1 %vm450_vm1, %v5354_v24  ;;  %29300 = vmatprep.mubr.msk.f32.mxu0 %vm450_vm1, %v34563_v15  ;;  %v35095_v15 = vld [vmem:[%s32302_s21 + $0x209] sm:$0xff]  ;;  %v16303_v24 = vld [vmem:[%s32302_s21 + $0x259] sm:$0xff] }
 0x327   : > { %39078 = vst [vmem:[#allocation73_spill] sm:$0xff] %v35095_v15 }
 0x329   : > { %27979 = vmatmul.mubr.msk.f32.gmra.mrb[4].mxu1 %vm450_vm1, %v5355_v39  ;;  %29301 = vmatmul.mubr.msk.f32.gmra.mrb[36].mxu0 %vm450_vm1, %v34566_v46  ;;  %v35098_v46 = vld [vmem:[%s32302_s21 + $0xa0] sm:$0xff]  ;;  %v35169_v39 = vld [vmem:[%s32302_s21 + $0xf0] sm:$0xff] }
 0x32a   : > { %27981 = vmatprep.mubr.msk.f32.mxu1 %vm450_vm1, %v5356_v52  ;;  %29303 = vmatprep.mubr.msk.f32.mxu0 %vm450_vm1, %v34577_v47  ;;  %v16294_v47 = vld [vmem:[%s32302_s21 + $0x211] sm:$0xff]  ;;  %v16304_v52 = vld [vmem:[%s32302_s21 + $0x261] sm:$0xff] }
 0x32d   : > { %27982 = vmatmul.mubr.msk.f32.gmra.mrb[6].mxu1 %vm450_vm1, %v5357_v60  ;;  %29304 = vmatmul.mubr.msk.f32.gmra.mrb[38].mxu0 %vm450_vm1, %v34580_v48  ;;  %v35109_v48 = vld [vmem:[%s32302_s21 + $0xa8] sm:$0xff]  ;;  %v35179_v60 = vld [vmem:[%s32302_s21 + $0xf8] sm:$0xff] }
 0x32e   : > { %27984 = vmatprep.mubr.msk.f32.mxu1 %vm450_vm1, %v5358_v18  ;;  %29306 = vmatprep.mubr.msk.f32.mxu0 %vm450_vm1, %v34591_v51  ;;  %v16295_v51 = vld [vmem:[%s32302_s21 + $0x219] sm:$0xff]  ;;  %v16305_v18 = vld [vmem:[%s32302_s21 + $0x269] sm:$0xff] }
 0x331   : > { %27985 = vmatmul.mubr.msk.f32.gmra.mrb[8].mxu1 %vm450_vm1, %v5359_v20  ;;  %29307 = vmatmul.mubr.msk.f32.gmra.mrb[40].mxu0 %vm450_vm1, %v34594_v54  ;;  %v35113_v54 = vld [vmem:[%s32302_s21 + $0xb0] sm:$0xff]  ;;  %v35183_v20 = vld [vmem:[%s32302_s21 + $0x100] sm:$0xff] }
 0x332   : > { %27987 = vmatprep.mubr.msk.f32.mxu1 %vm450_vm1, %v5360_v16  ;;  %29309 = vmatprep.mubr.msk.f32.mxu0 %vm450_vm1, %v34605_v62  ;;  %v16296_v62 = vld [vmem:[%s32302_s21 + $0x221] sm:$0xff]  ;;  %v16306_v16 = vld [vmem:[%s32302_s21 + $0x271] sm:$0xff] }
 0x335   : > { %27988 = vmatmul.mubr.msk.f32.gmra.mrb[10].mxu1 %vm450_vm1, %v5361_v14  ;;  %29310 = vmatmul.mubr.msk.f32.gmra.mrb[42].mxu0 %vm450_vm1, %v34608_v27  ;;  %v35123_v27 = vld [vmem:[%s32302_s21 + $0xb8] sm:$0xff]  ;;  %v35193_v14 = vld [vmem:[%s32302_s21 + $0x108] sm:$0xff] }
 0x336   : > { %27990 = vmatprep.mubr.msk.f32.mxu1 %vm450_vm1, %v5362_v11  ;;  %29312 = vmatprep.mubr.msk.f32.mxu0 %vm450_vm1, %v34619_v35  ;;  %v16297_v35 = vld [vmem:[%s32302_s21 + $0x229] sm:$0xff]  ;;  %v16307_v11 = vld [vmem:[%s32302_s21 + $0x279] sm:$0xff] }
 0x339   : > { %27991 = vmatmul.mubr.msk.f32.gmra.mrb[12].mxu1 %vm450_vm1, %v5363_v10  ;;  %29313 = vmatmul.mubr.msk.f32.gmra.mrb[44].mxu0 %vm450_vm1, %v34622_v28  ;;  %v35127_v28 = vld [vmem:[%s32302_s21 + $0xc0] sm:$0xff]  ;;  %v35197_v10 = vld [vmem:[%s32302_s21 + $0x110] sm:$0xff] }
 0x33a   : > { %27993 = vmatprep.mubr.msk.f32.mxu1 %vm450_vm1, %v5364_v12  ;;  %29315 = vmatprep.mubr.msk.f32.mxu0 %vm450_vm1, %v34633_v40  ;;  %v16298_v40 = vld [vmem:[%s32302_s21 + $0x231] sm:$0xff]  ;;  %v35200_v12 = vld [vmem:[%s32302_s21 + $0x82] sm:$0xff] }
 0x33b   : > { %39079 = vst [vmem:[#allocation74_spill] sm:$0xff] %v35200_v12 }
 0x33d   : > { %27994 = vmatmul.mubr.msk.f32.gmra.mrb[14].mxu1 %vm450_vm1, %v35075_v5  ;;  %29316 = vmatmul.mubr.msk.f32.gmra.mrb[46].mxu0 %vm450_vm1, %v34636_v43  ;;  %v35137_v43 = vld [vmem:[%s32302_s21 + $0xc8] sm:$0xff] }
 0x33e   : > { %27996 = vmatprep.mubr.msk.f32.mxu1 %vm450_vm1, %v35078_v7  ;;  %29318 = vmatprep.mubr.msk.f32.mxu0 %vm450_vm1, %v35081_v9  ;;  %v35345_v9 = vld [vmem:[%s32302_s21 + $0x180] sm:$0xff] }
 0x33f   : > { %39097 = vst [vmem:[#allocation58_spill] sm:$0xff] %v35345_v9 }
 0x341   : > { %27997 = vmatmul.mubr.msk.f32.gmra.mrb[16].mxu1 %vm450_vm1, %v35092_v13  ;;  %29319 = vmatmul.mubr.msk.f32.gmra.mrb[48].mxu0 %vm450_vm1, %v35095_v15  ;;  %v35328_v15 = vld [vmem:[%s32302_s21 + $0xe2] sm:$0xff] }
 0x342   : > { %27999 = vmatprep.mubr.msk.f32.mxu1 %vm450_vm1, %v35098_v46  ;;  %29321 = vmatprep.mubr.msk.f32.mxu0 %vm450_vm1, %v16294_v47  ;;  %v35210_v47 = vld [vmem:[%s32302_s21 + $0x118] sm:$0xff]  ;;  %39094 = vst [vmem:[#allocation52_spill] sm:$0xff] %v35328_v15 }
 0x345   : > { %28000 = vmatmul.mubr.msk.f32.gmra.mrb[18].mxu1 %vm450_vm1, %v35109_v48  ;;  %29322 = vmatmul.mubr.msk.f32.gmra.mrb[50].mxu0 %vm450_vm1, %v16295_v51  ;;  %v35213_v51 = vld [vmem:[%s32302_s21 + $0x8a] sm:$0xff] }
 0x346   : > { %28002 = vmatprep.mubr.msk.f32.mxu1 %vm450_vm1, %v35113_v54  ;;  %29324 = vmatprep.mubr.msk.f32.mxu0 %vm450_vm1, %v16296_v62  ;;  %39080 = vst [vmem:[#allocation75_spill] sm:$0xff] %v35213_v51  ;;  %v35216_v62 = vld [vmem:[%s32302_s21 + $0x120] sm:$0xff] }
 0x349   : > { %28003 = vmatmul.mubr.msk.f32.gmra.mrb[20].mxu1 %vm450_vm1, %v35123_v27  ;;  %29325 = vmatmul.mubr.msk.f32.gmra.mrb[52].mxu0 %vm450_vm1, %v16297_v35  ;;  %v35219_v35 = vld [vmem:[%s32302_s21 + $0x92] sm:$0xff] }
 0x34a   : > { %28005 = vmatprep.mubr.msk.f32.mxu1 %vm450_vm1, %v35127_v28  ;;  %29327 = vmatprep.mubr.msk.f32.mxu0 %vm450_vm1, %v16298_v40  ;;  %39081 = vst [vmem:[#allocation76_spill] sm:$0xff] %v35219_v35  ;;  %v35230_v40 = vld [vmem:[%s32302_s21 + $0x128] sm:$0xff] }
 0x34d   : > { %28006 = vmatmul.mubr.msk.f32.gmra.mrb[22].mxu1 %vm450_vm1, %v35137_v43  ;;  %29328 = vmatmul.mubr.msk.f32.gmra.mrb[54].mxu0 %vm450_vm1, %v16299_v29  ;;  %v35233_v29 = vld [vmem:[%s32302_s21 + $0x9a] sm:$0xff] }
 0x34e   : > { %28008 = vmatprep.mubr.msk.f32.mxu1 %vm450_vm1, %v35141_v2  ;;  %29330 = vmatprep.mubr.msk.f32.mxu0 %vm450_vm1, %v16300_v56  ;;  %39082 = vst [vmem:[#allocation77_spill] sm:$0xff] %v35233_v29  ;;  %v35236_v56 = vld [vmem:[%s32302_s21 + $0x130] sm:$0xff] }
 0x351   : > { %28009 = vmatmul.mubr.msk.f32.gmra.mrb[24].mxu1 %vm450_vm1, %v35151_v25  ;;  %29331 = vmatmul.mubr.msk.f32.gmra.mrb[56].mxu0 %vm450_vm1, %v16301_v0  ;;  %v35239_v0 = vld [vmem:[%s32302_s21 + $0xa2] sm:$0xff] }
 0x352   : > { %28011 = vmatprep.mubr.msk.f32.mxu1 %vm450_vm1, %v35155_v6  ;;  %29333 = vmatprep.mubr.msk.f32.mxu0 %vm450_vm1, %v16302_v8  ;;  %39083 = vst [vmem:[#allocation20_spill] sm:$0xff] %v35239_v0  ;;  %v35252_v8 = vld [vmem:[%s32302_s21 + $0x138] sm:$0xff] }
 0x355   : > { %28012 = vmatmul.mubr.msk.f32.gmra.mrb[26].mxu1 %vm450_vm1, %v35165_v33  ;;  %29334 = vmatmul.mubr.msk.f32.gmra.mrb[58].mxu0 %vm450_vm1, %v16303_v24  ;;  %v35255_v24 = vld [vmem:[%s32302_s21 + $0xaa] sm:$0xff] }
 0x356   : > { %28014 = vmatprep.mubr.msk.f32.mxu1 %vm450_vm1, %v35169_v39  ;;  %29336 = vmatprep.mubr.msk.f32.mxu0 %vm450_vm1, %v16304_v52  ;;  %39084 = vst [vmem:[#allocation24_spill] sm:$0xff] %v35255_v24  ;;  %v35258_v52 = vld [vmem:[%s32302_s21 + $0x140] sm:$0xff] }
 0x359   : > { %28015 = vmatmul.mubr.msk.f32.gmra.mrb[28].mxu1 %vm450_vm1, %v35179_v60  ;;  %29337 = vmatmul.mubr.msk.f32.gmra.mrb[60].mxu0 %vm450_vm1, %v16305_v18  ;;  %v35270_v18 = vld [vmem:[%s38543_s1 + $0x58] sm:$0xf] }
 0x35a   : > { %28017 = vmatprep.mubr.msk.f32.mxu1 %vm450_vm1, %v35183_v20  ;;  %29339 = vmatprep.mubr.msk.f32.mxu0 %vm450_vm1, %v16306_v16  ;;  %v35277_v16 = vld [vmem:[%s32302_s21 + $0x148] sm:$0xff] }
 0x35d   : > { %28018 = vmatmul.mubr.msk.f32.gmra.mrb[30].mxu1 %vm450_vm1, %v35193_v14  ;;  %29340 = vmatmul.mubr.msk.f32.gmra.mrb[62].mxu0 %vm450_vm1, %v16307_v11  ;;  %v35280_v11 = vld [vmem:[%s32302_s21 + $0xba] sm:$0xff] }
 0x35e   : > { %28020 = vmatprep.mubr.msk.f32.mxu1 %vm450_vm1, %v35197_v10  ;;  %29344 = vmatprep.mubr.msk.f32.mxu0 %vm450_vm1, %v35200_v12  ;;  %39086 = vst [vmem:[#allocation32_spill] sm:$0xff] %v35280_v11  ;;  %v35325_v12 = vld [vmem:[%s32302_s21 + $0x170] sm:$0xff] }
 0x35f   : > { %39093 = vst [vmem:[#allocation50_spill] sm:$0xff] %v35325_v12 }
 0x361   : > { %28021 = vmatmul.mubr.msk.f32.gmra.mrb[32].mxu1 %vm450_vm1, %v35210_v47  ;;  %29345 = vmatmul.mubr.msk.f32.vlgmr.msra.gmra.mrb[0].mxu0 %vm450_vm1, %v35213_v51  ;;  %v35308_v51 = vld [vmem:[%s32302_s21 + $0xd2] sm:$0xff] }
 0x362   : > { %28023 = vmatprep.mubr.msk.f32.mxu1 %vm450_vm1, %v35216_v62  ;;  %29347 = vmatprep.mubr.msk.f32.mxu0 %vm450_vm1, %v35219_v35  ;;  %v35305_v35 = vld [vmem:[%s32302_s21 + $0x160] sm:$0xff]  ;;  %39090 = vst [vmem:[#allocation46_spill] sm:$0xff] %v35308_v51 }
 0x363   : > { %29441 = vmatpush3.msk.msra.mxu0 %vm643_vm0, %v34843_v4  ;;  %v35261_v4 = vld [vmem:[%s32302_s21 + $0xb2] sm:$0xff]  ;;  %39089 = vst [vmem:[#allocation44_spill] sm:$0xff] %v35305_v35 }
 0x364   : > { %39085 = vst [vmem:[#allocation28_spill] sm:$0xff] %v35261_v4  ;;  %29538 = vmatprep.subr.msk.mxu0 %vm643_vm0, %v35270_v18 }
 0x365   : > { %28024 = vmatmul.mubr.msk.f32.gmra.mrb[34].mxu1 %vm450_vm1, %v35230_v40  ;;  %29348 = vmatmul.mubr.msk.f32.gmra.mrb[2].mxu0 %vm450_vm1, %v35233_v29  ;;  %v35302_v29 = vld [vmem:[%s32302_s21 + $0xca] sm:$0xff] }
 0x366   : > { %28026 = vmatprep.mubr.msk.f32.mxu1 %vm450_vm1, %v35236_v56  ;;  %29350 = vmatprep.mubr.msk.f32.mxu0 %vm450_vm1, %v35239_v0  ;;  %v35283_v0 = vld [vmem:[%s32302_s21 + $0x150] sm:$0xff]  ;;  %39088 = vst [vmem:[#allocation40_spill] sm:$0xff] %v35302_v29 }
 0x369   : > { %28027 = vmatmul.mubr.msk.f32.gmra.mrb[36].mxu1 %vm450_vm1, %v35252_v8  ;;  %29351 = vmatmul.mubr.msk.f32.gmra.mrb[4].mxu0 %vm450_vm1, %v35255_v24  ;;  %v35286_v24 = vld [vmem:[%s32302_s21 + $0xc2] sm:$0xff] }
 0x36a   : > { %28029 = vmatprep.mubr.msk.f32.mxu1 %vm450_vm1, %v35258_v52  ;;  %29353 = vmatprep.mubr.msk.f32.mxu0 %vm450_vm1, %v35261_v4  ;;  %39087 = vst [vmem:[#allocation36_spill] sm:$0xff] %v35286_v24  ;;  %v35299_v4 = vld [vmem:[%s32302_s21 + $0x158] sm:$0xff] }
 0x36d   : > { %28030 = vmatmul.mubr.msk.f32.gmra.mrb[38].mxu1 %vm450_vm1, %v35277_v16  ;;  %29354 = vmatmul.mubr.msk.f32.gmra.mrb[6].mxu0 %vm450_vm1, %v35280_v11  ;;  %v35322_v11 = vld [vmem:[%s32302_s21 + $0xda] sm:$0xff] }
 0x36e   : > { %28032 = vmatprep.mubr.msk.f32.mxu1 %vm450_vm1, %v35283_v0  ;;  %29356 = vmatprep.mubr.msk.f32.mxu0 %vm450_vm1, %v35286_v24  ;;  %v35319_v24 = vld [vmem:[%s32302_s21 + $0x168] sm:$0xff]  ;;  %39092 = vst [vmem:[#allocation8_spill] sm:$0xff] %v35322_v11 }
 0x36f   : > { %39091 = vst [vmem:[#allocation48_spill] sm:$0xff] %v35319_v24 }
 0x371   : > { %28033 = vmatmul.mubr.msk.f32.gmra.mrb[40].mxu1 %vm450_vm1, %v35299_v4  ;;  %29357 = vmatmul.mubr.msk.f32.gmra.mrb[8].mxu0 %vm450_vm1, %v35302_v29  ;;  %v35342_v29 = vld [vmem:[%s32302_s21 + $0xea] sm:$0xff] }
 0x372   : > { %28035 = vmatprep.mubr.msk.f32.mxu1 %vm450_vm1, %v35305_v35  ;;  %29359 = vmatprep.mubr.msk.f32.mxu0 %vm450_vm1, %v35308_v51  ;;  %v35339_v51 = vld [vmem:[%s32302_s21 + $0x178] sm:$0xff]  ;;  %39096 = vst [vmem:[#allocation56_spill] sm:$0xff] %v35342_v29 }
 0x373   : > { %39095 = vst [vmem:[#allocation54_spill] sm:$0xff] %v35339_v51  ;;  %v35348_v35 = vld [vmem:[%s32302_s21 + $0xf2] sm:$0xff] }
 0x374   : > { %39098 = vst [vmem:[#allocation60_spill] sm:$0xff] %v35348_v35 }
 0x375   : > { %28036 = vmatmul.mubr.msk.f32.gmra.mrb[42].mxu1 %vm450_vm1, %v35319_v24  ;;  %29360 = vmatmul.mubr.msk.f32.gmra.mrb[10].mxu0 %vm450_vm1, %v35322_v11  ;;  %v35362_v11 = vld [vmem:[%s32302_s21 + $0xfa] sm:$0xff]  ;;  %v35368_v24 = vld [vmem:[%s32302_s21 + $0x102] sm:$0xff] }
 0x376   : > { %28038 = vmatprep.mubr.msk.f32.mxu1 %vm450_vm1, %v35325_v12  ;;  %29362 = vmatprep.mubr.msk.f32.mxu0 %vm450_vm1, %v35328_v15  ;;  %v35359_v15 = vld [vmem:[%s32302_s21 + $0x188] sm:$0xff]  ;;  %39100 = vst [vmem:[#allocation64_spill] sm:$0xff] %v35362_v11  ;;  %v35365_v12 = vld [vmem:[%s32302_s21 + $0x190] sm:$0xff]  ;;  %39102 = vst [vmem:[#allocation68_spill] sm:$0xff] %v35368_v24 }
 0x377   : > { %39099 = vst [vmem:[#allocation62_spill] sm:$0xff] %v35359_v15  ;;  %39101 = vst [vmem:[#allocation66_spill] sm:$0xff] %v35365_v12 }
 0x379   : > { %28039 = vmatmul.mubr.msk.f32.gmra.mrb[44].mxu1 %vm450_vm1, %v35339_v51  ;;  %29363 = vmatmul.mubr.msk.f32.gmra.mrb[12].mxu0 %vm450_vm1, %v35342_v29  ;;  %v35382_v29 = vld [vmem:[%s32302_s21 + $0x10a] sm:$0xff]  ;;  %v35388_v51 = vld [vmem:[%s32302_s21 + $0x112] sm:$0xff] }
 0x37a   : > { %28041 = vmatprep.mubr.msk.f32.mxu1 %vm450_vm1, %v35345_v9  ;;  %29365 = vmatprep.mubr.msk.f32.mxu0 %vm450_vm1, %v35348_v35  ;;  %v35379_v35 = vld [vmem:[%s32302_s21 + $0x198] sm:$0xff]  ;;  %39104 = vst [vmem:[#allocation70_spill] sm:$0xff] %v35382_v29  ;;  %v35385_v9 = vld [vmem:[%s32302_s21 + $0x1a0] sm:$0xff]  ;;  %39106 = vst [vmem:[#allocation14_spill] sm:$0xff] %v35388_v51 }
 0x37b   : > { %39103 = vst [vmem:[#allocation10_spill] sm:$0xff] %v35379_v35  ;;  %39105 = vst [vmem:[#allocation12_spill] sm:$0xff] %v35385_v9 }
 0x37d   : > { %28042 = vmatmul.mubr.msk.f32.gmra.mrb[46].mxu1 %vm450_vm1, %v35359_v15  ;;  %29366 = vmatmul.mubr.msk.f32.gmra.mrb[14].mxu0 %vm450_vm1, %v35362_v11  ;;  %v35402_v11 = vld [vmem:[%s32302_s21 + $0x11a] sm:$0xff]  ;;  %v35408_v15 = vld [vmem:[%s32302_s21 + $0x122] sm:$0xff] }
 0x37e   : > { %28044 = vmatprep.mubr.msk.f32.mxu1 %vm450_vm1, %v35365_v12  ;;  %29368 = vmatprep.mubr.msk.f32.mxu0 %vm450_vm1, %v35368_v24  ;;  %v35399_v24 = vld [vmem:[%s32302_s21 + $0x1a8] sm:$0xff]  ;;  %39108 = vst [vmem:[#allocation16_spill] sm:$0xff] %v35402_v11  ;;  %v35405_v12 = vld [vmem:[%s32302_s21 + $0x1b0] sm:$0xff]  ;;  %39110 = vst [vmem:[#allocation18_spill] sm:$0xff] %v35408_v15 }
 0x37f   : > { %39107 = vst [vmem:[#allocation39_spill] sm:$0xff] %v35399_v24  ;;  %39109 = vst [vmem:[#allocation43_spill] sm:$0xff] %v35405_v12 }
 0x381   : > { %28045 = vmatmul.mubr.msk.f32.gmra.mrb[48].mxu1 %vm450_vm1, %v35379_v35  ;;  %29369 = vmatmul.mubr.msk.f32.gmra.mrb[16].mxu0 %vm450_vm1, %v35382_v29  ;;  %v35422_v29 = vld [vmem:[%s32302_s21 + $0x12a] sm:$0xff]  ;;  %v35428_v35 = vld [vmem:[%s32302_s21 + $0x132] sm:$0xff] }
 0x382   : > { %28047 = vmatprep.mubr.msk.f32.mxu1 %vm450_vm1, %v35385_v9  ;;  %29371 = vmatprep.mubr.msk.f32.mxu0 %vm450_vm1, %v35388_v51  ;;  %v35419_v51 = vld [vmem:[%s32302_s21 + $0x1b8] sm:$0xff]  ;;  %39112 = vst [vmem:[#allocation22_spill] sm:$0xff] %v35422_v29  ;;  %v35425_v9 = vld [vmem:[%s32302_s21 + $0x1c0] sm:$0xff]  ;;  %39114 = vst [vmem:[#allocation26_spill] sm:$0xff] %v35428_v35 }
 0x383   : > { %39111 = vst [vmem:[#allocation47_spill] sm:$0xff] %v35419_v51  ;;  %39113 = vst [vmem:[#allocation51_spill] sm:$0xff] %v35425_v9 }
 0x385   : > { %28048 = vmatmul.mubr.msk.f32.gmra.mrb[50].mxu1 %vm450_vm1, %v35399_v24  ;;  %29372 = vmatmul.mubr.msk.f32.gmra.mrb[18].mxu0 %vm450_vm1, %v35402_v11  ;;  %v35442_v11 = vld [vmem:[%s32302_s21 + $0x13a] sm:$0xff]  ;;  %v35448_v24 = vld [vmem:[%s32302_s21 + $0x142] sm:$0xff] }
 0x386   : > { %28050 = vmatprep.mubr.msk.f32.mxu1 %vm450_vm1, %v35405_v12  ;;  %29374 = vmatprep.mubr.msk.f32.mxu0 %vm450_vm1, %v35408_v15  ;;  %v35439_v15 = vld [vmem:[%s32302_s21 + $0x1c8] sm:$0xff]  ;;  %39116 = vst [vmem:[#allocation30_spill] sm:$0xff] %v35442_v11  ;;  %v35445_v12 = vld [vmem:[%s32302_s21 + $0x1d0] sm:$0xff]  ;;  %39118 = vst [vmem:[#allocation38_spill] sm:$0xff] %v35448_v24 }
 0x387   : > { %39115 = vst [vmem:[#allocation55_spill] sm:$0xff] %v35439_v15  ;;  %39117 = vst [vmem:[#allocation34_spill] sm:$0xff] %v35445_v12 }
 0x389   : > { %28051 = vmatmul.mubr.msk.f32.gmra.mrb[52].mxu1 %vm450_vm1, %v35419_v51  ;;  %29375 = vmatmul.mubr.msk.f32.gmra.mrb[20].mxu0 %vm450_vm1, %v35422_v29  ;;  %v35462_v29 = vld [vmem:[%s32302_s21 + $0x14a] sm:$0xff]  ;;  %v35468_v51 = vld [vmem:[%s32302_s21 + $0x152] sm:$0xff] }
 0x38a   : > { %28053 = vmatprep.mubr.msk.f32.mxu1 %vm450_vm1, %v35425_v9  ;;  %29377 = vmatprep.mubr.msk.f32.mxu0 %vm450_vm1, %v35428_v35  ;;  %v35459_v35 = vld [vmem:[%s32302_s21 + $0x1d8] sm:$0xff]  ;;  %39119 = vst [vmem:[#allocation42_spill] sm:$0xff] %v35462_v29  ;;  %v35465_v9 = vld [vmem:[%s32302_s21 + $0x1e0] sm:$0xff]  ;;  %39121 = vst [vmem:[#allocation11_spill] sm:$0xff] %v35468_v51 }
 0x38b   : > { %39120 = vst [vmem:[#allocation9_spill] sm:$0xff] %v35465_v9 }
 0x38d   : > { %28054 = vmatmul.mubr.msk.f32.gmra.mrb[54].mxu1 %vm450_vm1, %v35439_v15  ;;  %29378 = vmatmul.mubr.msk.f32.gmra.mrb[22].mxu0 %vm450_vm1, %v35442_v11  ;;  %v35482_v11 = vld [vmem:[%s32302_s21 + $0x15a] sm:$0xff]  ;;  %v35488_v15 = vld [vmem:[%s32302_s21 + $0x162] sm:$0xff] }
 0x38e   : > { %28056 = vmatprep.mubr.msk.f32.mxu1 %vm450_vm1, %v35445_v12  ;;  %29380 = vmatprep.mubr.msk.f32.mxu0 %vm450_vm1, %v35448_v24  ;;  %v35479_v24 = vld [vmem:[%s32302_s21 + $0x1e8] sm:$0xff]  ;;  %39122 = vst [vmem:[#allocation13_spill] sm:$0xff] %v35482_v11  ;;  %v35485_v12 = vld [vmem:[%s32302_s21 + $0x1f0] sm:$0xff]  ;;  %39124 = vst [vmem:[#allocation17_spill] sm:$0xff] %v35488_v15 }
 0x38f   : > { %39123 = vst [vmem:[#allocation15_spill] sm:$0xff] %v35485_v12 }
 0x391   : > { %28057 = vmatmul.mubr.msk.f32.gmra.mrb[56].mxu1 %vm450_vm1, %v35459_v35  ;;  %29381 = vmatmul.mubr.msk.f32.gmra.mrb[24].mxu0 %vm450_vm1, %v35462_v29  ;;  %v35502_v29 = vld [vmem:[%s32302_s21 + $0x16a] sm:$0xff] }
 0x392   : > { %28059 = vmatprep.mubr.msk.f32.mxu1 %vm450_vm1, %v35465_v9  ;;  %29383 = vmatprep.mubr.msk.f32.mxu0 %vm450_vm1, %v35468_v51  ;;  %v35499_v51 = vld [vmem:[%s32302_s21 + $0x1f8] sm:$0xff]  ;;  %39126 = vst [vmem:[#allocation21_spill] sm:$0xff] %v35502_v29 }
 0x393   : > { %39125 = vst [vmem:[#allocation19_spill] sm:$0xff] %v35499_v51  ;;  %v35505_v9 = vld [vmem:[%s32302_s21 + $0x172] sm:$0xff] }
 0x394   : > { %39127 = vst [vmem:[#allocation23_spill] sm:$0xff] %v35505_v9 }
 0x395   : > { %28060 = vmatmul.mubr.msk.f32.gmra.mrb[58].mxu1 %vm450_vm1, %v35479_v24  ;;  %29384 = vmatmul.mubr.msk.f32.gmra.mrb[26].mxu0 %vm450_vm1, %v35482_v11  ;;  %v6188_v11 = vld [vmem:[%s32302_s21 + $0x11] sm:$0xff] }
 0x396   : > { %28062 = vmatprep.mubr.msk.f32.mxu1 %vm450_vm1, %v35485_v12  ;;  %29386 = vmatprep.mubr.msk.f32.mxu0 %vm450_vm1, %v35488_v15  ;;  %v35516_v15 = vld [vmem:[%s32302_s21 + $0x17a] sm:$0xff]  ;;  %v35520_v12 = vld [vmem:[%s32302_s21 + $0x182] sm:$0xff] }
 0x397   : > { %39128 = vst [vmem:[#allocation25_spill] sm:$0xff] %v35516_v15  ;;  %39129 = vst [vmem:[#allocation27_spill] sm:$0xff] %v35520_v12 }
 0x399   : > { %28063 = vmatmul.mubr.msk.f32.gmra.mrb[60].mxu1 %vm450_vm1, %v35499_v51  ;;  %29387 = vmatmul.mubr.msk.f32.gmra.mrb[28].mxu0 %vm450_vm1, %v35502_v29  ;;  %v6190_v29 = vld [vmem:[%s32302_s21 + $0x21] sm:$0xff]  ;;  %v35535_v51 = vld [vmem:[%s32302_s21 + $0x192] sm:$0xff] }
 0x39a   : > { %28065 = vmatprep.mubr.msk.f32.mxu1 %vm450_vm1, %v34720_v3  ;;  %29389 = vmatprep.mubr.msk.f32.mxu0 %vm450_vm1, %v35505_v9  ;;  %v6189_v3 = vld [vmem:[%s32302_s21 + $0x19] sm:$0xff]  ;;  %v35531_v9 = vld [vmem:[%s32302_s21 + $0x18a] sm:$0xff]  ;;  %39131 = vst [vmem:[#allocation31_spill] sm:$0xff] %v35535_v51 }
 0x39b   : > { %39130 = vst [vmem:[#allocation29_spill] sm:$0xff] %v35531_v9 }
 0x39d   : > { %28066 = vmatmul.mubr.msk.f32.gmra.mrb[62].mxu1 %vm450_vm1, %v34731_v55  ;;  %29390 = vmatmul.mubr.msk.f32.gmra.mrb[30].mxu0 %vm450_vm1, %v35516_v15  ;;  %v35540_v55 = vld [vmem:[%s38543_s1 + $0x24] sm:$0xf]  ;;  %v6192_v15 = vld [vmem:[%s32302_s21 + $0x31] sm:$0xff] }
 0x39e   : > { %28070 = vmatprep.mubr.msk.f32.mxu1 %vm450_vm1, %v6188_v11  ;;  %29392 = vmatprep.mubr.msk.f32.mxu0 %vm450_vm1, %v35520_v12  ;;  %v6191_v11 = vld [vmem:[%s32302_s21 + $0x29] sm:$0xff]  ;;  %v35550_v12 = vld [vmem:[%s32302_s21 + $0x19a] sm:$0xff] }
 0x39f   : > { %39132 = vst [vmem:[#allocation33_spill] sm:$0xff] %v35550_v12 }
 0x3a1   : > { %28071 = vmatmul.mubr.msk.f32.vlgmr.msra.gmra.mrb[0].mxu1 %vm450_vm1, %v6189_v3  ;;  %29393 = vmatmul.mubr.msk.f32.gmra.mrb[32].mxu0 %vm450_vm1, %v35531_v9  ;;  %v35556_v3 = vld [vmem:[%s32302_s21 + $0x1a2] sm:$0xff]  ;;  %v35572_v9 = vld [vmem:[%s32302_s21 + $0x1b2] sm:$0xff] }
 0x3a2   : > { %28167 = vmatpush3.msk.msra.mxu1 %vm643_vm0, %v35014_v31  ;;  %28073 = vmatprep.mubr.msk.f32.mxu1 %vm450_vm1, %v6190_v29  ;;  %39133 = vst [vmem:[#allocation35_spill] sm:$0xff] %v35556_v3  ;;  %v6193_v31 = vld [vmem:[%s32302_s21 + $0x39] sm:$0xff]  ;;  %v35568_v29 = vld [vmem:[%s32302_s21 + $0x1aa] sm:$0xff]  ;;  %39135 = vst [vmem:[#allocation41_spill] sm:$0xff] %v35572_v9 }
 0x3a3   : > { %29395 = vmatprep.mubr.msk.f32.mxu0 %vm450_vm1, %v35535_v51  ;;  %28264 = vmatprep.subr.msk.mxu1 %vm643_vm0, %v35540_v55  ;;  %39134 = vst [vmem:[#allocation37_spill] sm:$0xff] %v35568_v29  ;;  %v6194_v51 = vld [vmem:[%s32302_s21 + $0x41] sm:$0xff] }
 0x3a5   : > { %28074 = vmatmul.mubr.msk.f32.gmra.mrb[2].mxu1 %vm450_vm1, %v6191_v11  ;;  %29396 = vmatmul.mubr.msk.f32.gmra.mrb[34].mxu0 %vm450_vm1, %v35550_v12  ;;  %v35582_v11 = vld [vmem:[%s32302_s21 + $0x1ba] sm:$0xff]  ;;  %v35586_v12 = vld [vmem:[%s32302_s21 + $0x1c2] sm:$0xff] }
 0x3a6   : > { %28076 = vmatprep.mubr.msk.f32.mxu1 %vm450_vm1, %v6192_v15  ;;  %29398 = vmatprep.mubr.msk.f32.mxu0 %vm450_vm1, %v35556_v3  ;;  %v6195_v15 = vld [vmem:[%s32302_s21 + $0x49] sm:$0xff]  ;;  %39136 = vst [vmem:[#allocation45_spill] sm:$0xff] %v35582_v11  ;;  %v6196_v3 = vld [vmem:[%s32302_s21 + $0x51] sm:$0xff]  ;;  %39137 = vst [vmem:[#allocation49_spill] sm:$0xff] %v35586_v12 }
 0x3a9   : > { %28077 = vmatmul.mubr.msk.f32.gmra.mrb[4].mxu1 %vm450_vm1, %v6193_v31  ;;  %29399 = vmatmul.mubr.msk.f32.gmra.mrb[36].mxu0 %vm450_vm1, %v35568_v29  ;;  %v35596_v31 = vld [vmem:[%s32302_s21 + $0x1ca] sm:$0xff]  ;;  %v35600_v29 = vld [vmem:[%s32302_s21 + $0x1d2] sm:$0xff] }
 0x3aa   : > { %28079 = vmatprep.mubr.msk.f32.mxu1 %vm450_vm1, %v6194_v51  ;;  %29401 = vmatprep.mubr.msk.f32.mxu0 %vm450_vm1, %v35572_v9  ;;  %v6197_v51 = vld [vmem:[%s32302_s21 + $0x59] sm:$0xff]  ;;  %v6198_v9 = vld [vmem:[%s32302_s21 + $0x61] sm:$0xff]  ;;  %39138 = vst [vmem:[#allocation53_spill] sm:$0xff] %v35600_v29 }
 0x3ad   : > { %28080 = vmatmul.mubr.msk.f32.gmra.mrb[6].mxu1 %vm450_vm1, %v6195_v15  ;;  %29402 = vmatmul.mubr.msk.f32.gmra.mrb[38].mxu0 %vm450_vm1, %v35582_v11  ;;  %v35610_v15 = vld [vmem:[%s32302_s21 + $0x1da] sm:$0xff]  ;;  %v35614_v11 = vld [vmem:[%s32302_s21 + $0x1e2] sm:$0xff] }
 0x3ae   : > { %28082 = vmatprep.mubr.msk.f32.mxu1 %vm450_vm1, %v6196_v3  ;;  %29404 = vmatprep.mubr.msk.f32.mxu0 %vm450_vm1, %v35586_v12  ;;  %v6199_v3 = vld [vmem:[%s32302_s21 + $0x69] sm:$0xff]  ;;  %v6200_v12 = vld [vmem:[%s32302_s21 + $0x71] sm:$0xff] }
 0x3b1   : > { %28083 = vmatmul.mubr.msk.f32.gmra.mrb[8].mxu1 %vm450_vm1, %v6197_v51  ;;  %29405 = vmatmul.mubr.msk.f32.gmra.mrb[40].mxu0 %vm450_vm1, %v35596_v31  ;;  %v35624_v51 = vld [vmem:[%s32302_s21 + $0x1ea] sm:$0xff] }
 0x3b2   : > { %28085 = vmatprep.mubr.msk.f32.mxu1 %vm450_vm1, %v6198_v9  ;;  %29407 = vmatprep.mubr.msk.f32.mxu0 %vm450_vm1, %v35600_v29  ;;  %v6201_v9 = vld [vmem:[%s32302_s21 + $0x79] sm:$0xff] }
 0x3b3   : > { %v35627_v29 = vld [vmem:[%s32302_s21 + $0x1f2] sm:$0xff] }
 0x3b5   : > { %28086 = vmatmul.mubr.msk.f32.gmra.mrb[10].mxu1 %vm450_vm1, %v6199_v3  ;;  %29408 = vmatmul.mubr.msk.f32.gmra.mrb[42].mxu0 %vm450_vm1, %v35610_v15  ;;  %v35640_v3 = vld [vmem:[%s32302_s21 + $0x202] sm:$0xff] }
 0x3b6   : > { %28088 = vmatprep.mubr.msk.f32.mxu1 %vm450_vm1, %v6200_v12  ;;  %29410 = vmatprep.mubr.msk.f32.mxu0 %vm450_vm1, %v35614_v11  ;;  %v35637_v12 = vld [vmem:[%s32302_s21 + $0x1fa] sm:$0xff] }
 0x3b9   : > { %28089 = vmatmul.mubr.msk.f32.gmra.mrb[12].mxu1 %vm450_vm1, %v6201_v9  ;;  %29411 = vmatmul.mubr.msk.f32.gmra.mrb[44].mxu0 %vm450_vm1, %v35624_v51  ;;  %v17132_v9 = vld [vmem:[%s32302_s21 + $0x212] sm:$0xff] }
 0x3ba   : > { %28091 = vmatprep.mubr.msk.f32.mxu1 %vm450_vm1, %v34791_v30  ;;  %29413 = vmatprep.mubr.msk.f32.mxu0 %vm450_vm1, %v35627_v29  ;;  %v35651_v30 = vld [vmem:[%s32302_s21 + $0x20a] sm:$0xff] }
 0x3bb   : > { %39139 = vst [vmem:[#allocation57_spill] sm:$0xff] %v35651_v30 }
 0x3bd   : > { %28092 = vmatmul.mubr.msk.f32.gmra.mrb[14].mxu1 %vm450_vm1, %v34801_v61  ;;  %29414 = vmatmul.mubr.msk.f32.gmra.mrb[46].mxu0 %vm450_vm1, %v35637_v12  ;;  %v17133_v61 = vld [vmem:[%s32302_s21 + $0x21a] sm:$0xff] }
 0x3be   : > { %28094 = vmatprep.mubr.msk.f32.mxu1 %vm450_vm1, %v34804_v23  ;;  %29416 = vmatprep.mubr.msk.f32.mxu0 %vm450_vm1, %v35640_v3  ;;  %v17134_v23 = vld [vmem:[%s32302_s21 + $0x222] sm:$0xff] }
 0x3c1   : > { %28095 = vmatmul.mubr.msk.f32.gmra.mrb[16].mxu1 %vm450_vm1, %v34815_v26  ;;  %29417 = vmatmul.mubr.msk.f32.gmra.mrb[48].mxu0 %vm450_vm1, %v35651_v30  ;;  %v17135_v26 = vld [vmem:[%s32302_s21 + $0x22a] sm:$0xff]  ;;  %v17136_v30 = vld [vmem:[%s32302_s21 + $0x232] sm:$0xff] }
 0x3c2   : > { %28097 = vmatprep.mubr.msk.f32.mxu1 %vm450_vm1, %v34818_v57  ;;  %29419 = vmatprep.mubr.msk.f32.mxu0 %vm450_vm1, %v17132_v9  ;;  %v17137_v57 = vld [vmem:[%s32302_s21 + $0x23a] sm:$0xff] }
 0x3c3   : > { %v7031_v9 = vld [vmem:[%s32302_s21 + $0x3a] sm:$0xff] }
 0x3c5   : > { %28098 = vmatmul.mubr.msk.f32.gmra.mrb[18].mxu1 %vm450_vm1, %v34831_v50  ;;  %29420 = vmatmul.mubr.msk.f32.gmra.mrb[50].mxu0 %vm450_vm1, %v17133_v61  ;;  %v17138_v50 = vld [vmem:[%s32302_s21 + $0x242] sm:$0xff] }
 0x3c6   : > { %28100 = vmatprep.mubr.msk.f32.mxu1 %vm450_vm1, %v34834_v58  ;;  %29422 = vmatprep.mubr.msk.f32.mxu0 %vm450_vm1, %v17134_v23  ;;  %v17139_v58 = vld [vmem:[%s32302_s21 + $0x24a] sm:$0xff]  ;;  %v7032_v61 = vld [vmem:[%s32302_s21 + $0x42] sm:$0xff] }
 0x3c7   : > { %v39152_v23 = vld [vmem:[#allocation43_spill] sm:$0xff] }
 0x3c9   : > { %28101 = vmatmul.mubr.msk.f32.gmra.mrb[20].mxu1 %vm450_vm1, %v34850_v32  ;;  %29423 = vmatmul.mubr.msk.f32.gmra.mrb[52].mxu0 %vm450_vm1, %v17135_v26  ;;  %v17140_v32 = vld [vmem:[%s32302_s21 + $0x252] sm:$0xff]  ;;  %v39153_v26 = vld [vmem:[#allocation47_spill] sm:$0xff] }
 0x3ca   : > { %28103 = vmatprep.mubr.msk.f32.mxu1 %vm450_vm1, %v34853_v36  ;;  %29425 = vmatprep.mubr.msk.f32.mxu0 %vm450_vm1, %v17136_v30  ;;  %v17141_v36 = vld [vmem:[%s32302_s21 + $0x25a] sm:$0xff]  ;;  %v39150_v30 = vld [vmem:[#allocation12_spill] sm:$0xff] }
 0x3cd   : > { %28104 = vmatmul.mubr.msk.f32.gmra.mrb[22].mxu1 %vm450_vm1, %v34866_v21  ;;  %29426 = vmatmul.mubr.msk.f32.gmra.mrb[54].mxu0 %vm450_vm1, %v17137_v57  ;;  %v17142_v21 = vld [vmem:[%s32302_s21 + $0x262] sm:$0xff]  ;;  %v7033_v57 = vld [vmem:[%s32302_s21 + $0x4a] sm:$0xff] }
 0x3ce   : > { %28106 = vmatprep.mubr.msk.f32.mxu1 %vm450_vm1, %v34869_v34  ;;  %29428 = vmatprep.mubr.msk.f32.mxu0 %vm450_vm1, %v17138_v50  ;;  %v17143_v34 = vld [vmem:[%s32302_s21 + $0x26a] sm:$0xff]  ;;  %v7034_v50 = vld [vmem:[%s32302_s21 + $0x52] sm:$0xff] }
 0x3d1   : > { %28107 = vmatmul.mubr.msk.f32.gmra.mrb[24].mxu1 %vm450_vm1, %v34880_v49  ;;  %29429 = vmatmul.mubr.msk.f32.gmra.mrb[56].mxu0 %vm450_vm1, %v17139_v58  ;;  %v17144_v49 = vld [vmem:[%s32302_s21 + $0x272] sm:$0xff]  ;;  %v39154_v58 = vld [vmem:[#allocation51_spill] sm:$0xff] }
 0x3d2   : > { %28109 = vmatprep.mubr.msk.f32.mxu1 %vm450_vm1, %v34883_v22  ;;  %29431 = vmatprep.mubr.msk.f32.mxu0 %vm450_vm1, %v17140_v32  ;;  %v17145_v22 = vld [vmem:[%s32302_s21 + $0x27a] sm:$0xff] }
 0x3d3   : > { %v39155_v32 = vld [vmem:[#allocation55_spill] sm:$0xff] }
 0x3d5   : > { %28110 = vmatmul.mubr.msk.f32.gmra.mrb[26].mxu1 %vm450_vm1, %v34894_v19  ;;  %29432 = vmatmul.mubr.msk.f32.gmra.mrb[58].mxu0 %vm450_vm1, %v17141_v36  ;;  %v35742_v19 = vld [vmem:[%s38543_s1 + $0x5c] sm:$0xf] }
 0x3d6   : > { %28112 = vmatprep.mubr.msk.f32.mxu1 %vm450_vm1, %v34897_v45  ;;  %29434 = vmatprep.mubr.msk.f32.mxu0 %vm450_vm1, %v17142_v21  ;;  %v35749_v45 = vld [vmem:[%s32302_s21 + $0x149] sm:$0xff]  ;;  %v7035_v36 = vld [vmem:[%s32302_s21 + $0x5a] sm:$0xff] }
 0x3d7   : > { %v7036_v21 = vld [vmem:[%s32302_s21 + $0x62] sm:$0xff] }
 0x3d9   : > { %28113 = vmatmul.mubr.msk.f32.gmra.mrb[28].mxu1 %vm450_vm1, %v34908_v53  ;;  %29435 = vmatmul.mubr.msk.f32.gmra.mrb[60].mxu0 %vm450_vm1, %v17143_v34  ;;  %v35752_v53 = vld [vmem:[%s32302_s21 + $0x151] sm:$0xff] }
 0x3da   : > { %28115 = vmatprep.mubr.msk.f32.mxu1 %vm450_vm1, %v34911_v41  ;;  %29437 = vmatprep.mubr.msk.f32.mxu0 %vm450_vm1, %v17144_v49  ;;  %v35765_v41 = vld [vmem:[%s32302_s21 + $0x159] sm:$0xff]  ;;  %v7037_v49 = vld [vmem:[%s32302_s21 + $0x6a] sm:$0xff] }
 0x3db   : > { %v39156_v34 = vld [vmem:[#allocation34_spill] sm:$0xff] }
 0x3dd   : > { %28116 = vmatmul.mubr.msk.f32.gmra.mrb[30].mxu1 %vm450_vm1, %v34922_v17  ;;  %29438 = vmatmul.mubr.msk.f32.gmra.mrb[62].mxu0 %vm450_vm1, %v17145_v22  ;;  %v35768_v17 = vld [vmem:[%s32302_s21 + $0x161] sm:$0xff]  ;;  %v7038_v22 = vld [vmem:[%s32302_s21 + $0x72] sm:$0xff] }
 0x3de   : > { %28118 = vmatprep.mubr.msk.f32.mxu1 %vm450_vm1, %v34925_v1  ;;  %29442 = vmatprep.mubr.msk.f32.mxu0 %vm450_vm1, %v35075_v5  ;;  %v35779_v1 = vld [vmem:[%s32302_s21 + $0x169] sm:$0xff]  ;;  %v35824_v5 = vld [vmem:[%s32302_s21 + $0x1a1] sm:$0xff] }
 0x3e1   : > { %28119 = vmatmul.mubr.msk.f32.gmra.mrb[32].mxu1 %vm450_vm1, %v34936_v59  ;;  %29443 = vmatmul.mubr.msk.f32.vlgmr.msra.gmra.mrb[0].mxu0 %vm450_vm1, %v35078_v7  ;;  %v35782_v59 = vld [vmem:[%s32302_s21 + $0x171] sm:$0xff]  ;;  %v35835_v7 = vld [vmem:[%s32302_s21 + $0x1a9] sm:$0xff] }
 0x3e2   : > { %28121 = vmatprep.mubr.msk.f32.mxu1 %vm450_vm1, %v34939_v63  ;;  %29445 = vmatprep.mubr.msk.f32.mxu0 %vm450_vm1, %v35092_v13  ;;  %v35793_v63 = vld [vmem:[%s32302_s21 + $0x179] sm:$0xff]  ;;  %v35838_v13 = vld [vmem:[%s32302_s21 + $0x1b1] sm:$0xff] }
 0x3e3   : > { %29539 = vmatpush3.msk.msra.mxu0 %vm643_vm0, %v35270_v18  ;;  %v39149_v18 = vld [vmem:[#allocation10_spill] sm:$0xff] }
 0x3e4   : > { %29636 = vmatprep.subr.msk.mxu0 %vm643_vm0, %v35742_v19 }
 0x3e5   : > { %28122 = vmatmul.mubr.msk.f32.gmra.mrb[34].mxu1 %vm450_vm1, %v34950_v44  ;;  %29446 = vmatmul.mubr.msk.f32.gmra.mrb[2].mxu0 %vm450_vm1, %v35098_v46  ;;  %v35796_v44 = vld [vmem:[%s32302_s21 + $0x181] sm:$0xff]  ;;  %v35849_v46 = vld [vmem:[%s32302_s21 + $0x1b9] sm:$0xff] }
 0x3e6   : > { %28124 = vmatprep.mubr.msk.f32.mxu1 %vm450_vm1, %v34953_v38  ;;  %29448 = vmatprep.mubr.msk.f32.mxu0 %vm450_vm1, %v35109_v48  ;;  %v35807_v38 = vld [vmem:[%s32302_s21 + $0x189] sm:$0xff]  ;;  %v35852_v48 = vld [vmem:[%s32302_s21 + $0x1c1] sm:$0xff] }
 0x3e9   : > { %28125 = vmatmul.mubr.msk.f32.gmra.mrb[36].mxu1 %vm450_vm1, %v34964_v37  ;;  %29449 = vmatmul.mubr.msk.f32.gmra.mrb[4].mxu0 %vm450_vm1, %v35113_v54  ;;  %v35810_v37 = vld [vmem:[%s32302_s21 + $0x191] sm:$0xff]  ;;  %v35863_v54 = vld [vmem:[%s32302_s21 + $0x1c9] sm:$0xff] }
 0x3ea   : > { %28127 = vmatprep.mubr.msk.f32.mxu1 %vm450_vm1, %v34967_v42  ;;  %29451 = vmatprep.mubr.msk.f32.mxu0 %vm450_vm1, %v35123_v27  ;;  %v35821_v42 = vld [vmem:[%s32302_s21 + $0x199] sm:$0xff]  ;;  %v35866_v27 = vld [vmem:[%s32302_s21 + $0x1d1] sm:$0xff] }
 0x3ed   : > { %28128 = vmatmul.mubr.msk.f32.gmra.mrb[38].mxu1 %vm450_vm1, %v35749_v45  ;;  %29452 = vmatmul.mubr.msk.f32.gmra.mrb[6].mxu0 %vm450_vm1, %v35127_v28  ;;  %v35877_v28 = vld [vmem:[%s32302_s21 + $0x1d9] sm:$0xff] }
 0x3ee   : > { %28130 = vmatprep.mubr.msk.f32.mxu1 %vm450_vm1, %v35752_v53  ;;  %29454 = vmatprep.mubr.msk.f32.mxu0 %vm450_vm1, %v35137_v43  ;;  %v35880_v43 = vld [vmem:[%s32302_s21 + $0x1e1] sm:$0xff] }
 0x3f1   : > { %28131 = vmatmul.mubr.msk.f32.gmra.mrb[40].mxu1 %vm450_vm1, %v35765_v41  ;;  %29455 = vmatmul.mubr.msk.f32.gmra.mrb[8].mxu0 %vm450_vm1, %v35141_v2  ;;  %v35891_v2 = vld [vmem:[%s32302_s21 + $0x1e9] sm:$0xff] }
 0x3f2   : > { %28133 = vmatprep.mubr.msk.f32.mxu1 %vm450_vm1, %v35768_v17  ;;  %29457 = vmatprep.mubr.msk.f32.mxu0 %vm450_vm1, %v35151_v25  ;;  %v35894_v25 = vld [vmem:[%s32302_s21 + $0x1f1] sm:$0xff] }
 0x3f5   : > { %28134 = vmatmul.mubr.msk.f32.gmra.mrb[42].mxu1 %vm450_vm1, %v35779_v1  ;;  %29458 = vmatmul.mubr.msk.f32.gmra.mrb[10].mxu0 %vm450_vm1, %v35155_v6  ;;  %v39140_v6 = vld [vmem:[#allocation44_spill] sm:$0xff] }
 0x3f6   : > { %28136 = vmatprep.mubr.msk.f32.mxu1 %vm450_vm1, %v35782_v59  ;;  %29460 = vmatprep.mubr.msk.f32.mxu0 %vm450_vm1, %v35165_v33  ;;  %v39141_v33 = vld [vmem:[#allocation48_spill] sm:$0xff] }
 0x3f9   : > { %28137 = vmatmul.mubr.msk.f32.gmra.mrb[44].mxu1 %vm450_vm1, %v35793_v63  ;;  %29461 = vmatmul.mubr.msk.f32.gmra.mrb[12].mxu0 %vm450_vm1, %v35169_v39  ;;  %v35905_v39 = vld [vmem:[%s32302_s21 + $0x1f9] sm:$0xff] }
 0x3fa   : > { %28139 = vmatprep.mubr.msk.f32.mxu1 %vm450_vm1, %v35796_v44  ;;  %29463 = vmatprep.mubr.msk.f32.mxu0 %vm450_vm1, %v35179_v60  ;;  %v39142_v60 = vld [vmem:[#allocation50_spill] sm:$0xff] }
 0x3fd   : > { %28140 = vmatmul.mubr.msk.f32.gmra.mrb[46].mxu1 %vm450_vm1, %v35807_v38  ;;  %29464 = vmatmul.mubr.msk.f32.gmra.mrb[14].mxu0 %vm450_vm1, %v35183_v20  ;;  %v39143_v20 = vld [vmem:[#allocation72_spill] sm:$0xff] }
 0x3fe   : > { %28142 = vmatprep.mubr.msk.f32.mxu1 %vm450_vm1, %v35810_v37  ;;  %29466 = vmatprep.mubr.msk.f32.mxu0 %vm450_vm1, %v35193_v14  ;;  %v39144_v14 = vld [vmem:[#allocation54_spill] sm:$0xff] }
 0x401   : > { %28143 = vmatmul.mubr.msk.f32.gmra.mrb[48].mxu1 %vm450_vm1, %v35821_v42  ;;  %29467 = vmatmul.mubr.msk.f32.gmra.mrb[16].mxu0 %vm450_vm1, %v35197_v10  ;;  %v7026_v10 = vld [vmem:[%s32302_s21 + $0x12] sm:$0xff] }
 0x402   : > { %28145 = vmatprep.mubr.msk.f32.mxu1 %vm450_vm1, %v35824_v5  ;;  %29469 = vmatprep.mubr.msk.f32.mxu0 %vm450_vm1, %v35210_v47  ;;  %v39145_v47 = vld [vmem:[#allocation73_spill] sm:$0xff] }
 0x405   : > { %28146 = vmatmul.mubr.msk.f32.gmra.mrb[50].mxu1 %vm450_vm1, %v35835_v7  ;;  %29470 = vmatmul.mubr.msk.f32.gmra.mrb[18].mxu0 %vm450_vm1, %v35216_v62  ;;  %v39146_v62 = vld [vmem:[#allocation58_spill] sm:$0xff] }
 0x406   : > { %28148 = vmatprep.mubr.msk.f32.mxu1 %vm450_vm1, %v35838_v13  ;;  %29472 = vmatprep.mubr.msk.f32.mxu0 %vm450_vm1, %v35230_v40  ;;  %v39147_v40 = vld [vmem:[#allocation62_spill] sm:$0xff] }
 0x409   : > { %28149 = vmatmul.mubr.msk.f32.gmra.mrb[52].mxu1 %vm450_vm1, %v35849_v46  ;;  %29473 = vmatmul.mubr.msk.f32.gmra.mrb[20].mxu0 %vm450_vm1, %v35236_v56  ;;  %v7027_v56 = vld [vmem:[%s32302_s21 + $0x1a] sm:$0xff] }
 0x40a   : > { %28151 = vmatprep.mubr.msk.f32.mxu1 %vm450_vm1, %v35852_v48  ;;  %29475 = vmatprep.mubr.msk.f32.mxu0 %vm450_vm1, %v35252_v8  ;;  %v35928_v8 = vld [vmem:[%s38543_s1 + $0x28] sm:$0xf] }
 0x40d   : > { %28152 = vmatmul.mubr.msk.f32.gmra.mrb[54].mxu1 %vm450_vm1, %v35863_v54  ;;  %29476 = vmatmul.mubr.msk.f32.gmra.mrb[22].mxu0 %vm450_vm1, %v35258_v52  ;;  %v39148_v52 = vld [vmem:[#allocation66_spill] sm:$0xff] }
 0x40e   : > { %28154 = vmatprep.mubr.msk.f32.mxu1 %vm450_vm1, %v35866_v27  ;;  %29478 = vmatprep.mubr.msk.f32.mxu0 %vm450_vm1, %v35277_v16  ;;  %v7030_v16 = vld [vmem:[%s32302_s21 + $0x32] sm:$0xff] }
 0x411   : > { %28155 = vmatmul.mubr.msk.f32.gmra.mrb[56].mxu1 %vm450_vm1, %v35877_v28  ;;  %29479 = vmatmul.mubr.msk.f32.gmra.mrb[24].mxu0 %vm450_vm1, %v35283_v0  ;;  %v7028_v0 = vld [vmem:[%s32302_s21 + $0x22] sm:$0xff] }
 0x412   : > { %28157 = vmatprep.mubr.msk.f32.mxu1 %vm450_vm1, %v35880_v43  ;;  %29481 = vmatprep.mubr.msk.f32.mxu0 %vm450_vm1, %v35299_v4  ;;  %v7029_v4 = vld [vmem:[%s32302_s21 + $0x2a] sm:$0xff] }
 0x415   : > { %28158 = vmatmul.mubr.msk.f32.gmra.mrb[58].mxu1 %vm450_vm1, %v35891_v2  ;;  %29482 = vmatmul.mubr.msk.f32.gmra.mrb[26].mxu0 %vm450_vm1, %v39140_v6  ;;  %v39157_v6 = vld [vmem:[#allocation9_spill] sm:$0xff] }
 0x416   : > { %28160 = vmatprep.mubr.msk.f32.mxu1 %vm450_vm1, %v35894_v25  ;;  %29484 = vmatprep.mubr.msk.f32.mxu0 %vm450_vm1, %v39141_v33  ;;  %v7039_v33 = vld [vmem:[%s32302_s21 + $0x7a] sm:$0xff] }
 0x419   : > { %28161 = vmatmul.mubr.msk.f32.gmra.mrb[60].mxu1 %vm450_vm1, %v35905_v39  ;;  %29485 = vmatmul.mubr.msk.f32.gmra.mrb[28].mxu0 %vm450_vm1, %v39142_v60  ;;  %v39158_v60 = vld [vmem:[#allocation15_spill] sm:$0xff] }
 0x41a   : > { %28163 = vmatprep.mubr.msk.f32.mxu1 %vm450_vm1, %v39143_v20  ;;  %29487 = vmatprep.mubr.msk.f32.mxu0 %vm450_vm1, %v39144_v14  ;;  %v39160_v20 = vld [vmem:[#allocation19_spill] sm:$0xff] }
 0x41b   : > { %v35989_v14 = vld [vmem:[%s32302_s21 + $0x200] sm:$0xff] }
 0x41d   : > { %28164 = vmatmul.mubr.msk.f32.gmra.mrb[62].mxu1 %vm450_vm1, %v39145_v47  ;;  %29488 = vmatmul.mubr.msk.f32.gmra.mrb[30].mxu0 %vm450_vm1, %v39146_v62  ;;  %v39161_v47 = vld [vmem:[#allocation75_spill] sm:$0xff]  ;;  %v36003_v62 = vld [vmem:[%s32302_s21 + $0x210] sm:$0xff] }
 0x41e   : > { %28168 = vmatprep.mubr.msk.f32.mxu1 %vm450_vm1, %v7026_v10  ;;  %29490 = vmatprep.mubr.msk.f32.mxu0 %vm450_vm1, %v39147_v40  ;;  %v35992_v10 = vld [vmem:[%s32302_s21 + $0x208] sm:$0xff]  ;;  %v36006_v40 = vld [vmem:[%s32302_s21 + $0x218] sm:$0xff] }
 0x421   : > { %28169 = vmatmul.mubr.msk.f32.vlgmr.msra.gmra.mrb[0].mxu1 %vm450_vm1, %v7027_v56  ;;  %29491 = vmatmul.mubr.msk.f32.gmra.mrb[32].mxu0 %vm450_vm1, %v39148_v52  ;;  %v39163_v56 = vld [vmem:[#allocation77_spill] sm:$0xff]  ;;  %v36017_v52 = vld [vmem:[%s32302_s21 + $0x220] sm:$0xff] }
 0x422   : > { %28265 = vmatpush3.msk.msra.mxu1 %vm643_vm0, %v35540_v55  ;;  %28171 = vmatprep.mubr.msk.f32.mxu1 %vm450_vm1, %v7028_v0  ;;  %v39151_v55 = vld [vmem:[#allocation39_spill] sm:$0xff]  ;;  %v39164_v0 = vld [vmem:[#allocation20_spill] sm:$0xff] }
 0x423   : > { %29493 = vmatprep.mubr.msk.f32.mxu0 %vm450_vm1, %v39149_v18  ;;  %28362 = vmatprep.subr.msk.mxu1 %vm643_vm0, %v35928_v8  ;;  %v39165_v18 = vld [vmem:[#allocation24_spill] sm:$0xff] }
 0x425   : > { %28172 = vmatmul.mubr.msk.f32.gmra.mrb[2].mxu1 %vm450_vm1, %v7029_v4  ;;  %29494 = vmatmul.mubr.msk.f32.gmra.mrb[34].mxu0 %vm450_vm1, %v39150_v30  ;;  %v36020_v4 = vld [vmem:[%s32302_s21 + $0x228] sm:$0xff]  ;;  %v36031_v30 = vld [vmem:[%s32302_s21 + $0x230] sm:$0xff] }
 0x426   : > { %28174 = vmatprep.mubr.msk.f32.mxu1 %vm450_vm1, %v7030_v16  ;;  %29496 = vmatprep.mubr.msk.f32.mxu0 %vm450_vm1, %v39151_v55  ;;  %v39166_v16 = vld [vmem:[#allocation28_spill] sm:$0xff]  ;;  %v36034_v55 = vld [vmem:[%s32302_s21 + $0x238] sm:$0xff] }
 0x429   : > { %28175 = vmatmul.mubr.msk.f32.gmra.mrb[4].mxu1 %vm450_vm1, %v7031_v9  ;;  %29497 = vmatmul.mubr.msk.f32.gmra.mrb[36].mxu0 %vm450_vm1, %v39152_v23  ;;  %v39167_v9 = vld [vmem:[#allocation32_spill] sm:$0xff] }
 0x42a   : > { %28177 = vmatprep.mubr.msk.f32.mxu1 %vm450_vm1, %v7032_v61  ;;  %29499 = vmatprep.mubr.msk.f32.mxu0 %vm450_vm1, %v39153_v26  ;;  %v39168_v61 = vld [vmem:[#allocation36_spill] sm:$0xff] }
 0x42b   : > { %v17975_v23 = vld [vmem:[%s32302_s21 + $0x240] sm:$0xff]  ;;  %v17976_v26 = vld [vmem:[%s32302_s21 + $0x248] sm:$0xff] }
 0x42d   : > { %28178 = vmatmul.mubr.msk.f32.gmra.mrb[6].mxu1 %vm450_vm1, %v7033_v57  ;;  %29500 = vmatmul.mubr.msk.f32.gmra.mrb[38].mxu0 %vm450_vm1, %v39154_v58  ;;  %v39169_v57 = vld [vmem:[#allocation40_spill] sm:$0xff]  ;;  %v17977_v58 = vld [vmem:[%s32302_s21 + $0x250] sm:$0xff] }
 0x42e   : > { %28180 = vmatprep.mubr.msk.f32.mxu1 %vm450_vm1, %v7034_v50  ;;  %29502 = vmatprep.mubr.msk.f32.mxu0 %vm450_vm1, %v39155_v32  ;;  %v39170_v50 = vld [vmem:[#allocation46_spill] sm:$0xff] }
 0x42f   : > { %v17978_v32 = vld [vmem:[%s32302_s21 + $0x258] sm:$0xff] }
 0x431   : > { %28181 = vmatmul.mubr.msk.f32.gmra.mrb[8].mxu1 %vm450_vm1, %v7035_v36  ;;  %29503 = vmatmul.mubr.msk.f32.gmra.mrb[40].mxu0 %vm450_vm1, %v39156_v34  ;;  %v39171_v36 = vld [vmem:[#allocation8_spill] sm:$0xff] }
 0x432   : > { %28183 = vmatprep.mubr.msk.f32.mxu1 %vm450_vm1, %v7036_v21  ;;  %29505 = vmatprep.mubr.msk.f32.mxu0 %vm450_vm1, %v35459_v35  ;;  %v39159_v35 = vld [vmem:[#allocation74_spill] sm:$0xff]  ;;  %v39172_v21 = vld [vmem:[#allocation52_spill] sm:$0xff] }
 0x433   : > { %v17979_v34 = vld [vmem:[%s32302_s21 + $0x260] sm:$0xff] }
 0x435   : > { %28184 = vmatmul.mubr.msk.f32.gmra.mrb[10].mxu1 %vm450_vm1, %v7037_v49  ;;  %29506 = vmatmul.mubr.msk.f32.gmra.mrb[42].mxu0 %vm450_vm1, %v39157_v6  ;;  %v17980_v49 = vld [vmem:[%s32302_s21 + $0x268] sm:$0xff] }
 0x436   : > { %28186 = vmatprep.mubr.msk.f32.mxu1 %vm450_vm1, %v7038_v22  ;;  %29508 = vmatprep.mubr.msk.f32.mxu0 %vm450_vm1, %v35479_v24  ;;  %v39162_v24 = vld [vmem:[#allocation76_spill] sm:$0xff] }
 0x437   : > { %v39173_v22 = vld [vmem:[#allocation56_spill] sm:$0xff] }
 0x438   : > { %v39174_v6 = vld [vmem:[#allocation60_spill] sm:$0xff] }
 0x439   : > { %28187 = vmatmul.mubr.msk.f32.gmra.mrb[12].mxu1 %vm450_vm1, %v7039_v33  ;;  %29509 = vmatmul.mubr.msk.f32.gmra.mrb[44].mxu0 %vm450_vm1, %v39158_v60  ;;  %v17981_v33 = vld [vmem:[%s32302_s21 + $0x270] sm:$0xff]  ;;  %v17982_v60 = vld [vmem:[%s32302_s21 + $0x278] sm:$0xff] }
 0x43a   : > { %28189 = vmatprep.mubr.msk.f32.mxu1 %vm450_vm1, %v39159_v35  ;;  %29511 = vmatprep.mubr.msk.f32.mxu0 %vm450_vm1, %v39160_v20  ;;  %v39175_v35 = vld [vmem:[#allocation64_spill] sm:$0xff] }
 0x43b   : > { %v39176_v20 = vld [vmem:[#allocation68_spill] sm:$0xff] }
 0x43d   : > { %28190 = vmatmul.mubr.msk.f32.gmra.mrb[14].mxu1 %vm450_vm1, %v39161_v47  ;;  %29512 = vmatmul.mubr.msk.f32.gmra.mrb[46].mxu0 %vm450_vm1, %v35989_v14  ;;  %v17983_v47 = vld [vmem:[%s32302_s21 + $0x280] sm:$0xff] }
 0x43e   : > { %28192 = vmatprep.mubr.msk.f32.mxu1 %vm450_vm1, %v39162_v24  ;;  %29514 = vmatprep.mubr.msk.f32.mxu0 %vm450_vm1, %v35992_v10  ;;  %v36078_v24 = vld [vmem:[%s32302_s21 + $0x89] sm:$0xff] }
 0x441   : > { %28193 = vmatmul.mubr.msk.f32.gmra.mrb[16].mxu1 %vm450_vm1, %v39163_v56  ;;  %29515 = vmatmul.mubr.msk.f32.gmra.mrb[48].mxu0 %vm450_vm1, %v36003_v62  ;;  %v39177_v56 = vld [vmem:[#allocation70_spill] sm:$0xff] }
 0x442   : > { %28195 = vmatprep.mubr.msk.f32.mxu1 %vm450_vm1, %v39164_v0  ;;  %29517 = vmatprep.mubr.msk.f32.mxu0 %vm450_vm1, %v36006_v40  ;;  %v39178_v0 = vld [vmem:[#allocation14_spill] sm:$0xff] }
 0x445   : > { %28196 = vmatmul.mubr.msk.f32.gmra.mrb[18].mxu1 %vm450_vm1, %v39165_v18  ;;  %29518 = vmatmul.mubr.msk.f32.gmra.mrb[50].mxu0 %vm450_vm1, %v36017_v52  ;;  %v36088_v18 = vld [vmem:[%s32302_s21 + $0x91] sm:$0xff] }
 0x446   : > { %28198 = vmatprep.mubr.msk.f32.mxu1 %vm450_vm1, %v39166_v16  ;;  %29520 = vmatprep.mubr.msk.f32.mxu0 %vm450_vm1, %v36020_v4  ;;  %v36091_v16 = vld [vmem:[%s32302_s21 + $0x99] sm:$0xff] }
 0x449   : > { %28199 = vmatmul.mubr.msk.f32.gmra.mrb[20].mxu1 %vm450_vm1, %v39167_v9  ;;  %29521 = vmatmul.mubr.msk.f32.gmra.mrb[52].mxu0 %vm450_vm1, %v36031_v30  ;;  %v39179_v9 = vld [vmem:[#allocation16_spill] sm:$0xff] }
 0x44a   : > { %28201 = vmatprep.mubr.msk.f32.mxu1 %vm450_vm1, %v39168_v61  ;;  %29523 = vmatprep.mubr.msk.f32.mxu0 %vm450_vm1, %v36034_v55  ;;  %v39180_v61 = vld [vmem:[#allocation18_spill] sm:$0xff] }
 0x44d   : > { %28202 = vmatmul.mubr.msk.f32.gmra.mrb[22].mxu1 %vm450_vm1, %v39169_v57  ;;  %29524 = vmatmul.mubr.msk.f32.gmra.mrb[54].mxu0 %vm450_vm1, %v17975_v23  ;;  %v36102_v23 = vld [vmem:[%s32302_s21 + $0xa1] sm:$0xff]  ;;  %v39181_v57 = vld [vmem:[#allocation22_spill] sm:$0xff] }
 0x44e   : > { %28204 = vmatprep.mubr.msk.f32.mxu1 %vm450_vm1, %v39170_v50  ;;  %29526 = vmatprep.mubr.msk.f32.mxu0 %vm450_vm1, %v17976_v26  ;;  %v36105_v26 = vld [vmem:[%s32302_s21 + $0xa9] sm:$0xff]  ;;  %v39182_v50 = vld [vmem:[#allocation26_spill] sm:$0xff] }
 0x451   : > { %28205 = vmatmul.mubr.msk.f32.gmra.mrb[24].mxu1 %vm450_vm1, %v39171_v36  ;;  %29527 = vmatmul.mubr.msk.f32.gmra.mrb[56].mxu0 %vm450_vm1, %v17977_v58  ;;  %v36118_v58 = vld [vmem:[%s32302_s21 + $0xb1] sm:$0xff] }
 0x452   : > { %28207 = vmatprep.mubr.msk.f32.mxu1 %vm450_vm1, %v39172_v21  ;;  %29529 = vmatprep.mubr.msk.f32.mxu0 %vm450_vm1, %v17978_v32  ;;  %v36121_v32 = vld [vmem:[%s32302_s21 + $0xb9] sm:$0xff] }
 0x453   : > { %v39183_v36 = vld [vmem:[#allocation30_spill] sm:$0xff] }
 0x454   : > { %v39184_v21 = vld [vmem:[#allocation38_spill] sm:$0xff] }
 0x455   : > { %28208 = vmatmul.mubr.msk.f32.gmra.mrb[26].mxu1 %vm450_vm1, %v39173_v22  ;;  %29530 = vmatmul.mubr.msk.f32.gmra.mrb[58].mxu0 %vm450_vm1, %v17979_v34  ;;  %v36137_v34 = vld [vmem:[%s32302_s21 + $0xc1] sm:$0xff]  ;;  %v39185_v22 = vld [vmem:[#allocation42_spill] sm:$0xff] }
 0x456   : > { %28210 = vmatprep.mubr.msk.f32.mxu1 %vm450_vm1, %v39174_v6  ;;  %29532 = vmatprep.mubr.msk.f32.mxu0 %vm450_vm1, %v17980_v49  ;;  %v36140_v49 = vld [vmem:[%s32302_s21 + $0xc9] sm:$0xff]  ;;  %v39186_v6 = vld [vmem:[#allocation11_spill] sm:$0xff] }
 0x459   : > { %28211 = vmatmul.mubr.msk.f32.gmra.mrb[28].mxu1 %vm450_vm1, %v39175_v35  ;;  %29533 = vmatmul.mubr.msk.f32.gmra.mrb[60].mxu0 %vm450_vm1, %v17981_v33  ;;  %v36153_v33 = vld [vmem:[%s32302_s21 + $0xd1] sm:$0xff] }
 0x45a   : > { %28213 = vmatprep.mubr.msk.f32.mxu1 %vm450_vm1, %v39176_v20  ;;  %29535 = vmatprep.mubr.msk.f32.mxu0 %vm450_vm1, %v17982_v60  ;;  %v36156_v60 = vld [vmem:[%s32302_s21 + $0xd9] sm:$0xff]  ;;  %v39187_v35 = vld [vmem:[#allocation13_spill] sm:$0xff] }
 0x45b   : > { %v39188_v20 = vld [vmem:[#allocation17_spill] sm:$0xff] }
 0x45d   : > { %28214 = vmatmul.mubr.msk.f32.gmra.mrb[30].mxu1 %vm450_vm1, %v39177_v56  ;;  %29536 = vmatmul.mubr.msk.f32.gmra.mrb[62].mxu0 %vm450_vm1, %v17983_v47  ;;  %v36167_v47 = vld [vmem:[%s32302_s21 + $0xe1] sm:$0xff]  ;;  %v36170_v56 = vld [vmem:[%s32302_s21 + $0xe9] sm:$0xff] }
 0x45e   : > { %28216 = vmatprep.mubr.msk.f32.mxu1 %vm450_vm1, %v39178_v0  ;;  %29540 = vmatprep.mubr.msk.f32.mxu0 %vm450_vm1, %v36078_v24  ;;  %v39189_v0 = vld [vmem:[#allocation21_spill] sm:$0xff] }
 0x461   : > { %28217 = vmatmul.mubr.msk.f32.gmra.mrb[32].mxu1 %vm450_vm1, %v39179_v9  ;;  %29541 = vmatmul.mubr.msk.f32.vlgmr.msra.gmra.mrb[0].mxu0 %vm450_vm1, %v36088_v18  ;;  %v39190_v9 = vld [vmem:[#allocation23_spill] sm:$0xff] }
 0x462   : > { %28219 = vmatprep.mubr.msk.f32.mxu1 %vm450_vm1, %v39180_v61  ;;  %29543 = vmatprep.mubr.msk.f32.mxu0 %vm450_vm1, %v36091_v16  ;;  %v36181_v61 = vld [vmem:[%s32302_s21 + $0xf1] sm:$0xff] }
 0x463   : > { %29637 = vmatpush3.msk.msra.mxu0 %vm643_vm0, %v35742_v19  ;;  %v36130_v19 = vld [vmem:[%s38543_s1 + $0x60] sm:$0xf] }
 0x464   : > { %29734 = vmatprep.subr.msk.mxu0 %vm643_vm0, %v36130_v19 }
 0x465   : > { %28220 = vmatmul.mubr.msk.f32.gmra.mrb[34].mxu1 %vm450_vm1, %v39181_v57  ;;  %29544 = vmatmul.mubr.msk.f32.gmra.mrb[2].mxu0 %vm450_vm1, %v36102_v23  ;;  %v36184_v57 = vld [vmem:[%s32302_s21 + $0xf9] sm:$0xff] }
 0x466   : > { %28222 = vmatprep.mubr.msk.f32.mxu1 %vm450_vm1, %v39182_v50  ;;  %29546 = vmatprep.mubr.msk.f32.mxu0 %vm450_vm1, %v36105_v26  ;;  %v39191_v50 = vld [vmem:[#allocation25_spill] sm:$0xff] }
 0x469   : > { %28223 = vmatmul.mubr.msk.f32.gmra.mrb[36].mxu1 %vm450_vm1, %v39183_v36  ;;  %29547 = vmatmul.mubr.msk.f32.gmra.mrb[4].mxu0 %vm450_vm1, %v36118_v58  ;;  %v39192_v36 = vld [vmem:[#allocation27_spill] sm:$0xff] }
 0x46a   : > { %28225 = vmatprep.mubr.msk.f32.mxu1 %vm450_vm1, %v39184_v21  ;;  %29549 = vmatprep.mubr.msk.f32.mxu0 %vm450_vm1, %v36121_v32  ;;  %v36195_v21 = vld [vmem:[%s32302_s21 + $0x101] sm:$0xff] }
 0x46d   : > { %28226 = vmatmul.mubr.msk.f32.gmra.mrb[38].mxu1 %vm450_vm1, %v39185_v22  ;;  %29550 = vmatmul.mubr.msk.f32.gmra.mrb[6].mxu0 %vm450_vm1, %v36137_v34  ;;  %v36198_v22 = vld [vmem:[%s32302_s21 + $0x109] sm:$0xff] }
 0x46e   : > { %28228 = vmatprep.mubr.msk.f32.mxu1 %vm450_vm1, %v39186_v6  ;;  %29552 = vmatprep.mubr.msk.f32.mxu0 %vm450_vm1, %v36140_v49  ;;  %v39193_v6 = vld [vmem:[#allocation29_spill] sm:$0xff] }
 0x471   : > { %28229 = vmatmul.mubr.msk.f32.gmra.mrb[40].mxu1 %vm450_vm1, %v39187_v35  ;;  %29553 = vmatmul.mubr.msk.f32.gmra.mrb[8].mxu0 %vm450_vm1, %v36153_v33  ;;  %v39194_v35 = vld [vmem:[#allocation31_spill] sm:$0xff] }
 0x472   : > { %28231 = vmatprep.mubr.msk.f32.mxu1 %vm450_vm1, %v39188_v20  ;;  %29555 = vmatprep.mubr.msk.f32.mxu0 %vm450_vm1, %v36156_v60  ;;  %v36209_v20 = vld [vmem:[%s32302_s21 + $0x111] sm:$0xff] }
 0x473   : > { %39195 = vst [vmem:[#allocation59_spill] sm:$0xff] %v36209_v20 }
 0x475   : > { %28232 = vmatmul.mubr.msk.f32.gmra.mrb[42].mxu1 %vm450_vm1, %v39189_v0  ;;  %29556 = vmatmul.mubr.msk.f32.gmra.mrb[10].mxu0 %vm450_vm1, %v36167_v47  ;;  %v36212_v0 = vld [vmem:[%s32302_s21 + $0x119] sm:$0xff] }
 0x476   : > { %28234 = vmatprep.mubr.msk.f32.mxu1 %vm450_vm1, %v39190_v9  ;;  %29558 = vmatprep.mubr.msk.f32.mxu0 %vm450_vm1, %v36170_v56  ;;  %39196 = vst [vmem:[#allocation61_spill] sm:$0xff] %v36212_v0  ;;  %v39197_v9 = vld [vmem:[#allocation33_spill] sm:$0xff] }
 0x479   : > { %28235 = vmatmul.mubr.msk.f32.gmra.mrb[44].mxu1 %vm450_vm1, %v39191_v50  ;;  %29559 = vmatmul.mubr.msk.f32.gmra.mrb[12].mxu0 %vm450_vm1, %v36181_v61  ;;  %v39198_v50 = vld [vmem:[#allocation35_spill] sm:$0xff] }
 0x47a   : > { %28237 = vmatprep.mubr.msk.f32.mxu1 %vm450_vm1, %v39192_v36  ;;  %29561 = vmatprep.mubr.msk.f32.mxu0 %vm450_vm1, %v36184_v57  ;;  %v36223_v36 = vld [vmem:[%s32302_s21 + $0x121] sm:$0xff] }
 0x47d   : > { %28238 = vmatmul.mubr.msk.f32.gmra.mrb[46].mxu1 %vm450_vm1, %v39193_v6  ;;  %29562 = vmatmul.mubr.msk.f32.gmra.mrb[14].mxu0 %vm450_vm1, %v36195_v21  ;;  %v36226_v6 = vld [vmem:[%s32302_s21 + $0x129] sm:$0xff] }
 0x47e   : > { %28240 = vmatprep.mubr.msk.f32.mxu1 %vm450_vm1, %v39194_v35  ;;  %29564 = vmatprep.mubr.msk.f32.mxu0 %vm450_vm1, %v36198_v22  ;;  %39199 = vst [vmem:[#allocation63_spill] sm:$0xff] %v36226_v6  ;;  %v39200_v35 = vld [vmem:[#allocation37_spill] sm:$0xff] }
 0x481   : > { %28241 = vmatmul.mubr.msk.f32.gmra.mrb[48].mxu1 %vm450_vm1, %v39197_v9  ;;  %29565 = vmatmul.mubr.msk.f32.gmra.mrb[16].mxu0 %vm450_vm1, %v36209_v20  ;;  %v39201_v9 = vld [vmem:[#allocation41_spill] sm:$0xff]  ;;  %v36240_v20 = vld [vmem:[%s32302_s21 + $0x139] sm:$0xff] }
 0x482   : > { %28243 = vmatprep.mubr.msk.f32.mxu1 %vm450_vm1, %v39198_v50  ;;  %29567 = vmatprep.mubr.msk.f32.mxu0 %vm450_vm1, %v36212_v0  ;;  %v36237_v50 = vld [vmem:[%s32302_s21 + $0x131] sm:$0xff] }
 0x483   : > { %v39202_v0 = vld [vmem:[#allocation45_spill] sm:$0xff] }
 0x485   : > { %28244 = vmatmul.mubr.msk.f32.gmra.mrb[50].mxu1 %vm450_vm1, %v39200_v35  ;;  %29568 = vmatmul.mubr.msk.f32.gmra.mrb[18].mxu0 %vm450_vm1, %v36223_v36  ;;  %v39203_v35 = vld [vmem:[#allocation49_spill] sm:$0xff] }
 0x486   : > { %28246 = vmatprep.mubr.msk.f32.mxu1 %vm450_vm1, %v39201_v9  ;;  %29570 = vmatprep.mubr.msk.f32.mxu0 %vm450_vm1, %v36226_v6  ;;  %v36251_v9 = vld [vmem:[%s32302_s21 + $0x141] sm:$0xff]  ;;  %v39204_v6 = vld [vmem:[#allocation53_spill] sm:$0xff] }
 0x489   : > { %28247 = vmatmul.mubr.msk.f32.gmra.mrb[52].mxu1 %vm450_vm1, %v39202_v0  ;;  %29571 = vmatmul.mubr.msk.f32.gmra.mrb[20].mxu0 %vm450_vm1, %v36237_v50  ;;  %v36440_v0 = vld [vmem:[%s32302_s21 + $0xf0] sm:$0xff] }
 0x48a   : > { %28249 = vmatprep.mubr.msk.f32.mxu1 %vm450_vm1, %v39203_v35  ;;  %29573 = vmatprep.mubr.msk.f32.mxu0 %vm450_vm1, %v36240_v20  ;;  %v36454_v35 = vld [vmem:[%s32302_s21 + $0xf8] sm:$0xff] }
 0x48d   : > { %28250 = vmatmul.mubr.msk.f32.gmra.mrb[54].mxu1 %vm450_vm1, %v35596_v31  ;;  %29574 = vmatmul.mubr.msk.f32.gmra.mrb[22].mxu0 %vm450_vm1, %v36251_v9  ;;  %v39205_v31 = vld [vmem:[#allocation57_spill] sm:$0xff] }
 0x48e   : > { %28252 = vmatprep.mubr.msk.f32.mxu1 %vm450_vm1, %v39204_v6  ;;  %29576 = vmatprep.mubr.msk.f32.mxu0 %vm450_vm1, %v35749_v45  ;;  %v7869_v45 = vld [vmem:[%s32302_s21 + $0x68] sm:$0xff]  ;;  %v36443_v6 = vld [vmem:[%s32302_s21 + $0x239] sm:$0xff] }
 0x48f   : > { %39212 = vst [vmem:[#allocation50_spill] sm:$0xff] %v36443_v6 }
 0x491   : > { %28253 = vmatmul.mubr.msk.f32.gmra.mrb[56].mxu1 %vm450_vm1, %v35610_v15  ;;  %29577 = vmatmul.mubr.msk.f32.gmra.mrb[24].mxu0 %vm450_vm1, %v35752_v53  ;;  %v7866_v15 = vld [vmem:[%s32302_s21 + $0x50] sm:$0xff] }
 0x492   : > { %28255 = vmatprep.mubr.msk.f32.mxu1 %vm450_vm1, %v35614_v11  ;;  %29579 = vmatprep.mubr.msk.f32.mxu0 %vm450_vm1, %v35765_v41  ;;  %v7864_v11 = vld [vmem:[%s32302_s21 + $0x40] sm:$0xff]  ;;  %v7870_v53 = vld [vmem:[%s32302_s21 + $0x70] sm:$0xff]  ;;  %v7871_v41 = vld [vmem:[%s32302_s21 + $0x78] sm:$0xff] }
 0x495   : > { %28256 = vmatmul.mubr.msk.f32.gmra.mrb[58].mxu1 %vm450_vm1, %v35624_v51  ;;  %29580 = vmatmul.mubr.msk.f32.gmra.mrb[26].mxu0 %vm450_vm1, %v35768_v17  ;;  %v36298_v51 = vld [vmem:[%s38543_s1 + $0x2c] sm:$0xf]  ;;  %v7872_v17 = vld [vmem:[%s32302_s21 + $0x80] sm:$0xff] }
 0x496   : > { %28258 = vmatprep.mubr.msk.f32.mxu1 %vm450_vm1, %v35627_v29  ;;  %29582 = vmatprep.mubr.msk.f32.mxu0 %vm450_vm1, %v35779_v1  ;;  %v7865_v29 = vld [vmem:[%s32302_s21 + $0x48] sm:$0xff] }
 0x497   : > { %v7873_v1 = vld [vmem:[%s32302_s21 + $0x88] sm:$0xff] }
 0x499   : > { %28259 = vmatmul.mubr.msk.f32.gmra.mrb[60].mxu1 %vm450_vm1, %v35637_v12  ;;  %29583 = vmatmul.mubr.msk.f32.gmra.mrb[28].mxu0 %vm450_vm1, %v35782_v59  ;;  %v7867_v12 = vld [vmem:[%s32302_s21 + $0x58] sm:$0xff]  ;;  %v36336_v59 = vld [vmem:[%s32302_s21 + $0x90] sm:$0xff] }
 0x49a   : > { %28261 = vmatprep.mubr.msk.f32.mxu1 %vm450_vm1, %v35640_v3  ;;  %29585 = vmatprep.mubr.msk.f32.mxu0 %vm450_vm1, %v35793_v63  ;;  %v7868_v3 = vld [vmem:[%s32302_s21 + $0x60] sm:$0xff]  ;;  %v36346_v63 = vld [vmem:[%s32302_s21 + $0x98] sm:$0xff] }
 0x49d   : > { %28262 = vmatmul.mubr.msk.f32.gmra.mrb[62].mxu1 %vm450_vm1, %v39205_v31  ;;  %29586 = vmatmul.mubr.msk.f32.gmra.mrb[30].mxu0 %vm450_vm1, %v35796_v44  ;;  %v36349_v44 = vld [vmem:[%s32302_s21 + $0xa0] sm:$0xff] }
 0x49e   : > { %28266 = vmatprep.mubr.msk.f32.mxu1 %vm450_vm1, %v7864_v11  ;;  %29588 = vmatprep.mubr.msk.f32.mxu0 %vm450_vm1, %v35807_v38  ;;  %v36360_v38 = vld [vmem:[%s32302_s21 + $0xa8] sm:$0xff]  ;;  %v36458_v31 = vld [vmem:[%s32302_s21 + $0x100] sm:$0xff] }
 0x49f   : > { %v18813_v11 = vld [vmem:[%s32302_s21 + $0x241] sm:$0xff] }
 0x4a1   : > { %28267 = vmatmul.mubr.msk.f32.vlgmr.msra.gmra.mrb[0].mxu1 %vm450_vm1, %v7865_v29  ;;  %29589 = vmatmul.mubr.msk.f32.gmra.mrb[32].mxu0 %vm450_vm1, %v35810_v37  ;;  %v36363_v37 = vld [vmem:[%s32302_s21 + $0xb0] sm:$0xff] }
 0x4a2   : > { %28363 = vmatpush3.msk.msra.mxu1 %vm643_vm0, %v35928_v8  ;;  %28269 = vmatprep.mubr.msk.f32.mxu1 %vm450_vm1, %v7866_v15  ;;  %v36437_v8 = vld [vmem:[%s32302_s21 + $0x231] sm:$0xff]  ;;  %v18814_v29 = vld [vmem:[%s32302_s21 + $0x249] sm:$0xff] }
 0x4a3   : > { %29591 = vmatprep.mubr.msk.f32.mxu0 %vm450_vm1, %v35821_v42  ;;  %28460 = vmatprep.subr.msk.mxu1 %vm643_vm0, %v36298_v51  ;;  %v36374_v42 = vld [vmem:[%s32302_s21 + $0xb8] sm:$0xff]  ;;  %39211 = vst [vmem:[#allocation48_spill] sm:$0xff] %v36437_v8  ;;  %v36468_v15 = vld [vmem:[%s32302_s21 + $0x108] sm:$0xff] }
 0x4a5   : > { %28270 = vmatmul.mubr.msk.f32.gmra.mrb[2].mxu1 %vm450_vm1, %v7867_v12  ;;  %29592 = vmatmul.mubr.msk.f32.gmra.mrb[34].mxu0 %vm450_vm1, %v35824_v5  ;;  %v36377_v5 = vld [vmem:[%s32302_s21 + $0x201] sm:$0xff]  ;;  %v18815_v12 = vld [vmem:[%s32302_s21 + $0x251] sm:$0xff] }
 0x4a6   : > { %28272 = vmatprep.mubr.msk.f32.mxu1 %vm450_vm1, %v7868_v3  ;;  %29594 = vmatprep.mubr.msk.f32.mxu0 %vm450_vm1, %v35835_v7  ;;  %v36380_v7 = vld [vmem:[%s32302_s21 + $0xc0] sm:$0xff]  ;;  %v36472_v3 = vld [vmem:[%s32302_s21 + $0x110] sm:$0xff] }
 0x4a9   : > { %28273 = vmatmul.mubr.msk.f32.gmra.mrb[4].mxu1 %vm450_vm1, %v7869_v45  ;;  %29595 = vmatmul.mubr.msk.f32.gmra.mrb[36].mxu0 %vm450_vm1, %v35838_v13  ;;  %v36383_v13 = vld [vmem:[%s32302_s21 + $0x209] sm:$0xff]  ;;  %v18816_v45 = vld [vmem:[%s32302_s21 + $0x259] sm:$0xff] }
 0x4aa   : > { %28275 = vmatprep.mubr.msk.f32.mxu1 %vm450_vm1, %v7870_v53  ;;  %29597 = vmatprep.mubr.msk.f32.mxu0 %vm450_vm1, %v35849_v46  ;;  %39206 = vst [vmem:[#allocation65_spill] sm:$0xff] %v36383_v13  ;;  %v36394_v46 = vld [vmem:[%s32302_s21 + $0xc8] sm:$0xff]  ;;  %v36482_v53 = vld [vmem:[%s32302_s21 + $0x118] sm:$0xff] }
 0x4ad   : > { %28276 = vmatmul.mubr.msk.f32.gmra.mrb[6].mxu1 %vm450_vm1, %v7871_v41  ;;  %29598 = vmatmul.mubr.msk.f32.gmra.mrb[38].mxu0 %vm450_vm1, %v35852_v48  ;;  %v36397_v48 = vld [vmem:[%s32302_s21 + $0x211] sm:$0xff]  ;;  %v18817_v41 = vld [vmem:[%s32302_s21 + $0x261] sm:$0xff] }
 0x4ae   : > { %28278 = vmatprep.mubr.msk.f32.mxu1 %vm450_vm1, %v7872_v17  ;;  %29600 = vmatprep.mubr.msk.f32.mxu0 %vm450_vm1, %v35863_v54  ;;  %39207 = vst [vmem:[#allocation67_spill] sm:$0xff] %v36397_v48  ;;  %v36400_v54 = vld [vmem:[%s32302_s21 + $0xd0] sm:$0xff]  ;;  %v36486_v17 = vld [vmem:[%s32302_s21 + $0x120] sm:$0xff] }
 0x4b1   : > { %28279 = vmatmul.mubr.msk.f32.gmra.mrb[8].mxu1 %vm450_vm1, %v7873_v1  ;;  %29601 = vmatmul.mubr.msk.f32.gmra.mrb[40].mxu0 %vm450_vm1, %v35866_v27  ;;  %v36403_v27 = vld [vmem:[%s32302_s21 + $0x219] sm:$0xff]  ;;  %v18818_v1 = vld [vmem:[%s32302_s21 + $0x269] sm:$0xff] }
 0x4b2   : > { %28281 = vmatprep.mubr.msk.f32.mxu1 %vm450_vm1, %v36336_v59  ;;  %29603 = vmatprep.mubr.msk.f32.mxu0 %vm450_vm1, %v35877_v28  ;;  %39208 = vst [vmem:[#allocation69_spill] sm:$0xff] %v36403_v27  ;;  %v36414_v28 = vld [vmem:[%s32302_s21 + $0xd8] sm:$0xff] }
 0x4b5   : > { %28282 = vmatmul.mubr.msk.f32.gmra.mrb[10].mxu1 %vm450_vm1, %v36346_v63  ;;  %29604 = vmatmul.mubr.msk.f32.gmra.mrb[42].mxu0 %vm450_vm1, %v35880_v43  ;;  %v36417_v43 = vld [vmem:[%s32302_s21 + $0x221] sm:$0xff] }
 0x4b6   : > { %28284 = vmatprep.mubr.msk.f32.mxu1 %vm450_vm1, %v36349_v44  ;;  %29606 = vmatprep.mubr.msk.f32.mxu0 %vm450_vm1, %v35891_v2  ;;  %39209 = vst [vmem:[#allocation71_spill] sm:$0xff] %v36417_v43  ;;  %v36420_v2 = vld [vmem:[%s32302_s21 + $0xe0] sm:$0xff] }
 0x4b9   : > { %28285 = vmatmul.mubr.msk.f32.gmra.mrb[12].mxu1 %vm450_vm1, %v36360_v38  ;;  %29607 = vmatmul.mubr.msk.f32.gmra.mrb[44].mxu0 %vm450_vm1, %v35894_v25  ;;  %v36423_v25 = vld [vmem:[%s32302_s21 + $0x229] sm:$0xff] }
 0x4ba   : > { %28287 = vmatprep.mubr.msk.f32.mxu1 %vm450_vm1, %v36363_v37  ;;  %29609 = vmatprep.mubr.msk.f32.mxu0 %vm450_vm1, %v35905_v39  ;;  %39210 = vst [vmem:[#allocation44_spill] sm:$0xff] %v36423_v25  ;;  %v36434_v39 = vld [vmem:[%s32302_s21 + $0xe8] sm:$0xff] }
 0x4bd   : > { %28288 = vmatmul.mubr.msk.f32.gmra.mrb[14].mxu1 %vm450_vm1, %v36374_v42  ;;  %29610 = vmatmul.mubr.msk.f32.gmra.mrb[46].mxu0 %vm450_vm1, %v36377_v5 }
 0x4be   : > { %28290 = vmatprep.mubr.msk.f32.mxu1 %vm450_vm1, %v36380_v7  ;;  %29612 = vmatprep.mubr.msk.f32.mxu0 %vm450_vm1, %v36383_v13  ;;  %v36575_v13 = vld [vmem:[%s32302_s21 + $0x170] sm:$0xff] }
 0x4bf   : > { %39223 = vst [vmem:[#allocation47_spill] sm:$0xff] %v36575_v13 }
 0x4c1   : > { %28291 = vmatmul.mubr.msk.f32.gmra.mrb[16].mxu1 %vm450_vm1, %v36394_v46  ;;  %29613 = vmatmul.mubr.msk.f32.gmra.mrb[48].mxu0 %vm450_vm1, %v36397_v48  ;;  %v36556_v48 = vld [vmem:[%s32302_s21 + $0xaa] sm:$0xff] }
 0x4c2   : > { %28293 = vmatprep.mubr.msk.f32.mxu1 %vm450_vm1, %v36400_v54  ;;  %29615 = vmatprep.mubr.msk.f32.mxu0 %vm450_vm1, %v36403_v27  ;;  %v36553_v27 = vld [vmem:[%s32302_s21 + $0x160] sm:$0xff]  ;;  %39220 = vst [vmem:[#allocation12_spill] sm:$0xff] %v36556_v48 }
 0x4c3   : > { %39219 = vst [vmem:[#allocation10_spill] sm:$0xff] %v36553_v27 }
 0x4c5   : > { %28294 = vmatmul.mubr.msk.f32.gmra.mrb[18].mxu1 %vm450_vm1, %v36414_v28  ;;  %29616 = vmatmul.mubr.msk.f32.gmra.mrb[50].mxu0 %vm450_vm1, %v36417_v43  ;;  %v36536_v43 = vld [vmem:[%s32302_s21 + $0x9a] sm:$0xff] }
 0x4c6   : > { %28296 = vmatprep.mubr.msk.f32.mxu1 %vm450_vm1, %v36420_v2  ;;  %29618 = vmatprep.mubr.msk.f32.mxu0 %vm450_vm1, %v36423_v25  ;;  %v36533_v25 = vld [vmem:[%s32302_s21 + $0x150] sm:$0xff]  ;;  %39216 = vst [vmem:[#allocation58_spill] sm:$0xff] %v36536_v43 }
 0x4c7   : > { %39215 = vst [vmem:[#allocation73_spill] sm:$0xff] %v36533_v25 }
 0x4c9   : > { %28297 = vmatmul.mubr.msk.f32.gmra.mrb[20].mxu1 %vm450_vm1, %v36434_v39  ;;  %29619 = vmatmul.mubr.msk.f32.gmra.mrb[52].mxu0 %vm450_vm1, %v36437_v8  ;;  %v36517_v8 = vld [vmem:[%s32302_s21 + $0x8a] sm:$0xff] }
 0x4ca   : > { %28299 = vmatprep.mubr.msk.f32.mxu1 %vm450_vm1, %v36440_v0  ;;  %29621 = vmatprep.mubr.msk.f32.mxu0 %vm450_vm1, %v36443_v6  ;;  %v36514_v6 = vld [vmem:[%s32302_s21 + $0x140] sm:$0xff]  ;;  %39213 = vst [vmem:[#allocation72_spill] sm:$0xff] %v36517_v8 }
 0x4cd   : > { %28300 = vmatmul.mubr.msk.f32.gmra.mrb[22].mxu1 %vm450_vm1, %v36454_v35  ;;  %29622 = vmatmul.mubr.msk.f32.gmra.mrb[54].mxu0 %vm450_vm1, %v18813_v11  ;;  %v36496_v11 = vld [vmem:[%s32302_s21 + $0x128] sm:$0xff] }
 0x4ce   : > { %28302 = vmatprep.mubr.msk.f32.mxu1 %vm450_vm1, %v36458_v31  ;;  %29624 = vmatprep.mubr.msk.f32.mxu0 %vm450_vm1, %v18814_v29  ;;  %v18819_v29 = vld [vmem:[%s32302_s21 + $0x271] sm:$0xff] }
 0x4d1   : > { %28303 = vmatmul.mubr.msk.f32.gmra.mrb[24].mxu1 %vm450_vm1, %v36468_v15  ;;  %29625 = vmatmul.mubr.msk.f32.gmra.mrb[56].mxu0 %vm450_vm1, %v18815_v12  ;;  %v36500_v12 = vld [vmem:[%s32302_s21 + $0x130] sm:$0xff] }
 0x4d2   : > { %28305 = vmatprep.mubr.msk.f32.mxu1 %vm450_vm1, %v36472_v3  ;;  %29627 = vmatprep.mubr.msk.f32.mxu0 %vm450_vm1, %v18816_v45  ;;  %v18820_v45 = vld [vmem:[%s32302_s21 + $0x279] sm:$0xff] }
 0x4d5   : > { %28306 = vmatmul.mubr.msk.f32.gmra.mrb[26].mxu1 %vm450_vm1, %v36482_v53  ;;  %29628 = vmatmul.mubr.msk.f32.gmra.mrb[58].mxu0 %vm450_vm1, %v18817_v41  ;;  %v36510_v41 = vld [vmem:[%s32302_s21 + $0x138] sm:$0xff] }
 0x4d6   : > { %28308 = vmatprep.mubr.msk.f32.mxu1 %vm450_vm1, %v36486_v17  ;;  %29630 = vmatprep.mubr.msk.f32.mxu0 %vm450_vm1, %v18818_v1  ;;  %v18821_v1 = vld [vmem:[%s32302_s21 + $0x281] sm:$0xff] }
 0x4d9   : > { %28309 = vmatmul.mubr.msk.f32.gmra.mrb[28].mxu1 %vm450_vm1, %v36496_v11  ;;  %29631 = vmatmul.mubr.msk.f32.gmra.mrb[60].mxu0 %vm450_vm1, %v18819_v29  ;;  %v36527_v29 = vld [vmem:[%s32302_s21 + $0x148] sm:$0xff] }
 0x4da   : > { %28311 = vmatprep.mubr.msk.f32.mxu1 %vm450_vm1, %v36500_v12  ;;  %29633 = vmatprep.mubr.msk.f32.mxu0 %vm450_vm1, %v18820_v45  ;;  %v36530_v45 = vld [vmem:[%s32302_s21 + $0x92] sm:$0xff] }
 0x4db   : > { %39214 = vst [vmem:[#allocation54_spill] sm:$0xff] %v36530_v45 }
 0x4dd   : > { %28312 = vmatmul.mubr.msk.f32.gmra.mrb[30].mxu1 %vm450_vm1, %v36510_v41  ;;  %29634 = vmatmul.mubr.msk.f32.gmra.mrb[62].mxu0 %vm450_vm1, %v18821_v1  ;;  %v36547_v1 = vld [vmem:[%s32302_s21 + $0x158] sm:$0xff] }
 0x4de   : > { %28314 = vmatprep.mubr.msk.f32.mxu1 %vm450_vm1, %v36514_v6  ;;  %29638 = vmatprep.mubr.msk.f32.mxu0 %vm450_vm1, %v36517_v8  ;;  %39217 = vst [vmem:[#allocation62_spill] sm:$0xff] %v36547_v1  ;;  %v36550_v8 = vld [vmem:[%s32302_s21 + $0xa2] sm:$0xff] }
 0x4df   : > { %39218 = vst [vmem:[#allocation66_spill] sm:$0xff] %v36550_v8 }
 0x4e1   : > { %28315 = vmatmul.mubr.msk.f32.gmra.mrb[32].mxu1 %vm450_vm1, %v36527_v29  ;;  %29639 = vmatmul.mubr.msk.f32.vlgmr.msra.gmra.mrb[0].mxu0 %vm450_vm1, %v36530_v45  ;;  %v36572_v45 = vld [vmem:[%s32302_s21 + $0xb2] sm:$0xff] }
 0x4e2   : > { %28317 = vmatprep.mubr.msk.f32.mxu1 %vm450_vm1, %v36533_v25  ;;  %29641 = vmatprep.mubr.msk.f32.mxu0 %vm450_vm1, %v36536_v43  ;;  %v36569_v43 = vld [vmem:[%s32302_s21 + $0x168] sm:$0xff]  ;;  %39222 = vst [vmem:[#allocation43_spill] sm:$0xff] %v36572_v45  ;;  %v36625_v25 = vld [vmem:[%s32302_s21 + $0xda] sm:$0xff] }
 0x4e3   : > { %29735 = vmatpush3.msk.msra.mxu0 %vm643_vm0, %v36130_v19  ;;  %39221 = vst [vmem:[#allocation39_spill] sm:$0xff] %v36569_v43  ;;  %v36578_v19 = vld [vmem:[%s32302_s21 + $0xba] sm:$0xff]  ;;  %39232 = vst [vmem:[#allocation76_spill] sm:$0xff] %v36625_v25 }
 0x4e4   : > { %39224 = vst [vmem:[#allocation51_spill] sm:$0xff] %v36578_v19 }
 0x4e5   : > { %28318 = vmatmul.mubr.msk.f32.gmra.mrb[34].mxu1 %vm450_vm1, %v36547_v1  ;;  %29642 = vmatmul.mubr.msk.f32.gmra.mrb[2].mxu0 %vm450_vm1, %v36550_v8  ;;  %v36594_v8 = vld [vmem:[%s32302_s21 + $0x178] sm:$0xff]  ;;  %v36622_v1 = vld [vmem:[%s32302_s21 + $0x190] sm:$0xff] }
 0x4e6   : > { %28320 = vmatprep.mubr.msk.f32.mxu1 %vm450_vm1, %v36553_v27  ;;  %29644 = vmatprep.mubr.msk.f32.mxu0 %vm450_vm1, %v36556_v48  ;;  %v36587_v48 = vld [vmem:[%s38543_s1 + $0x64] sm:$0xf]  ;;  %39225 = vst [vmem:[#allocation55_spill] sm:$0xff] %v36594_v8  ;;  %39231 = vst [vmem:[#allocation75_spill] sm:$0xff] %v36622_v1 }
 0x4e7   : > { %v36597_v27 = vld [vmem:[%s32302_s21 + $0xc2] sm:$0xff]  ;;  %29832 = vmatprep.subr.msk.mxu0 %vm643_vm0, %v36587_v48 }
 0x4e8   : > { %39226 = vst [vmem:[#allocation34_spill] sm:$0xff] %v36597_v27 }
 0x4e9   : > { %28321 = vmatmul.mubr.msk.f32.gmra.mrb[36].mxu1 %vm450_vm1, %v36569_v43  ;;  %29645 = vmatmul.mubr.msk.f32.gmra.mrb[4].mxu0 %vm450_vm1, %v36572_v45  ;;  %v36600_v43 = vld [vmem:[%s32302_s21 + $0x180] sm:$0xff]  ;;  %v36603_v45 = vld [vmem:[%s32302_s21 + $0xca] sm:$0xff] }
 0x4ea   : > { %28323 = vmatprep.mubr.msk.f32.mxu1 %vm450_vm1, %v36575_v13  ;;  %29647 = vmatprep.mubr.msk.f32.mxu0 %vm450_vm1, %v36578_v19  ;;  %39227 = vst [vmem:[#allocation9_spill] sm:$0xff] %v36600_v43  ;;  %39228 = vst [vmem:[#allocation15_spill] sm:$0xff] %v36603_v45  ;;  %v36616_v19 = vld [vmem:[%s32302_s21 + $0x188] sm:$0xff]  ;;  %v36619_v13 = vld [vmem:[%s32302_s21 + $0xd2] sm:$0xff] }
 0x4eb   : > { %39229 = vst [vmem:[#allocation74_spill] sm:$0xff] %v36616_v19  ;;  %39230 = vst [vmem:[#allocation19_spill] sm:$0xff] %v36619_v13 }
 0x4ed   : > { %28324 = vmatmul.mubr.msk.f32.gmra.mrb[38].mxu1 %vm450_vm1, %v36594_v8  ;;  %29648 = vmatmul.mubr.msk.f32.gmra.mrb[6].mxu0 %vm450_vm1, %v36597_v27  ;;  %v36639_v27 = vld [vmem:[%s32302_s21 + $0xe2] sm:$0xff]  ;;  %v36645_v8 = vld [vmem:[%s32302_s21 + $0xea] sm:$0xff] }
 0x4ee   : > { %28326 = vmatprep.mubr.msk.f32.mxu1 %vm450_vm1, %v36600_v43  ;;  %29650 = vmatprep.mubr.msk.f32.mxu0 %vm450_vm1, %v36603_v45  ;;  %v36636_v45 = vld [vmem:[%s32302_s21 + $0x198] sm:$0xff]  ;;  %39234 = vst [vmem:[#allocation20_spill] sm:$0xff] %v36639_v27  ;;  %v36642_v43 = vld [vmem:[%s32302_s21 + $0x1a0] sm:$0xff]  ;;  %39236 = vst [vmem:[#allocation28_spill] sm:$0xff] %v36645_v8 }
 0x4ef   : > { %39233 = vst [vmem:[#allocation77_spill] sm:$0xff] %v36636_v45  ;;  %39235 = vst [vmem:[#allocation24_spill] sm:$0xff] %v36642_v43 }
 0x4f1   : > { %28327 = vmatmul.mubr.msk.f32.gmra.mrb[40].mxu1 %vm450_vm1, %v36616_v19  ;;  %29651 = vmatmul.mubr.msk.f32.gmra.mrb[8].mxu0 %vm450_vm1, %v36619_v13  ;;  %v36659_v13 = vld [vmem:[%s32302_s21 + $0xf2] sm:$0xff]  ;;  %v36665_v19 = vld [vmem:[%s32302_s21 + $0xfa] sm:$0xff] }
 0x4f2   : > { %28329 = vmatprep.mubr.msk.f32.mxu1 %vm450_vm1, %v36622_v1  ;;  %29653 = vmatprep.mubr.msk.f32.mxu0 %vm450_vm1, %v36625_v25  ;;  %v36656_v25 = vld [vmem:[%s32302_s21 + $0x1a8] sm:$0xff]  ;;  %39238 = vst [vmem:[#allocation36_spill] sm:$0xff] %v36659_v13  ;;  %v36662_v1 = vld [vmem:[%s32302_s21 + $0x1b0] sm:$0xff]  ;;  %39240 = vst [vmem:[#allocation46_spill] sm:$0xff] %v36665_v19 }
 0x4f3   : > { %39237 = vst [vmem:[#allocation32_spill] sm:$0xff] %v36656_v25  ;;  %39239 = vst [vmem:[#allocation40_spill] sm:$0xff] %v36662_v1 }
 0x4f5   : > { %28330 = vmatmul.mubr.msk.f32.gmra.mrb[42].mxu1 %vm450_vm1, %v36636_v45  ;;  %29654 = vmatmul.mubr.msk.f32.gmra.mrb[10].mxu0 %vm450_vm1, %v36639_v27  ;;  %v36679_v27 = vld [vmem:[%s32302_s21 + $0x102] sm:$0xff]  ;;  %v36685_v45 = vld [vmem:[%s32302_s21 + $0x10a] sm:$0xff] }
 0x4f6   : > { %28332 = vmatprep.mubr.msk.f32.mxu1 %vm450_vm1, %v36642_v43  ;;  %29656 = vmatprep.mubr.msk.f32.mxu0 %vm450_vm1, %v36645_v8  ;;  %v36676_v8 = vld [vmem:[%s32302_s21 + $0x1b8] sm:$0xff]  ;;  %39242 = vst [vmem:[#allocation52_spill] sm:$0xff] %v36679_v27  ;;  %v36682_v43 = vld [vmem:[%s32302_s21 + $0x1c0] sm:$0xff]  ;;  %39244 = vst [vmem:[#allocation60_spill] sm:$0xff] %v36685_v45 }
 0x4f7   : > { %39241 = vst [vmem:[#allocation8_spill] sm:$0xff] %v36676_v8  ;;  %39243 = vst [vmem:[#allocation56_spill] sm:$0xff] %v36682_v43 }
 0x4f9   : > { %28333 = vmatmul.mubr.msk.f32.gmra.mrb[44].mxu1 %vm450_vm1, %v36656_v25  ;;  %29657 = vmatmul.mubr.msk.f32.gmra.mrb[12].mxu0 %vm450_vm1, %v36659_v13  ;;  %v36699_v13 = vld [vmem:[%s32302_s21 + $0x112] sm:$0xff]  ;;  %v36705_v25 = vld [vmem:[%s32302_s21 + $0x11a] sm:$0xff] }
 0x4fa   : > { %28335 = vmatprep.mubr.msk.f32.mxu1 %vm450_vm1, %v36662_v1  ;;  %29659 = vmatprep.mubr.msk.f32.mxu0 %vm450_vm1, %v36665_v19  ;;  %v36696_v19 = vld [vmem:[%s32302_s21 + $0x1c8] sm:$0xff]  ;;  %39246 = vst [vmem:[#allocation68_spill] sm:$0xff] %v36699_v13  ;;  %v36702_v1 = vld [vmem:[%s32302_s21 + $0x1d0] sm:$0xff]  ;;  %39248 = vst [vmem:[#allocation14_spill] sm:$0xff] %v36705_v25 }
 0x4fb   : > { %39245 = vst [vmem:[#allocation64_spill] sm:$0xff] %v36696_v19  ;;  %39247 = vst [vmem:[#allocation70_spill] sm:$0xff] %v36702_v1 }
 0x4fd   : > { %28336 = vmatmul.mubr.msk.f32.gmra.mrb[46].mxu1 %vm450_vm1, %v36676_v8  ;;  %29660 = vmatmul.mubr.msk.f32.gmra.mrb[14].mxu0 %vm450_vm1, %v36679_v27  ;;  %v36719_v27 = vld [vmem:[%s32302_s21 + $0x122] sm:$0xff]  ;;  %v36725_v8 = vld [vmem:[%s32302_s21 + $0x12a] sm:$0xff] }
 0x4fe   : > { %28338 = vmatprep.mubr.msk.f32.mxu1 %vm450_vm1, %v36682_v43  ;;  %29662 = vmatprep.mubr.msk.f32.mxu0 %vm450_vm1, %v36685_v45  ;;  %v36716_v45 = vld [vmem:[%s32302_s21 + $0x1d8] sm:$0xff]  ;;  %39249 = vst [vmem:[#allocation16_spill] sm:$0xff] %v36719_v27  ;;  %v36722_v43 = vld [vmem:[%s32302_s21 + $0x1e0] sm:$0xff]  ;;  %39251 = vst [vmem:[#allocation22_spill] sm:$0xff] %v36725_v8 }
 0x4ff   : > { %39250 = vst [vmem:[#allocation18_spill] sm:$0xff] %v36722_v43 }
 0x501   : > { %28339 = vmatmul.mubr.msk.f32.gmra.mrb[48].mxu1 %vm450_vm1, %v36696_v19  ;;  %29663 = vmatmul.mubr.msk.f32.gmra.mrb[16].mxu0 %vm450_vm1, %v36699_v13  ;;  %v36739_v13 = vld [vmem:[%s32302_s21 + $0x132] sm:$0xff]  ;;  %v36745_v19 = vld [vmem:[%s32302_s21 + $0x13a] sm:$0xff] }
 0x502   : > { %28341 = vmatprep.mubr.msk.f32.mxu1 %vm450_vm1, %v36702_v1  ;;  %29665 = vmatprep.mubr.msk.f32.mxu0 %vm450_vm1, %v36705_v25  ;;  %v36736_v25 = vld [vmem:[%s32302_s21 + $0x1e8] sm:$0xff]  ;;  %39252 = vst [vmem:[#allocation26_spill] sm:$0xff] %v36739_v13  ;;  %v36742_v1 = vld [vmem:[%s32302_s21 + $0x1f0] sm:$0xff]  ;;  %39253 = vst [vmem:[#allocation30_spill] sm:$0xff] %v36745_v19 }
 0x505   : > { %28342 = vmatmul.mubr.msk.f32.gmra.mrb[50].mxu1 %vm450_vm1, %v36716_v45  ;;  %29666 = vmatmul.mubr.msk.f32.gmra.mrb[18].mxu0 %vm450_vm1, %v36719_v27  ;;  %v36759_v27 = vld [vmem:[%s32302_s21 + $0x142] sm:$0xff] }
 0x506   : > { %28344 = vmatprep.mubr.msk.f32.mxu1 %vm450_vm1, %v36722_v43  ;;  %29668 = vmatprep.mubr.msk.f32.mxu0 %vm450_vm1, %v36725_v8  ;;  %v36756_v8 = vld [vmem:[%s32302_s21 + $0x1f8] sm:$0xff]  ;;  %v36762_v43 = vld [vmem:[%s32302_s21 + $0x14a] sm:$0xff] }
 0x507   : > { %39254 = vst [vmem:[#allocation38_spill] sm:$0xff] %v36762_v43 }
 0x509   : > { %28345 = vmatmul.mubr.msk.f32.gmra.mrb[52].mxu1 %vm450_vm1, %v36736_v25  ;;  %29669 = vmatmul.mubr.msk.f32.gmra.mrb[20].mxu0 %vm450_vm1, %v36739_v13  ;;  %v36776_v13 = vld [vmem:[%s32302_s21 + $0x15a] sm:$0xff] }
 0x50a   : > { %28347 = vmatprep.mubr.msk.f32.mxu1 %vm450_vm1, %v36742_v1  ;;  %29671 = vmatprep.mubr.msk.f32.mxu0 %vm450_vm1, %v36745_v19  ;;  %v36773_v19 = vld [vmem:[%s32302_s21 + $0x152] sm:$0xff] }
 0x50d   : > { %28348 = vmatmul.mubr.msk.f32.gmra.mrb[54].mxu1 %vm450_vm1, %v36756_v8  ;;  %29672 = vmatmul.mubr.msk.f32.gmra.mrb[22].mxu0 %vm450_vm1, %v36759_v27 }
 0x50e   : > { %28350 = vmatprep.mubr.msk.f32.mxu1 %vm450_vm1, %v35989_v14  ;;  %29674 = vmatprep.mubr.msk.f32.mxu0 %vm450_vm1, %v36762_v43  ;;  %v36787_v14 = vld [vmem:[%s32302_s21 + $0x162] sm:$0xff]  ;;  %v36790_v43 = vld [vmem:[%s32302_s21 + $0x16a] sm:$0xff] }
 0x50f   : > { %39255 = vst [vmem:[#allocation42_spill] sm:$0xff] %v36790_v43 }
 0x511   : > { %28351 = vmatmul.mubr.msk.f32.gmra.mrb[56].mxu1 %vm450_vm1, %v35992_v10  ;;  %29675 = vmatmul.mubr.msk.f32.gmra.mrb[24].mxu0 %vm450_vm1, %v36773_v19  ;;  %v36801_v10 = vld [vmem:[%s32302_s21 + $0x172] sm:$0xff] }
 0x512   : > { %28353 = vmatprep.mubr.msk.f32.mxu1 %vm450_vm1, %v36003_v62  ;;  %29677 = vmatprep.mubr.msk.f32.mxu0 %vm450_vm1, %v36776_v13  ;;  %39256 = vst [vmem:[#allocation11_spill] sm:$0xff] %v36801_v10  ;;  %v36804_v62 = vld [vmem:[%s32302_s21 + $0x17a] sm:$0xff] }
 0x513   : > { %39257 = vst [vmem:[#allocation13_spill] sm:$0xff] %v36804_v62 }
 0x515   : > { %28354 = vmatmul.mubr.msk.f32.gmra.mrb[58].mxu1 %vm450_vm1, %v36006_v40  ;;  %29678 = vmatmul.mubr.msk.f32.gmra.mrb[26].mxu0 %vm450_vm1, %v36787_v14  ;;  %v36815_v40 = vld [vmem:[%s32302_s21 + $0x182] sm:$0xff] }
 0x516   : > { %28356 = vmatprep.mubr.msk.f32.mxu1 %vm450_vm1, %v36017_v52  ;;  %29680 = vmatprep.mubr.msk.f32.mxu0 %vm450_vm1, %v36790_v43  ;;  %39258 = vst [vmem:[#allocation17_spill] sm:$0xff] %v36815_v40  ;;  %v8702_v52 = vld [vmem:[%s32302_s21 + $0x41] sm:$0xff]  ;;  %v36819_v43 = vld [vmem:[%s32302_s21 + $0x18a] sm:$0xff] }
 0x517   : > { %39259 = vst [vmem:[#allocation21_spill] sm:$0xff] %v36819_v43 }
 0x519   : > { %28357 = vmatmul.mubr.msk.f32.gmra.mrb[60].mxu1 %vm450_vm1, %v36020_v4  ;;  %29681 = vmatmul.mubr.msk.f32.gmra.mrb[28].mxu0 %vm450_vm1, %v36801_v10  ;;  %v8703_v4 = vld [vmem:[%s32302_s21 + $0x49] sm:$0xff]  ;;  %v36834_v10 = vld [vmem:[%s32302_s21 + $0x19a] sm:$0xff] }
 0x51a   : > { %28359 = vmatprep.mubr.msk.f32.mxu1 %vm450_vm1, %v36031_v30  ;;  %29683 = vmatprep.mubr.msk.f32.mxu0 %vm450_vm1, %v36804_v62  ;;  %v36830_v30 = vld [vmem:[%s32302_s21 + $0x192] sm:$0xff]  ;;  %39261 = vst [vmem:[#allocation25_spill] sm:$0xff] %v36834_v10 }
 0x51b   : > { %39260 = vst [vmem:[#allocation23_spill] sm:$0xff] %v36830_v30  ;;  %v8704_v62 = vld [vmem:[%s32302_s21 + $0x51] sm:$0xff] }
 0x51d   : > { %28360 = vmatmul.mubr.msk.f32.gmra.mrb[62].mxu1 %vm450_vm1, %v36034_v55  ;;  %29684 = vmatmul.mubr.msk.f32.gmra.mrb[30].mxu0 %vm450_vm1, %v36815_v40  ;;  %v36839_v55 = vld [vmem:[%s38543_s1 + $0x30] sm:$0xf]  ;;  %v8706_v40 = vld [vmem:[%s32302_s21 + $0x61] sm:$0xff] }
 0x51e   : > { %28364 = vmatprep.mubr.msk.f32.mxu1 %vm450_vm1, %v8702_v52  ;;  %29686 = vmatprep.mubr.msk.f32.mxu0 %vm450_vm1, %v36819_v43  ;;  %v8705_v52 = vld [vmem:[%s32302_s21 + $0x59] sm:$0xff]  ;;  %v36849_v43 = vld [vmem:[%s32302_s21 + $0x1a2] sm:$0xff] }
 0x51f   : > { %39262 = vst [vmem:[#allocation27_spill] sm:$0xff] %v36849_v43 }
 0x521   : > { %28365 = vmatmul.mubr.msk.f32.vlgmr.msra.gmra.mrb[0].mxu1 %vm450_vm1, %v8703_v4  ;;  %29687 = vmatmul.mubr.msk.f32.gmra.mrb[32].mxu0 %vm450_vm1, %v36830_v30  ;;  %v36855_v4 = vld [vmem:[%s32302_s21 + $0x1aa] sm:$0xff]  ;;  %v36871_v30 = vld [vmem:[%s32302_s21 + $0x1ba] sm:$0xff] }
 0x522   : > { %28461 = vmatpush3.msk.msra.mxu1 %vm643_vm0, %v36298_v51  ;;  %28367 = vmatprep.mubr.msk.f32.mxu1 %vm450_vm1, %v8704_v62  ;;  %39263 = vst [vmem:[#allocation29_spill] sm:$0xff] %v36855_v4  ;;  %v8707_v51 = vld [vmem:[%s32302_s21 + $0x69] sm:$0xff]  ;;  %v36867_v62 = vld [vmem:[%s32302_s21 + $0x1b2] sm:$0xff] }
 0x523   : > { %29689 = vmatprep.mubr.msk.f32.mxu0 %vm450_vm1, %v36834_v10  ;;  %28558 = vmatprep.subr.msk.mxu1 %vm643_vm0, %v36839_v55  ;;  %v8708_v10 = vld [vmem:[%s32302_s21 + $0x71] sm:$0xff] }
 0x525   : > { %28368 = vmatmul.mubr.msk.f32.gmra.mrb[2].mxu1 %vm450_vm1, %v8705_v52  ;;  %29690 = vmatmul.mubr.msk.f32.gmra.mrb[34].mxu0 %vm450_vm1, %v36849_v43  ;;  %v36881_v52 = vld [vmem:[%s32302_s21 + $0x1c2] sm:$0xff]  ;;  %v36885_v43 = vld [vmem:[%s32302_s21 + $0x1ca] sm:$0xff] }
 0x526   : > { %28370 = vmatprep.mubr.msk.f32.mxu1 %vm450_vm1, %v8706_v40  ;;  %29692 = vmatprep.mubr.msk.f32.mxu0 %vm450_vm1, %v36855_v4  ;;  %v8709_v40 = vld [vmem:[%s32302_s21 + $0x79] sm:$0xff]  ;;  %v8710_v4 = vld [vmem:[%s32302_s21 + $0x81] sm:$0xff] }
 0x529   : > { %28371 = vmatmul.mubr.msk.f32.gmra.mrb[4].mxu1 %vm450_vm1, %v8707_v51  ;;  %29693 = vmatmul.mubr.msk.f32.gmra.mrb[36].mxu0 %vm450_vm1, %v36867_v62  ;;  %v36897_v51 = vld [vmem:[%s32302_s21 + $0x1da] sm:$0xff] }
 0x52a   : > { %28373 = vmatprep.mubr.msk.f32.mxu1 %vm450_vm1, %v8708_v10  ;;  %29695 = vmatprep.mubr.msk.f32.mxu0 %vm450_vm1, %v36871_v30  ;;  %v36894_v10 = vld [vmem:[%s32302_s21 + $0x1d2] sm:$0xff] }
 0x52d   : > { %28374 = vmatmul.mubr.msk.f32.gmra.mrb[6].mxu1 %vm450_vm1, %v8709_v40  ;;  %29696 = vmatmul.mubr.msk.f32.gmra.mrb[38].mxu0 %vm450_vm1, %v36881_v52  ;;  %v36911_v40 = vld [vmem:[%s32302_s21 + $0x1ea] sm:$0xff] }
 0x52e   : > { %28376 = vmatprep.mubr.msk.f32.mxu1 %vm450_vm1, %v8710_v4  ;;  %29698 = vmatprep.mubr.msk.f32.mxu0 %vm450_vm1, %v36885_v43  ;;  %v36908_v4 = vld [vmem:[%s32302_s21 + $0x1e2] sm:$0xff] }
 0x531   : > { %28377 = vmatmul.mubr.msk.f32.gmra.mrb[8].mxu1 %vm450_vm1, %v36078_v24  ;;  %29699 = vmatmul.mubr.msk.f32.gmra.mrb[40].mxu0 %vm450_vm1, %v36894_v10  ;;  %v36922_v24 = vld [vmem:[%s32302_s21 + $0x1f2] sm:$0xff] }
 0x532   : > { %28379 = vmatprep.mubr.msk.f32.mxu1 %vm450_vm1, %v36088_v18  ;;  %29701 = vmatprep.mubr.msk.f32.mxu0 %vm450_vm1, %v36897_v51  ;;  %v36925_v18 = vld [vmem:[%s32302_s21 + $0x1fa] sm:$0xff] }
 0x535   : > { %28380 = vmatmul.mubr.msk.f32.gmra.mrb[10].mxu1 %vm450_vm1, %v36091_v16  ;;  %29702 = vmatmul.mubr.msk.f32.gmra.mrb[42].mxu0 %vm450_vm1, %v36908_v4  ;;  %v36936_v16 = vld [vmem:[%s32302_s21 + $0x202] sm:$0xff] }
 0x536   : > { %28382 = vmatprep.mubr.msk.f32.mxu1 %vm450_vm1, %v36102_v23  ;;  %29704 = vmatprep.mubr.msk.f32.mxu0 %vm450_vm1, %v36911_v40  ;;  %v36939_v23 = vld [vmem:[%s32302_s21 + $0x20a] sm:$0xff] }
 0x539   : > { %28383 = vmatmul.mubr.msk.f32.gmra.mrb[12].mxu1 %vm450_vm1, %v36105_v26  ;;  %29705 = vmatmul.mubr.msk.f32.gmra.mrb[44].mxu0 %vm450_vm1, %v36922_v24  ;;  %v36950_v26 = vld [vmem:[%s32302_s21 + $0x212] sm:$0xff] }
 0x53a   : > { %28385 = vmatprep.mubr.msk.f32.mxu1 %vm450_vm1, %v36118_v58  ;;  %29707 = vmatprep.mubr.msk.f32.mxu0 %vm450_vm1, %v36925_v18  ;;  %v36953_v58 = vld [vmem:[%s32302_s21 + $0x21a] sm:$0xff] }
 0x53d   : > { %28386 = vmatmul.mubr.msk.f32.gmra.mrb[14].mxu1 %vm450_vm1, %v36121_v32  ;;  %29708 = vmatmul.mubr.msk.f32.gmra.mrb[46].mxu0 %vm450_vm1, %v36936_v16  ;;  %v36964_v32 = vld [vmem:[%s32302_s21 + $0x222] sm:$0xff] }
 0x53e   : > { %28388 = vmatprep.mubr.msk.f32.mxu1 %vm450_vm1, %v36137_v34  ;;  %29710 = vmatprep.mubr.msk.f32.mxu0 %vm450_vm1, %v36939_v23  ;;  %v36967_v34 = vld [vmem:[%s32302_s21 + $0x22a] sm:$0xff] }
 0x541   : > { %28389 = vmatmul.mubr.msk.f32.gmra.mrb[16].mxu1 %vm450_vm1, %v36140_v49  ;;  %29711 = vmatmul.mubr.msk.f32.gmra.mrb[48].mxu0 %vm450_vm1, %v36950_v26  ;;  %v36978_v49 = vld [vmem:[%s32302_s21 + $0x232] sm:$0xff] }
 0x542   : > { %28391 = vmatprep.mubr.msk.f32.mxu1 %vm450_vm1, %v36153_v33  ;;  %29713 = vmatprep.mubr.msk.f32.mxu0 %vm450_vm1, %v36953_v58  ;;  %39264 = vst [vmem:[#allocation31_spill] sm:$0xff] %v36978_v49  ;;  %v36981_v33 = vld [vmem:[%s32302_s21 + $0x23a] sm:$0xff] }
 0x543   : > { %39265 = vst [vmem:[#allocation33_spill] sm:$0xff] %v36981_v33 }
 0x545   : > { %28392 = vmatmul.mubr.msk.f32.gmra.mrb[18].mxu1 %vm450_vm1, %v36156_v60  ;;  %29714 = vmatmul.mubr.msk.f32.gmra.mrb[50].mxu0 %vm450_vm1, %v36964_v32  ;;  %v19651_v60 = vld [vmem:[%s32302_s21 + $0x242] sm:$0xff] }
 0x546   : > { %28394 = vmatprep.mubr.msk.f32.mxu1 %vm450_vm1, %v36167_v47  ;;  %29716 = vmatprep.mubr.msk.f32.mxu0 %vm450_vm1, %v36967_v34  ;;  %v19652_v47 = vld [vmem:[%s32302_s21 + $0x24a] sm:$0xff] }
 0x549   : > { %28395 = vmatmul.mubr.msk.f32.gmra.mrb[20].mxu1 %vm450_vm1, %v36170_v56  ;;  %29717 = vmatmul.mubr.msk.f32.gmra.mrb[52].mxu0 %vm450_vm1, %v36978_v49  ;;  %v19653_v56 = vld [vmem:[%s32302_s21 + $0x252] sm:$0xff]  ;;  %v19654_v49 = vld [vmem:[%s32302_s21 + $0x25a] sm:$0xff] }
 0x54a   : > { %28397 = vmatprep.mubr.msk.f32.mxu1 %vm450_vm1, %v36181_v61  ;;  %29719 = vmatprep.mubr.msk.f32.mxu0 %vm450_vm1, %v36981_v33  ;;  %v39266_v61 = vld [vmem:[#allocation59_spill] sm:$0xff]  ;;  %v39267_v33 = vld [vmem:[#allocation61_spill] sm:$0xff] }
 0x54d   : > { %28398 = vmatmul.mubr.msk.f32.gmra.mrb[22].mxu1 %vm450_vm1, %v36184_v57  ;;  %29720 = vmatmul.mubr.msk.f32.gmra.mrb[54].mxu0 %vm450_vm1, %v19651_v60  ;;  %v19655_v57 = vld [vmem:[%s32302_s21 + $0x262] sm:$0xff]  ;;  %v19656_v60 = vld [vmem:[%s32302_s21 + $0x26a] sm:$0xff] }
 0x54e   : > { %28400 = vmatprep.mubr.msk.f32.mxu1 %vm450_vm1, %v36195_v21  ;;  %29722 = vmatprep.mubr.msk.f32.mxu0 %vm450_vm1, %v19652_v47  ;;  %v19657_v21 = vld [vmem:[%s32302_s21 + $0x272] sm:$0xff]  ;;  %v39268_v47 = vld [vmem:[#allocation63_spill] sm:$0xff] }
 0x551   : > { %28401 = vmatmul.mubr.msk.f32.gmra.mrb[24].mxu1 %vm450_vm1, %v36198_v22  ;;  %29723 = vmatmul.mubr.msk.f32.gmra.mrb[56].mxu0 %vm450_vm1, %v19653_v56  ;;  %v19658_v22 = vld [vmem:[%s32302_s21 + $0x27a] sm:$0xff] }
 0x552   : > { %28403 = vmatprep.mubr.msk.f32.mxu1 %vm450_vm1, %v39266_v61  ;;  %29725 = vmatprep.mubr.msk.f32.mxu0 %vm450_vm1, %v19654_v49  ;;  %v19659_v49 = vld [vmem:[%s32302_s21 + $0x282] sm:$0xff] }
 0x553   : > { %v39276_v56 = vld [vmem:[#allocation71_spill] sm:$0xff] }
 0x554   : > { %v39277_v61 = vld [vmem:[#allocation47_spill] sm:$0xff] }
 0x555   : > { %28404 = vmatmul.mubr.msk.f32.gmra.mrb[26].mxu1 %vm450_vm1, %v39267_v33  ;;  %29726 = vmatmul.mubr.msk.f32.gmra.mrb[58].mxu0 %vm450_vm1, %v19655_v57  ;;  %v37035_v33 = vld [vmem:[%s32302_s21 + $0x151] sm:$0xff]  ;;  %v39278_v57 = vld [vmem:[#allocation44_spill] sm:$0xff] }
 0x556   : > { %28406 = vmatprep.mubr.msk.f32.mxu1 %vm450_vm1, %v36223_v36  ;;  %29728 = vmatprep.mubr.msk.f32.mxu0 %vm450_vm1, %v19656_v60  ;;  %v37032_v36 = vld [vmem:[%s32302_s21 + $0x149] sm:$0xff]  ;;  %v39279_v60 = vld [vmem:[#allocation55_spill] sm:$0xff] }
 0x559   : > { %28407 = vmatmul.mubr.msk.f32.gmra.mrb[28].mxu1 %vm450_vm1, %v39268_v47  ;;  %29729 = vmatmul.mubr.msk.f32.gmra.mrb[60].mxu0 %vm450_vm1, %v19657_v21  ;;  %v39280_v21 = vld [vmem:[#allocation48_spill] sm:$0xff] }
 0x55a   : > { %28409 = vmatprep.mubr.msk.f32.mxu1 %vm450_vm1, %v36237_v50  ;;  %29731 = vmatprep.mubr.msk.f32.mxu0 %vm450_vm1, %v19658_v22  ;;  %v37049_v50 = vld [vmem:[%s32302_s21 + $0x161] sm:$0xff]  ;;  %v39281_v22 = vld [vmem:[#allocation9_spill] sm:$0xff] }
 0x55b   : > { %v9540_v47 = vld [vmem:[%s32302_s21 + $0x42] sm:$0xff] }
 0x55d   : > { %28410 = vmatmul.mubr.msk.f32.gmra.mrb[30].mxu1 %vm450_vm1, %v36240_v20  ;;  %29732 = vmatmul.mubr.msk.f32.gmra.mrb[62].mxu0 %vm450_vm1, %v19659_v49  ;;  %v37046_v20 = vld [vmem:[%s32302_s21 + $0x159] sm:$0xff] }
 0x55e   : > { %28412 = vmatprep.mubr.msk.f32.mxu1 %vm450_vm1, %v36251_v9  ;;  %29736 = vmatprep.mubr.msk.f32.mxu0 %vm450_vm1, %v36336_v59  ;;  %v37062_v9 = vld [vmem:[%s32302_s21 + $0x169] sm:$0xff]  ;;  %v37065_v59 = vld [vmem:[%s32302_s21 + $0x171] sm:$0xff] }
 0x55f   : > { %v39282_v49 = vld [vmem:[#allocation50_spill] sm:$0xff] }
 0x561   : > { %28413 = vmatmul.mubr.msk.f32.gmra.mrb[32].mxu1 %vm450_vm1, %v37032_v36  ;;  %29737 = vmatmul.mubr.msk.f32.vlgmr.msra.gmra.mrb[0].mxu0 %vm450_vm1, %v36346_v63  ;;  %v37074_v63 = vld [vmem:[%s38543_s1 + $0x68] sm:$0xf] }
 0x562   : > { %28415 = vmatprep.mubr.msk.f32.mxu1 %vm450_vm1, %v37035_v33  ;;  %29739 = vmatprep.mubr.msk.f32.mxu0 %vm450_vm1, %v36349_v44  ;;  %v37081_v44 = vld [vmem:[%s32302_s21 + $0x179] sm:$0xff] }
 0x563   : > { %29833 = vmatpush3.msk.msra.mxu0 %vm643_vm0, %v36587_v48  ;;  %v37125_v48 = vld [vmem:[%s32302_s21 + $0x1a9] sm:$0xff] }
 0x564   : > { %29930 = vmatprep.subr.msk.mxu0 %vm643_vm0, %v37074_v63 }
 0x565   : > { %28416 = vmatmul.mubr.msk.f32.gmra.mrb[34].mxu1 %vm450_vm1, %v37046_v20  ;;  %29740 = vmatmul.mubr.msk.f32.gmra.mrb[2].mxu0 %vm450_vm1, %v36360_v38  ;;  %v37084_v38 = vld [vmem:[%s32302_s21 + $0x181] sm:$0xff] }
 0x566   : > { %28418 = vmatprep.mubr.msk.f32.mxu1 %vm450_vm1, %v37049_v50  ;;  %29742 = vmatprep.mubr.msk.f32.mxu0 %vm450_vm1, %v36363_v37  ;;  %v37097_v37 = vld [vmem:[%s32302_s21 + $0x189] sm:$0xff] }
 0x569   : > { %28419 = vmatmul.mubr.msk.f32.gmra.mrb[36].mxu1 %vm450_vm1, %v37062_v9  ;;  %29743 = vmatmul.mubr.msk.f32.gmra.mrb[4].mxu0 %vm450_vm1, %v36374_v42  ;;  %v37100_v42 = vld [vmem:[%s32302_s21 + $0x191] sm:$0xff] }
 0x56a   : > { %28421 = vmatprep.mubr.msk.f32.mxu1 %vm450_vm1, %v37065_v59  ;;  %29745 = vmatprep.mubr.msk.f32.mxu0 %vm450_vm1, %v36380_v7  ;;  %v37111_v7 = vld [vmem:[%s32302_s21 + $0x199] sm:$0xff] }
 0x56d   : > { %28422 = vmatmul.mubr.msk.f32.gmra.mrb[38].mxu1 %vm450_vm1, %v37081_v44  ;;  %29746 = vmatmul.mubr.msk.f32.gmra.mrb[6].mxu0 %vm450_vm1, %v36394_v46  ;;  %v37114_v46 = vld [vmem:[%s32302_s21 + $0x1a1] sm:$0xff] }
 0x56e   : > { %28424 = vmatprep.mubr.msk.f32.mxu1 %vm450_vm1, %v37084_v38  ;;  %29748 = vmatprep.mubr.msk.f32.mxu0 %vm450_vm1, %v36400_v54  ;;  %v37128_v54 = vld [vmem:[%s32302_s21 + $0x1b1] sm:$0xff] }
 0x571   : > { %28425 = vmatmul.mubr.msk.f32.gmra.mrb[40].mxu1 %vm450_vm1, %v37097_v37  ;;  %29749 = vmatmul.mubr.msk.f32.gmra.mrb[8].mxu0 %vm450_vm1, %v36414_v28  ;;  %v37139_v28 = vld [vmem:[%s32302_s21 + $0x1b9] sm:$0xff] }
 0x572   : > { %28427 = vmatprep.mubr.msk.f32.mxu1 %vm450_vm1, %v37100_v42  ;;  %29751 = vmatprep.mubr.msk.f32.mxu0 %vm450_vm1, %v36420_v2  ;;  %v37142_v2 = vld [vmem:[%s32302_s21 + $0x1c1] sm:$0xff] }
 0x575   : > { %28428 = vmatmul.mubr.msk.f32.gmra.mrb[42].mxu1 %vm450_vm1, %v37111_v7  ;;  %29752 = vmatmul.mubr.msk.f32.gmra.mrb[10].mxu0 %vm450_vm1, %v36434_v39  ;;  %v37153_v39 = vld [vmem:[%s32302_s21 + $0x1c9] sm:$0xff] }
 0x576   : > { %28430 = vmatprep.mubr.msk.f32.mxu1 %vm450_vm1, %v37114_v46  ;;  %29754 = vmatprep.mubr.msk.f32.mxu0 %vm450_vm1, %v36440_v0  ;;  %v37156_v0 = vld [vmem:[%s32302_s21 + $0x1d1] sm:$0xff] }
 0x579   : > { %28431 = vmatmul.mubr.msk.f32.gmra.mrb[44].mxu1 %vm450_vm1, %v37125_v48  ;;  %29755 = vmatmul.mubr.msk.f32.gmra.mrb[12].mxu0 %vm450_vm1, %v36454_v35  ;;  %v37167_v35 = vld [vmem:[%s32302_s21 + $0x1d9] sm:$0xff] }
 0x57a   : > { %28433 = vmatprep.mubr.msk.f32.mxu1 %vm450_vm1, %v37128_v54  ;;  %29757 = vmatprep.mubr.msk.f32.mxu0 %vm450_vm1, %v36458_v31  ;;  %v37170_v31 = vld [vmem:[%s32302_s21 + $0x1e1] sm:$0xff] }
 0x57d   : > { %28434 = vmatmul.mubr.msk.f32.gmra.mrb[46].mxu1 %vm450_vm1, %v37139_v28  ;;  %29758 = vmatmul.mubr.msk.f32.gmra.mrb[14].mxu0 %vm450_vm1, %v36468_v15  ;;  %v37181_v15 = vld [vmem:[%s32302_s21 + $0x1e9] sm:$0xff] }
 0x57e   : > { %28436 = vmatprep.mubr.msk.f32.mxu1 %vm450_vm1, %v37142_v2  ;;  %29760 = vmatprep.mubr.msk.f32.mxu0 %vm450_vm1, %v36472_v3  ;;  %v37184_v3 = vld [vmem:[%s32302_s21 + $0x1f1] sm:$0xff] }
 0x581   : > { %28437 = vmatmul.mubr.msk.f32.gmra.mrb[48].mxu1 %vm450_vm1, %v37153_v39  ;;  %29761 = vmatmul.mubr.msk.f32.gmra.mrb[16].mxu0 %vm450_vm1, %v36482_v53  ;;  %v37195_v53 = vld [vmem:[%s32302_s21 + $0x1f9] sm:$0xff] }
 0x582   : > { %28439 = vmatprep.mubr.msk.f32.mxu1 %vm450_vm1, %v37156_v0  ;;  %29763 = vmatprep.mubr.msk.f32.mxu0 %vm450_vm1, %v36486_v17  ;;  %v39269_v17 = vld [vmem:[#allocation73_spill] sm:$0xff] }
 0x585   : > { %28440 = vmatmul.mubr.msk.f32.gmra.mrb[50].mxu1 %vm450_vm1, %v37167_v35  ;;  %29764 = vmatmul.mubr.msk.f32.gmra.mrb[18].mxu0 %vm450_vm1, %v36496_v11  ;;  %v39270_v11 = vld [vmem:[#allocation65_spill] sm:$0xff] }
 0x586   : > { %28442 = vmatprep.mubr.msk.f32.mxu1 %vm450_vm1, %v37170_v31  ;;  %29766 = vmatprep.mubr.msk.f32.mxu0 %vm450_vm1, %v36500_v12  ;;  %v39271_v12 = vld [vmem:[#allocation62_spill] sm:$0xff] }
 0x589   : > { %28443 = vmatmul.mubr.msk.f32.gmra.mrb[52].mxu1 %vm450_vm1, %v37181_v15  ;;  %29767 = vmatmul.mubr.msk.f32.gmra.mrb[20].mxu0 %vm450_vm1, %v36510_v41  ;;  %v39273_v41 = vld [vmem:[#allocation10_spill] sm:$0xff] }
 0x58a   : > { %28445 = vmatprep.mubr.msk.f32.mxu1 %vm450_vm1, %v37184_v3  ;;  %29769 = vmatprep.mubr.msk.f32.mxu0 %vm450_vm1, %v36514_v6  ;;  %v39272_v6 = vld [vmem:[#allocation67_spill] sm:$0xff] }
 0x58d   : > { %28446 = vmatmul.mubr.msk.f32.gmra.mrb[54].mxu1 %vm450_vm1, %v37195_v53  ;;  %29770 = vmatmul.mubr.msk.f32.gmra.mrb[22].mxu0 %vm450_vm1, %v36527_v29  ;;  %v39274_v29 = vld [vmem:[#allocation69_spill] sm:$0xff] }
 0x58e   : > { %28448 = vmatprep.mubr.msk.f32.mxu1 %vm450_vm1, %v36377_v5  ;;  %29772 = vmatprep.mubr.msk.f32.mxu0 %vm450_vm1, %v39269_v17  ;;  %v39275_v5 = vld [vmem:[#allocation39_spill] sm:$0xff]  ;;  %v39283_v17 = vld [vmem:[#allocation74_spill] sm:$0xff] }
 0x591   : > { %28449 = vmatmul.mubr.msk.f32.gmra.mrb[56].mxu1 %vm450_vm1, %v39270_v11  ;;  %29773 = vmatmul.mubr.msk.f32.gmra.mrb[24].mxu0 %vm450_vm1, %v39271_v12  ;;  %v39284_v11 = vld [vmem:[#allocation75_spill] sm:$0xff]  ;;  %v9541_v12 = vld [vmem:[%s32302_s21 + $0x4a] sm:$0xff] }
 0x592   : > { %28451 = vmatprep.mubr.msk.f32.mxu1 %vm450_vm1, %v39272_v6  ;;  %29775 = vmatprep.mubr.msk.f32.mxu0 %vm450_vm1, %v39273_v41  ;;  %v9542_v6 = vld [vmem:[%s32302_s21 + $0x52] sm:$0xff] }
 0x593   : > { %v39285_v41 = vld [vmem:[#allocation77_spill] sm:$0xff] }
 0x595   : > { %28452 = vmatmul.mubr.msk.f32.gmra.mrb[58].mxu1 %vm450_vm1, %v39274_v29  ;;  %29776 = vmatmul.mubr.msk.f32.gmra.mrb[26].mxu0 %vm450_vm1, %v39275_v5  ;;  %v9543_v29 = vld [vmem:[%s32302_s21 + $0x5a] sm:$0xff]  ;;  %v39286_v5 = vld [vmem:[#allocation24_spill] sm:$0xff] }
 0x596   : > { %28454 = vmatprep.mubr.msk.f32.mxu1 %vm450_vm1, %v39276_v56  ;;  %29778 = vmatprep.mubr.msk.f32.mxu0 %vm450_vm1, %v39277_v61  ;;  %v9544_v56 = vld [vmem:[%s32302_s21 + $0x62] sm:$0xff]  ;;  %v37252_v61 = vld [vmem:[%s38543_s1 + $0x34] sm:$0xf] }
 0x599   : > { %28455 = vmatmul.mubr.msk.f32.gmra.mrb[60].mxu1 %vm450_vm1, %v39278_v57  ;;  %29779 = vmatmul.mubr.msk.f32.gmra.mrb[28].mxu0 %vm450_vm1, %v39279_v60  ;;  %v39288_v57 = vld [vmem:[#allocation40_spill] sm:$0xff] }
 0x59a   : > { %28457 = vmatprep.mubr.msk.f32.mxu1 %vm450_vm1, %v39280_v21  ;;  %29781 = vmatprep.mubr.msk.f32.mxu0 %vm450_vm1, %v39281_v22  ;;  %v9545_v60 = vld [vmem:[%s32302_s21 + $0x6a] sm:$0xff]  ;;  %v9546_v21 = vld [vmem:[%s32302_s21 + $0x72] sm:$0xff] }
 0x59b   : > { %v39289_v22 = vld [vmem:[#allocation8_spill] sm:$0xff] }
 0x59d   : > { %28458 = vmatmul.mubr.msk.f32.gmra.mrb[62].mxu1 %vm450_vm1, %v39282_v49  ;;  %29782 = vmatmul.mubr.msk.f32.gmra.mrb[30].mxu0 %vm450_vm1, %v39283_v17  ;;  %v9547_v49 = vld [vmem:[%s32302_s21 + $0x7a] sm:$0xff]  ;;  %v9548_v17 = vld [vmem:[%s32302_s21 + $0x82] sm:$0xff] }
 0x59e   : > { %28462 = vmatprep.mubr.msk.f32.mxu1 %vm450_vm1, %v9540_v47  ;;  %29784 = vmatprep.mubr.msk.f32.mxu0 %vm450_vm1, %v39284_v11  ;;  %v39290_v47 = vld [vmem:[#allocation56_spill] sm:$0xff] }
 0x59f   : > { %v39291_v11 = vld [vmem:[#allocation64_spill] sm:$0xff] }
 0x5a1   : > { %28463 = vmatmul.mubr.msk.f32.vlgmr.msra.gmra.mrb[0].mxu1 %vm450_vm1, %v9541_v12  ;;  %29785 = vmatmul.mubr.msk.f32.gmra.mrb[32].mxu0 %vm450_vm1, %v39285_v41  ;;  %v39292_v12 = vld [vmem:[#allocation70_spill] sm:$0xff] }
 0x5a2   : > { %28559 = vmatpush3.msk.msra.mxu1 %vm643_vm0, %v36839_v55  ;;  %28465 = vmatprep.mubr.msk.f32.mxu1 %vm450_vm1, %v9542_v6  ;;  %v39287_v55 = vld [vmem:[#allocation32_spill] sm:$0xff]  ;;  %v39294_v41 = vld [vmem:[#allocation54_spill] sm:$0xff] }
 0x5a3   : > { %29787 = vmatprep.mubr.msk.f32.mxu0 %vm450_vm1, %v39286_v5  ;;  %30028 = vmatprep.subr.msk.mxu1 %vm643_vm0, %v37252_v61  ;;  %v39293_v6 = vld [vmem:[#allocation72_spill] sm:$0xff]  ;;  %v39296_v5 = vld [vmem:[#allocation58_spill] sm:$0xff] }
 0x5a5   : > { %28466 = vmatmul.mubr.msk.f32.gmra.mrb[2].mxu1 %vm450_vm1, %v9543_v29  ;;  %29788 = vmatmul.mubr.msk.f32.gmra.mrb[34].mxu0 %vm450_vm1, %v39287_v55  ;;  %v39295_v29 = vld [vmem:[#allocation18_spill] sm:$0xff]  ;;  %v39298_v55 = vld [vmem:[#allocation12_spill] sm:$0xff] }
 0x5a6   : > { %28468 = vmatprep.mubr.msk.f32.mxu1 %vm450_vm1, %v9544_v56  ;;  %29790 = vmatprep.mubr.msk.f32.mxu0 %vm450_vm1, %v39288_v57  ;;  %v39297_v56 = vld [vmem:[#allocation66_spill] sm:$0xff]  ;;  %v39299_v57 = vld [vmem:[#allocation43_spill] sm:$0xff] }
 0x5a9   : > { %28469 = vmatmul.mubr.msk.f32.gmra.mrb[4].mxu1 %vm450_vm1, %v9545_v60  ;;  %29791 = vmatmul.mubr.msk.f32.gmra.mrb[36].mxu0 %vm450_vm1, %v39289_v22  ;;  %v37309_v60 = vld [vmem:[%s32302_s21 + $0x210] sm:$0xff]  ;;  %v37323_v22 = vld [vmem:[%s32302_s21 + $0x220] sm:$0xff] }
 0x5aa   : > { %28471 = vmatprep.mubr.msk.f32.mxu1 %vm450_vm1, %v9546_v21  ;;  %29793 = vmatprep.mubr.msk.f32.mxu0 %vm450_vm1, %v39290_v47  ;;  %v39301_v21 = vld [vmem:[#allocation34_spill] sm:$0xff]  ;;  %v39302_v47 = vld [vmem:[#allocation15_spill] sm:$0xff] }
 0x5ad   : > { %28472 = vmatmul.mubr.msk.f32.gmra.mrb[6].mxu1 %vm450_vm1, %v9547_v49  ;;  %29794 = vmatmul.mubr.msk.f32.gmra.mrb[38].mxu0 %vm450_vm1, %v39291_v11  ;;  %v39303_v49 = vld [vmem:[#allocation19_spill] sm:$0xff]  ;;  %v37337_v11 = vld [vmem:[%s32302_s21 + $0x230] sm:$0xff] }
 0x5ae   : > { %28474 = vmatprep.mubr.msk.f32.mxu1 %vm450_vm1, %v9548_v17  ;;  %29796 = vmatprep.mubr.msk.f32.mxu0 %vm450_vm1, %v39292_v12  ;;  %v37334_v17 = vld [vmem:[%s32302_s21 + $0x228] sm:$0xff]  ;;  %v32194_v12 = vmov 0  }
 0x5af   : > { %32079 = vset.pattern.permute.xlu0 %v32194_v12  ;;  %32080 = vset.pattern.permute.xlu1 %v32194_v12  ;;  %v23015_v12 = vld [vmem:[%s38544_s2 + $0x18] sm:$0xff] }
 0x5b1   : > { %28475 = vmatmul.mubr.msk.f32.gmra.mrb[8].mxu1 %vm450_vm1, %v39293_v6  ;;  %29797 = vmatmul.mubr.msk.f32.gmra.mrb[40].mxu0 %vm450_vm1, %v36716_v45  ;;  %v37295_v45 = vld [vmem:[%s32302_s21 + $0x200] sm:$0xff] }
 0x5b2   : > { %28477 = vmatprep.mubr.msk.f32.mxu1 %vm450_vm1, %v39294_v41  ;;  %29799 = vmatprep.mubr.msk.f32.mxu0 %vm450_vm1, %v39295_v29  ;;  %v23012_v6 = vld [vmem:[%s38544_s2] sm:$0xff] }
 0x5b3   : > { %23078 = vperm.xlu0 %32079, %v23012_v6   ;;  %v39304_v41 = vld [vmem:[#allocation76_spill] sm:$0xff] }
 0x5b4   : > { %v39305_v29 = vld [vmem:[#allocation20_spill] sm:$0xff] }
 0x5b5   : > { %28478 = vmatmul.mubr.msk.f32.gmra.mrb[10].mxu1 %vm450_vm1, %v39296_v5  ;;  %29800 = vmatmul.mubr.msk.f32.gmra.mrb[42].mxu0 %vm450_vm1, %v36736_v25  ;;  %v37306_v25 = vld [vmem:[%s32302_s21 + $0x208] sm:$0xff]  ;;  %v37351_v5 = vld [vmem:[%s32302_s21 + $0x238] sm:$0xff]  ;;  %v23016_v6 = vld [vmem:[%s38544_s2 + $0x20] sm:$0xff] }
 0x5b6   : > { %28480 = vmatprep.mubr.msk.f32.mxu1 %vm450_vm1, %v39297_v56  ;;  %29802 = vmatprep.mubr.msk.f32.mxu0 %vm450_vm1, %v36742_v1  ;;  %v39300_v1 = vld [vmem:[#allocation51_spill] sm:$0xff] }
 0x5b7   : > { %v37354_v56 = vld [vmem:[%s32302_s21 + $0x240] sm:$0xff] }
 0x5b9   : > { %28481 = vmatmul.mubr.msk.f32.gmra.mrb[12].mxu1 %vm450_vm1, %v39298_v55  ;;  %29803 = vmatmul.mubr.msk.f32.gmra.mrb[44].mxu0 %vm450_vm1, %v36756_v8  ;;  %v37320_v8 = vld [vmem:[%s32302_s21 + $0x218] sm:$0xff]  ;;  %v23014_v55 = vld [vmem:[%s38544_s2 + $0x10] sm:$0xff] }
 0x5ba   : > { %28483 = vmatprep.mubr.msk.f32.mxu1 %vm450_vm1, %v39299_v57  ;;  %29805 = vmatprep.mubr.msk.f32.mxu0 %vm450_vm1, %v37295_v45  ;;  %v23013_v57 = vld [vmem:[%s38544_s2 + $0x8] sm:$0xff] }
 0x5bb   : > { %23088 = vperm.xlu1 %32080, %v23014_v55   ;;  %23083 = vperm.xlu0 %32079, %v23013_v57   ;;  %v20491_v55 = vld [vmem:[%s32302_s21 + $0x258] sm:$0xff]  ;;  %v20492_v57 = vld [vmem:[%s32302_s21 + $0x260] sm:$0xff] }
 0x5bd   : > { %28484 = vmatmul.mubr.msk.f32.gmra.mrb[14].mxu1 %vm450_vm1, %v39300_v1  ;;  %29806 = vmatmul.mubr.msk.f32.gmra.mrb[46].mxu0 %vm450_vm1, %v37306_v25  ;;  %v39306_v1 = vld [vmem:[#allocation28_spill] sm:$0xff] }
 0x5be   : > { %28486 = vmatprep.mubr.msk.f32.mxu1 %vm450_vm1, %v39301_v21  ;;  %29808 = vmatprep.mubr.msk.f32.mxu0 %vm450_vm1, %v37309_v60  ;;  %v39307_v21 = vld [vmem:[#allocation36_spill] sm:$0xff] }
 0x5bf   : > { %23093 = vperm.xlu1 %32080, %v23015_v12   ;;  %23098 = vperm.xlu0 %32079, %v23016_v6   ;;  %v39310_v12 = vld [vmem:[#allocation60_spill] sm:$0xff]  ;;  %v20494_v6 = vld [vmem:[%s32302_s21 + $0x270] sm:$0xff] }
 0x5c1   : > { %28487 = vmatmul.mubr.msk.f32.gmra.mrb[16].mxu1 %vm450_vm1, %v39302_v47  ;;  %29809 = vmatmul.mubr.msk.f32.gmra.mrb[48].mxu0 %vm450_vm1, %v37320_v8  ;;  %v20489_v47 = vld [vmem:[%s32302_s21 + $0x248] sm:$0xff] }
 0x5c2   : > { %28489 = vmatprep.mubr.msk.f32.mxu1 %vm450_vm1, %v39303_v49  ;;  %29811 = vmatprep.mubr.msk.f32.mxu0 %vm450_vm1, %v37323_v22  ;;  %v20490_v49 = vld [vmem:[%s32302_s21 + $0x250] sm:$0xff] }
 0x5c5   : > { %28490 = vmatmul.mubr.msk.f32.gmra.mrb[18].mxu1 %vm450_vm1, %v39304_v41  ;;  %29812 = vmatmul.mubr.msk.f32.gmra.mrb[50].mxu0 %vm450_vm1, %v37334_v17  ;;  %v39308_v41 = vld [vmem:[#allocation46_spill] sm:$0xff] }
 0x5c6   : > { %28492 = vmatprep.mubr.msk.f32.mxu1 %vm450_vm1, %v39305_v29  ;;  %29814 = vmatprep.mubr.msk.f32.mxu0 %vm450_vm1, %v37337_v11  ;;  %v39309_v29 = vld [vmem:[#allocation52_spill] sm:$0xff] }
 0x5c9   : > { %28493 = vmatmul.mubr.msk.f32.gmra.mrb[20].mxu1 %vm450_vm1, %v39306_v1  ;;  %29815 = vmatmul.mubr.msk.f32.gmra.mrb[52].mxu0 %vm450_vm1, %v37351_v5  ;;  %v23017_v1 = vld [vmem:[%s38544_s2 + $0x28] sm:$0xff] }
 0x5ca   : > { %28495 = vmatprep.mubr.msk.f32.mxu1 %vm450_vm1, %v39307_v21  ;;  %29817 = vmatprep.mubr.msk.f32.mxu0 %vm450_vm1, %v37354_v56  ;;  %v23018_v21 = vld [vmem:[%s38544_s2 + $0x30] sm:$0xff] }
 0x5cb   : > { %23103 = vperm.xlu1 %32080, %v23017_v1   ;;  %23108 = vperm.xlu0 %32079, %v23018_v21   ;;  %v39312_v1 = vld [vmem:[#allocation14_spill] sm:$0xff]  ;;  %v20496_v21 = vld [vmem:[%s32302_s21 + $0x280] sm:$0xff] }
 0x5cd   : > { %28496 = vmatmul.mubr.msk.f32.gmra.mrb[22].mxu1 %vm450_vm1, %v39308_v41  ;;  %29818 = vmatmul.mubr.msk.f32.gmra.mrb[54].mxu0 %vm450_vm1, %v20489_v47  ;;  %v39311_v47 = vld [vmem:[#allocation68_spill] sm:$0xff]  ;;  %v23019_v41 = vld [vmem:[%s38544_s2 + $0x38] sm:$0xff] }
 0x5ce   : > { %28498 = vmatprep.mubr.msk.f32.mxu1 %vm450_vm1, %v39309_v29  ;;  %29820 = vmatprep.mubr.msk.f32.mxu0 %vm450_vm1, %v20490_v49  ;;  %v20493_v49 = vld [vmem:[%s32302_s21 + $0x268] sm:$0xff]  ;;  %v23020_v29 = vld [vmem:[%s38544_s2 + $0x40] sm:$0xff] }
 0x5cf   : > { %23113 = vperm.xlu1 %32080, %v23019_v41   ;;  %23118 = vperm.xlu0 %32079, %v23020_v29   ;;  %v39314_v41 = vld [vmem:[#allocation22_spill] sm:$0xff] }
 0x5d0   : > { %v21272_v29 = vld [vmem:[%s32302_s21 + $0x91] sm:$0xff] }
 0x5d1   : > { %28499 = vmatmul.mubr.msk.f32.gmra.mrb[24].mxu1 %vm450_vm1, %v39310_v12  ;;  %29821 = vmatmul.mubr.msk.f32.gmra.mrb[56].mxu0 %vm450_vm1, %v20491_v55  ;;  %v39313_v55 = vld [vmem:[#allocation16_spill] sm:$0xff] }
 0x5d2   : > { %28501 = vmatprep.mubr.msk.f32.mxu1 %vm450_vm1, %v39311_v47  ;;  %29823 = vmatprep.mubr.msk.f32.mxu0 %vm450_vm1, %v20492_v57  ;;  %v20495_v57 = vld [vmem:[%s32302_s21 + $0x278] sm:$0xff]  ;;  %v23021_v12 = vld [vmem:[%s38544_s2 + $0x48] sm:$0xff]  ;;  %v23022_v47 = vld [vmem:[%s38544_s2 + $0x50] sm:$0xff] }
 0x5d3   : > { %23123 = vperm.xlu1 %32080, %v23021_v12   ;;  %23128 = vperm.xlu0 %32079, %v23022_v47   ;;  %v39316_v12 = vld [vmem:[#allocation30_spill] sm:$0xff]  ;;  %v23025_v47 = vld [vmem:[%s38544_s2 + $0x68] sm:$0xff] }
 0x5d5   : > { %28502 = vmatmul.mubr.msk.f32.gmra.mrb[26].mxu1 %vm450_vm1, %v39312_v1  ;;  %29824 = vmatmul.mubr.msk.f32.gmra.mrb[58].mxu0 %vm450_vm1, %v20493_v49  ;;  %v39315_v49 = vld [vmem:[#allocation26_spill] sm:$0xff] }
 0x5d6   : > { %28504 = vmatprep.mubr.msk.f32.mxu1 %vm450_vm1, %v39313_v55  ;;  %29826 = vmatprep.mubr.msk.f32.mxu0 %vm450_vm1, %v20494_v6  ;;  %v20497_v6 = vld [vmem:[%s32302_s21 + $0x288] sm:$0xff]  ;;  %v23023_v1 = vld [vmem:[%s38544_s2 + $0x58] sm:$0xff]  ;;  %v23024_v55 = vld [vmem:[%s38544_s2 + $0x60] sm:$0xff] }
 0x5d7   : > { %23133 = vperm.xlu1 %32080, %v23023_v1   ;;  %23138 = vperm.xlu0 %32079, %v23024_v55   ;;  %v23028_v1 = vld [vmem:[%s38544_s2 + $0x80] sm:$0xff]  ;;  %v23029_v55 = vld [vmem:[%s38544_s2 + $0x88] sm:$0xff] }
 0x5d9   : > { %28505 = vmatmul.mubr.msk.f32.gmra.mrb[28].mxu1 %vm450_vm1, %v39314_v41  ;;  %29827 = vmatmul.mubr.msk.f32.gmra.mrb[60].mxu0 %vm450_vm1, %v20495_v57  ;;  %v21273_v57 = vld [vmem:[%s32302_s21 + $0x99] sm:$0xff]  ;;  %v23026_v41 = vld [vmem:[%s38544_s2 + $0x70] sm:$0xff] }
 0x5da   : > { %28507 = vmatprep.mubr.msk.f32.mxu1 %vm450_vm1, %v39315_v49  ;;  %29829 = vmatprep.mubr.msk.f32.mxu0 %vm450_vm1, %v20496_v21  ;;  %v21274_v21 = vld [vmem:[%s32302_s21 + $0xa1] sm:$0xff]  ;;  %v39317_v49 = vld [vmem:[#allocation38_spill] sm:$0xff] }
 0x5db   : > { %23143 = vperm.xlu1 %32080, %v23025_v47   ;;  %23148 = vperm.xlu0 %32079, %v23026_v41   ;;  %v23031_v47 = vld [vmem:[%s38544_s2 + $0x98] sm:$0xff]  ;;  %v23032_v41 = vld [vmem:[%s38544_s2 + $0xa0] sm:$0xff] }
 0x5dd   : > { %28508 = vmatmul.mubr.msk.f32.gmra.mrb[30].mxu1 %vm450_vm1, %v39316_v12  ;;  %29830 = vmatmul.mubr.msk.f32.gmra.mrb[62].mxu0 %vm450_vm1, %v20497_v6  ;;  %v21276_v6 = vld [vmem:[%s32302_s21 + $0xb1] sm:$0xff] }
 0x5de   : > { %28510 = vmatprep.mubr.msk.f32.mxu1 %vm450_vm1, %v36759_v27  ;;  %29834 = vmatprep.mubr.msk.f32.mxu0 %vm450_vm1, %v21272_v29  ;;  %v21275_v27 = vld [vmem:[%s32302_s21 + $0xa9] sm:$0xff]  ;;  %v23027_v29 = vld [vmem:[%s38544_s2 + $0x78] sm:$0xff] }
 0x5df   : > { %23153 = vperm.xlu1 %32080, %v23027_v29   ;;  %23158 = vperm.xlu0 %32079, %v23028_v1   ;;  %v23030_v12 = vld [vmem:[%s38544_s2 + $0x90] sm:$0xff]  ;;  %v21282_v29 = vld [vmem:[%s32302_s21 + $0xe1] sm:$0xff] }
 0x5e0   : > { %v23033_v1 = vld [vmem:[%s38544_s2 + $0xa8] sm:$0xff] }
 0x5e1   : > { %28511 = vmatmul.mubr.msk.f32.gmra.mrb[32].mxu1 %vm450_vm1, %v39317_v49  ;;  %29835 = vmatmul.mubr.msk.f32.vlgmr.msra.gmra.mrb[0].mxu0 %vm450_vm1, %v21273_v57  ;;  %v21279_v57 = vld [vmem:[%s32302_s21 + $0xc9] sm:$0xff] }
 0x5e2   : > { %28513 = vmatprep.mubr.msk.f32.mxu1 %vm450_vm1, %v36773_v19  ;;  %29837 = vmatprep.mubr.msk.f32.mxu0 %vm450_vm1, %v21274_v21  ;;  %v21277_v19 = vld [vmem:[%s32302_s21 + $0xb9] sm:$0xff]  ;;  %v21280_v21 = vld [vmem:[%s32302_s21 + $0xd1] sm:$0xff] }
 0x5e3   : > { %29931 = vmatpush3.msk.msra.mxu0 %vm643_vm0, %v37074_v63  ;;  %v21278_v63 = vld [vmem:[%s32302_s21 + $0xc1] sm:$0xff]  ;;  %23163 = vperm.xlu1 %32080, %v23029_v55   ;;  %v39320_v49 = vld [vmem:[#allocation13_spill] sm:$0xff] }
 0x5e4   : > { %23168 = vperm.xlu0 %32079, %v23030_v12   ;;  %v39323_v55 = vld [vmem:[#allocation23_spill] sm:$0xff]  ;;  %v21283_v12 = vld [vmem:[%s32302_s21 + $0xe9] sm:$0xff] }
 0x5e5   : > { %28514 = vmatmul.mubr.msk.f32.gmra.mrb[34].mxu1 %vm450_vm1, %v36776_v13  ;;  %29838 = vmatmul.mubr.msk.f32.gmra.mrb[2].mxu0 %vm450_vm1, %v21275_v27  ;;  %v39318_v13 = vld [vmem:[#allocation42_spill] sm:$0xff]  ;;  %v39321_v27 = vld [vmem:[#allocation17_spill] sm:$0xff] }
 0x5e6   : > { %28516 = vmatprep.mubr.msk.f32.mxu1 %vm450_vm1, %v36787_v14  ;;  %29840 = vmatprep.mubr.msk.f32.mxu0 %vm450_vm1, %v21276_v6  ;;  %v39319_v14 = vld [vmem:[#allocation11_spill] sm:$0xff] }
 0x5e7   : > { %23173 = vperm.xlu1 %32080, %v23031_v47   ;;  %v21281_v6 = vld [vmem:[%s32302_s21 + $0xd9] sm:$0xff] }
 0x5e8   : > { %23178 = vperm.xlu0 %32079, %v23032_v41   ;;  %v39325_v47 = vld [vmem:[#allocation27_spill] sm:$0xff] }
 0x5e9   : > { %28517 = vmatmul.mubr.msk.f32.gmra.mrb[36].mxu1 %vm450_vm1, %v39318_v13  ;;  %29841 = vmatmul.mubr.msk.f32.gmra.mrb[4].mxu0 %vm450_vm1, %v21277_v19  ;;  %v23034_v19 = vld [vmem:[%s38544_s2 + $0xb0] sm:$0xff]  ;;  %v21285_v41 = vld [vmem:[%s32302_s21 + $0xf9] sm:$0xff] }
 0x5ea   : > { %28519 = vmatprep.mubr.msk.f32.mxu1 %vm450_vm1, %v39319_v14  ;;  %29843 = vmatprep.mubr.msk.f32.mxu0 %vm450_vm1, %v21278_v63  ;;  %v39322_v63 = vld [vmem:[#allocation21_spill] sm:$0xff]  ;;  %v23035_v14 = vld [vmem:[%s38544_s2 + $0xb8] sm:$0xff] }
 0x5eb   : > { %23183 = vperm.xlu1 %32080, %v23033_v1   ;;  %v21284_v13 = vld [vmem:[%s32302_s21 + $0xf1] sm:$0xff]  ;;  %v21287_v1 = vld [vmem:[%s32302_s21 + $0x109] sm:$0xff] }
 0x5ec   : > { %23188 = vperm.xlu0 %32079, %v23034_v19   ;;  %v21288_v19 = vld [vmem:[%s32302_s21 + $0x111] sm:$0xff] }
 0x5ed   : > { %28520 = vmatmul.mubr.msk.f32.gmra.mrb[38].mxu1 %vm450_vm1, %v39320_v49  ;;  %29844 = vmatmul.mubr.msk.f32.gmra.mrb[6].mxu0 %vm450_vm1, %v21279_v57  ;;  %v23036_v57 = vld [vmem:[%s38544_s2 + $0xc0] sm:$0xff] }
 0x5ee   : > { %28522 = vmatprep.mubr.msk.f32.mxu1 %vm450_vm1, %v39321_v27  ;;  %29846 = vmatprep.mubr.msk.f32.mxu0 %vm450_vm1, %v21280_v21  ;;  %v39324_v21 = vld [vmem:[#allocation25_spill] sm:$0xff]  ;;  %v21286_v49 = vld [vmem:[%s32302_s21 + $0x101] sm:$0xff] }
 0x5ef   : > { %23193 = vperm.xlu1 %32080, %v23035_v14   ;;  %v23037_v27 = vld [vmem:[%s38544_s2 + $0xc8] sm:$0xff]  ;;  %v23042_v14 = vld [vmem:[%s38544_s2 + $0xf0] sm:$0xff] }
 0x5f0   : > { %23198 = vperm.xlu0 %32079, %v23036_v57   ;;  %v23043_v57 = vld [vmem:[%s38544_s2 + $0xf8] sm:$0xff] }
 0x5f1   : > { %28523 = vmatmul.mubr.msk.f32.gmra.mrb[40].mxu1 %vm450_vm1, %v39322_v63  ;;  %29847 = vmatmul.mubr.msk.f32.gmra.mrb[8].mxu0 %vm450_vm1, %v21281_v6  ;;  %v23038_v6 = vld [vmem:[%s38544_s2 + $0xd0] sm:$0xff]  ;;  %v23039_v63 = vld [vmem:[%s38544_s2 + $0xd8] sm:$0xff] }
 0x5f2   : > { %28525 = vmatprep.mubr.msk.f32.mxu1 %vm450_vm1, %v39323_v55  ;;  %29849 = vmatprep.mubr.msk.f32.mxu0 %vm450_vm1, %v21282_v29  ;;  %v39326_v29 = vld [vmem:[#allocation29_spill] sm:$0xff]  ;;  %v23040_v55 = vld [vmem:[%s38544_s2 + $0xe0] sm:$0xff] }
 0x5f3   : > { %23203 = vperm.xlu1 %32080, %v23037_v27   ;;  %v23063_v27 = vld [vmem:[%s38544_s2 + $0x198] sm:$0xff] }
 0x5f4   : > { %23208 = vperm.xlu0 %32079, %v23038_v6   ;;  %v23064_v6 = vld [vmem:[%s38544_s2 + $0x1a0] sm:$0xff] }
 0x5f5   : > { %28526 = vmatmul.mubr.msk.f32.gmra.mrb[42].mxu1 %vm450_vm1, %v39324_v21  ;;  %29850 = vmatmul.mubr.msk.f32.gmra.mrb[10].mxu0 %vm450_vm1, %v21283_v12  ;;  %v21290_v12 = vld [vmem:[%s32302_s21 + $0x121] sm:$0xff] }
 0x5f6   : > { %28528 = vmatprep.mubr.msk.f32.mxu1 %vm450_vm1, %v39325_v47  ;;  %29852 = vmatprep.mubr.msk.f32.mxu0 %vm450_vm1, %v21284_v13  ;;  %v23041_v13 = vld [vmem:[%s38544_s2 + $0xe8] sm:$0xff]  ;;  %v23044_v21 = vld [vmem:[%s38544_s2 + $0x100] sm:$0xff] }
 0x5f7   : > { %23213 = vperm.xlu1 %32080, %v23039_v63   ;;  %v23045_v47 = vld [vmem:[%s38544_s2 + $0x108] sm:$0xff]  ;;  %v23068_v63 = vld [vmem:[%s38544_s2 + $0x1c0] sm:$0xff] }
 0x5f8   : > { %23218 = vperm.xlu0 %32079, %v23040_v55   ;;  %v37755_v55 = vld [vmem:[%s32302_s21 + $0x201] sm:$0xff] }
 0x5f9   : > { %28529 = vmatmul.mubr.msk.f32.gmra.mrb[44].mxu1 %vm450_vm1, %v39326_v29  ;;  %29853 = vmatmul.mubr.msk.f32.gmra.mrb[12].mxu0 %vm450_vm1, %v21285_v41  ;;  %v23046_v41 = vld [vmem:[%s38544_s2 + $0x110] sm:$0xff]  ;;  %v23065_v29 = vld [vmem:[%s38544_s2 + $0x1a8] sm:$0xff] }
 0x5fa   : > { %28531 = vmatprep.mubr.msk.f32.mxu1 %vm450_vm1, %v36867_v62  ;;  %29855 = vmatprep.mubr.msk.f32.mxu0 %vm450_vm1, %v21286_v49  ;;  %v21289_v62 = vld [vmem:[%s32302_s21 + $0x119] sm:$0xff]  ;;  %v23062_v49 = vld [vmem:[%s38544_s2 + $0x190] sm:$0xff] }
 0x5fb   : > { %23223 = vperm.xlu1 %32080, %v23041_v13   ;;  %v10394_v13 = vld [vmem:[%s32302_s21 + $0xc8] sm:$0xff] }
 0x5fc   : > { %23228 = vperm.xlu0 %32079, %v23042_v14   ;;  %v37775_v14 = vld [vmem:[%s32302_s21 + $0x211] sm:$0xff] }
 0x5fd   : > { %28532 = vmatmul.mubr.msk.f32.gmra.mrb[46].mxu1 %vm450_vm1, %v36871_v30  ;;  %29856 = vmatmul.mubr.msk.f32.gmra.mrb[14].mxu0 %vm450_vm1, %v21287_v1  ;;  %v21291_v30 = vld [vmem:[%s32302_s21 + $0x129] sm:$0xff] }
 0x5fe   : > { %28534 = vmatprep.mubr.msk.f32.mxu1 %vm450_vm1, %v36881_v52  ;;  %29858 = vmatprep.mubr.msk.f32.mxu0 %vm450_vm1, %v21288_v19  ;;  %v21292_v52 = vld [vmem:[%s32302_s21 + $0x131] sm:$0xff] }
 0x5ff   : > { %23233 = vperm.xlu1 %32080, %v23043_v57   ;;  %v23066_v1 = vld [vmem:[%s38544_s2 + $0x1b0] sm:$0xff]  ;;  %v23067_v19 = vld [vmem:[%s38544_s2 + $0x1b8] sm:$0xff] }
 0x600   : > { %23238 = vperm.xlu0 %32079, %v23044_v21   ;;  %v37791_v57 = vld [vmem:[%s32302_s21 + $0x219] sm:$0xff] }
 0x601   : > { %28535 = vmatmul.mubr.msk.f32.gmra.mrb[48].mxu1 %vm450_vm1, %v36885_v43  ;;  %29859 = vmatmul.mubr.msk.f32.gmra.mrb[16].mxu0 %vm450_vm1, %v21289_v62  ;;  %v21293_v43 = vld [vmem:[%s32302_s21 + $0x139] sm:$0xff]  ;;  %v23069_v62 = vld [vmem:[%s38544_s2 + $0x1c8] sm:$0xff] }
 0x602   : > { %28537 = vmatprep.mubr.msk.f32.mxu1 %vm450_vm1, %v36894_v10  ;;  %29861 = vmatprep.mubr.msk.f32.mxu0 %vm450_vm1, %v21290_v12  ;;  %v21294_v10 = vld [vmem:[%s32302_s21 + $0x141] sm:$0xff]  ;;  %v23070_v12 = vld [vmem:[%s38544_s2 + $0x1d0] sm:$0xff]  ;;  %v10396_v21 = vld [vmem:[%s32302_s21 + $0xd8] sm:$0xff] }
 0x603   : > { %23243 = vperm.xlu1 %32080, %v23045_v47   ;;  %v23074_v47 = vld [vmem:[%s38544_s2 + $0x1f0] sm:$0xff] }
 0x604   : > { %23248 = vperm.xlu0 %32079, %v23046_v41   ;;  %v10397_v41 = vld [vmem:[%s32302_s21 + $0xe0] sm:$0xff] }
 0x605   : > { %28538 = vmatmul.mubr.msk.f32.gmra.mrb[50].mxu1 %vm450_vm1, %v36897_v51  ;;  %29862 = vmatmul.mubr.msk.f32.gmra.mrb[18].mxu0 %vm450_vm1, %v21291_v30  ;;  %v23047_v51 = vld [vmem:[%s38544_s2 + $0x118] sm:$0xff] }
 0x606   : > { %28540 = vmatprep.mubr.msk.f32.mxu1 %vm450_vm1, %v36908_v4  ;;  %29864 = vmatprep.mubr.msk.f32.mxu0 %vm450_vm1, %v21292_v52  ;;  %v23048_v4 = vld [vmem:[%s38544_s2 + $0x120] sm:$0xff]  ;;  %v23071_v30 = vld [vmem:[%s38544_s2 + $0x1d8] sm:$0xff]  ;;  %v10395_v52 = vld [vmem:[%s32302_s21 + $0xd0] sm:$0xff] }
 0x607   : > { %23253 = vperm.xlu1 %32080, %v23047_v51   ;;  %v37811_v51 = vld [vmem:[%s32302_s21 + $0x229] sm:$0xff] }
 0x608   : > { %23258 = vperm.xlu0 %32079, %v23048_v4   ;;  %v10398_v4 = vld [vmem:[%s32302_s21 + $0xe8] sm:$0xff] }
 0x609   : > { %28541 = vmatmul.mubr.msk.f32.gmra.mrb[52].mxu1 %vm450_vm1, %v36911_v40  ;;  %29865 = vmatmul.mubr.msk.f32.gmra.mrb[20].mxu0 %vm450_vm1, %v21293_v43  ;;  %v23049_v40 = vld [vmem:[%s38544_s2 + $0x128] sm:$0xff] }
 0x60a   : > { %28543 = vmatprep.mubr.msk.f32.mxu1 %vm450_vm1, %v36922_v24  ;;  %29867 = vmatprep.mubr.msk.f32.mxu0 %vm450_vm1, %v21294_v10  ;;  %v23050_v24 = vld [vmem:[%s38544_s2 + $0x130] sm:$0xff]  ;;  %v37795_v43 = vld [vmem:[%s32302_s21 + $0x221] sm:$0xff] }
 0x60b   : > { %23263 = vperm.xlu1 %32080, %v23049_v40   ;;  %v23073_v10 = vld [vmem:[%s38544_s2 + $0x1e8] sm:$0xff]  ;;  %v37815_v40 = vld [vmem:[%s32302_s21 + $0x231] sm:$0xff] }
 0x60c   : > { %23268 = vperm.xlu0 %32079, %v23050_v24   ;;  %v23075_v24 = vld [vmem:[%s38544_s2 + $0x1f8] sm:$0xff] }
 0x60d   : > { %28544 = vmatmul.mubr.msk.f32.gmra.mrb[54].mxu1 %vm450_vm1, %v36925_v18  ;;  %29868 = vmatmul.mubr.msk.f32.gmra.mrb[22].mxu0 %vm450_vm1, %v37032_v36  ;;  %v23051_v18 = vld [vmem:[%s38544_s2 + $0x138] sm:$0xff] }
 0x60e   : > { %28546 = vmatprep.mubr.msk.f32.mxu1 %vm450_vm1, %v36936_v16  ;;  %29870 = vmatprep.mubr.msk.f32.mxu0 %vm450_vm1, %v37035_v33  ;;  %v23052_v16 = vld [vmem:[%s38544_s2 + $0x140] sm:$0xff]  ;;  %v23055_v36 = vld [vmem:[%s38544_s2 + $0x158] sm:$0xff] }
 0x60f   : > { %23273 = vperm.xlu1 %32080, %v23051_v18   ;;  %v23056_v33 = vld [vmem:[%s38544_s2 + $0x160] sm:$0xff]  ;;  %v10399_v18 = vld [vmem:[%s32302_s21 + $0xf0] sm:$0xff] }
 0x610   : > { %23278 = vperm.xlu0 %32079, %v23052_v16   ;;  %v37828_v16 = vld [vmem:[%s32302_s21 + $0x239] sm:$0xff] }
 0x611   : > { %28547 = vmatmul.mubr.msk.f32.gmra.mrb[56].mxu1 %vm450_vm1, %v36939_v23  ;;  %29871 = vmatmul.mubr.msk.f32.gmra.mrb[24].mxu0 %vm450_vm1, %v37046_v20  ;;  %v23053_v23 = vld [vmem:[%s38544_s2 + $0x148] sm:$0xff]  ;;  %v10379_v20 = vld [vmem:[%s32302_s21 + $0x50] sm:$0xff] }
 0x612   : > { %28549 = vmatprep.mubr.msk.f32.mxu1 %vm450_vm1, %v36950_v26  ;;  %29873 = vmatprep.mubr.msk.f32.mxu0 %vm450_vm1, %v37049_v50  ;;  %v23054_v26 = vld [vmem:[%s38544_s2 + $0x150] sm:$0xff]  ;;  %v10380_v50 = vld [vmem:[%s32302_s21 + $0x58] sm:$0xff] }
 0x613   : > { %23283 = vperm.xlu1 %32080, %v23053_v23   ;;  %v10400_v23 = vld [vmem:[%s32302_s21 + $0xf8] sm:$0xff] }
 0x614   : > { %23288 = vperm.xlu0 %32079, %v23054_v26   ;;  %v37832_v26 = vld [vmem:[%s32302_s21 + $0x241] sm:$0xff] }
 0x615   : > { %28550 = vmatmul.mubr.msk.f32.gmra.mrb[58].mxu1 %vm450_vm1, %v36953_v58  ;;  %29874 = vmatmul.mubr.msk.f32.gmra.mrb[26].mxu0 %vm450_vm1, %v37062_v9  ;;  %v39327_v58 = vld [vmem:[#allocation31_spill] sm:$0xff]  ;;  %v23057_v9 = vld [vmem:[%s38544_s2 + $0x168] sm:$0xff] }
 0x616   : > { %28552 = vmatprep.mubr.msk.f32.mxu1 %vm450_vm1, %v36964_v32  ;;  %29876 = vmatprep.mubr.msk.f32.mxu0 %vm450_vm1, %v37065_v59  ;;  %v10378_v32 = vld [vmem:[%s32302_s21 + $0x48] sm:$0xff]  ;;  %v23058_v59 = vld [vmem:[%s38544_s2 + $0x170] sm:$0xff] }
 0x617   : > { %23293 = vperm.xlu1 %32080, %v23055_v36   ;;  %v10402_v36 = vld [vmem:[%s32302_s21 + $0x108] sm:$0xff] }
 0x618   : > { %23298 = vperm.xlu0 %32079, %v23056_v33   ;;  %v21328_v33 = vld [vmem:[%s32302_s21 + $0x251] sm:$0xff] }
 0x619   : > { %28553 = vmatmul.mubr.msk.f32.gmra.mrb[60].mxu1 %vm450_vm1, %v36967_v34  ;;  %29877 = vmatmul.mubr.msk.f32.gmra.mrb[28].mxu0 %vm450_vm1, %v37081_v44  ;;  %v39328_v34 = vld [vmem:[#allocation33_spill] sm:$0xff]  ;;  %v10381_v44 = vld [vmem:[%s32302_s21 + $0x60] sm:$0xff] }
 0x61a   : > { %28555 = vmatprep.mubr.msk.f32.mxu1 %vm450_vm1, %v39327_v58  ;;  %29879 = vmatprep.mubr.msk.f32.mxu0 %vm450_vm1, %v37084_v38  ;;  %v10382_v38 = vld [vmem:[%s32302_s21 + $0x68] sm:$0xff]  ;;  %v10401_v58 = vld [vmem:[%s32302_s21 + $0x100] sm:$0xff] }
 0x61b   : > { %23303 = vperm.xlu1 %32080, %v23057_v9   ;;  %v21330_v9 = vld [vmem:[%s32302_s21 + $0x261] sm:$0xff] }
 0x61c   : > { %23308 = vperm.xlu0 %32079, %v23058_v59   ;;  %v10405_v59 = vld [vmem:[%s32302_s21 + $0x120] sm:$0xff] }
 0x61d   : > { %28556 = vmatmul.mubr.msk.f32.gmra.mrb[62].mxu1 %vm450_vm1, %v39328_v34  ;;  %29880 = vmatmul.mubr.msk.f32.gmra.mrb[30].mxu0 %vm450_vm1, %v37097_v37  ;;  %v23059_v37 = vld [vmem:[%s38544_s2 + $0x178] sm:$0xff]  ;;  %v10403_v34 = vld [vmem:[%s32302_s21 + $0x110] sm:$0xff] }
 0x61e   : > { %28560 = vmatprep.mubr.msk.f32.mxu1 %vm450_vm1, %v10378_v32  ;;  %29882 = vmatprep.mubr.msk.f32.mxu0 %vm450_vm1, %v37100_v42  ;;  %v23060_v42 = vld [vmem:[%s38544_s2 + $0x180] sm:$0xff]  ;;  %v21327_v32 = vld [vmem:[%s32302_s21 + $0x249] sm:$0xff] }
 0x61f   : > { %23313 = vperm.xlu1 %32080, %v23059_v37   ;;  %v21332_v37 = vld [vmem:[%s32302_s21 + $0x271] sm:$0xff] }
 0x620   : > { %23318 = vperm.xlu0 %32079, %v23060_v42   ;;  %v10407_v42 = vld [vmem:[%s32302_s21 + $0x130] sm:$0xff] }
 0x621   : > { %28561 = vmatmul.mubr.msk.f32.vlgmr.msra.gmra.mrb[0].mxu1 %vm450_vm1, %v10379_v20  ;;  %29883 = vmatmul.mubr.msk.f32.gmra.mrb[32].mxu0 %vm450_vm1, %v37111_v7  ;;  %v10383_v7 = vld [vmem:[%s32302_s21 + $0x70] sm:$0xff]  ;;  %v21329_v20 = vld [vmem:[%s32302_s21 + $0x259] sm:$0xff] }
 0x622   : > { %30029 = vmatpush3.msk.msra.mxu1 %vm643_vm0, %v37252_v61  ;;  %28563 = vmatprep.mubr.msk.f32.mxu1 %vm450_vm1, %v10380_v50  ;;  %v23061_v61 = vld [vmem:[%s38544_s2 + $0x188] sm:$0xff]  ;;  %v10404_v50 = vld [vmem:[%s32302_s21 + $0x118] sm:$0xff] }
 0x623   : > { %29885 = vmatprep.mubr.msk.f32.mxu0 %vm450_vm1, %v37114_v46  ;;  %v10384_v46 = vld [vmem:[%s32302_s21 + $0x78] sm:$0xff]  ;;  %23323 = vperm.xlu1 %32080, %v23061_v61   ;;  %v21334_v61 = vld [vmem:[%s32302_s21 + $0x281] sm:$0xff] }
 0x624   : > { %23328 = vperm.xlu0 %32079, %v23062_v49   ;;  %v10409_v49 = vld [vmem:[%s32302_s21 + $0x140] sm:$0xff] }
 0x625   : > { %28564 = vmatmul.mubr.msk.f32.gmra.mrb[2].mxu1 %vm450_vm1, %v10381_v44  ;;  %29886 = vmatmul.mubr.msk.f32.gmra.mrb[34].mxu0 %vm450_vm1, %v37125_v48  ;;  %v10385_v48 = vld [vmem:[%s32302_s21 + $0x80] sm:$0xff]  ;;  %v21331_v44 = vld [vmem:[%s32302_s21 + $0x269] sm:$0xff] }
 0x626   : > { %28566 = vmatprep.mubr.msk.f32.mxu1 %vm450_vm1, %v10382_v38  ;;  %29888 = vmatprep.mubr.msk.f32.mxu0 %vm450_vm1, %v37128_v54  ;;  %v10386_v54 = vld [vmem:[%s32302_s21 + $0x88] sm:$0xff] }
 0x627   : > { %23333 = vperm.xlu1 %32080, %v23063_v27   ;;  %v10406_v38 = vld [vmem:[%s32302_s21 + $0x128] sm:$0xff]  ;;  %v22110_v27 = vld [vmem:[%s32302_s21 + $0x92] sm:$0xff] }
 0x628   : > { %23338 = vperm.xlu0 %32079, %v23064_v6   ;;  %v10411_v6 = vld [vmem:[%s32302_s21 + $0x150] sm:$0xff] }
 0x629   : > { %28567 = vmatmul.mubr.msk.f32.gmra.mrb[4].mxu1 %vm450_vm1, %v10383_v7  ;;  %29889 = vmatmul.mubr.msk.f32.gmra.mrb[36].mxu0 %vm450_vm1, %v37139_v28  ;;  %v10387_v28 = vld [vmem:[%s32302_s21 + $0x90] sm:$0xff]  ;;  %v21333_v7 = vld [vmem:[%s32302_s21 + $0x279] sm:$0xff] }
 0x62a   : > { %28569 = vmatprep.mubr.msk.f32.mxu1 %vm450_vm1, %v10384_v46  ;;  %29891 = vmatprep.mubr.msk.f32.mxu0 %vm450_vm1, %v37142_v2  ;;  %v10388_v2 = vld [vmem:[%s32302_s21 + $0x98] sm:$0xff] }
 0x62b   : > { %23343 = vperm.xlu1 %32080, %v23065_v29   ;;  %v10408_v46 = vld [vmem:[%s32302_s21 + $0x138] sm:$0xff]  ;;  %v22112_v29 = vld [vmem:[%s32302_s21 + $0xa2] sm:$0xff] }
 0x62c   : > { %23348 = vperm.xlu0 %32079, %v23066_v1   ;;  %v10413_v1 = vld [vmem:[%s32302_s21 + $0x160] sm:$0xff] }
 0x62d   : > { %28570 = vmatmul.mubr.msk.f32.gmra.mrb[6].mxu1 %vm450_vm1, %v10385_v48  ;;  %29892 = vmatmul.mubr.msk.f32.gmra.mrb[38].mxu0 %vm450_vm1, %v37153_v39  ;;  %v10389_v39 = vld [vmem:[%s32302_s21 + $0xa0] sm:$0xff]  ;;  %v21335_v48 = vld [vmem:[%s32302_s21 + $0x289] sm:$0xff] }
 0x62e   : > { %28572 = vmatprep.mubr.msk.f32.mxu1 %vm450_vm1, %v10386_v54  ;;  %29894 = vmatprep.mubr.msk.f32.mxu0 %vm450_vm1, %v37156_v0  ;;  %v10390_v0 = vld [vmem:[%s32302_s21 + $0xa8] sm:$0xff] }
 0x62f   : > { %23353 = vperm.xlu1 %32080, %v23067_v19   ;;  %v10410_v54 = vld [vmem:[%s32302_s21 + $0x148] sm:$0xff]  ;;  %v22114_v19 = vld [vmem:[%s32302_s21 + $0xb2] sm:$0xff] }
 0x630   : > { %23358 = vperm.xlu0 %32079, %v23068_v63   ;;  %v10415_v63 = vld [vmem:[%s32302_s21 + $0x170] sm:$0xff] }
 0x631   : > { %28573 = vmatmul.mubr.msk.f32.gmra.mrb[8].mxu1 %vm450_vm1, %v10387_v28  ;;  %29895 = vmatmul.mubr.msk.f32.gmra.mrb[40].mxu0 %vm450_vm1, %v37167_v35  ;;  %v10391_v35 = vld [vmem:[%s32302_s21 + $0xb0] sm:$0xff]  ;;  %v22111_v28 = vld [vmem:[%s32302_s21 + $0x9a] sm:$0xff] }
 0x632   : > { %28575 = vmatprep.mubr.msk.f32.mxu1 %vm450_vm1, %v10388_v2  ;;  %29897 = vmatprep.mubr.msk.f32.mxu0 %vm450_vm1, %v37170_v31  ;;  %v10392_v31 = vld [vmem:[%s32302_s21 + $0xb8] sm:$0xff] }
 0x633   : > { %23363 = vperm.xlu1 %32080, %v23069_v62   ;;  %v10412_v2 = vld [vmem:[%s32302_s21 + $0x158] sm:$0xff]  ;;  %v22116_v62 = vld [vmem:[%s32302_s21 + $0xc2] sm:$0xff] }
 0x634   : > { %23368 = vperm.xlu0 %32079, %v23070_v12   ;;  %v10417_v12 = vld [vmem:[%s32302_s21 + $0x180] sm:$0xff] }
 0x635   : > { %28576 = vmatmul.mubr.msk.f32.gmra.mrb[10].mxu1 %vm450_vm1, %v10389_v39  ;;  %29898 = vmatmul.mubr.msk.f32.gmra.mrb[42].mxu0 %vm450_vm1, %v37181_v15  ;;  %v10393_v15 = vld [vmem:[%s32302_s21 + $0xc0] sm:$0xff]  ;;  %v22113_v39 = vld [vmem:[%s32302_s21 + $0xaa] sm:$0xff] }
 0x636   : > { %28578 = vmatprep.mubr.msk.f32.mxu1 %vm450_vm1, %v10390_v0  ;;  %29900 = vmatprep.mubr.msk.f32.mxu0 %vm450_vm1, %v37184_v3  ;;  %v37771_v3 = vld [vmem:[%s32302_s21 + $0x209] sm:$0xff] }
 0x637   : > { %23373 = vperm.xlu1 %32080, %v23071_v30   ;;  %v10414_v0 = vld [vmem:[%s32302_s21 + $0x168] sm:$0xff]  ;;  %v22118_v30 = vld [vmem:[%s32302_s21 + $0xd2] sm:$0xff] }
 0x639   : > { %28579 = vmatmul.mubr.msk.f32.gmra.mrb[12].mxu1 %vm450_vm1, %v10391_v35  ;;  %29901 = vmatmul.mubr.msk.f32.gmra.mrb[44].mxu0 %vm450_vm1, %v37195_v53  ;;  %v23072_v53 = vld [vmem:[%s38544_s2 + $0x1e0] sm:$0xff] }
 0x63a   : > { %28581 = vmatprep.mubr.msk.f32.mxu1 %vm450_vm1, %v10392_v31  ;;  %29903 = vmatprep.mubr.msk.f32.mxu0 %vm450_vm1, %v37755_v55  ;;  %v22115_v35 = vld [vmem:[%s32302_s21 + $0xba] sm:$0xff] }
 0x63b   : > { %23378 = vperm.xlu0 %32079, %v23072_v53   ;;  %23383 = vperm.xlu1 %32080, %v23073_v10   ;;  %v10416_v31 = vld [vmem:[%s32302_s21 + $0x178] sm:$0xff]  ;;  %v10419_v53 = vld [vmem:[%s32302_s21 + $0x190] sm:$0xff]  ;;  %v22120_v10 = vld [vmem:[%s32302_s21 + $0xe2] sm:$0xff] }
 0x63d   : > { %28582 = vmatmul.mubr.msk.f32.gmra.mrb[14].mxu1 %vm450_vm1, %v10393_v15  ;;  %29904 = vmatmul.mubr.msk.f32.gmra.mrb[46].mxu0 %vm450_vm1, %v37771_v3  ;;  %v22117_v15 = vld [vmem:[%s32302_s21 + $0xca] sm:$0xff] }
 0x63e   : > { %28584 = vmatprep.mubr.msk.f32.mxu1 %vm450_vm1, %v10394_v13  ;;  %29906 = vmatprep.mubr.msk.f32.mxu0 %vm450_vm1, %v37775_v14  ;;  %v10418_v13 = vld [vmem:[%s32302_s21 + $0x188] sm:$0xff] }
 0x63f   : > { %23388 = vperm.xlu0 %32079, %v23074_v47   ;;  %23393 = vperm.xlu1 %32080, %v23075_v24   ;;  %v10421_v47 = vld [vmem:[%s32302_s21 + $0x1a0] sm:$0xff]  ;;  %v22122_v24 = vld [vmem:[%s32302_s21 + $0xf2] sm:$0xff] }
 0x641   : > { %28585 = vmatmul.mubr.msk.f32.gmra.mrb[16].mxu1 %vm450_vm1, %v10395_v52  ;;  %29907 = vmatmul.mubr.msk.f32.gmra.mrb[48].mxu0 %vm450_vm1, %v37791_v57  ;;  %v22119_v52 = vld [vmem:[%s32302_s21 + $0xda] sm:$0xff] }
 0x642   : > { %28587 = vmatprep.mubr.msk.f32.mxu1 %vm450_vm1, %v10396_v21  ;;  %29909 = vmatprep.mubr.msk.f32.mxu0 %vm450_vm1, %v37795_v43  ;;  %v10420_v21 = vld [vmem:[%s32302_s21 + $0x198] sm:$0xff] }
 0x645   : > { %28588 = vmatmul.mubr.msk.f32.gmra.mrb[18].mxu1 %vm450_vm1, %v10397_v41  ;;  %29910 = vmatmul.mubr.msk.f32.gmra.mrb[50].mxu0 %vm450_vm1, %v37811_v51  ;;  %v22121_v41 = vld [vmem:[%s32302_s21 + $0xea] sm:$0xff] }
 0x646   : > { %28590 = vmatprep.mubr.msk.f32.mxu1 %vm450_vm1, %v10398_v4  ;;  %29912 = vmatprep.mubr.msk.f32.mxu0 %vm450_vm1, %v37815_v40  ;;  %v10422_v4 = vld [vmem:[%s32302_s21 + $0x1a8] sm:$0xff] }
 0x649   : > { %28591 = vmatmul.mubr.msk.f32.gmra.mrb[20].mxu1 %vm450_vm1, %v10399_v18  ;;  %29913 = vmatmul.mubr.msk.f32.gmra.mrb[52].mxu0 %vm450_vm1, %v37828_v16  ;;  %v10423_v18 = vld [vmem:[%s32302_s21 + $0x1b0] sm:$0xff] }
 0x64a   : > { %28593 = vmatprep.mubr.msk.f32.mxu1 %vm450_vm1, %v10400_v23  ;;  %29915 = vmatprep.mubr.msk.f32.mxu0 %vm450_vm1, %v37832_v26  ;;  %v22123_v23 = vld [vmem:[%s32302_s21 + $0xfa] sm:$0xff] }
 0x64d   : > { %28594 = vmatmul.mubr.msk.f32.gmra.mrb[22].mxu1 %vm450_vm1, %v10401_v58  ;;  %29916 = vmatmul.mubr.msk.f32.gmra.mrb[54].mxu0 %vm450_vm1, %v21327_v32  ;;  %v10424_v58 = vld [vmem:[%s32302_s21 + $0x1b8] sm:$0xff]  ;;  %v22124_v32 = vld [vmem:[%s32302_s21 + $0x102] sm:$0xff] }
 0x64e   : > { %28596 = vmatprep.mubr.msk.f32.mxu1 %vm450_vm1, %v10402_v36  ;;  %29918 = vmatprep.mubr.msk.f32.mxu0 %vm450_vm1, %v21328_v33  ;;  %v10425_v36 = vld [vmem:[%s32302_s21 + $0x1c0] sm:$0xff]  ;;  %v22125_v33 = vld [vmem:[%s32302_s21 + $0x10a] sm:$0xff] }
 0x651   : > { %28597 = vmatmul.mubr.msk.f32.gmra.mrb[24].mxu1 %vm450_vm1, %v10403_v34  ;;  %29919 = vmatmul.mubr.msk.f32.gmra.mrb[56].mxu0 %vm450_vm1, %v21329_v20  ;;  %v10426_v34 = vld [vmem:[%s32302_s21 + $0x1c8] sm:$0xff]  ;;  %v22126_v20 = vld [vmem:[%s32302_s21 + $0x112] sm:$0xff] }
 0x652   : > { %28599 = vmatprep.mubr.msk.f32.mxu1 %vm450_vm1, %v10404_v50  ;;  %29921 = vmatprep.mubr.msk.f32.mxu0 %vm450_vm1, %v21330_v9  ;;  %v10427_v50 = vld [vmem:[%s32302_s21 + $0x1d0] sm:$0xff]  ;;  %v22127_v9 = vld [vmem:[%s32302_s21 + $0x11a] sm:$0xff] }
 0x655   : > { %28600 = vmatmul.mubr.msk.f32.gmra.mrb[26].mxu1 %vm450_vm1, %v10405_v59  ;;  %29922 = vmatmul.mubr.msk.f32.gmra.mrb[58].mxu0 %vm450_vm1, %v21331_v44  ;;  %v10428_v59 = vld [vmem:[%s32302_s21 + $0x1d8] sm:$0xff]  ;;  %v22128_v44 = vld [vmem:[%s32302_s21 + $0x122] sm:$0xff] }
 0x656   : > { %28602 = vmatprep.mubr.msk.f32.mxu1 %vm450_vm1, %v10406_v38  ;;  %29924 = vmatprep.mubr.msk.f32.mxu0 %vm450_vm1, %v21332_v37  ;;  %v10429_v38 = vld [vmem:[%s32302_s21 + $0x1e0] sm:$0xff]  ;;  %v22129_v37 = vld [vmem:[%s32302_s21 + $0x12a] sm:$0xff] }
 0x659   : > { %28603 = vmatmul.mubr.msk.f32.gmra.mrb[28].mxu1 %vm450_vm1, %v10407_v42  ;;  %29925 = vmatmul.mubr.msk.f32.gmra.mrb[60].mxu0 %vm450_vm1, %v21333_v7  ;;  %v10430_v42 = vld [vmem:[%s32302_s21 + $0x1e8] sm:$0xff]  ;;  %v22130_v7 = vld [vmem:[%s32302_s21 + $0x132] sm:$0xff] }
 0x65a   : > { %28605 = vmatprep.mubr.msk.f32.mxu1 %vm450_vm1, %v10408_v46  ;;  %29927 = vmatprep.mubr.msk.f32.mxu0 %vm450_vm1, %v21334_v61  ;;  %v10431_v46 = vld [vmem:[%s32302_s21 + $0x1f0] sm:$0xff]  ;;  %v22131_v61 = vld [vmem:[%s32302_s21 + $0x13a] sm:$0xff] }
 0x65d   : > { %28606 = vmatmul.mubr.msk.f32.gmra.mrb[30].mxu1 %vm450_vm1, %v10409_v49  ;;  %29928 = vmatmul.mubr.msk.f32.gmra.mrb[62].mxu0 %vm450_vm1, %v21335_v48  ;;  %v10432_v49 = vld [vmem:[%s32302_s21 + $0x1f8] sm:$0xff]  ;;  %v22132_v48 = vld [vmem:[%s32302_s21 + $0x142] sm:$0xff] }
 0x65e   : > { %28608 = vmatprep.mubr.msk.f32.mxu1 %vm450_vm1, %v10410_v54  ;;  %29932 = vmatprep.mubr.msk.f32.mxu0 %vm450_vm1, %v22110_v27  ;;  %v22133_v54 = vld [vmem:[%s32302_s21 + $0x14a] sm:$0xff]  ;;  %v22134_v27 = vld [vmem:[%s32302_s21 + $0x152] sm:$0xff] }
 0x661   : > { %28609 = vmatmul.mubr.msk.f32.gmra.mrb[32].mxu1 %vm450_vm1, %v10411_v6  ;;  %29933 = vmatmul.mubr.msk.f32.vlgmr.msra.gmra.mrb[0].mxu0 %vm450_vm1, %v22111_v28  ;;  %v22135_v6 = vld [vmem:[%s32302_s21 + $0x15a] sm:$0xff]  ;;  %v22136_v28 = vld [vmem:[%s32302_s21 + $0x162] sm:$0xff] }
 0x662   : > { %28611 = vmatprep.mubr.msk.f32.mxu1 %vm450_vm1, %v10412_v2  ;;  %29935 = vmatprep.mubr.msk.f32.mxu0 %vm450_vm1, %v22112_v29  ;;  %v22138_v2 = vld [vmem:[%s32302_s21 + $0x172] sm:$0xff] }
 0x663   : > { %v11250_v29 = vld [vmem:[%s32302_s21 + $0x159] sm:$0xff] }
 0x665   : > { %28612 = vmatmul.mubr.msk.f32.gmra.mrb[34].mxu1 %vm450_vm1, %v10413_v1  ;;  %29936 = vmatmul.mubr.msk.f32.gmra.mrb[2].mxu0 %vm450_vm1, %v22113_v39  ;;  %v22144_v1 = vld [vmem:[%s32302_s21 + $0x1a2] sm:$0xff]  ;;  %v22145_v39 = vld [vmem:[%s32302_s21 + $0x1aa] sm:$0xff] }
 0x666   : > { %28614 = vmatprep.mubr.msk.f32.mxu1 %vm450_vm1, %v10414_v0  ;;  %29938 = vmatprep.mubr.msk.f32.mxu0 %vm450_vm1, %v22114_v19  ;;  %v11252_v0 = vld [vmem:[%s32302_s21 + $0x169] sm:$0xff]  ;;  %v22146_v19 = vld [vmem:[%s32302_s21 + $0x1b2] sm:$0xff] }
 0x669   : > { %28615 = vmatmul.mubr.msk.f32.gmra.mrb[36].mxu1 %vm450_vm1, %v10415_v63  ;;  %29939 = vmatmul.mubr.msk.f32.gmra.mrb[4].mxu0 %vm450_vm1, %v22115_v35  ;;  %v11253_v63 = vld [vmem:[%s32302_s21 + $0x171] sm:$0xff]  ;;  %v22147_v35 = vld [vmem:[%s32302_s21 + $0x1ba] sm:$0xff] }
 0x66a   : > { %28617 = vmatprep.mubr.msk.f32.mxu1 %vm450_vm1, %v10416_v31  ;;  %29941 = vmatprep.mubr.msk.f32.mxu0 %vm450_vm1, %v22116_v62  ;;  %v11254_v31 = vld [vmem:[%s32302_s21 + $0x179] sm:$0xff]  ;;  %v22148_v62 = vld [vmem:[%s32302_s21 + $0x1c2] sm:$0xff] }
 0x66d   : > { %28618 = vmatmul.mubr.msk.f32.gmra.mrb[38].mxu1 %vm450_vm1, %v10417_v12  ;;  %29942 = vmatmul.mubr.msk.f32.gmra.mrb[6].mxu0 %vm450_vm1, %v22117_v15  ;;  %v11255_v12 = vld [vmem:[%s32302_s21 + $0x181] sm:$0xff]  ;;  %v22149_v15 = vld [vmem:[%s32302_s21 + $0x1ca] sm:$0xff] }
 0x66e   : > { %28620 = vmatprep.mubr.msk.f32.mxu1 %vm450_vm1, %v10418_v13  ;;  %29944 = vmatprep.mubr.msk.f32.mxu0 %vm450_vm1, %v22118_v30  ;;  %v11256_v13 = vld [vmem:[%s32302_s21 + $0x189] sm:$0xff]  ;;  %v22150_v30 = vld [vmem:[%s32302_s21 + $0x1d2] sm:$0xff] }
 0x671   : > { %28621 = vmatmul.mubr.msk.f32.gmra.mrb[40].mxu1 %vm450_vm1, %v10419_v53  ;;  %29945 = vmatmul.mubr.msk.f32.gmra.mrb[8].mxu0 %vm450_vm1, %v22119_v52  ;;  %v11257_v53 = vld [vmem:[%s32302_s21 + $0x191] sm:$0xff]  ;;  %v22151_v52 = vld [vmem:[%s32302_s21 + $0x1da] sm:$0xff] }
 0x672   : > { %28623 = vmatprep.mubr.msk.f32.mxu1 %vm450_vm1, %v10420_v21  ;;  %29947 = vmatprep.mubr.msk.f32.mxu0 %vm450_vm1, %v22120_v10  ;;  %v11258_v21 = vld [vmem:[%s32302_s21 + $0x199] sm:$0xff]  ;;  %v22152_v10 = vld [vmem:[%s32302_s21 + $0x1e2] sm:$0xff] }
 0x675   : > { %28624 = vmatmul.mubr.msk.f32.gmra.mrb[42].mxu1 %vm450_vm1, %v10421_v47  ;;  %29948 = vmatmul.mubr.msk.f32.gmra.mrb[10].mxu0 %vm450_vm1, %v22121_v41  ;;  %v11259_v47 = vld [vmem:[%s32302_s21 + $0x1a1] sm:$0xff]  ;;  %v22153_v41 = vld [vmem:[%s32302_s21 + $0x1ea] sm:$0xff] }
 0x676   : > { %28626 = vmatprep.mubr.msk.f32.mxu1 %vm450_vm1, %v10422_v4  ;;  %29950 = vmatprep.mubr.msk.f32.mxu0 %vm450_vm1, %v22122_v24  ;;  %v11260_v4 = vld [vmem:[%s32302_s21 + $0x1a9] sm:$0xff]  ;;  %v22154_v24 = vld [vmem:[%s32302_s21 + $0x1f2] sm:$0xff] }
 0x679   : > { %28627 = vmatmul.mubr.msk.f32.gmra.mrb[44].mxu1 %vm450_vm1, %v10423_v18  ;;  %29951 = vmatmul.mubr.msk.f32.gmra.mrb[12].mxu0 %vm450_vm1, %v22123_v23  ;;  %v11261_v18 = vld [vmem:[%s32302_s21 + $0x1b1] sm:$0xff]  ;;  %v22155_v23 = vld [vmem:[%s32302_s21 + $0x1fa] sm:$0xff] }
 0x67a   : > { %28629 = vmatprep.mubr.msk.f32.mxu1 %vm450_vm1, %v10424_v58  ;;  %29953 = vmatprep.mubr.msk.f32.mxu0 %vm450_vm1, %v22124_v32  ;;  %v11262_v58 = vld [vmem:[%s32302_s21 + $0x1b9] sm:$0xff]  ;;  %v22156_v32 = vld [vmem:[%s32302_s21 + $0x202] sm:$0xff] }
 0x67d   : > { %28630 = vmatmul.mubr.msk.f32.gmra.mrb[46].mxu1 %vm450_vm1, %v10425_v36  ;;  %29954 = vmatmul.mubr.msk.f32.gmra.mrb[14].mxu0 %vm450_vm1, %v22125_v33  ;;  %v11263_v36 = vld [vmem:[%s32302_s21 + $0x1c1] sm:$0xff]  ;;  %v22157_v33 = vld [vmem:[%s32302_s21 + $0x20a] sm:$0xff] }
 0x67e   : > { %28632 = vmatprep.mubr.msk.f32.mxu1 %vm450_vm1, %v10426_v34  ;;  %29956 = vmatprep.mubr.msk.f32.mxu0 %vm450_vm1, %v22126_v20  ;;  %v11264_v34 = vld [vmem:[%s32302_s21 + $0x1c9] sm:$0xff]  ;;  %v22158_v20 = vld [vmem:[%s32302_s21 + $0x212] sm:$0xff] }
 0x681   : > { %28633 = vmatmul.mubr.msk.f32.gmra.mrb[48].mxu1 %vm450_vm1, %v10427_v50  ;;  %29957 = vmatmul.mubr.msk.f32.gmra.mrb[16].mxu0 %vm450_vm1, %v22127_v9  ;;  %v11265_v50 = vld [vmem:[%s32302_s21 + $0x1d1] sm:$0xff]  ;;  %v22159_v9 = vld [vmem:[%s32302_s21 + $0x21a] sm:$0xff] }
 0x682   : > { %28635 = vmatprep.mubr.msk.f32.mxu1 %vm450_vm1, %v10428_v59  ;;  %29959 = vmatprep.mubr.msk.f32.mxu0 %vm450_vm1, %v22128_v44  ;;  %v11266_v59 = vld [vmem:[%s32302_s21 + $0x1d9] sm:$0xff]  ;;  %v22160_v44 = vld [vmem:[%s32302_s21 + $0x222] sm:$0xff] }
 0x685   : > { %28636 = vmatmul.mubr.msk.f32.gmra.mrb[50].mxu1 %vm450_vm1, %v10429_v38  ;;  %29960 = vmatmul.mubr.msk.f32.gmra.mrb[18].mxu0 %vm450_vm1, %v22129_v37  ;;  %v11267_v38 = vld [vmem:[%s32302_s21 + $0x1e1] sm:$0xff]  ;;  %v22161_v37 = vld [vmem:[%s32302_s21 + $0x22a] sm:$0xff] }
 0x686   : > { %28638 = vmatprep.mubr.msk.f32.mxu1 %vm450_vm1, %v10430_v42  ;;  %29962 = vmatprep.mubr.msk.f32.mxu0 %vm450_vm1, %v22130_v7  ;;  %v11268_v42 = vld [vmem:[%s32302_s21 + $0x1e9] sm:$0xff]  ;;  %v22162_v7 = vld [vmem:[%s32302_s21 + $0x232] sm:$0xff] }
 0x689   : > { %28639 = vmatmul.mubr.msk.f32.gmra.mrb[52].mxu1 %vm450_vm1, %v10431_v46  ;;  %29963 = vmatmul.mubr.msk.f32.gmra.mrb[20].mxu0 %vm450_vm1, %v22131_v61  ;;  %v11269_v46 = vld [vmem:[%s32302_s21 + $0x1f1] sm:$0xff]  ;;  %v22163_v61 = vld [vmem:[%s32302_s21 + $0x23a] sm:$0xff] }
 0x68a   : > { %28641 = vmatprep.mubr.msk.f32.mxu1 %vm450_vm1, %v10432_v49  ;;  %29965 = vmatprep.mubr.msk.f32.mxu0 %vm450_vm1, %v22132_v48  ;;  %v11270_v49 = vld [vmem:[%s32302_s21 + $0x1f9] sm:$0xff]  ;;  %v22164_v48 = vld [vmem:[%s32302_s21 + $0x242] sm:$0xff] }
 0x68d   : > { %28642 = vmatmul.mubr.msk.f32.gmra.mrb[54].mxu1 %vm450_vm1, %v37295_v45  ;;  %29966 = vmatmul.mubr.msk.f32.gmra.mrb[22].mxu0 %vm450_vm1, %v22133_v54  ;;  %v22137_v45 = vld [vmem:[%s32302_s21 + $0x16a] sm:$0xff] }
 0x68e   : > { %28644 = vmatprep.mubr.msk.f32.mxu1 %vm450_vm1, %v37306_v25  ;;  %29968 = vmatprep.mubr.msk.f32.mxu0 %vm450_vm1, %v22134_v27  ;;  %v22139_v25 = vld [vmem:[%s32302_s21 + $0x17a] sm:$0xff]  ;;  %v22165_v54 = vld [vmem:[%s32302_s21 + $0x24a] sm:$0xff]  ;;  %v22166_v27 = vld [vmem:[%s32302_s21 + $0x252] sm:$0xff] }
 0x691   : > { %28645 = vmatmul.mubr.msk.f32.gmra.mrb[56].mxu1 %vm450_vm1, %v37309_v60  ;;  %29969 = vmatmul.mubr.msk.f32.gmra.mrb[24].mxu0 %vm450_vm1, %v22135_v6  ;;  %v22140_v60 = vld [vmem:[%s32302_s21 + $0x182] sm:$0xff]  ;;  %v22167_v6 = vld [vmem:[%s32302_s21 + $0x25a] sm:$0xff] }
 0x692   : > { %28647 = vmatprep.mubr.msk.f32.mxu1 %vm450_vm1, %v37320_v8  ;;  %29971 = vmatprep.mubr.msk.f32.mxu0 %vm450_vm1, %v22136_v28  ;;  %v22141_v8 = vld [vmem:[%s32302_s21 + $0x18a] sm:$0xff]  ;;  %v22168_v28 = vld [vmem:[%s32302_s21 + $0x262] sm:$0xff] }
 0x695   : > { %28648 = vmatmul.mubr.msk.f32.gmra.mrb[58].mxu1 %vm450_vm1, %v37323_v22  ;;  %29972 = vmatmul.mubr.msk.f32.gmra.mrb[26].mxu0 %vm450_vm1, %v22137_v45  ;;  %v11248_v22 = vld [vmem:[%s32302_s21 + $0x149] sm:$0xff]  ;;  %v22170_v45 = vld [vmem:[%s32302_s21 + $0x272] sm:$0xff] }
 0x696   : > { %28650 = vmatprep.mubr.msk.f32.mxu1 %vm450_vm1, %v37334_v17  ;;  %29974 = vmatprep.mubr.msk.f32.mxu0 %vm450_vm1, %v22138_v2  ;;  %v22142_v17 = vld [vmem:[%s32302_s21 + $0x192] sm:$0xff] }
 0x699   : > { %28651 = vmatmul.mubr.msk.f32.gmra.mrb[60].mxu1 %vm450_vm1, %v37337_v11  ;;  %29975 = vmatmul.mubr.msk.f32.gmra.mrb[28].mxu0 %vm450_vm1, %v22139_v25  ;;  %v11249_v11 = vld [vmem:[%s32302_s21 + $0x151] sm:$0xff] }
 0x69a   : > { %28653 = vmatprep.mubr.msk.f32.mxu1 %vm450_vm1, %v37351_v5  ;;  %29977 = vmatprep.mubr.msk.f32.mxu0 %vm450_vm1, %v22140_v60  ;;  %v22143_v5 = vld [vmem:[%s32302_s21 + $0x19a] sm:$0xff] }
 0x69d   : > { %28654 = vmatmul.mubr.msk.f32.gmra.mrb[62].mxu1 %vm450_vm1, %v37354_v56  ;;  %29978 = vmatmul.mubr.msk.f32.gmra.mrb[30].mxu0 %vm450_vm1, %v22141_v8  ;;  %v11251_v56 = vld [vmem:[%s32302_s21 + $0x161] sm:$0xff] }
 0x69e   : > { %28706 = vmatprep.mubr.msk.f32.mxu1 %vm450_vm1, %v11248_v22  ;;  %29980 = vmatprep.mubr.msk.f32.mxu0 %vm450_vm1, %v22142_v17 }
 0x6a1   : > { %28707 = vmatmul.mubr.msk.f32.vlgmr.msra.gmra.mrb[32].mxu1 %vm450_vm1, %v11249_v11  ;;  %29981 = vmatmul.mubr.msk.f32.gmra.mrb[32].mxu0 %vm450_vm1, %v22143_v5 }
 0x6a2   : > { %28709 = vmatprep.mubr.msk.f32.mxu1 %vm450_vm1, %v11250_v29  ;;  %29983 = vmatprep.mubr.msk.f32.mxu0 %vm450_vm1, %v22144_v1 }
 0x6a5   : > { %28710 = vmatmul.mubr.msk.f32.gmra.mrb[34].mxu1 %vm450_vm1, %v11251_v56  ;;  %29984 = vmatmul.mubr.msk.f32.gmra.mrb[34].mxu0 %vm450_vm1, %v22145_v39 }
 0x6a6   : > { %28712 = vmatprep.mubr.msk.f32.mxu1 %vm450_vm1, %v11252_v0  ;;  %29986 = vmatprep.mubr.msk.f32.mxu0 %vm450_vm1, %v22146_v19 }
 0x6a9   : > { %28713 = vmatmul.mubr.msk.f32.gmra.mrb[36].mxu1 %vm450_vm1, %v11253_v63  ;;  %29987 = vmatmul.mubr.msk.f32.gmra.mrb[36].mxu0 %vm450_vm1, %v22147_v35 }
 0x6aa   : > { %28715 = vmatprep.mubr.msk.f32.mxu1 %vm450_vm1, %v11254_v31  ;;  %29989 = vmatprep.mubr.msk.f32.mxu0 %vm450_vm1, %v22148_v62 }
 0x6ad   : > { %28716 = vmatmul.mubr.msk.f32.gmra.mrb[38].mxu1 %vm450_vm1, %v11255_v12  ;;  %29990 = vmatmul.mubr.msk.f32.gmra.mrb[38].mxu0 %vm450_vm1, %v22149_v15 }
 0x6ae   : > { %28718 = vmatprep.mubr.msk.f32.mxu1 %vm450_vm1, %v11256_v13  ;;  %29992 = vmatprep.mubr.msk.f32.mxu0 %vm450_vm1, %v22150_v30 }
 0x6b1   : > { %28719 = vmatmul.mubr.msk.f32.gmra.mrb[40].mxu1 %vm450_vm1, %v11257_v53  ;;  %29993 = vmatmul.mubr.msk.f32.gmra.mrb[40].mxu0 %vm450_vm1, %v22151_v52 }
 0x6b2   : > { %28721 = vmatprep.mubr.msk.f32.mxu1 %vm450_vm1, %v11258_v21  ;;  %29995 = vmatprep.mubr.msk.f32.mxu0 %vm450_vm1, %v22152_v10 }
 0x6b5   : > { %28722 = vmatmul.mubr.msk.f32.gmra.mrb[42].mxu1 %vm450_vm1, %v11259_v47  ;;  %29996 = vmatmul.mubr.msk.f32.gmra.mrb[42].mxu0 %vm450_vm1, %v22153_v41 }
 0x6b6   : > { %28724 = vmatprep.mubr.msk.f32.mxu1 %vm450_vm1, %v11260_v4  ;;  %29998 = vmatprep.mubr.msk.f32.mxu0 %vm450_vm1, %v22154_v24 }
 0x6b9   : > { %28725 = vmatmul.mubr.msk.f32.gmra.mrb[44].mxu1 %vm450_vm1, %v11261_v18  ;;  %29999 = vmatmul.mubr.msk.f32.gmra.mrb[44].mxu0 %vm450_vm1, %v22155_v23 }
 0x6ba   : > { %28727 = vmatprep.mubr.msk.f32.mxu1 %vm450_vm1, %v11262_v58  ;;  %30001 = vmatprep.mubr.msk.f32.mxu0 %vm450_vm1, %v22156_v32 }
 0x6bd   : > { %28728 = vmatmul.mubr.msk.f32.gmra.mrb[46].mxu1 %vm450_vm1, %v11263_v36  ;;  %30002 = vmatmul.mubr.msk.f32.gmra.mrb[46].mxu0 %vm450_vm1, %v22157_v33 }
 0x6be   : > { %28730 = vmatprep.mubr.msk.f32.mxu1 %vm450_vm1, %v11264_v34  ;;  %30004 = vmatprep.mubr.msk.f32.mxu0 %vm450_vm1, %v22158_v20 }
 0x6c1   : > { %28731 = vmatmul.mubr.msk.f32.gmra.mrb[48].mxu1 %vm450_vm1, %v11265_v50  ;;  %30005 = vmatmul.mubr.msk.f32.gmra.mrb[48].mxu0 %vm450_vm1, %v22159_v9 }
 0x6c2   : > { %28733 = vmatprep.mubr.msk.f32.mxu1 %vm450_vm1, %v11266_v59  ;;  %30007 = vmatprep.mubr.msk.f32.mxu0 %vm450_vm1, %v22160_v44 }
 0x6c5   : > { %28734 = vmatmul.mubr.msk.f32.gmra.mrb[50].mxu1 %vm450_vm1, %v11267_v38  ;;  %30008 = vmatmul.mubr.msk.f32.gmra.mrb[50].mxu0 %vm450_vm1, %v22161_v37 }
 0x6c6   : > { %28736 = vmatprep.mubr.msk.f32.mxu1 %vm450_vm1, %v11268_v42  ;;  %30010 = vmatprep.mubr.msk.f32.mxu0 %vm450_vm1, %v22162_v7 }
 0x6c9   : > { %28737 = vmatmul.mubr.msk.f32.gmra.mrb[52].mxu1 %vm450_vm1, %v11269_v46  ;;  %30011 = vmatmul.mubr.msk.f32.gmra.mrb[52].mxu0 %vm450_vm1, %v22163_v61 }
 0x6ca   : > { %28739 = vmatprep.mubr.msk.f32.mxu1 %vm450_vm1, %v11270_v49  ;;  %30013 = vmatprep.mubr.msk.f32.mxu0 %vm450_vm1, %v22164_v48 }
 0x6cd   : > { %28740 = vmatmul.mubr.msk.f32.gmra.mrb[54].mxu1 %vm450_vm1, %v37755_v55  ;;  %30014 = vmatmul.mubr.msk.f32.gmra.mrb[54].mxu0 %vm450_vm1, %v22165_v54  ;;  %v22169_v55 = vld [vmem:[%s32302_s21 + $0x26a] sm:$0xff] }
 0x6ce   : > { %28742 = vmatprep.mubr.msk.f32.mxu1 %vm450_vm1, %v37771_v3  ;;  %30016 = vmatprep.mubr.msk.f32.mxu0 %vm450_vm1, %v22166_v27  ;;  %v22171_v3 = vld [vmem:[%s32302_s21 + $0x27a] sm:$0xff] }
 0x6d1   : > { %28743 = vmatmul.mubr.msk.f32.gmra.mrb[56].mxu1 %vm450_vm1, %v37775_v14  ;;  %30017 = vmatmul.mubr.msk.f32.gmra.mrb[56].mxu0 %vm450_vm1, %v22167_v6  ;;  %v22172_v14 = vld [vmem:[%s32302_s21 + $0x282] sm:$0xff] }
 0x6d2   : > { %28745 = vmatprep.mubr.msk.f32.mxu1 %vm450_vm1, %v37791_v57  ;;  %30019 = vmatprep.mubr.msk.f32.mxu0 %vm450_vm1, %v22168_v28  ;;  %v22173_v57 = vld [vmem:[%s32302_s21 + $0x28a] sm:$0xff]  ;;  %s38229_s21 = sand.u32 1, %s32176_s16  }
 0x6d3   : > { %s23835_s11 = sshll.u32 %s38229_s21, 9  ;;  %s23665_s29 = scalar_lea.sflag [#allocation3], %s38229_s21 }
 0x6d4   : > { %s38242_s12 = scalar_lea.vmem [#allocation2], %s23835_s11 }
 0x6d5   : > { %28746 = vmatmul.mubr.msk.f32.gmra.mrb[58].mxu1 %vm450_vm1, %v37795_v43  ;;  %30020 = vmatmul.mubr.msk.f32.gmra.mrb[58].mxu0 %vm450_vm1, %v22169_v55  ;;  %v38132_v43 = vpop.permute.xlu0 %23078  ;;  %s23685_s14 = sshll.u32 %s38242_s12, 4  ;;  %s38455_s14 = int_to_ptr.vmem [resolvable:$true] %s23685_s14 }
 0x6d6   : > { %28748 = vmatprep.mubr.msk.f32.mxu1 %vm450_vm1, %v37811_v51  ;;  %30022 = vmatprep.mubr.msk.f32.mxu0 %vm450_vm1, %v22170_v45  ;;  %v38134_v51 = vpop.permute.xlu1 %23088  ;;  %s32082_s30 = scalar_lea.vmem %s38455_s14, 8192  ;;  %p32089_p1 = scmp.lt.s32.totalorder %s38455_s14, %s32087_s6 }
 0x6d7   : > { %p32083_p12 = scmp.ne.s32.totalorder %s38455_s14, %s32082_s30  ;;  %p32090_p2 = scmp.lt.s32.totalorder %s32088_s7, %s32082_s30 }
 0x6d9   : > { %28749 = vmatmul.mubr.msk.f32.gmra.mrb[60].mxu1 %vm450_vm1, %v37815_v40  ;;  %30023 = vmatmul.mubr.msk.f32.gmra.mrb[60].mxu0 %vm450_vm1, %v22171_v3  ;;  %v23084_v40 = vpop.permute.xlu0 %23083  ;;  %p32084_p13 = pnand %p32083_p12, %p32264_p4  ;;  %p32091_p3 = por %p32090_p2, %p32089_p1 }
 0x6da   : > { %28751 = vmatprep.mubr.msk.f32.mxu1 %vm450_vm1, %v37828_v16  ;;  %30025 = vmatprep.mubr.msk.f32.mxu0 %vm450_vm1, %v22172_v14  ;;  %v38138_v8 = vpop.permute.xlu1 %23093 }
 0x6db   : > { %p32085_p0 = pneg %p32084_p13 }
 0x6dd   : > { %28752 = vmatmul.mubr.msk.f32.gmra.mrb[62].mxu1 %vm450_vm1, %v37832_v26  ;;  %30026 = vmatmul.mubr.msk.f32.gmra.mrb[62].mxu0 %vm450_vm1, %v22173_v57  ;;  %v38146_v26 = vpop.permute.xlu0 %23098  ;;  %p32092_p5 = pnand %p32091_p3, %p32085_p0 }
 0x6de   : > { %v38148_v11 = vpop.permute.xlu1 %23103 }
 0x6e1   : > { %v38154_v1 = vpop.permute.xlu0 %23108 }
 0x6e2   : > { %v38158_v39 = vpop.permute.xlu1 %23113 }
 0x6e5   : > { %v38166_v35 = vpop.permute.xlu0 %23118 }
 0x6e6   : > { %v38168_v31 = vpop.permute.xlu1 %23123 }
 0x6e9   : > { %v38174_v15 = vpop.permute.xlu0 %23128 }
 0x6ea   : > { %v38178_v30 = vpop.permute.xlu1 %23133 }
 0x6ed   : > { %v38186_v10 = vpop.permute.xlu0 %23138 }
 0x6ee   : > { %v38188_v47 = vpop.permute.xlu1 %23143 }
 0x6f1   : > { %v38194_v24 = vpop.permute.xlu0 %23148 }
 0x6f2   : > { %v38198_v23 = vpop.permute.xlu1 %23153 }
 0x6f4   : > { %v28562_v2 = vpop.f32.mrb[0].mxu1 }
 0x6f5   : > { %v10769_v25 = vpop.f32.mrb[1].mxu1  ;;  %v38206_v33 = vpop.permute.xlu0 %23158 }
 0x6f6   : > { %v38208_v34 = vpop.permute.xlu1 %23163 }
 0x6f8   : > { %v38136_v60 = vpop.f32.mrb[2].mxu1 }
 0x6f9   : > { %v38140_v16 = vpop.f32.mrb[3].mxu1  ;;  %v38214_v9 = vpop.permute.xlu0 %23168 }
 0x6fa   : > { %v38218_v44 = vpop.permute.xlu1 %23173 }
 0x6fc   : > { %v38142_v22 = vpop.f32.mrb[4].mxu1 }
 0x6fd   : > { %v38144_v17 = vpop.f32.mrb[5].mxu1  ;;  %v38226_v7 = vpop.permute.xlu0 %23178 }
 0x6fe   : > { %v38231_v46 = vpop.permute.xlu1 %23183 }
 0x700   : > { %v38150_v5 = vpop.f32.mrb[6].mxu1 }
 0x701   : > { %v38152_v29 = vpop.f32.mrb[7].mxu1  ;;  %v38238_v48 = vpop.permute.xlu0 %23188 }
 0x702   : > { %v38240_v27 = vpop.permute.xlu1 %23193 }
 0x704   : > { %v38156_v56 = vpop.f32.mrb[8].mxu1 }
 0x705   : > { %v38160_v0 = vpop.f32.mrb[9].mxu1 }
 0x708   : > { %v38162_v19 = vpop.f32.mrb[10].mxu1 }
 0x709   : > { %v38164_v63 = vpop.f32.mrb[11].mxu1 }
 0x70c   : > { %v38170_v62 = vpop.f32.mrb[12].mxu1 }
 0x70d   : > { %v38172_v12 = vpop.f32.mrb[13].mxu1 }
 0x710   : > { %v38176_v13 = vpop.f32.mrb[14].mxu1 }
 0x711   : > { %v38180_v53 = vpop.f32.mrb[15].mxu1 }
 0x714   : > { %v38182_v52 = vpop.f32.mrb[16].mxu1 }
 0x715   : > { %v38184_v21 = vpop.f32.mrb[17].mxu1 }
 0x718   : > { %v38190_v41 = vpop.f32.mrb[18].mxu1 }
 0x719   : > { %v38192_v4 = vpop.f32.mrb[19].mxu1 }
 0x71c   : > { %v38196_v18 = vpop.f32.mrb[20].mxu1 }
 0x71d   : > { %v38200_v58 = vpop.f32.mrb[21].mxu1 }
 0x720   : > { %v38202_v32 = vpop.f32.mrb[22].mxu1 }
 0x721   : > { %v38204_v36 = vpop.f32.mrb[23].mxu1 }
 0x724   : > { %v38210_v20 = vpop.f32.mrb[24].mxu1 }
 0x725   : > { %v38212_v50 = vpop.f32.mrb[25].mxu1 }
 0x728   : > { %v38216_v59 = vpop.f32.mrb[26].mxu1 }
 0x729   : > { %39329 = vst [vmem:[#allocation35_spill] sm:$0xff] %v38216_v59  ;;  %v38220_v38 = vpop.f32.mrb[27].mxu1 }
 0x72a   : > { %39330 = vst [vmem:[#allocation37_spill] sm:$0xff] %v38220_v38 }
 0x72c   : > { %v38222_v37 = vpop.f32.mrb[28].mxu1 }
 0x72d   : > { %39331 = vst [vmem:[#allocation41_spill] sm:$0xff] %v38222_v37  ;;  %v38224_v42 = vpop.f32.mrb[29].mxu1 }
 0x72e   : > { %39332 = vst [vmem:[#allocation45_spill] sm:$0xff] %v38224_v42  ;;  %v38248_v42 = vpop.permute.xlu0 %23198 }
 0x730   : > { %v38233_v61 = vpop.f32.mrb[30].mxu1 }
 0x731   : > { %39333 = vst [vmem:[#allocation49_spill] sm:$0xff] %v38233_v61  ;;  %v38236_v49 = vpop.f32.mrb[31].mxu1 }
 0x732   : > { %39334 = vst [vmem:[#allocation53_spill] sm:$0xff] %v38236_v49 }
 0x734   : > { %v29934_v54 = vpop.f32.mrb[0].mxu0 }
 0x735   : > { %v30035_v6 = vadd.f32 %v29934_v54, %v28562_v2  ;;  %v22501_v28 = vpop.f32.mrb[1].mxu0 }
 0x736   : > { %v30041_v55 = vadd.f32 %v22501_v28, %v10769_v25  ;;  %v38251_v28 = vpop.permute.xlu1 %23203 }
 0x737   : > { %22885 = vst [vmem:[%s38242_s12 + $0x8] sm:$0xff] %v30035_v6  ;;  %v23397_v45 = vmul.f32 %v30035_v6, %v23084_v40 }
 0x738   : > { %22884 = vst [vmem:[%s38242_s12] sm:$0xff] %v30041_v55  ;;  %v23396_v3 = vmul.f32 %v30041_v55, %v38132_v43  ;;  %v29937_v14 = vpop.f32.mrb[2].mxu0 }
 0x739   : > { %v23531_v57 = vmul.f32 %v30035_v6, %v23397_v45  ;;  %v30047_v49 = vadd.f32 %v29937_v14, %v38136_v60  ;;  %v22511_v61 = vpop.f32.mrb[3].mxu0 }
 0x73a   : > { %v23460_v2 = vadd.f32 %v23397_v45, %v23396_v3  ;;  %v23530_v25 = vmul.f32 %v30041_v55, %v23396_v3  ;;  %v30053_v54 = vadd.f32 %v22511_v61, %v38140_v16  ;;  %v38261_v61 = vpop.permute.xlu0 %23208 }
 0x73b   : > { %22887 = vst [vmem:[%s38242_s12 + $0x18] sm:$0xff] %v30047_v49  ;;  %v23399_v37 = vmul.f32 %v30047_v49, %v38138_v8 }
 0x73c   : > { %v23594_v40 = vadd.f32 %v23531_v57, %v23530_v25  ;;  %22886 = vst [vmem:[%s38242_s12 + $0x10] sm:$0xff] %v30053_v54  ;;  %v23398_v43 = vmul.f32 %v30053_v54, %v38134_v51  ;;  %v29940_v6 = vpop.f32.mrb[4].mxu0 }
 0x73d   : > { %v30059_v60 = vadd.f32 %v29940_v6, %v38142_v22  ;;  %v22521_v14 = vpop.f32.mrb[5].mxu0  ;;  %v23533_v45 = vmul.f32 %v30047_v49, %v23399_v37  ;;  %v38265_v22 = vpop.permute.xlu1 %23213 }
 0x73e   : > { %v23461_v38 = vadd.f32 %v23460_v2, %v23398_v43  ;;  %v23532_v59 = vmul.f32 %v30053_v54, %v23398_v43  ;;  %v30065_v55 = vadd.f32 %v22521_v14, %v38144_v17  ;;  %v38274_v14 = vpop.permute.xlu0 %23218 }
 0x73f   : > { %22889 = vst [vmem:[%s38242_s12 + $0x28] sm:$0xff] %v30059_v60  ;;  %v23401_v16 = vmul.f32 %v30059_v60, %v38148_v11 }
 0x740   : > { %v23595_v3 = vadd.f32 %v23594_v40, %v23532_v59  ;;  %22888 = vst [vmem:[%s38242_s12 + $0x20] sm:$0xff] %v30065_v55  ;;  %v23400_v51 = vmul.f32 %v30065_v55, %v38146_v26  ;;  %v23462_v8 = vadd.f32 %v23461_v38, %v23399_v37  ;;  %v29943_v57 = vpop.f32.mrb[6].mxu0 }
 0x741   : > { %v30071_v2 = vadd.f32 %v29943_v57, %v38150_v5  ;;  %v22531_v25 = vpop.f32.mrb[7].mxu0  ;;  %v23535_v6 = vmul.f32 %v30059_v60, %v23401_v16 }
 0x742   : > { %v23463_v17 = vadd.f32 %v23462_v8, %v23400_v51  ;;  %v23534_v54 = vmul.f32 %v30065_v55, %v23400_v51  ;;  %v23596_v43 = vadd.f32 %v23595_v3, %v23533_v45  ;;  %v30077_v11 = vadd.f32 %v22531_v25, %v38152_v29  ;;  %v38277_v3 = vpop.permute.xlu1 %23223 }
 0x743   : > { %22891 = vst [vmem:[%s38242_s12 + $0x38] sm:$0xff] %v30071_v2  ;;  %v23403_v49 = vmul.f32 %v30071_v2, %v38158_v39 }
 0x744   : > { %v23597_v59 = vadd.f32 %v23596_v43, %v23534_v54  ;;  %22890 = vst [vmem:[%s38242_s12 + $0x30] sm:$0xff] %v30077_v11  ;;  %v23402_v26 = vmul.f32 %v30077_v11, %v38154_v1  ;;  %v23464_v38 = vadd.f32 %v23463_v17, %v23401_v16  ;;  %v29946_v37 = vpop.f32.mrb[8].mxu0 }
 0x745   : > { %v30083_v5 = vadd.f32 %v29946_v37, %v38156_v56  ;;  %v22541_v40 = vpop.f32.mrb[9].mxu0  ;;  %v23537_v51 = vmul.f32 %v30071_v2, %v23403_v49 }
 0x746   : > { %v23465_v55 = vadd.f32 %v23464_v38, %v23402_v26  ;;  %v23536_v45 = vmul.f32 %v30077_v11, %v23402_v26  ;;  %v23598_v29 = vadd.f32 %v23597_v59, %v23535_v6  ;;  %v30089_v60 = vadd.f32 %v22541_v40, %v38160_v0 }
 0x747   : > { %22893 = vst [vmem:[%s38242_s12 + $0x48] sm:$0xff] %v30083_v5  ;;  %v23405_v39 = vmul.f32 %v30083_v5, %v38168_v31  ;;  %v38286_v31 = vpop.permute.xlu0 %23228 }
 0x748   : > { %v23599_v1 = vadd.f32 %v23598_v29, %v23536_v45  ;;  %22892 = vst [vmem:[%s38242_s12 + $0x40] sm:$0xff] %v30089_v60  ;;  %v23404_v56 = vmul.f32 %v30089_v60, %v38166_v35  ;;  %v23466_v16 = vadd.f32 %v23465_v55, %v23403_v49  ;;  %v29949_v8 = vpop.f32.mrb[10].mxu0  ;;  %v38291_v49 = vpop.permute.xlu1 %23233 }
 0x749   : > { %v30095_v57 = vadd.f32 %v29949_v8, %v38162_v19  ;;  %v22551_v25 = vpop.f32.mrb[11].mxu0  ;;  %v23539_v11 = vmul.f32 %v30083_v5, %v23405_v39 }
 0x74a   : > { %v23467_v17 = vadd.f32 %v23466_v16, %v23404_v56  ;;  %v23538_v54 = vmul.f32 %v30089_v60, %v23404_v56  ;;  %v23600_v0 = vadd.f32 %v23599_v1, %v23537_v51  ;;  %v30101_v43 = vadd.f32 %v22551_v25, %v38164_v63 }
 0x74b   : > { %22895 = vst [vmem:[%s38242_s12 + $0x58] sm:$0xff] %v30095_v57  ;;  %v23407_v6 = vmul.f32 %v30095_v57, %v38178_v30  ;;  %v38300_v51 = vpop.permute.xlu0 %23238 }
 0x74c   : > { %v23601_v2 = vadd.f32 %v23600_v0, %v23538_v54  ;;  %22894 = vst [vmem:[%s38242_s12 + $0x50] sm:$0xff] %v30101_v43  ;;  %v23406_v35 = vmul.f32 %v30101_v43, %v38174_v15  ;;  %v23468_v59 = vadd.f32 %v23467_v17, %v23405_v39  ;;  %v29952_v19 = vpop.f32.mrb[12].mxu0 }
 0x74d   : > { %v30107_v26 = vadd.f32 %v29952_v19, %v38170_v62  ;;  %v22561_v38 = vpop.f32.mrb[13].mxu0  ;;  %v23541_v30 = vmul.f32 %v30095_v57, %v23407_v6 }
 0x74e   : > { %v23469_v63 = vadd.f32 %v23468_v59, %v23406_v35  ;;  %v23540_v37 = vmul.f32 %v30101_v43, %v23406_v35  ;;  %v23602_v5 = vadd.f32 %v23601_v2, %v23539_v11  ;;  %v30113_v40 = vadd.f32 %v22561_v38, %v38172_v12 }
 0x74f   : > { %22897 = vst [vmem:[%s38242_s12 + $0x68] sm:$0xff] %v30107_v26  ;;  %v23409_v55 = vmul.f32 %v30107_v26, %v38188_v47  ;;  %v38303_v47 = vpop.permute.xlu1 %23243  ;;  %v38313_v35 = vpop.permute.xlu0 %23248 }
 0x750   : > { %v23603_v45 = vadd.f32 %v23602_v5, %v23540_v37  ;;  %22896 = vst [vmem:[%s38242_s12 + $0x60] sm:$0xff] %v30113_v40  ;;  %v23408_v15 = vmul.f32 %v30113_v40, %v38186_v10  ;;  %v23470_v29 = vadd.f32 %v23469_v63, %v23407_v6  ;;  %v29955_v60 = vpop.f32.mrb[14].mxu0 }
 0x751   : > { %v30119_v62 = vadd.f32 %v29955_v60, %v38176_v13  ;;  %v22571_v39 = vpop.f32.mrb[15].mxu0  ;;  %v23543_v8 = vmul.f32 %v30107_v26, %v23409_v55 }
 0x752   : > { %v23471_v1 = vadd.f32 %v23470_v29, %v23408_v15  ;;  %v23542_v56 = vmul.f32 %v30113_v40, %v23408_v15  ;;  %v23604_v12 = vadd.f32 %v23603_v45, %v23541_v30  ;;  %v30125_v16 = vadd.f32 %v22571_v39, %v38180_v53 }
 0x753   : > { %22899 = vst [vmem:[%s38242_s12 + $0x78] sm:$0xff] %v30119_v62  ;;  %v23411_v10 = vmul.f32 %v30119_v62, %v38198_v23  ;;  %v38317_v26 = vpop.permute.xlu1 %23253  ;;  %v38326_v60 = vpop.permute.xlu0 %23258 }
 0x754   : > { %v23605_v57 = vadd.f32 %v23604_v12, %v23542_v56  ;;  %22898 = vst [vmem:[%s38242_s12 + $0x70] sm:$0xff] %v30125_v16  ;;  %v23410_v13 = vmul.f32 %v30125_v16, %v38194_v24  ;;  %v23472_v25 = vadd.f32 %v23471_v1, %v23409_v55  ;;  %v29958_v17 = vpop.f32.mrb[16].mxu0 }
 0x755   : > { %v30131_v54 = vadd.f32 %v29958_v17, %v38182_v52  ;;  %v22581_v0 = vpop.f32.mrb[17].mxu0  ;;  %v23545_v23 = vmul.f32 %v30119_v62, %v23411_v10 }
 0x756   : > { %v23473_v43 = vadd.f32 %v23472_v25, %v23410_v13  ;;  %v23544_v11 = vmul.f32 %v30125_v16, %v23410_v13  ;;  %v23606_v53 = vadd.f32 %v23605_v57, %v23543_v8  ;;  %v30137_v2 = vadd.f32 %v22581_v0, %v38184_v21 }
 0x757   : > { %22901 = vst [vmem:[%s38242_s12 + $0x88] sm:$0xff] %v30131_v54  ;;  %v23413_v6 = vmul.f32 %v30131_v54, %v38208_v34  ;;  %v38329_v56 = vpop.permute.xlu1 %23263 }
 0x758   : > { %v23607_v59 = vadd.f32 %v23606_v53, %v23544_v11  ;;  %22900 = vst [vmem:[%s38242_s12 + $0x80] sm:$0xff] %v30137_v2  ;;  %v23412_v24 = vmul.f32 %v30137_v2, %v38206_v33  ;;  %v23474_v19 = vadd.f32 %v23473_v43, %v23411_v10  ;;  %v29961_v52 = vpop.f32.mrb[18].mxu0 }
 0x759   : > { %v30143_v38 = vadd.f32 %v29961_v52, %v38190_v41  ;;  %v22591_v63 = vpop.f32.mrb[19].mxu0  ;;  %v23547_v40 = vmul.f32 %v30131_v54, %v23413_v6 }
 0x75a   : > { %v23475_v21 = vadd.f32 %v23474_v19, %v23412_v24  ;;  %v23546_v37 = vmul.f32 %v30137_v2, %v23412_v24  ;;  %v23608_v5 = vadd.f32 %v23607_v59, %v23545_v23  ;;  %v30149_v34 = vadd.f32 %v22591_v63, %v38192_v4 }
 0x75b   : > { %22903 = vst [vmem:[%s38242_s12 + $0x98] sm:$0xff] %v30143_v38  ;;  %v23415_v30 = vmul.f32 %v30143_v38, %v38218_v44  ;;  %v38343_v53 = vpop.permute.xlu1 %23273 }
 0x75c   : > { %v23609_v55 = vadd.f32 %v23608_v5, %v23546_v37  ;;  %22902 = vst [vmem:[%s38242_s12 + $0x90] sm:$0xff] %v30149_v34  ;;  %v23414_v33 = vmul.f32 %v30149_v34, %v38214_v9  ;;  %v23476_v45 = vadd.f32 %v23475_v21, %v23413_v6  ;;  %v29964_v15 = vpop.f32.mrb[20].mxu0  ;;  %v39335_v21 = vld [vmem:[#allocation35_spill] sm:$0xff] }
 0x75d   : > { %v30155_v41 = vadd.f32 %v29964_v15, %v38196_v18  ;;  %v22601_v29 = vpop.f32.mrb[21].mxu0  ;;  %v23549_v12 = vmul.f32 %v30143_v38, %v23415_v30 }
 0x75e   : > { %v23477_v62 = vadd.f32 %v23476_v45, %v23414_v33  ;;  %v23548_v39 = vmul.f32 %v30149_v34, %v23414_v33  ;;  %v23610_v4 = vadd.f32 %v23609_v55, %v23547_v40  ;;  %v30161_v1 = vadd.f32 %v22601_v29, %v38200_v58  ;;  %v39336_v55 = vld [vmem:[#allocation37_spill] sm:$0xff] }
 0x75f   : > { %22905 = vst [vmem:[%s38242_s12 + $0xa8] sm:$0xff] %v30155_v41  ;;  %v23417_v44 = vmul.f32 %v30155_v41, %v38231_v46  ;;  %v38338_v46 = vpop.permute.xlu0 %23268 }
 0x760   : > { %v23611_v9 = vadd.f32 %v23610_v4, %v23548_v39  ;;  %22904 = vst [vmem:[%s38242_s12 + $0xa0] sm:$0xff] %v30161_v1  ;;  %v23416_v18 = vmul.f32 %v30161_v1, %v38226_v7  ;;  %v23478_v16 = vadd.f32 %v23477_v62, %v23415_v30  ;;  %v29967_v8 = vpop.f32.mrb[22].mxu0  ;;  %v39337_v62 = vld [vmem:[#allocation41_spill] sm:$0xff] }
 0x761   : > { %v30167_v57 = vadd.f32 %v29967_v8, %v38202_v32  ;;  %v22611_v10 = vpop.f32.mrb[23].mxu0  ;;  %v23551_v54 = vmul.f32 %v30155_v41, %v23417_v44 }
 0x762   : > { %v23479_v13 = vadd.f32 %v23478_v16, %v23416_v18  ;;  %v23550_v25 = vmul.f32 %v30161_v1, %v23416_v18  ;;  %v23612_v58 = vadd.f32 %v23611_v9, %v23549_v12  ;;  %v30173_v17 = vadd.f32 %v22611_v10, %v38204_v36  ;;  %v39338_v9 = vld [vmem:[#allocation45_spill] sm:$0xff] }
 0x763   : > { %22907 = vst [vmem:[%s38242_s12 + $0xb8] sm:$0xff] %v30167_v57  ;;  %v23419_v43 = vmul.f32 %v30167_v57, %v38240_v27  ;;  %v38352_v5 = vpop.permute.xlu0 %23278 }
 0x764   : > { %v23613_v0 = vadd.f32 %v23612_v58, %v23550_v25  ;;  %22906 = vst [vmem:[%s38242_s12 + $0xb0] sm:$0xff] %v30173_v17  ;;  %v23418_v7 = vmul.f32 %v30173_v17, %v38238_v48  ;;  %v23480_v11 = vadd.f32 %v23479_v13, %v23417_v44  ;;  %v29970_v32 = vpop.f32.mrb[24].mxu0  ;;  %v39339_v58 = vld [vmem:[#allocation49_spill] sm:$0xff] }
 0x765   : > { %v30179_v2 = vadd.f32 %v29970_v32, %v38210_v20  ;;  %v22621_v6 = vpop.f32.mrb[25].mxu0  ;;  %v23553_v27 = vmul.f32 %v30167_v57, %v23419_v43 }
 0x766   : > { %v23481_v36 = vadd.f32 %v23480_v11, %v23418_v7  ;;  %v23552_v23 = vmul.f32 %v30173_v17, %v23418_v7  ;;  %v23614_v59 = vadd.f32 %v23613_v0, %v23551_v54  ;;  %v30185_v24 = vadd.f32 %v22621_v6, %v38212_v50 }
 0x767   : > { %22909 = vst [vmem:[%s38242_s12 + $0xc8] sm:$0xff] %v30179_v2  ;;  %v23421_v19 = vmul.f32 %v30179_v2, %v38251_v28  ;;  %v38355_v28 = vpop.permute.xlu1 %23283  ;;  %v38365_v8 = vpop.permute.xlu0 %23288 }
 0x768   : > { %v23615_v52 = vadd.f32 %v23614_v59, %v23552_v23  ;;  %22908 = vst [vmem:[%s38242_s12 + $0xc0] sm:$0xff] %v30185_v24  ;;  %v23420_v48 = vmul.f32 %v30185_v24, %v38248_v42  ;;  %v23482_v38 = vadd.f32 %v23481_v36, %v23419_v43  ;;  %v29973_v63 = vpop.f32.mrb[26].mxu0 }
 0x769   : > { %v30191_v20 = vadd.f32 %v29973_v63, %v39335_v21  ;;  %v22631_v37 = vpop.f32.mrb[27].mxu0  ;;  %v23555_v33 = vmul.f32 %v30179_v2, %v23421_v19 }
 0x76a   : > { %v23483_v34 = vadd.f32 %v23482_v38, %v23420_v48  ;;  %v23554_v40 = vmul.f32 %v30185_v24, %v23420_v48  ;;  %v23616_v50 = vadd.f32 %v23615_v52, %v23553_v27  ;;  %v30197_v30 = vadd.f32 %v22631_v37, %v39336_v55 }
 0x76b   : > { %22911 = vst [vmem:[%s38242_s12 + $0xd8] sm:$0xff] %v30191_v20  ;;  %v23423_v42 = vmul.f32 %v30191_v20, %v38265_v22  ;;  %v38369_v25 = vpop.permute.xlu1 %23293  ;;  %v38377_v38 = vpop.permute.xlu0 %23298 }
 0x76c   : > { %v23617_v45 = vadd.f32 %v23616_v50, %v23554_v40  ;;  %22910 = vst [vmem:[%s38242_s12 + $0xd0] sm:$0xff] %v30197_v30  ;;  %v23422_v15 = vmul.f32 %v30197_v30, %v38261_v61  ;;  %v23484_v41 = vadd.f32 %v23483_v34, %v23421_v19  ;;  %v29976_v29 = vpop.f32.mrb[28].mxu0 }
 0x76d   : > { %v30203_v39 = vadd.f32 %v29976_v29, %v39337_v62  ;;  %v22641_v4 = vpop.f32.mrb[29].mxu0  ;;  %v23557_v22 = vmul.f32 %v30191_v20, %v23423_v42 }
 0x76e   : > { %v23485_v1 = vadd.f32 %v23484_v41, %v23422_v15  ;;  %v23556_v44 = vmul.f32 %v30197_v30, %v23422_v15  ;;  %v23618_v12 = vadd.f32 %v23617_v45, %v23555_v33  ;;  %v30209_v18 = vadd.f32 %v22641_v4, %v39338_v9 }
 0x76f   : > { %22913 = vst [vmem:[%s38242_s12 + $0xe8] sm:$0xff] %v30203_v39  ;;  %v23425_v16 = vmul.f32 %v30203_v39, %v38277_v3  ;;  %v39340_v3 = vld [vmem:[#allocation53_spill] sm:$0xff]  ;;  %v38379_v63 = vpop.permute.xlu1 %23303 }
 0x770   : > { %v23619_v57 = vadd.f32 %v23618_v12, %v23556_v44  ;;  %22912 = vst [vmem:[%s38242_s12 + $0xe0] sm:$0xff] %v30209_v18  ;;  %v23424_v61 = vmul.f32 %v30209_v18, %v38274_v14  ;;  %v23486_v10 = vadd.f32 %v23485_v1, %v23423_v42  ;;  %v29979_v13 = vpop.f32.mrb[30].mxu0 }
 0x771   : > { %v30215_v17 = vadd.f32 %v29979_v13, %v39339_v58  ;;  %v22651_v54 = vpop.f32.mrb[31].mxu0  ;;  %v23559_v32 = vmul.f32 %v30203_v39, %v23425_v16 }
 0x772   : > { %v23487_v0 = vadd.f32 %v23486_v10, %v23424_v61  ;;  %v23558_v43 = vmul.f32 %v30209_v18, %v23424_v61  ;;  %v23620_v7 = vadd.f32 %v23619_v57, %v23557_v22  ;;  %v30221_v11 = vadd.f32 %v22651_v54, %v39340_v3 }
 0x773   : > { %22915 = vst [vmem:[%s38242_s12 + $0xf8] sm:$0xff] %v30215_v17  ;;  %v23427_v6 = vmul.f32 %v30215_v17, %v38291_v49 }
 0x774   : > { %v23621_v2 = vadd.f32 %v23620_v7, %v23558_v43  ;;  %22914 = vst [vmem:[%s38242_s12 + $0xf0] sm:$0xff] %v30221_v11  ;;  %v23426_v14 = vmul.f32 %v30221_v11, %v38286_v31  ;;  %v23488_v36 = vadd.f32 %v23487_v0, %v23425_v16  ;;  %v28708_v23 = vpop.f32.mrb[32].mxu1  ;;  %v29982_v59 = vpop.f32.mrb[32].mxu0 }
 0x775   : > { %v11767_v24 = vpop.f32.mrb[33].mxu1  ;;  %v22661_v19 = vpop.f32.mrb[33].mxu0  ;;  %v30227_v21 = vadd.f32 %v29982_v59, %v28708_v23  ;;  %v23561_v20 = vmul.f32 %v30215_v17, %v23427_v6 }
 0x776   : > { %v23489_v27 = vadd.f32 %v23488_v36, %v23426_v14  ;;  %v23560_v52 = vmul.f32 %v30221_v11, %v23426_v14  ;;  %v23622_v48 = vadd.f32 %v23621_v2, %v23559_v32  ;;  %v30233_v37 = vadd.f32 %v22661_v19, %v11767_v24  ;;  %v38391_v16 = vpop.permute.xlu1 %23313 }
 0x777   : > { %22917 = vst [vmem:[%s38242_s12 + $0x108] sm:$0xff] %v30227_v21  ;;  %v23429_v50 = vmul.f32 %v30227_v21, %v38303_v47 }
 0x778   : > { %v23623_v49 = vadd.f32 %v23622_v48, %v23560_v52  ;;  %v23490_v34 = vadd.f32 %v23489_v27, %v23427_v6  ;;  %v28711_v31 = vpop.f32.mrb[34].mxu1  ;;  %v29985_v40 = vpop.f32.mrb[34].mxu0  ;;  %22916 = vst [vmem:[%s38242_s12 + $0x100] sm:$0xff] %v30233_v37  ;;  %v23428_v33 = vmul.f32 %v30233_v37, %v38300_v51 }
 0x779   : > { %v11777_v55 = vpop.f32.mrb[35].mxu1  ;;  %v22671_v30 = vpop.f32.mrb[35].mxu0  ;;  %v30239_v42 = vadd.f32 %v29985_v40, %v28711_v31  ;;  %v23563_v4 = vmul.f32 %v30227_v21, %v23429_v50 }
 0x77a   : > { %v23624_v45 = vadd.f32 %v23623_v49, %v23561_v20  ;;  %v23491_v15 = vadd.f32 %v23490_v34, %v23428_v33  ;;  %v23562_v41 = vmul.f32 %v30233_v37, %v23428_v33  ;;  %v30245_v29 = vadd.f32 %v22671_v30, %v11777_v55  ;;  %v38389_v51 = vpop.permute.xlu0 %23308  ;;  %v38403_v21 = vpop.permute.xlu1 %23323 }
 0x77b   : > { %22919 = vst [vmem:[%s38242_s12 + $0x118] sm:$0xff] %v30239_v42  ;;  %v23431_v1 = vmul.f32 %v30239_v42, %v38317_v26 }
 0x77c   : > { %v28714_v62 = vpop.f32.mrb[36].mxu1  ;;  %v29988_v39 = vpop.f32.mrb[36].mxu0  ;;  %v23625_v12 = vadd.f32 %v23624_v45, %v23562_v41  ;;  %22918 = vst [vmem:[%s38242_s12 + $0x110] sm:$0xff] %v30245_v29  ;;  %v23430_v9 = vmul.f32 %v30245_v29, %v38313_v35  ;;  %v23492_v18 = vadd.f32 %v23491_v15, %v23429_v50 }
 0x77d   : > { %v11787_v44 = vpop.f32.mrb[37].mxu1  ;;  %v22681_v47 = vpop.f32.mrb[37].mxu0  ;;  %v30251_v22 = vadd.f32 %v29988_v39, %v28714_v62  ;;  %v23565_v17 = vmul.f32 %v30239_v42, %v23431_v1 }
 0x77e   : > { %v23493_v57 = vadd.f32 %v23492_v18, %v23430_v9  ;;  %v23564_v61 = vmul.f32 %v30245_v29, %v23430_v9  ;;  %v23626_v10 = vadd.f32 %v23625_v12, %v23563_v4  ;;  %v30257_v13 = vadd.f32 %v22681_v47, %v11787_v44  ;;  %v38401_v48 = vpop.permute.xlu0 %23318 }
 0x77f   : > { %22921 = vst [vmem:[%s38242_s12 + $0x128] sm:$0xff] %v30251_v22  ;;  %v23433_v54 = vmul.f32 %v30251_v22, %v38329_v56 }
 0x780   : > { %v28717_v58 = vpop.f32.mrb[38].mxu1  ;;  %v29991_v26 = vpop.f32.mrb[38].mxu0  ;;  %v23627_v43 = vadd.f32 %v23626_v10, %v23564_v61  ;;  %22920 = vst [vmem:[%s38242_s12 + $0x120] sm:$0xff] %v30257_v13  ;;  %v23432_v7 = vmul.f32 %v30257_v13, %v38326_v60  ;;  %v23494_v3 = vadd.f32 %v23493_v57, %v23431_v1 }
 0x781   : > { %v11797_v0 = vpop.f32.mrb[39].mxu1  ;;  %v22691_v35 = vpop.f32.mrb[39].mxu0  ;;  %v30263_v11 = vadd.f32 %v29991_v26, %v28717_v58  ;;  %v23567_v59 = vmul.f32 %v30251_v22, %v23433_v54 }
 0x782   : > { %v23495_v32 = vadd.f32 %v23494_v3, %v23432_v7  ;;  %v23566_v2 = vmul.f32 %v30257_v13, %v23432_v7  ;;  %v23628_v6 = vadd.f32 %v23627_v43, %v23565_v17  ;;  %v30269_v14 = vadd.f32 %v22691_v35, %v11797_v0  ;;  %v38413_v22 = vpop.permute.xlu0 %23328  ;;  %v23334_v57 = vpop.permute.xlu1 %23333 }
 0x783   : > { %22923 = vst [vmem:[%s38242_s12 + $0x138] sm:$0xff] %v30263_v11  ;;  %v23435_v24 = vmul.f32 %v30263_v11, %v38343_v53 }
 0x784   : > { %v28720_v36 = vpop.f32.mrb[40].mxu1  ;;  %v29994_v23 = vpop.f32.mrb[40].mxu0  ;;  %v23629_v27 = vadd.f32 %v23628_v6, %v23566_v2  ;;  %22922 = vst [vmem:[%s38242_s12 + $0x130] sm:$0xff] %v30269_v14  ;;  %v23434_v52 = vmul.f32 %v30269_v14, %v38338_v46  ;;  %v23496_v60 = vadd.f32 %v23495_v32, %v23433_v54 }
 0x785   : > { %v11807_v56 = vpop.f32.mrb[41].mxu1  ;;  %v22701_v19 = vpop.f32.mrb[41].mxu0  ;;  %v30275_v20 = vadd.f32 %v29994_v23, %v28720_v36  ;;  %v23569_v50 = vmul.f32 %v30263_v11, %v23435_v24 }
 0x786   : > { %v23497_v49 = vadd.f32 %v23496_v60, %v23434_v52  ;;  %v23568_v37 = vmul.f32 %v30269_v14, %v23434_v52  ;;  %v23630_v34 = vadd.f32 %v23629_v27, %v23567_v59  ;;  %v30281_v31 = vadd.f32 %v22701_v19, %v11807_v56  ;;  %v23339_v52 = vpop.permute.xlu0 %23338  ;;  %v38423_v60 = vpop.permute.xlu1 %23343 }
 0x787   : > { %22925 = vst [vmem:[%s38242_s12 + $0x148] sm:$0xff] %v30275_v20  ;;  %v23437_v55 = vmul.f32 %v30275_v20, %v38355_v28 }
 0x788   : > { %v28723_v40 = vpop.f32.mrb[42].mxu1  ;;  %v29997_v53 = vpop.f32.mrb[42].mxu0  ;;  %v23631_v33 = vadd.f32 %v23630_v34, %v23568_v37  ;;  %22924 = vst [vmem:[%s38242_s12 + $0x140] sm:$0xff] %v30281_v31  ;;  %v23436_v45 = vmul.f32 %v30281_v31, %v38352_v5  ;;  %v23498_v42 = vadd.f32 %v23497_v49, %v23435_v24 }
 0x789   : > { %v11817_v30 = vpop.f32.mrb[43].mxu1  ;;  %v22711_v46 = vpop.f32.mrb[43].mxu0  ;;  %v30287_v15 = vadd.f32 %v29997_v53, %v28723_v40  ;;  %v23571_v44 = vmul.f32 %v30275_v20, %v23437_v55 }
 0x78a   : > { %v23499_v41 = vadd.f32 %v23498_v42, %v23436_v45  ;;  %v23570_v29 = vmul.f32 %v30281_v31, %v23436_v45  ;;  %v23632_v62 = vadd.f32 %v23631_v33, %v23569_v50  ;;  %v30293_v39 = vadd.f32 %v22711_v46, %v11817_v30 }
 0x78b   : > { %22927 = vst [vmem:[%s38242_s12 + $0x158] sm:$0xff] %v30287_v15  ;;  %v23439_v47 = vmul.f32 %v30287_v15, %v38369_v25 }
 0x78c   : > { %v28726_v4 = vpop.f32.mrb[44].mxu1  ;;  %v30000_v1 = vpop.f32.mrb[44].mxu0  ;;  %v23633_v9 = vadd.f32 %v23632_v62, %v23570_v29  ;;  %22926 = vst [vmem:[%s38242_s12 + $0x150] sm:$0xff] %v30293_v39  ;;  %v23438_v18 = vmul.f32 %v30293_v39, %v38365_v8  ;;  %v23500_v5 = vadd.f32 %v23499_v41, %v23437_v55 }
 0x78d   : > { %v11827_v28 = vpop.f32.mrb[45].mxu1  ;;  %v22721_v12 = vpop.f32.mrb[45].mxu0  ;;  %v30299_v61 = vadd.f32 %v30000_v1, %v28726_v4  ;;  %v23573_v25 = vmul.f32 %v30287_v15, %v23439_v47 }
 0x78e   : > { %v23501_v10 = vadd.f32 %v23500_v5, %v23438_v18  ;;  %v23572_v13 = vmul.f32 %v30293_v39, %v23438_v18  ;;  %v23634_v58 = vadd.f32 %v23633_v9, %v23571_v44  ;;  %v30305_v26 = vadd.f32 %v22721_v12, %v11827_v28  ;;  %v23349_v12 = vpop.permute.xlu0 %23348  ;;  %v23354_v9 = vpop.permute.xlu1 %23353 }
 0x78f   : > { %22929 = vst [vmem:[%s38242_s12 + $0x168] sm:$0xff] %v30299_v61  ;;  %v23441_v0 = vmul.f32 %v30299_v61, %v38379_v63 }
 0x790   : > { %v28729_v17 = vpop.f32.mrb[46].mxu1  ;;  %v30003_v54 = vpop.f32.mrb[46].mxu0  ;;  %v23635_v8 = vadd.f32 %v23634_v58, %v23572_v13  ;;  %22928 = vst [vmem:[%s38242_s12 + $0x160] sm:$0xff] %v30305_v26  ;;  %v23440_v7 = vmul.f32 %v30305_v26, %v38377_v38  ;;  %v23502_v3 = vadd.f32 %v23501_v10, %v23439_v47 }
 0x791   : > { %v11837_v35 = vpop.f32.mrb[47].mxu1  ;;  %v22731_v43 = vpop.f32.mrb[47].mxu0  ;;  %v30311_v11 = vadd.f32 %v30003_v54, %v28729_v17  ;;  %v23575_v59 = vmul.f32 %v30299_v61, %v23441_v0 }
 0x792   : > { %v23503_v32 = vadd.f32 %v23502_v3, %v23440_v7  ;;  %v23574_v2 = vmul.f32 %v30305_v26, %v23440_v7  ;;  %v23636_v6 = vadd.f32 %v23635_v8, %v23573_v25  ;;  %v30317_v14 = vadd.f32 %v22731_v43, %v11837_v35 }
 0x793   : > { %22931 = vst [vmem:[%s38242_s12 + $0x178] sm:$0xff] %v30311_v11  ;;  %v23443_v24 = vmul.f32 %v30311_v11, %v38391_v16 }
 0x794   : > { %v28732_v36 = vpop.f32.mrb[48].mxu1  ;;  %v30006_v23 = vpop.f32.mrb[48].mxu0  ;;  %v23637_v19 = vadd.f32 %v23636_v6, %v23574_v2  ;;  %22930 = vst [vmem:[%s38242_s12 + $0x170] sm:$0xff] %v30317_v14  ;;  %v23442_v27 = vmul.f32 %v30317_v14, %v38389_v51  ;;  %v23504_v38 = vadd.f32 %v23503_v32, %v23441_v0 }
 0x795   : > { %v11847_v63 = vpop.f32.mrb[49].mxu1  ;;  %v22741_v56 = vpop.f32.mrb[49].mxu0  ;;  %v30323_v20 = vadd.f32 %v30006_v23, %v28732_v36  ;;  %v23577_v16 = vmul.f32 %v30311_v11, %v23443_v24 }
 0x796   : > { %v23505_v49 = vadd.f32 %v23504_v38, %v23442_v27  ;;  %v23576_v37 = vmul.f32 %v30317_v14, %v23442_v27  ;;  %v23638_v34 = vadd.f32 %v23637_v19, %v23575_v59  ;;  %v30329_v31 = vadd.f32 %v22741_v56, %v11847_v63  ;;  %v23359_v36 = vpop.permute.xlu0 %23358  ;;  %v23364_v23 = vpop.permute.xlu1 %23363 }
 0x797   : > { %22933 = vst [vmem:[%s38242_s12 + $0x188] sm:$0xff] %v30323_v20  ;;  %v23445_v50 = vmul.f32 %v30323_v20, %v38403_v21 }
 0x798   : > { %v28735_v40 = vpop.f32.mrb[50].mxu1  ;;  %v30009_v53 = vpop.f32.mrb[50].mxu0  ;;  %v23639_v51 = vadd.f32 %v23638_v34, %v23576_v37  ;;  %22932 = vst [vmem:[%s38242_s12 + $0x180] sm:$0xff] %v30329_v31  ;;  %v23444_v46 = vmul.f32 %v30329_v31, %v38401_v48  ;;  %v23506_v33 = vadd.f32 %v23505_v49, %v23443_v24 }
 0x799   : > { %v11857_v55 = vpop.f32.mrb[51].mxu1  ;;  %v22751_v30 = vpop.f32.mrb[51].mxu0  ;;  %v30335_v45 = vadd.f32 %v30009_v53, %v28735_v40  ;;  %v23579_v4 = vmul.f32 %v30323_v20, %v23445_v50 }
 0x79a   : > { %v23507_v42 = vadd.f32 %v23506_v33, %v23444_v46  ;;  %v23578_v15 = vmul.f32 %v30329_v31, %v23444_v46  ;;  %v23640_v41 = vadd.f32 %v23639_v51, %v23577_v16  ;;  %v30341_v29 = vadd.f32 %v22751_v30, %v11857_v55  ;;  %v23374_v46 = vpop.permute.xlu1 %23373 }
 0x79b   : > { %22935 = vst [vmem:[%s38242_s12 + $0x198] sm:$0xff] %v30335_v45  ;;  %v23447_v1 = vmul.f32 %v30335_v45, %v23334_v57 }
 0x79c   : > { %v28738_v62 = vpop.f32.mrb[52].mxu1  ;;  %v30012_v39 = vpop.f32.mrb[52].mxu0  ;;  %v23641_v47 = vadd.f32 %v23640_v41, %v23578_v15  ;;  %22934 = vst [vmem:[%s38242_s12 + $0x190] sm:$0xff] %v30341_v29  ;;  %v23446_v28 = vmul.f32 %v30341_v29, %v38413_v22  ;;  %v23508_v48 = vadd.f32 %v23507_v42, %v23445_v50 }
 0x79d   : > { %v11867_v44 = vpop.f32.mrb[53].mxu1  ;;  %v22761_v21 = vpop.f32.mrb[53].mxu0  ;;  %v30347_v18 = vadd.f32 %v30012_v39, %v28738_v62  ;;  %v23581_v57 = vmul.f32 %v30335_v45, %v23447_v1 }
 0x79e   : > { %v23580_v5 = vmul.f32 %v30341_v29, %v23446_v28  ;;  %v30353_v61 = vadd.f32 %v22761_v21, %v11867_v44  ;;  %v23509_v58 = vadd.f32 %v23508_v48, %v23446_v28  ;;  %v23642_v26 = vadd.f32 %v23641_v47, %v23579_v4 }
 0x79f   : > { %22937 = vst [vmem:[%s38242_s12 + $0x1a8] sm:$0xff] %v30347_v18 }
 0x7a0   : > { %v28741_v10 = vpop.f32.mrb[54].mxu1  ;;  %v30015_v13 = vpop.f32.mrb[54].mxu0  ;;  %22936 = vst [vmem:[%s38242_s12 + $0x1a0] sm:$0xff] %v30353_v61  ;;  %v23448_v25 = vmul.f32 %v30353_v61, %v23339_v52  ;;  %v23510_v0 = vadd.f32 %v23509_v58, %v23447_v1  ;;  %v23643_v22 = vadd.f32 %v23642_v26, %v23580_v5 }
 0x7a1   : > { %v11877_v17 = vpop.f32.mrb[55].mxu1  ;;  %v22771_v54 = vpop.f32.mrb[55].mxu0  ;;  %v30359_v35 = vadd.f32 %v30015_v13, %v28741_v10 }
 0x7a2   : > { %v30365_v43 = vadd.f32 %v22771_v54, %v11877_v17  ;;  %v23511_v3 = vadd.f32 %v23510_v0, %v23448_v25  ;;  %v23582_v11 = vmul.f32 %v30353_v61, %v23448_v25  ;;  %v23644_v32 = vadd.f32 %v23643_v22, %v23581_v57  ;;  %v23384_v22 = vpop.permute.xlu1 %23383 }
 0x7a3   : > { %22939 = vst [vmem:[%s38242_s12 + $0x1b8] sm:$0xff] %v30359_v35 }
 0x7a4   : > { %v28744_v8 = vpop.f32.mrb[56].mxu1  ;;  %v30018_v7 = vpop.f32.mrb[56].mxu0  ;;  %22938 = vst [vmem:[%s38242_s12 + $0x1b0] sm:$0xff] %v30365_v43  ;;  %v23645_v14 = vadd.f32 %v23644_v32, %v23582_v11 }
 0x7a5   : > { %v11887_v2 = vpop.f32.mrb[57].mxu1  ;;  %v22781_v6 = vpop.f32.mrb[57].mxu0  ;;  %v30371_v59 = vadd.f32 %v30018_v7, %v28744_v8 }
 0x7a6   : > { %v30377_v24 = vadd.f32 %v22781_v6, %v11887_v2  ;;  %v23001_v19 = vld [vmem:[%s38242_s12 + $0x1a8] sm:$0xff] }
 0x7a7   : > { %22941 = vst [vmem:[%s38242_s12 + $0x1c8] sm:$0xff] %v30371_v59  ;;  %v23449_v52 = vmul.f32 %v38423_v60, %v23001_v19  ;;  %v23369_v60 = vpop.permute.xlu0 %23368 }
 0x7a8   : > { %v28747_v63 = vpop.f32.mrb[58].mxu1  ;;  %v30021_v56 = vpop.f32.mrb[58].mxu0  ;;  %22940 = vst [vmem:[%s38242_s12 + $0x1c0] sm:$0xff] %v30377_v24 }
 0x7a9   : > { %v11897_v27 = vpop.f32.mrb[59].mxu1  ;;  %v22791_v38 = vpop.f32.mrb[59].mxu0  ;;  %v30383_v20 = vadd.f32 %v30021_v56, %v28747_v63  ;;  %v23583_v40 = vmul.f32 %v23449_v52, %v23001_v19  ;;  %v23512_v51 = vadd.f32 %v23511_v3, %v23449_v52 }
 0x7aa   : > { %v30389_v49 = vadd.f32 %v22791_v38, %v11897_v27  ;;  %v23003_v31 = vld [vmem:[%s38242_s12 + $0x1b8] sm:$0xff] }
 0x7ab   : > { %22943 = vst [vmem:[%s38242_s12 + $0x1d8] sm:$0xff] %v30383_v20  ;;  %v23002_v50 = vld [vmem:[%s38242_s12 + $0x1b0] sm:$0xff]  ;;  %v23451_v55 = vmul.f32 %v23354_v9, %v23003_v31  ;;  %v23646_v39 = vadd.f32 %v23645_v14, %v23583_v40  ;;  %v23379_v0 = vpop.permute.xlu0 %23378 }
 0x7ac   : > { %v28750_v37 = vpop.f32.mrb[60].mxu1  ;;  %v30024_v34 = vpop.f32.mrb[60].mxu0  ;;  %22942 = vst [vmem:[%s38242_s12 + $0x1d0] sm:$0xff] %v30389_v49  ;;  %v23450_v30 = vmul.f32 %v23349_v12, %v23002_v50 }
 0x7ad   : > { %v11907_v53 = vpop.f32.mrb[61].mxu1  ;;  %v22801_v16 = vpop.f32.mrb[61].mxu0  ;;  %v30395_v33 = vadd.f32 %v30024_v34, %v28750_v37  ;;  %v23585_v47 = vmul.f32 %v23451_v55, %v23003_v31 }
 0x7ae   : > { %v30401_v45 = vadd.f32 %v22801_v16, %v11907_v53  ;;  %v23005_v41 = vld [vmem:[%s38242_s12 + $0x1c8] sm:$0xff]  ;;  %v23513_v29 = vadd.f32 %v23512_v51, %v23450_v30  ;;  %v23584_v62 = vmul.f32 %v23450_v30, %v23002_v50 }
 0x7af   : > { %22945 = vst [vmem:[%s38242_s12 + $0x1e8] sm:$0xff] %v30395_v33  ;;  %v23004_v44 = vld [vmem:[%s38242_s12 + $0x1c0] sm:$0xff]  ;;  %v23453_v21 = vmul.f32 %v23364_v23, %v23005_v41 }
 0x7b0   : > { %v28753_v42 = vpop.f32.mrb[62].mxu1  ;;  %v30027_v15 = vpop.f32.mrb[62].mxu0  ;;  %22944 = vst [vmem:[%s38242_s12 + $0x1e0] sm:$0xff] %v30401_v45  ;;  %v23452_v28 = vmul.f32 %v23359_v36, %v23004_v44  ;;  %v23514_v48 = vadd.f32 %v23513_v29, %v23451_v55  ;;  %v23647_v12 = vadd.f32 %v23646_v39, %v23584_v62 }
 0x7b1   : > { %v11917_v4 = vpop.f32.mrb[63].mxu1  ;;  %v22811_v1 = vpop.f32.mrb[63].mxu0  ;;  %v30407_v9 = vadd.f32 %v30027_v15, %v28753_v42  ;;  %v23587_v26 = vmul.f32 %v23453_v21, %v23005_v41 }
 0x7b2   : > { %v30413_v18 = vadd.f32 %v22811_v1, %v11917_v4  ;;  %v23007_v5 = vld [vmem:[%s38242_s12 + $0x1d8] sm:$0xff]  ;;  %v23515_v61 = vadd.f32 %v23514_v48, %v23452_v28  ;;  %v23586_v10 = vmul.f32 %v23452_v28, %v23004_v44  ;;  %v23648_v13 = vadd.f32 %v23647_v12, %v23585_v47 }
 0x7b3   : > { %22947 = vst [vmem:[%s38242_s12 + $0x1f8] sm:$0xff] %v30407_v9  ;;  %v23006_v58 = vld [vmem:[%s38242_s12 + $0x1d0] sm:$0xff]  ;;  %v23455_v17 = vmul.f32 %v23374_v46, %v23007_v5 }
 0x7b4   : > { %22946 = vst [vmem:[%s38242_s12 + $0x1f0] sm:$0xff] %v30413_v18  ;;  %v23454_v57 = vmul.f32 %v23369_v60, %v23006_v58  ;;  %v23516_v54 = vadd.f32 %v23515_v61, %v23453_v21  ;;  %v23649_v25 = vadd.f32 %v23648_v13, %v23586_v10 }
 0x7b5   : > { %32095 = shalt.err (!%p32092_p5)
}
 0x7b6   : > { %s32096_s8 = scalar_lea.hbm %s38453_s26, 8192  ;;  %s32100_s11 = scalar_lea.hbm %s38545_s3, 16384 }
 0x7b7   : > { %p32097_p6 = scmp.ne.s32.totalorder %s38453_s26, %s32096_s8  ;;  %p32101_p10 = scmp.lt.u32.totalorder %s38453_s26, %s38545_s3 }
 0x7b8   : > { %p32102_p11 = scmp.lt.u32.totalorder %s32100_s11, %s32096_s8  ;;  %p32104_p13 = scmp.lt.u32.totalorder %s32096_s8, %s38453_s26 }
 0x7b9   : > { %p32098_p7 = pnand %p32097_p6, %p32264_p4 }
 0x7ba   : > { %p32103_p12 = por %p32102_p11, %p32101_p10 }
 0x7bb   : > { %p32099_p9 = pneg %p32098_p7 }
 0x7bc   : > { %p32105_p0 = por %p32104_p13, %p32103_p12 }
 0x7be   : > { %p32106_p1 = pnand %p32105_p0, %p32099_p9 }
 0x7c0   : > { %32109 = shalt.err (!%p32106_p1)
}
 0x7c1   : > { %s32196_s24 = smov 128   ;;  %s32197_s30 = smov 8   ;;  %v23009_v35 = vld [vmem:[%s38242_s12 + $0x1e8] sm:$0xff]  ;;  %v23517_v43 = vadd.f32 %v23516_v54, %v23454_v57  ;;  %v23588_v8 = vmul.f32 %v23454_v57, %v23006_v58  ;;  %v23650_v7 = vadd.f32 %v23649_v25, %v23587_v26  ;;  %v23008_v3 = vld [vmem:[%s38242_s12 + $0x1e0] sm:$0xff]  ;;  %v23589_v6 = vmul.f32 %v23455_v17, %v23007_v5  ;;  %v23011_v36 = vld [vmem:[%s38242_s12 + $0x1f8] sm:$0xff]  ;;  %v23389_v63 = vpop.permute.xlu0 %23388  ;;  %v23394_v56 = vpop.permute.xlu1 %23393 }
 0x7c2   : > { %32015 = dma.vmem_to_hbm [thread:$0]  (%p32264_p4), %s38455_s14, 8192, %s38453_s26, %s23665_s29, %s32196_s24, %s32196_s24, %s32197_s30   ;;  %v23457_v11 = vmul.f32 %v23384_v22, %v23009_v35  ;;  %v23456_v32 = vmul.f32 %v23379_v0, %v23008_v3  ;;  %v23459_v52 = vmul.f32 %v23394_v56, %v23011_v36 }
 0x7c3   : > { %v23518_v2 = vadd.f32 %v23517_v43, %v23455_v17  ;;  %v23651_v14 = vadd.f32 %v23650_v7, %v23588_v8  ;;  %v23010_v19 = vld [vmem:[%s38242_s12 + $0x1f0] sm:$0xff]  ;;  %s23836_s14 = sshll.u32 %s38229_s21, 1  ;;  %s25623_s12 = sshll.u32 %s32184_s18, 5 }
 0x7c4   : > { %v23590_v59 = vmul.f32 %v23456_v32, %v23008_v3  ;;  %v23591_v27 = vmul.f32 %v23457_v11, %v23009_v35  ;;  %v23458_v38 = vmul.f32 %v23389_v63, %v23010_v19  ;;  %v23593_v53 = vmul.f32 %v23459_v52, %v23011_v36  ;;  %s242_s26 = scalar_lea.vmem [#allocation4], %s23836_s14  ;;  %s38494_s7 = scalar_lea.hbm %s38546_s4, %s25623_s12 }
 0x7c5   : > { %v23519_v23 = vadd.f32 %v23518_v2, %v23456_v32  ;;  %v23652_v24 = vadd.f32 %v23651_v14, %v23589_v6  ;;  %s23702_s29 = sshll.u32 %s242_s26, 4  ;;  %s23670_s8 = scalar_lea.sflag [#allocation5], %s38229_s21  ;;  %s38496_s29 = int_to_ptr.vmem [resolvable:$true] %s23702_s29 }
 0x7c6   : > { %v23592_v34 = vmul.f32 %v23458_v38, %v23010_v19  ;;  %s32110_s9 = scalar_lea.vmem %s38496_s29, 32  ;;  %s32198_s18 = smov [#allocation4]  }
 0x7c7   : > { %v23520_v20 = vadd.f32 %v23519_v23, %v23457_v11  ;;  %v23653_v49 = vadd.f32 %v23652_v24, %v23590_v59  ;;  %p32111_p2 = scmp.ne.s32.totalorder %s38496_s29, %s32110_s9  ;;  %s32114_s10 = sshll.u32 %s32198_s18, 4  ;;  %s32115_s10 = int_to_ptr.vmem [resolvable:$false] %s32114_s10 }
 0x7c8   : > { %s32116_s11 = scalar_lea.vmem %s32115_s10, 64  ;;  %p32117_p6 = scmp.lt.s32.totalorder %s38496_s29, %s32115_s10 }
 0x7c9   : > { %v23521_v37 = vadd.f32 %v23520_v20, %v23458_v38  ;;  %v23654_v31 = vadd.f32 %v23653_v49, %v23591_v27  ;;  %p32112_p3 = pnand %p32111_p2, %p32264_p4  ;;  %p32118_p7 = scmp.lt.s32.totalorder %s32116_s11, %s32110_s9 }
 0x7cb   : > { %v23522_v40 = vadd.f32 %v23521_v37, %v23459_v52  ;;  %v23655_v16 = vadd.f32 %v23654_v31, %v23592_v34  ;;  %p32113_p5 = pneg %p32112_p3  ;;  %p32119_p9 = por %p32118_p7, %p32117_p6 }
 0x7cd   : > { %v23523_v50 = vrot.slane %v23522_v40, 4  ;;  %v23656_v55 = vadd.f32 %v23655_v16, %v23593_v53  ;;  %p32120_p10 = pnand %p32119_p9, %p32113_p5 }
 0x7cf   : > { %v23524_v30 = vadd.f32 %v23523_v50, %v23522_v40  ;;  %v23657_v51 = vrot.slane %v23656_v55, 4 }
 0x7d1   : > { %v23525_v60 = vrot.slane %v23524_v30, 2  ;;  %v23658_v46 = vadd.f32 %v23657_v51, %v23656_v55 }
 0x7d3   : > { %v23526_v33 = vadd.f32 %v23525_v60, %v23524_v30  ;;  %v23659_v45 = vrot.slane %v23658_v46, 2 }
 0x7d5   : > { %v23527_v42 = vrot.slane %v23526_v33, 1  ;;  %v23660_v15 = vadd.f32 %v23659_v45, %v23658_v46 }
 0x7d7   : > { %v23528_v41 = vadd.f32 %v23527_v42, %v23526_v33  ;;  %v23661_v29 = vrot.slane %v23660_v15, 1 }
 0x7d9   : > { %23529 = vst [vmem:[%s242_s26] sm:$0x1] %v23528_v41  ;;  %v23662_v62 = vadd.f32 %v23661_v29, %v23660_v15 }
 0x7db   : > { %23663 = vst [vmem:[%s242_s26 + $0x1] sm:$0x1] %v23662_v62 }
 0x7dc   : > { %32123 = shalt.err (!%p32120_p10)
}
 0x7dd   : > { %s32124_s21 = scalar_lea.hbm %s38494_s7, 32  ;;  %s32128_s24 = scalar_lea.hbm %s38546_s4, 64 }
 0x7de   : > { %p32125_p11 = scmp.ne.s32.totalorder %s38494_s7, %s32124_s21  ;;  %p32129_p0 = scmp.lt.u32.totalorder %s38494_s7, %s38546_s4 }
 0x7df   : > { %p32130_p1 = scmp.lt.u32.totalorder %s32128_s24, %s32124_s21  ;;  %p32132_p3 = scmp.lt.u32.totalorder %s32124_s21, %s38494_s7 }
 0x7e0   : > { %p32126_p12 = pnand %p32125_p11, %p32264_p4 }
 0x7e1   : > { %p32131_p2 = por %p32130_p1, %p32129_p0 }
 0x7e2   : > { %p32127_p13 = pneg %p32126_p12 }
 0x7e3   : > { %p32133_p5 = por %p32132_p3, %p32131_p2 }
 0x7e5   : > { %p32134_p6 = pnand %p32133_p5, %p32127_p13 }
 0x7e7   : > { %32137 = shalt.err (!%p32134_p6)
}
 0x7e8   : > { %32016 = dma.vmem_to_hbm [thread:$0]  (%p32264_p4), %s38496_s29, 32, %s38494_s7, %s23670_s8  }
 0x7e9 PF: > { %p32026_p7 = scmp.ge.s32.totalorder %s32192_s20, 2  ;;  %s23714_s12 = sand.u32 1, %s32172_s15  }
 0x7ea   : > { %s23715_s26 = scalar_lea.sflag [#allocation3], %s23714_s12 }
 0x7eb   : > { %p32020_p9 = pnand %p32026_p7, %p32271_p8 }
 0x7ed   : > { %32163 = dma.done.wait (!%p32020_p9), %s23715_s26, 8192  }
 0x7ee   : > { %32165 = vsyncadd (!%p32020_p9), %s23715_s26, 4294959104  ;;  %s23724_s5 = scalar_lea.sflag [#allocation5], %s23714_s12 }
 0x7ef   : > { %32167 = dma.done.wait (!%p32020_p9), %s23724_s5, 32  }
 0x7f0   : > { %32169 = vsyncadd (!%p32020_p9), %s23724_s5, 4294967264  ;;  %s21_s20 = sadd.s32 1, %s32192_s20   ;;  %s39341_s15 = smov %s32176_s16 }
 0x7f1   : > { %p18_p10 = scmp.ge.s32.totalorder %s21_s20, 4   ;;  %s39342_s16 = smov %s32180_s17 }
 0x7f2   : > { %s39343_s17 = smov %s32277_s28  ;;  %s39344_s18 = smov %s32188_s19 }
 0x7f3   : > { %s39345_s19 = smov %s39347_s23  ;;  %20 = sbr.rel (!%p18_p10) target bundleno = 6 (0x6), region = 113 }
 0x7fa   :  { %23729 = vsyncpa [#allocation3], 1 }
 0x7fb   :  { %23731 = vsyncpa [#allocation3 + $0x1], 1 }
 0x7fc   :  { %23732 = vsyncpa [#allocation5], 1 }
 0x7fd   :  { %23734 = vsyncpa [#allocation5 + $0x1], 1 }

</bundles_post_ra>
